<compile_context>
chip_gen: v6e
topology: v6e:2x2x1
jax: 0.10.0
libtpu: 0.0.40
codegen_flags: <defaults>
</compile_context>

<pallas_src>
import jax
import jax.numpy as jnp
import numpy as np
from jax.experimental import pallas as pl
from jax.experimental.pallas import tpu as pltpu

EPS = 1e-5                       # nn.BatchNorm2d default eps
LABEL_NUM = 4
HIGH = jax.lax.Precision.HIGHEST


# ------------------------------ fused kernel --------------------------------

def _fused_forward_kernel(x_ref,
                          s1_ref, w1_ref, g1_ref, b1_ref,
                          s2_ref, w2_ref, g2_ref, b2_ref,
                          s3_ref, w3_ref, g3_ref, b3_ref,
                          s4_ref, w4_ref, g4_ref, b4_ref,
                          s5_ref, w5_ref, bias5_ref,
                          rsel_ref, wl_ref, lb_ref,
                          o_ref):
    """Whole SpeakerClassifier forward; everything stays in VMEM/vregs."""

    def conv_taps(h, s_ref, w_ref):
        # z = sum_k (S_k @ h) @ W_k      (all 2-D f32 MXU matmuls)
        z = None
        for k in range(s_ref.shape[0]):
            patch = jnp.dot(s_ref[k], h, precision=HIGH,
                            preferred_element_type=jnp.float32)
            term = jnp.dot(patch, w_ref[k], precision=HIGH,
                           preferred_element_type=jnp.float32)
            z = term if z is None else z + term
        return z

    def gated_block(h, s_ref, w_ref, gamma_ref, beta_ref):
        # main + gate convolutions share one combined weight -> (rows, 2*Cout)
        z = conv_taps(h, s_ref, w_ref)
        # training-mode BatchNorm (biased batch stats over rows), single pass
        inv_n = 1.0 / z.shape[0]
        mean = jnp.sum(z, axis=0, keepdims=True) * inv_n
        msq = jnp.sum(z * z, axis=0, keepdims=True) * inv_n
        var = msq - mean * mean
        zn = (z - mean) * jax.lax.rsqrt(var + EPS) * gamma_ref[...] + beta_ref[...]
        cout = zn.shape[1] // 2
        return zn[:, :cout] * jax.nn.sigmoid(zn[:, cout:])

    h = x_ref[...]
    h = gated_block(h, s1_ref, w1_ref, g1_ref, b1_ref)
    h = gated_block(h, s2_ref, w2_ref, g2_ref, b2_ref)
    h = gated_block(h, s3_ref, w3_ref, g3_ref, b3_ref)
    h = gated_block(h, s4_ref, w4_ref, g4_ref, b4_ref)

    # conv_classify (bias kept: no BN follows)
    logits = conv_taps(h, s5_ref, w5_ref) + bias5_ref[...]

    # NCHW flatten + nn.Linear(8, 4), folded into selection matmuls:
    #   out[b, :] = lb + sum_p (R_p @ logits) @ Wl_p
    out = lb_ref[...]
    for p in range(rsel_ref.shape[0]):
        picked = jnp.dot(rsel_ref[p], logits, precision=HIGH,
                         preferred_element_type=jnp.float32)
        out = out + jnp.dot(picked, wl_ref[p], precision=HIGH,
                            preferred_element_type=jnp.float32)
    o_ref[...] = out


# --------------------------- parameter packing -------------------------------

def _make_tap_selectors(B, H, W_in, K, stride, pad):
    """Per-tap 0/1 row-selection matrices for a (1,K) conv on (b,h,w)-major rows."""
    W_out = (W_in + 2 * pad - K) // stride + 1
    G = B * H
    S = np.zeros((K, G * W_out, G * W_in), np.float32)
    for g in range(G):
        for wo in range(W_out):
            for k in range(K):
                wi = stride * wo - pad + k
                if 0 <= wi < W_in:
                    S[k, g * W_out + wo, g * W_in + wi] = 1.0
    keep = [k for k in range(K) if S[k].any()]   # drop taps that only see padding
    return jnp.asarray(S[keep]), keep, W_out


def pack_operands(params, B, H, W):
    """One-time prep: selection matrices + matmul-ready (pre-transposed) weights."""
    ops = []
    W_cur = W
    for i in range(1, 5):
        wm, _bm, gm, betam, wg, _bg, gg, betag = params[f'layer{i}']
        cout = wm.shape[0]
        K = wm.shape[3]
        S, keep, W_out = _make_tap_selectors(B, H, W_cur, K, stride=2, pad=1)
        # combined per-tap weight (Cin, 2*Cout): [main | gate]; conv biases dropped
        Wc = jnp.stack(
            [jnp.concatenate([wm[:, :, 0, k].T, wg[:, :, 0, k].T], axis=1)
             for k in keep], axis=0)
        gamma = jnp.concatenate([gm, gg]).reshape(1, 2 * cout)
        beta = jnp.concatenate([betam, betag]).reshape(1, 2 * cout)
        ops += [S, Wc, gamma, beta]
        W_cur = W_out

    # conv_classify: (1,3) conv, stride 1, pad 1
    w5 = params['conv_classify_w']
    b5 = params['conv_classify_b']
    cout5, K5 = w5.shape[0], w5.shape[3]
    S5, keep5, W_out5 = _make_tap_selectors(B, H, W_cur, K5, stride=1, pad=1)
    W5 = jnp.stack([w5[:, :, 0, k].T for k in keep5], axis=0)
    ops += [S5, W5, b5.reshape(1, cout5)]

    # NCHW flatten + Linear folded into selection matmuls
    HWf = H * W_out5
    lw, lb = params['linear_w'], params['linear_b']
    R = np.zeros((HWf, B, B * HWf), np.float32)
    for p in range(HWf):
        for b in range(B):
            R[p, b, b * HWf + p] = 1.0
    # Wl[p, c, j] = lw[j, c*HWf + p]  (matches torch .view(B,-1) channel-major order)
    Wl = jnp.transpose(lw.reshape(LABEL_NUM, cout5, HWf), (2, 1, 0))
    ops += [jnp.asarray(R), Wl, lb.reshape(1, LABEL_NUM)]
    return tuple(ops)


# -------------------------------- wrapper ------------------------------------

def speaker_classifier_forward(packed, x_nchw):
    B, C, H, W = x_nchw.shape
    # single entry-point layout change: NCHW -> channels-last (rows, C)
    x2d = x_nchw.transpose(0, 2, 3, 1).reshape(B * H * W, C)
    vmem = pl.BlockSpec(memory_space=pltpu.MemorySpace.VMEM)
    return pl.pallas_call(
        _fused_forward_kernel,
        out_shape=jax.ShapeDtypeStruct((B, LABEL_NUM), jnp.float32),
        in_specs=[vmem] * (1 + len(packed)),
        out_specs=vmem,
    )(x2d, *packed)


# --------------------------- deterministic params ----------------------------

def init_params(key):
    specs = [(16, 8), (32, 16), (32, 32), (16, 32)]   # (Cout, Cin) per gated layer
    params = {}
    keys = jax.random.split(key, 32)
    ki = 0
    for i, (cout, cin) in enumerate(specs, start=1):
        wm = 0.1 * jax.random.normal(keys[ki], (cout, cin, 1, 4), jnp.float32); ki += 1
        bm = 0.1 * jax.random.normal(keys[ki], (cout,), jnp.float32); ki += 1
        wg = 0.1 * jax.random.normal(keys[ki], (cout, cin, 1, 4), jnp.float32); ki += 1
        bg = 0.1 * jax.random.normal(keys[ki], (cout,), jnp.float32); ki += 1
        gm = jnp.ones((cout,), jnp.float32); betam = jnp.zeros((cout,), jnp.float32)
        gg = jnp.ones((cout,), jnp.float32); betag = jnp.zeros((cout,), jnp.float32)
        params[f'layer{i}'] = (wm, bm, gm, betam, wg, bg, gg, betag)
    params['conv_classify_w'] = 0.1 * jax.random.normal(keys[ki], (4, 16, 1, 3), jnp.float32); ki += 1
    params['conv_classify_b'] = 0.1 * jax.random.normal(keys[ki], (4,), jnp.float32); ki += 1
    params['linear_w'] = 0.1 * jax.random.normal(keys[ki], (4, 8), jnp.float32); ki += 1
    params['linear_b'] = 0.1 * jax.random.normal(keys[ki], (4,), jnp.float32); ki += 1
    return params


# ----------------------------- pure-JAX reference ----------------------------

def _ref_conv(x, w, b, stride, pad):
    out = jax.lax.conv_general_dilated(
        x, w, window_strides=(1, stride), padding=((0, 0), (pad, pad)),
        dimension_numbers=('NCHW', 'OIHW', 'NCHW'), precision=HIGH)
    return out + b.reshape(1, -1, 1, 1)


def _ref_bn(x, gamma, beta):
    mu = x.mean(axis=(0, 2, 3), keepdims=True)
    var = ((x - mu) ** 2).mean(axis=(0, 2, 3), keepdims=True)
    return (x - mu) * jax.lax.rsqrt(var + EPS) * gamma.reshape(1, -1, 1, 1) \
        + beta.reshape(1, -1, 1, 1)


def ref_forward(params, x):
    h = x
    for i in range(1, 5):
        wm, bm, gm, betam, wg, bg, gg, betag = params[f'layer{i}']
        y = _ref_bn(_ref_conv(h, wm, bm, 2, 1), gm, betam)
        g = _ref_bn(_ref_conv(h, wg, bg, 2, 1), gg, betag)
        h = y * jax.nn.sigmoid(g)
    logits = _ref_conv(h, params['conv_classify_w'], params['conv_classify_b'], 1, 1)
    logits = logits.reshape(logits.shape[0], -1)
    return jnp.dot(logits, params['linear_w'].T, precision=HIGH) + params['linear_b']


# ----------------------------------- main ------------------------------------

if __name__ == "__main__":
    key = jax.random.PRNGKey(0)
    pk, xk = jax.random.split(key)
    params = init_params(pk)
    # (B, C, H, W) = (2, 8, 2, 16): W halves 4x -> 1, so 4 ch * H * W_final = 8,
    # matching nn.Linear(8, 4) exactly as the PyTorch forward implies.
    x = jax.random.normal(xk, (2, 8, 2, 16), jnp.float32)

    packed = pack_operands(params, 2, 2, 16)           # one-time weight prep
    fwd = jax.jit(speaker_classifier_forward)

    out = jax.block_until_ready(fwd(packed, x))
    assert out.shape == (2, 4)

    ref = ref_forward(params, x)
    np.testing.assert_allclose(np.asarray(out), np.asarray(ref),
                               rtol=1e-4, atol=1e-4)
    print("KERNEL_OK")
</pallas_src>

<mosaic_0001>
module attributes {stable_mosaic.version = 11 : i64} {
  func.func @_fused_forward_kernel(%arg0: memref<64x8xf32, #tpu.memory_space<vmem>>, %arg1: memref<4x32x64xf32, #tpu.memory_space<vmem>>, %arg2: memref<4x8x32xf32, #tpu.memory_space<vmem>>, %arg3: memref<1x32xf32, #tpu.memory_space<vmem>>, %arg4: memref<1x32xf32, #tpu.memory_space<vmem>>, %arg5: memref<4x16x32xf32, #tpu.memory_space<vmem>>, %arg6: memref<4x16x64xf32, #tpu.memory_space<vmem>>, %arg7: memref<1x64xf32, #tpu.memory_space<vmem>>, %arg8: memref<1x64xf32, #tpu.memory_space<vmem>>, %arg9: memref<4x8x16xf32, #tpu.memory_space<vmem>>, %arg10: memref<4x32x64xf32, #tpu.memory_space<vmem>>, %arg11: memref<1x64xf32, #tpu.memory_space<vmem>>, %arg12: memref<1x64xf32, #tpu.memory_space<vmem>>, %arg13: memref<2x4x8xf32, #tpu.memory_space<vmem>>, %arg14: memref<2x32x32xf32, #tpu.memory_space<vmem>>, %arg15: memref<1x32xf32, #tpu.memory_space<vmem>>, %arg16: memref<1x32xf32, #tpu.memory_space<vmem>>, %arg17: memref<1x4x4xf32, #tpu.memory_space<vmem>>, %arg18: memref<1x16x4xf32, #tpu.memory_space<vmem>>, %arg19: memref<1x4xf32, #tpu.memory_space<vmem>>, %arg20: memref<2x2x4xf32, #tpu.memory_space<vmem>>, %arg21: memref<2x4x4xf32, #tpu.memory_space<vmem>>, %arg22: memref<1x4xf32, #tpu.memory_space<vmem>>, %arg23: memref<2x4xf32, #tpu.memory_space<vmem>>) attributes {dimension_semantics = [], scalar_prefetch = 0 : i64, scratch_operands = 0 : i64, tpu.core_type = #tpu.core_type<tc>} {
    %c0 = arith.constant 0 : index
    %c0_0 = arith.constant 0 : index
    %0 = vector.load %arg0[%c0, %c0_0] : memref<64x8xf32, #tpu.memory_space<vmem>>, vector<64x8xf32>
    %c0_1 = arith.constant 0 : index
    %c0_2 = arith.constant 0 : index
    %c0_3 = arith.constant 0 : index
    %1 = vector.load %arg1[%c0_1, %c0_2, %c0_3] : memref<4x32x64xf32, #tpu.memory_space<vmem>>, vector<1x32x64xf32>
    %2 = vector.shape_cast %1 : vector<1x32x64xf32> to vector<32x64xf32>
    %cst = arith.constant dense<0.000000e+00> : vector<32x8xf32>
    %3 = tpu.matmul %2, %0, %cst {dimension_numbers = #tpu.dot_dimension_numbers<[1], [0], [0], [1], [0, 0, 1, 1], [], []>, precision = #tpu.contract_precision<fp32>} : vector<32x64xf32>, vector<64x8xf32>, vector<32x8xf32> -> vector<32x8xf32>
    %c0_4 = arith.constant 0 : index
    %c0_5 = arith.constant 0 : index
    %c0_6 = arith.constant 0 : index
    %4 = vector.load %arg2[%c0_4, %c0_5, %c0_6] : memref<4x8x32xf32, #tpu.memory_space<vmem>>, vector<1x8x32xf32>
    %5 = vector.shape_cast %4 : vector<1x8x32xf32> to vector<8x32xf32>
    %cst_7 = arith.constant dense<0.000000e+00> : vector<32x32xf32>
    %6 = tpu.matmul %3, %5, %cst_7 {dimension_numbers = #tpu.dot_dimension_numbers<[1], [0], [0], [1], [0, 0, 1, 1], [], []>, precision = #tpu.contract_precision<fp32>} : vector<32x8xf32>, vector<8x32xf32>, vector<32x32xf32> -> vector<32x32xf32>
    %c1 = arith.constant 1 : index
    %c0_8 = arith.constant 0 : index
    %c0_9 = arith.constant 0 : index
    %7 = vector.load %arg1[%c1, %c0_8, %c0_9] : memref<4x32x64xf32, #tpu.memory_space<vmem>>, vector<1x32x64xf32>
    %8 = vector.shape_cast %7 : vector<1x32x64xf32> to vector<32x64xf32>
    %cst_10 = arith.constant dense<0.000000e+00> : vector<32x8xf32>
    %9 = tpu.matmul %8, %0, %cst_10 {dimension_numbers = #tpu.dot_dimension_numbers<[1], [0], [0], [1], [0, 0, 1, 1], [], []>, precision = #tpu.contract_precision<fp32>} : vector<32x64xf32>, vector<64x8xf32>, vector<32x8xf32> -> vector<32x8xf32>
    %c1_11 = arith.constant 1 : index
    %c0_12 = arith.constant 0 : index
    %c0_13 = arith.constant 0 : index
    %10 = vector.load %arg2[%c1_11, %c0_12, %c0_13] : memref<4x8x32xf32, #tpu.memory_space<vmem>>, vector<1x8x32xf32>
    %11 = vector.shape_cast %10 : vector<1x8x32xf32> to vector<8x32xf32>
    %cst_14 = arith.constant dense<0.000000e+00> : vector<32x32xf32>
    %12 = tpu.matmul %9, %11, %cst_14 {dimension_numbers = #tpu.dot_dimension_numbers<[1], [0], [0], [1], [0, 0, 1, 1], [], []>, precision = #tpu.contract_precision<fp32>} : vector<32x8xf32>, vector<8x32xf32>, vector<32x32xf32> -> vector<32x32xf32>
    %13 = arith.addf %6, %12 : vector<32x32xf32>
    %c2 = arith.constant 2 : index
    %c0_15 = arith.constant 0 : index
    %c0_16 = arith.constant 0 : index
    %14 = vector.load %arg1[%c2, %c0_15, %c0_16] : memref<4x32x64xf32, #tpu.memory_space<vmem>>, vector<1x32x64xf32>
    %15 = vector.shape_cast %14 : vector<1x32x64xf32> to vector<32x64xf32>
    %cst_17 = arith.constant dense<0.000000e+00> : vector<32x8xf32>
    %16 = tpu.matmul %15, %0, %cst_17 {dimension_numbers = #tpu.dot_dimension_numbers<[1], [0], [0], [1], [0, 0, 1, 1], [], []>, precision = #tpu.contract_precision<fp32>} : vector<32x64xf32>, vector<64x8xf32>, vector<32x8xf32> -> vector<32x8xf32>
    %c2_18 = arith.constant 2 : index
    %c0_19 = arith.constant 0 : index
    %c0_20 = arith.constant 0 : index
    %17 = vector.load %arg2[%c2_18, %c0_19, %c0_20] : memref<4x8x32xf32, #tpu.memory_space<vmem>>, vector<1x8x32xf32>
    %18 = vector.shape_cast %17 : vector<1x8x32xf32> to vector<8x32xf32>
    %cst_21 = arith.constant dense<0.000000e+00> : vector<32x32xf32>
    %19 = tpu.matmul %16, %18, %cst_21 {dimension_numbers = #tpu.dot_dimension_numbers<[1], [0], [0], [1], [0, 0, 1, 1], [], []>, precision = #tpu.contract_precision<fp32>} : vector<32x8xf32>, vector<8x32xf32>, vector<32x32xf32> -> vector<32x32xf32>
    %20 = arith.addf %13, %19 : vector<32x32xf32>
    %c3 = arith.constant 3 : index
    %c0_22 = arith.constant 0 : index
    %c0_23 = arith.constant 0 : index
    %21 = vector.load %arg1[%c3, %c0_22, %c0_23] : memref<4x32x64xf32, #tpu.memory_space<vmem>>, vector<1x32x64xf32>
    %22 = vector.shape_cast %21 : vector<1x32x64xf32> to vector<32x64xf32>
    %cst_24 = arith.constant dense<0.000000e+00> : vector<32x8xf32>
    %23 = tpu.matmul %22, %0, %cst_24 {dimension_numbers = #tpu.dot_dimension_numbers<[1], [0], [0], [1], [0, 0, 1, 1], [], []>, precision = #tpu.contract_precision<fp32>} : vector<32x64xf32>, vector<64x8xf32>, vector<32x8xf32> -> vector<32x8xf32>
    %c3_25 = arith.constant 3 : index
    %c0_26 = arith.constant 0 : index
    %c0_27 = arith.constant 0 : index
    %24 = vector.load %arg2[%c3_25, %c0_26, %c0_27] : memref<4x8x32xf32, #tpu.memory_space<vmem>>, vector<1x8x32xf32>
    %25 = vector.shape_cast %24 : vector<1x8x32xf32> to vector<8x32xf32>
    %cst_28 = arith.constant dense<0.000000e+00> : vector<32x32xf32>
    %26 = tpu.matmul %23, %25, %cst_28 {dimension_numbers = #tpu.dot_dimension_numbers<[1], [0], [0], [1], [0, 0, 1, 1], [], []>, precision = #tpu.contract_precision<fp32>} : vector<32x8xf32>, vector<8x32xf32>, vector<32x32xf32> -> vector<32x32xf32>
    %27 = arith.addf %20, %26 : vector<32x32xf32>
    %cst_29 = arith.constant dense<0.000000e+00> : vector<32xf32>
    %28 = vector.multi_reduction <add>, %27, %cst_29 [0] : vector<32x32xf32> to vector<32xf32>
    %29 = vector.shape_cast %28 : vector<32xf32> to vector<1x32xf32>
    %cst_30 = arith.constant 3.125000e-02 : f32
    %30 = vector.broadcast %cst_30 : f32 to vector<1x32xf32>
    %31 = arith.mulf %29, %30 : vector<1x32xf32>
    %32 = arith.mulf %27, %27 : vector<32x32xf32>
    %cst_31 = arith.constant dense<0.000000e+00> : vector<32xf32>
    %33 = vector.multi_reduction <add>, %32, %cst_31 [0] : vector<32x32xf32> to vector<32xf32>
    %34 = vector.shape_cast %33 : vector<32xf32> to vector<1x32xf32>
    %cst_32 = arith.constant 3.125000e-02 : f32
    %35 = vector.broadcast %cst_32 : f32 to vector<1x32xf32>
    %36 = arith.mulf %34, %35 : vector<1x32xf32>
    %37 = arith.mulf %31, %31 : vector<1x32xf32>
    %38 = arith.subf %36, %37 : vector<1x32xf32>
    %39 = vector.broadcast %31 : vector<1x32xf32> to vector<32x32xf32>
    %40 = arith.subf %27, %39 : vector<32x32xf32>
    %cst_33 = arith.constant 9.99999974E-6 : f32
    %41 = vector.broadcast %cst_33 : f32 to vector<1x32xf32>
    %42 = arith.addf %38, %41 : vector<1x32xf32>
    %43 = math.rsqrt %42 : vector<1x32xf32>
    %44 = vector.broadcast %43 : vector<1x32xf32> to vector<32x32xf32>
    %45 = arith.mulf %40, %44 : vector<32x32xf32>
    %c0_34 = arith.constant 0 : index
    %c0_35 = arith.constant 0 : index
    %46 = vector.load %arg3[%c0_34, %c0_35] : memref<1x32xf32, #tpu.memory_space<vmem>>, vector<1x32xf32>
    %47 = vector.broadcast %46 : vector<1x32xf32> to vector<32x32xf32>
    %48 = arith.mulf %45, %47 : vector<32x32xf32>
    %c0_36 = arith.constant 0 : index
    %c0_37 = arith.constant 0 : index
    %49 = vector.load %arg4[%c0_36, %c0_37] : memref<1x32xf32, #tpu.memory_space<vmem>>, vector<1x32xf32>
    %50 = vector.broadcast %49 : vector<1x32xf32> to vector<32x32xf32>
    %51 = arith.addf %48, %50 : vector<32x32xf32>
    %52 = vector.extract_strided_slice %51 {offsets = [0, 0], sizes = [32, 16], strides = [1, 1]} : vector<32x32xf32> to vector<32x16xf32>
    %53 = vector.extract_strided_slice %51 {offsets = [0, 16], sizes = [32, 16], strides = [1, 1]} : vector<32x32xf32> to vector<32x16xf32>
    %54 = arith.negf %53 : vector<32x16xf32>
    %55 = math.exp %54 : vector<32x16xf32>
    %cst_38 = arith.constant 1.000000e+00 : f32
    %56 = vector.broadcast %cst_38 : f32 to vector<32x16xf32>
    %57 = arith.addf %56, %55 : vector<32x16xf32>
    %58 = arith.divf %56, %57 : vector<32x16xf32>
    %59 = arith.mulf %52, %58 : vector<32x16xf32>
    %c0_39 = arith.constant 0 : index
    %c0_40 = arith.constant 0 : index
    %c0_41 = arith.constant 0 : index
    %60 = vector.load %arg5[%c0_39, %c0_40, %c0_41] : memref<4x16x32xf32, #tpu.memory_space<vmem>>, vector<1x16x32xf32>
    %61 = vector.shape_cast %60 : vector<1x16x32xf32> to vector<16x32xf32>
    %cst_42 = arith.constant dense<0.000000e+00> : vector<16x16xf32>
    %62 = tpu.matmul %61, %59, %cst_42 {dimension_numbers = #tpu.dot_dimension_numbers<[1], [0], [0], [1], [0, 0, 1, 1], [], []>, precision = #tpu.contract_precision<fp32>} : vector<16x32xf32>, vector<32x16xf32>, vector<16x16xf32> -> vector<16x16xf32>
    %c0_43 = arith.constant 0 : index
    %c0_44 = arith.constant 0 : index
    %c0_45 = arith.constant 0 : index
    %63 = vector.load %arg6[%c0_43, %c0_44, %c0_45] : memref<4x16x64xf32, #tpu.memory_space<vmem>>, vector<1x16x64xf32>
    %64 = vector.shape_cast %63 : vector<1x16x64xf32> to vector<16x64xf32>
    %cst_46 = arith.constant dense<0.000000e+00> : vector<16x64xf32>
    %65 = tpu.matmul %62, %64, %cst_46 {dimension_numbers = #tpu.dot_dimension_numbers<[1], [0], [0], [1], [0, 0, 1, 1], [], []>, precision = #tpu.contract_precision<fp32>} : vector<16x16xf32>, vector<16x64xf32>, vector<16x64xf32> -> vector<16x64xf32>
    %c1_47 = arith.constant 1 : index
    %c0_48 = arith.constant 0 : index
    %c0_49 = arith.constant 0 : index
    %66 = vector.load %arg5[%c1_47, %c0_48, %c0_49] : memref<4x16x32xf32, #tpu.memory_space<vmem>>, vector<1x16x32xf32>
    %67 = vector.shape_cast %66 : vector<1x16x32xf32> to vector<16x32xf32>
    %cst_50 = arith.constant dense<0.000000e+00> : vector<16x16xf32>
    %68 = tpu.matmul %67, %59, %cst_50 {dimension_numbers = #tpu.dot_dimension_numbers<[1], [0], [0], [1], [0, 0, 1, 1], [], []>, precision = #tpu.contract_precision<fp32>} : vector<16x32xf32>, vector<32x16xf32>, vector<16x16xf32> -> vector<16x16xf32>
    %c1_51 = arith.constant 1 : index
    %c0_52 = arith.constant 0 : index
    %c0_53 = arith.constant 0 : index
    %69 = vector.load %arg6[%c1_51, %c0_52, %c0_53] : memref<4x16x64xf32, #tpu.memory_space<vmem>>, vector<1x16x64xf32>
    %70 = vector.shape_cast %69 : vector<1x16x64xf32> to vector<16x64xf32>
    %cst_54 = arith.constant dense<0.000000e+00> : vector<16x64xf32>
    %71 = tpu.matmul %68, %70, %cst_54 {dimension_numbers = #tpu.dot_dimension_numbers<[1], [0], [0], [1], [0, 0, 1, 1], [], []>, precision = #tpu.contract_precision<fp32>} : vector<16x16xf32>, vector<16x64xf32>, vector<16x64xf32> -> vector<16x64xf32>
    %72 = arith.addf %65, %71 : vector<16x64xf32>
    %c2_55 = arith.constant 2 : index
    %c0_56 = arith.constant 0 : index
    %c0_57 = arith.constant 0 : index
    %73 = vector.load %arg5[%c2_55, %c0_56, %c0_57] : memref<4x16x32xf32, #tpu.memory_space<vmem>>, vector<1x16x32xf32>
    %74 = vector.shape_cast %73 : vector<1x16x32xf32> to vector<16x32xf32>
    %cst_58 = arith.constant dense<0.000000e+00> : vector<16x16xf32>
    %75 = tpu.matmul %74, %59, %cst_58 {dimension_numbers = #tpu.dot_dimension_numbers<[1], [0], [0], [1], [0, 0, 1, 1], [], []>, precision = #tpu.contract_precision<fp32>} : vector<16x32xf32>, vector<32x16xf32>, vector<16x16xf32> -> vector<16x16xf32>
    %c2_59 = arith.constant 2 : index
    %c0_60 = arith.constant 0 : index
    %c0_61 = arith.constant 0 : index
    %76 = vector.load %arg6[%c2_59, %c0_60, %c0_61] : memref<4x16x64xf32, #tpu.memory_space<vmem>>, vector<1x16x64xf32>
    %77 = vector.shape_cast %76 : vector<1x16x64xf32> to vector<16x64xf32>
    %cst_62 = arith.constant dense<0.000000e+00> : vector<16x64xf32>
    %78 = tpu.matmul %75, %77, %cst_62 {dimension_numbers = #tpu.dot_dimension_numbers<[1], [0], [0], [1], [0, 0, 1, 1], [], []>, precision = #tpu.contract_precision<fp32>} : vector<16x16xf32>, vector<16x64xf32>, vector<16x64xf32> -> vector<16x64xf32>
    %79 = arith.addf %72, %78 : vector<16x64xf32>
    %c3_63 = arith.constant 3 : index
    %c0_64 = arith.constant 0 : index
    %c0_65 = arith.constant 0 : index
    %80 = vector.load %arg5[%c3_63, %c0_64, %c0_65] : memref<4x16x32xf32, #tpu.memory_space<vmem>>, vector<1x16x32xf32>
    %81 = vector.shape_cast %80 : vector<1x16x32xf32> to vector<16x32xf32>
    %cst_66 = arith.constant dense<0.000000e+00> : vector<16x16xf32>
    %82 = tpu.matmul %81, %59, %cst_66 {dimension_numbers = #tpu.dot_dimension_numbers<[1], [0], [0], [1], [0, 0, 1, 1], [], []>, precision = #tpu.contract_precision<fp32>} : vector<16x32xf32>, vector<32x16xf32>, vector<16x16xf32> -> vector<16x16xf32>
    %c3_67 = arith.constant 3 : index
    %c0_68 = arith.constant 0 : index
    %c0_69 = arith.constant 0 : index
    %83 = vector.load %arg6[%c3_67, %c0_68, %c0_69] : memref<4x16x64xf32, #tpu.memory_space<vmem>>, vector<1x16x64xf32>
    %84 = vector.shape_cast %83 : vector<1x16x64xf32> to vector<16x64xf32>
    %cst_70 = arith.constant dense<0.000000e+00> : vector<16x64xf32>
    %85 = tpu.matmul %82, %84, %cst_70 {dimension_numbers = #tpu.dot_dimension_numbers<[1], [0], [0], [1], [0, 0, 1, 1], [], []>, precision = #tpu.contract_precision<fp32>} : vector<16x16xf32>, vector<16x64xf32>, vector<16x64xf32> -> vector<16x64xf32>
    %86 = arith.addf %79, %85 : vector<16x64xf32>
    %cst_71 = arith.constant dense<0.000000e+00> : vector<64xf32>
    %87 = vector.multi_reduction <add>, %86, %cst_71 [0] : vector<16x64xf32> to vector<64xf32>
    %88 = vector.shape_cast %87 : vector<64xf32> to vector<1x64xf32>
    %cst_72 = arith.constant 6.250000e-02 : f32
    %89 = vector.broadcast %cst_72 : f32 to vector<1x64xf32>
    %90 = arith.mulf %88, %89 : vector<1x64xf32>
    %91 = arith.mulf %86, %86 : vector<16x64xf32>
    %cst_73 = arith.constant dense<0.000000e+00> : vector<64xf32>
    %92 = vector.multi_reduction <add>, %91, %cst_73 [0] : vector<16x64xf32> to vector<64xf32>
    %93 = vector.shape_cast %92 : vector<64xf32> to vector<1x64xf32>
    %cst_74 = arith.constant 6.250000e-02 : f32
    %94 = vector.broadcast %cst_74 : f32 to vector<1x64xf32>
    %95 = arith.mulf %93, %94 : vector<1x64xf32>
    %96 = arith.mulf %90, %90 : vector<1x64xf32>
    %97 = arith.subf %95, %96 : vector<1x64xf32>
    %98 = vector.broadcast %90 : vector<1x64xf32> to vector<16x64xf32>
    %99 = arith.subf %86, %98 : vector<16x64xf32>
    %cst_75 = arith.constant 9.99999974E-6 : f32
    %100 = vector.broadcast %cst_75 : f32 to vector<1x64xf32>
    %101 = arith.addf %97, %100 : vector<1x64xf32>
    %102 = math.rsqrt %101 : vector<1x64xf32>
    %103 = vector.broadcast %102 : vector<1x64xf32> to vector<16x64xf32>
    %104 = arith.mulf %99, %103 : vector<16x64xf32>
    %c0_76 = arith.constant 0 : index
    %c0_77 = arith.constant 0 : index
    %105 = vector.load %arg7[%c0_76, %c0_77] : memref<1x64xf32, #tpu.memory_space<vmem>>, vector<1x64xf32>
    %106 = vector.broadcast %105 : vector<1x64xf32> to vector<16x64xf32>
    %107 = arith.mulf %104, %106 : vector<16x64xf32>
    %c0_78 = arith.constant 0 : index
    %c0_79 = arith.constant 0 : index
    %108 = vector.load %arg8[%c0_78, %c0_79] : memref<1x64xf32, #tpu.memory_space<vmem>>, vector<1x64xf32>
    %109 = vector.broadcast %108 : vector<1x64xf32> to vector<16x64xf32>
    %110 = arith.addf %107, %109 : vector<16x64xf32>
    %111 = vector.extract_strided_slice %110 {offsets = [0, 0], sizes = [16, 32], strides = [1, 1]} : vector<16x64xf32> to vector<16x32xf32>
    %112 = vector.extract_strided_slice %110 {offsets = [0, 32], sizes = [16, 32], strides = [1, 1]} : vector<16x64xf32> to vector<16x32xf32>
    %113 = arith.negf %112 : vector<16x32xf32>
    %114 = math.exp %113 : vector<16x32xf32>
    %cst_80 = arith.constant 1.000000e+00 : f32
    %115 = vector.broadcast %cst_80 : f32 to vector<16x32xf32>
    %116 = arith.addf %115, %114 : vector<16x32xf32>
    %117 = arith.divf %115, %116 : vector<16x32xf32>
    %118 = arith.mulf %111, %117 : vector<16x32xf32>
    %c0_81 = arith.constant 0 : index
    %c0_82 = arith.constant 0 : index
    %c0_83 = arith.constant 0 : index
    %119 = vector.load %arg9[%c0_81, %c0_82, %c0_83] : memref<4x8x16xf32, #tpu.memory_space<vmem>>, vector<1x8x16xf32>
    %120 = vector.shape_cast %119 : vector<1x8x16xf32> to vector<8x16xf32>
    %cst_84 = arith.constant dense<0.000000e+00> : vector<8x32xf32>
    %121 = tpu.matmul %120, %118, %cst_84 {dimension_numbers = #tpu.dot_dimension_numbers<[1], [0], [0], [1], [0, 0, 1, 1], [], []>, precision = #tpu.contract_precision<fp32>} : vector<8x16xf32>, vector<16x32xf32>, vector<8x32xf32> -> vector<8x32xf32>
    %c0_85 = arith.constant 0 : index
    %c0_86 = arith.constant 0 : index
    %c0_87 = arith.constant 0 : index
    %122 = vector.load %arg10[%c0_85, %c0_86, %c0_87] : memref<4x32x64xf32, #tpu.memory_space<vmem>>, vector<1x32x64xf32>
    %123 = vector.shape_cast %122 : vector<1x32x64xf32> to vector<32x64xf32>
    %cst_88 = arith.constant dense<0.000000e+00> : vector<8x64xf32>
    %124 = tpu.matmul %121, %123, %cst_88 {dimension_numbers = #tpu.dot_dimension_numbers<[1], [0], [0], [1], [0, 0, 1, 1], [], []>, precision = #tpu.contract_precision<fp32>} : vector<8x32xf32>, vector<32x64xf32>, vector<8x64xf32> -> vector<8x64xf32>
    %c1_89 = arith.constant 1 : index
    %c0_90 = arith.constant 0 : index
    %c0_91 = arith.constant 0 : index
    %125 = vector.load %arg9[%c1_89, %c0_90, %c0_91] : memref<4x8x16xf32, #tpu.memory_space<vmem>>, vector<1x8x16xf32>
    %126 = vector.shape_cast %125 : vector<1x8x16xf32> to vector<8x16xf32>
    %cst_92 = arith.constant dense<0.000000e+00> : vector<8x32xf32>
    %127 = tpu.matmul %126, %118, %cst_92 {dimension_numbers = #tpu.dot_dimension_numbers<[1], [0], [0], [1], [0, 0, 1, 1], [], []>, precision = #tpu.contract_precision<fp32>} : vector<8x16xf32>, vector<16x32xf32>, vector<8x32xf32> -> vector<8x32xf32>
    %c1_93 = arith.constant 1 : index
    %c0_94 = arith.constant 0 : index
    %c0_95 = arith.constant 0 : index
    %128 = vector.load %arg10[%c1_93, %c0_94, %c0_95] : memref<4x32x64xf32, #tpu.memory_space<vmem>>, vector<1x32x64xf32>
    %129 = vector.shape_cast %128 : vector<1x32x64xf32> to vector<32x64xf32>
    %cst_96 = arith.constant dense<0.000000e+00> : vector<8x64xf32>
    %130 = tpu.matmul %127, %129, %cst_96 {dimension_numbers = #tpu.dot_dimension_numbers<[1], [0], [0], [1], [0, 0, 1, 1], [], []>, precision = #tpu.contract_precision<fp32>} : vector<8x32xf32>, vector<32x64xf32>, vector<8x64xf32> -> vector<8x64xf32>
    %131 = arith.addf %124, %130 : vector<8x64xf32>
    %c2_97 = arith.constant 2 : index
    %c0_98 = arith.constant 0 : index
    %c0_99 = arith.constant 0 : index
    %132 = vector.load %arg9[%c2_97, %c0_98, %c0_99] : memref<4x8x16xf32, #tpu.memory_space<vmem>>, vector<1x8x16xf32>
    %133 = vector.shape_cast %132 : vector<1x8x16xf32> to vector<8x16xf32>
    %cst_100 = arith.constant dense<0.000000e+00> : vector<8x32xf32>
    %134 = tpu.matmul %133, %118, %cst_100 {dimension_numbers = #tpu.dot_dimension_numbers<[1], [0], [0], [1], [0, 0, 1, 1], [], []>, precision = #tpu.contract_precision<fp32>} : vector<8x16xf32>, vector<16x32xf32>, vector<8x32xf32> -> vector<8x32xf32>
    %c2_101 = arith.constant 2 : index
    %c0_102 = arith.constant 0 : index
    %c0_103 = arith.constant 0 : index
    %135 = vector.load %arg10[%c2_101, %c0_102, %c0_103] : memref<4x32x64xf32, #tpu.memory_space<vmem>>, vector<1x32x64xf32>
    %136 = vector.shape_cast %135 : vector<1x32x64xf32> to vector<32x64xf32>
    %cst_104 = arith.constant dense<0.000000e+00> : vector<8x64xf32>
    %137 = tpu.matmul %134, %136, %cst_104 {dimension_numbers = #tpu.dot_dimension_numbers<[1], [0], [0], [1], [0, 0, 1, 1], [], []>, precision = #tpu.contract_precision<fp32>} : vector<8x32xf32>, vector<32x64xf32>, vector<8x64xf32> -> vector<8x64xf32>
    %138 = arith.addf %131, %137 : vector<8x64xf32>
    %c3_105 = arith.constant 3 : index
    %c0_106 = arith.constant 0 : index
    %c0_107 = arith.constant 0 : index
    %139 = vector.load %arg9[%c3_105, %c0_106, %c0_107] : memref<4x8x16xf32, #tpu.memory_space<vmem>>, vector<1x8x16xf32>
    %140 = vector.shape_cast %139 : vector<1x8x16xf32> to vector<8x16xf32>
    %cst_108 = arith.constant dense<0.000000e+00> : vector<8x32xf32>
    %141 = tpu.matmul %140, %118, %cst_108 {dimension_numbers = #tpu.dot_dimension_numbers<[1], [0], [0], [1], [0, 0, 1, 1], [], []>, precision = #tpu.contract_precision<fp32>} : vector<8x16xf32>, vector<16x32xf32>, vector<8x32xf32> -> vector<8x32xf32>
    %c3_109 = arith.constant 3 : index
    %c0_110 = arith.constant 0 : index
    %c0_111 = arith.constant 0 : index
    %142 = vector.load %arg10[%c3_109, %c0_110, %c0_111] : memref<4x32x64xf32, #tpu.memory_space<vmem>>, vector<1x32x64xf32>
    %143 = vector.shape_cast %142 : vector<1x32x64xf32> to vector<32x64xf32>
    %cst_112 = arith.constant dense<0.000000e+00> : vector<8x64xf32>
    %144 = tpu.matmul %141, %143, %cst_112 {dimension_numbers = #tpu.dot_dimension_numbers<[1], [0], [0], [1], [0, 0, 1, 1], [], []>, precision = #tpu.contract_precision<fp32>} : vector<8x32xf32>, vector<32x64xf32>, vector<8x64xf32> -> vector<8x64xf32>
    %145 = arith.addf %138, %144 : vector<8x64xf32>
    %cst_113 = arith.constant dense<0.000000e+00> : vector<64xf32>
    %146 = vector.multi_reduction <add>, %145, %cst_113 [0] : vector<8x64xf32> to vector<64xf32>
    %147 = vector.shape_cast %146 : vector<64xf32> to vector<1x64xf32>
    %cst_114 = arith.constant 1.250000e-01 : f32
    %148 = vector.broadcast %cst_114 : f32 to vector<1x64xf32>
    %149 = arith.mulf %147, %148 : vector<1x64xf32>
    %150 = arith.mulf %145, %145 : vector<8x64xf32>
    %cst_115 = arith.constant dense<0.000000e+00> : vector<64xf32>
    %151 = vector.multi_reduction <add>, %150, %cst_115 [0] : vector<8x64xf32> to vector<64xf32>
    %152 = vector.shape_cast %151 : vector<64xf32> to vector<1x64xf32>
    %cst_116 = arith.constant 1.250000e-01 : f32
    %153 = vector.broadcast %cst_116 : f32 to vector<1x64xf32>
    %154 = arith.mulf %152, %153 : vector<1x64xf32>
    %155 = arith.mulf %149, %149 : vector<1x64xf32>
    %156 = arith.subf %154, %155 : vector<1x64xf32>
    %157 = vector.broadcast %149 : vector<1x64xf32> to vector<8x64xf32>
    %158 = arith.subf %145, %157 : vector<8x64xf32>
    %cst_117 = arith.constant 9.99999974E-6 : f32
    %159 = vector.broadcast %cst_117 : f32 to vector<1x64xf32>
    %160 = arith.addf %156, %159 : vector<1x64xf32>
    %161 = math.rsqrt %160 : vector<1x64xf32>
    %162 = vector.broadcast %161 : vector<1x64xf32> to vector<8x64xf32>
    %163 = arith.mulf %158, %162 : vector<8x64xf32>
    %c0_118 = arith.constant 0 : index
    %c0_119 = arith.constant 0 : index
    %164 = vector.load %arg11[%c0_118, %c0_119] : memref<1x64xf32, #tpu.memory_space<vmem>>, vector<1x64xf32>
    %165 = vector.broadcast %164 : vector<1x64xf32> to vector<8x64xf32>
    %166 = arith.mulf %163, %165 : vector<8x64xf32>
    %c0_120 = arith.constant 0 : index
    %c0_121 = arith.constant 0 : index
    %167 = vector.load %arg12[%c0_120, %c0_121] : memref<1x64xf32, #tpu.memory_space<vmem>>, vector<1x64xf32>
    %168 = vector.broadcast %167 : vector<1x64xf32> to vector<8x64xf32>
    %169 = arith.addf %166, %168 : vector<8x64xf32>
    %170 = vector.extract_strided_slice %169 {offsets = [0, 0], sizes = [8, 32], strides = [1, 1]} : vector<8x64xf32> to vector<8x32xf32>
    %171 = vector.extract_strided_slice %169 {offsets = [0, 32], sizes = [8, 32], strides = [1, 1]} : vector<8x64xf32> to vector<8x32xf32>
    %172 = arith.negf %171 : vector<8x32xf32>
    %173 = math.exp %172 : vector<8x32xf32>
    %cst_122 = arith.constant 1.000000e+00 : f32
    %174 = vector.broadcast %cst_122 : f32 to vector<8x32xf32>
    %175 = arith.addf %174, %173 : vector<8x32xf32>
    %176 = arith.divf %174, %175 : vector<8x32xf32>
    %177 = arith.mulf %170, %176 : vector<8x32xf32>
    %c0_123 = arith.constant 0 : index
    %c0_124 = arith.constant 0 : index
    %c0_125 = arith.constant 0 : index
    %178 = vector.load %arg13[%c0_123, %c0_124, %c0_125] : memref<2x4x8xf32, #tpu.memory_space<vmem>>, vector<1x4x8xf32>
    %179 = vector.shape_cast %178 : vector<1x4x8xf32> to vector<4x8xf32>
    %cst_126 = arith.constant dense<0.000000e+00> : vector<4x32xf32>
    %180 = tpu.matmul %179, %177, %cst_126 {dimension_numbers = #tpu.dot_dimension_numbers<[1], [0], [0], [1], [0, 0, 1, 1], [], []>, precision = #tpu.contract_precision<fp32>} : vector<4x8xf32>, vector<8x32xf32>, vector<4x32xf32> -> vector<4x32xf32>
    %c0_127 = arith.constant 0 : index
    %c0_128 = arith.constant 0 : index
    %c0_129 = arith.constant 0 : index
    %181 = vector.load %arg14[%c0_127, %c0_128, %c0_129] : memref<2x32x32xf32, #tpu.memory_space<vmem>>, vector<1x32x32xf32>
    %182 = vector.shape_cast %181 : vector<1x32x32xf32> to vector<32x32xf32>
    %cst_130 = arith.constant dense<0.000000e+00> : vector<4x32xf32>
    %183 = tpu.matmul %180, %182, %cst_130 {dimension_numbers = #tpu.dot_dimension_numbers<[1], [0], [0], [1], [0, 0, 1, 1], [], []>, precision = #tpu.contract_precision<fp32>} : vector<4x32xf32>, vector<32x32xf32>, vector<4x32xf32> -> vector<4x32xf32>
    %c1_131 = arith.constant 1 : index
    %c0_132 = arith.constant 0 : index
    %c0_133 = arith.constant 0 : index
    %184 = vector.load %arg13[%c1_131, %c0_132, %c0_133] : memref<2x4x8xf32, #tpu.memory_space<vmem>>, vector<1x4x8xf32>
    %185 = vector.shape_cast %184 : vector<1x4x8xf32> to vector<4x8xf32>
    %cst_134 = arith.constant dense<0.000000e+00> : vector<4x32xf32>
    %186 = tpu.matmul %185, %177, %cst_134 {dimension_numbers = #tpu.dot_dimension_numbers<[1], [0], [0], [1], [0, 0, 1, 1], [], []>, precision = #tpu.contract_precision<fp32>} : vector<4x8xf32>, vector<8x32xf32>, vector<4x32xf32> -> vector<4x32xf32>
    %c1_135 = arith.constant 1 : index
    %c0_136 = arith.constant 0 : index
    %c0_137 = arith.constant 0 : index
    %187 = vector.load %arg14[%c1_135, %c0_136, %c0_137] : memref<2x32x32xf32, #tpu.memory_space<vmem>>, vector<1x32x32xf32>
    %188 = vector.shape_cast %187 : vector<1x32x32xf32> to vector<32x32xf32>
    %cst_138 = arith.constant dense<0.000000e+00> : vector<4x32xf32>
    %189 = tpu.matmul %186, %188, %cst_138 {dimension_numbers = #tpu.dot_dimension_numbers<[1], [0], [0], [1], [0, 0, 1, 1], [], []>, precision = #tpu.contract_precision<fp32>} : vector<4x32xf32>, vector<32x32xf32>, vector<4x32xf32> -> vector<4x32xf32>
    %190 = arith.addf %183, %189 : vector<4x32xf32>
    %cst_139 = arith.constant dense<0.000000e+00> : vector<32xf32>
    %191 = vector.multi_reduction <add>, %190, %cst_139 [0] : vector<4x32xf32> to vector<32xf32>
    %192 = vector.shape_cast %191 : vector<32xf32> to vector<1x32xf32>
    %cst_140 = arith.constant 2.500000e-01 : f32
    %193 = vector.broadcast %cst_140 : f32 to vector<1x32xf32>
    %194 = arith.mulf %192, %193 : vector<1x32xf32>
    %195 = arith.mulf %190, %190 : vector<4x32xf32>
    %cst_141 = arith.constant dense<0.000000e+00> : vector<32xf32>
    %196 = vector.multi_reduction <add>, %195, %cst_141 [0] : vector<4x32xf32> to vector<32xf32>
    %197 = vector.shape_cast %196 : vector<32xf32> to vector<1x32xf32>
    %cst_142 = arith.constant 2.500000e-01 : f32
    %198 = vector.broadcast %cst_142 : f32 to vector<1x32xf32>
    %199 = arith.mulf %197, %198 : vector<1x32xf32>
    %200 = arith.mulf %194, %194 : vector<1x32xf32>
    %201 = arith.subf %199, %200 : vector<1x32xf32>
    %202 = vector.broadcast %194 : vector<1x32xf32> to vector<4x32xf32>
    %203 = arith.subf %190, %202 : vector<4x32xf32>
    %cst_143 = arith.constant 9.99999974E-6 : f32
    %204 = vector.broadcast %cst_143 : f32 to vector<1x32xf32>
    %205 = arith.addf %201, %204 : vector<1x32xf32>
    %206 = math.rsqrt %205 : vector<1x32xf32>
    %207 = vector.broadcast %206 : vector<1x32xf32> to vector<4x32xf32>
    %208 = arith.mulf %203, %207 : vector<4x32xf32>
    %c0_144 = arith.constant 0 : index
    %c0_145 = arith.constant 0 : index
    %209 = vector.load %arg15[%c0_144, %c0_145] : memref<1x32xf32, #tpu.memory_space<vmem>>, vector<1x32xf32>
    %210 = vector.broadcast %209 : vector<1x32xf32> to vector<4x32xf32>
    %211 = arith.mulf %208, %210 : vector<4x32xf32>
    %c0_146 = arith.constant 0 : index
    %c0_147 = arith.constant 0 : index
    %212 = vector.load %arg16[%c0_146, %c0_147] : memref<1x32xf32, #tpu.memory_space<vmem>>, vector<1x32xf32>
    %213 = vector.broadcast %212 : vector<1x32xf32> to vector<4x32xf32>
    %214 = arith.addf %211, %213 : vector<4x32xf32>
    %215 = vector.extract_strided_slice %214 {offsets = [0, 0], sizes = [4, 16], strides = [1, 1]} : vector<4x32xf32> to vector<4x16xf32>
    %216 = vector.extract_strided_slice %214 {offsets = [0, 16], sizes = [4, 16], strides = [1, 1]} : vector<4x32xf32> to vector<4x16xf32>
    %217 = arith.negf %216 : vector<4x16xf32>
    %218 = math.exp %217 : vector<4x16xf32>
    %cst_148 = arith.constant 1.000000e+00 : f32
    %219 = vector.broadcast %cst_148 : f32 to vector<4x16xf32>
    %220 = arith.addf %219, %218 : vector<4x16xf32>
    %221 = arith.divf %219, %220 : vector<4x16xf32>
    %222 = arith.mulf %215, %221 : vector<4x16xf32>
    %c0_149 = arith.constant 0 : index
    %c0_150 = arith.constant 0 : index
    %c0_151 = arith.constant 0 : index
    %223 = vector.load %arg17[%c0_149, %c0_150, %c0_151] : memref<1x4x4xf32, #tpu.memory_space<vmem>>, vector<1x4x4xf32>
    %224 = vector.shape_cast %223 : vector<1x4x4xf32> to vector<4x4xf32>
    %cst_152 = arith.constant dense<0.000000e+00> : vector<4x16xf32>
    %225 = tpu.matmul %224, %222, %cst_152 {dimension_numbers = #tpu.dot_dimension_numbers<[1], [0], [0], [1], [0, 0, 1, 1], [], []>, precision = #tpu.contract_precision<fp32>} : vector<4x4xf32>, vector<4x16xf32>, vector<4x16xf32> -> vector<4x16xf32>
    %c0_153 = arith.constant 0 : index
    %c0_154 = arith.constant 0 : index
    %c0_155 = arith.constant 0 : index
    %226 = vector.load %arg18[%c0_153, %c0_154, %c0_155] : memref<1x16x4xf32, #tpu.memory_space<vmem>>, vector<1x16x4xf32>
    %227 = vector.shape_cast %226 : vector<1x16x4xf32> to vector<16x4xf32>
    %cst_156 = arith.constant dense<0.000000e+00> : vector<4x4xf32>
    %228 = tpu.matmul %225, %227, %cst_156 {dimension_numbers = #tpu.dot_dimension_numbers<[1], [0], [0], [1], [0, 0, 1, 1], [], []>, precision = #tpu.contract_precision<fp32>} : vector<4x16xf32>, vector<16x4xf32>, vector<4x4xf32> -> vector<4x4xf32>
    %c0_157 = arith.constant 0 : index
    %c0_158 = arith.constant 0 : index
    %229 = vector.load %arg19[%c0_157, %c0_158] : memref<1x4xf32, #tpu.memory_space<vmem>>, vector<1x4xf32>
    %230 = vector.broadcast %229 : vector<1x4xf32> to vector<4x4xf32>
    %231 = arith.addf %228, %230 : vector<4x4xf32>
    %c0_159 = arith.constant 0 : index
    %c0_160 = arith.constant 0 : index
    %232 = vector.load %arg22[%c0_159, %c0_160] : memref<1x4xf32, #tpu.memory_space<vmem>>, vector<1x4xf32>
    %c0_161 = arith.constant 0 : index
    %c0_162 = arith.constant 0 : index
    %c0_163 = arith.constant 0 : index
    %233 = vector.load %arg20[%c0_161, %c0_162, %c0_163] : memref<2x2x4xf32, #tpu.memory_space<vmem>>, vector<1x2x4xf32>
    %234 = vector.shape_cast %233 : vector<1x2x4xf32> to vector<2x4xf32>
    %cst_164 = arith.constant dense<0.000000e+00> : vector<2x4xf32>
    %235 = tpu.matmul %234, %231, %cst_164 {dimension_numbers = #tpu.dot_dimension_numbers<[1], [0], [0], [1], [0, 0, 1, 1], [], []>, precision = #tpu.contract_precision<fp32>} : vector<2x4xf32>, vector<4x4xf32>, vector<2x4xf32> -> vector<2x4xf32>
    %c0_165 = arith.constant 0 : index
    %c0_166 = arith.constant 0 : index
    %c0_167 = arith.constant 0 : index
    %236 = vector.load %arg21[%c0_165, %c0_166, %c0_167] : memref<2x4x4xf32, #tpu.memory_space<vmem>>, vector<1x4x4xf32>
    %237 = vector.shape_cast %236 : vector<1x4x4xf32> to vector<4x4xf32>
    %cst_168 = arith.constant dense<0.000000e+00> : vector<2x4xf32>
    %238 = tpu.matmul %235, %237, %cst_168 {dimension_numbers = #tpu.dot_dimension_numbers<[1], [0], [0], [1], [0, 0, 1, 1], [], []>, precision = #tpu.contract_precision<fp32>} : vector<2x4xf32>, vector<4x4xf32>, vector<2x4xf32> -> vector<2x4xf32>
    %239 = vector.broadcast %232 : vector<1x4xf32> to vector<2x4xf32>
    %240 = arith.addf %239, %238 : vector<2x4xf32>
    %c1_169 = arith.constant 1 : index
    %c0_170 = arith.constant 0 : index
    %c0_171 = arith.constant 0 : index
    %241 = vector.load %arg20[%c1_169, %c0_170, %c0_171] : memref<2x2x4xf32, #tpu.memory_space<vmem>>, vector<1x2x4xf32>
    %242 = vector.shape_cast %241 : vector<1x2x4xf32> to vector<2x4xf32>
    %cst_172 = arith.constant dense<0.000000e+00> : vector<2x4xf32>
    %243 = tpu.matmul %242, %231, %cst_172 {dimension_numbers = #tpu.dot_dimension_numbers<[1], [0], [0], [1], [0, 0, 1, 1], [], []>, precision = #tpu.contract_precision<fp32>} : vector<2x4xf32>, vector<4x4xf32>, vector<2x4xf32> -> vector<2x4xf32>
    %c1_173 = arith.constant 1 : index
    %c0_174 = arith.constant 0 : index
    %c0_175 = arith.constant 0 : index
    %244 = vector.load %arg21[%c1_173, %c0_174, %c0_175] : memref<2x4x4xf32, #tpu.memory_space<vmem>>, vector<1x4x4xf32>
    %245 = vector.shape_cast %244 : vector<1x4x4xf32> to vector<4x4xf32>
    %cst_176 = arith.constant dense<0.000000e+00> : vector<2x4xf32>
    %246 = tpu.matmul %243, %245, %cst_176 {dimension_numbers = #tpu.dot_dimension_numbers<[1], [0], [0], [1], [0, 0, 1, 1], [], []>, precision = #tpu.contract_precision<fp32>} : vector<2x4xf32>, vector<4x4xf32>, vector<2x4xf32> -> vector<2x4xf32>
    %247 = arith.addf %240, %246 : vector<2x4xf32>
    %c0_177 = arith.constant 0 : index
    %c0_178 = arith.constant 0 : index
    %248 = vector.load %arg23[%c0_177, %c0_178] : memref<2x4xf32, #tpu.memory_space<vmem>>, vector<2x4xf32>
    tpu.vector_store %arg23[%c0_177, %c0_178], %247 {strides = array<i32>} : memref<2x4xf32, #tpu.memory_space<vmem>>, vector<2x4xf32>,
    return
  }
}

</mosaic_0001>

<bundles_post_ra>
// kernel: speaker_classifier_forward.1
= control target key start
LH: loop header
LB: loop body
LE: loop exit
PB: predicated region body
PF: predicated region fallthrough
CT: control target
= control target key end

     0   :  { %s24740_s0 = inlined_call_operand.vmem [shape: f32[64,8], index: 0, kind: input, shape index: {}]   ;;  %s24741_s1 = inlined_call_operand.hbm [shape: f32[4,32,64], index: 1, kind: input, shape index: {}]   ;;  %s24742_s2 = inlined_call_operand.hbm [shape: f32[4,8,32], index: 2, kind: input, shape index: {}]   ;;  %s24743_s3 = inlined_call_operand.hbm [shape: f32[1,32], index: 3, kind: input, shape index: {}]   ;;  %s24744_s4 = inlined_call_operand.hbm [shape: f32[1,32], index: 4, kind: input, shape index: {}]   ;;  %s24745_s5 = inlined_call_operand.hbm [shape: f32[4,16,32], index: 5, kind: input, shape index: {}]   ;;  %s24746_s6 = inlined_call_operand.hbm [shape: f32[4,16,64], index: 6, kind: input, shape index: {}]   ;;  %s24747_s7 = inlined_call_operand.hbm [shape: f32[1,64], index: 7, kind: input, shape index: {}]   ;;  %s24748_s8 = inlined_call_operand.hbm [shape: f32[1,64], index: 8, kind: input, shape index: {}]   ;;  %s24749_s9 = inlined_call_operand.hbm [shape: f32[4,8,16], index: 9, kind: input, shape index: {}]   ;;  %s24750_s10 = inlined_call_operand.vmem [shape: f32[4,32,64], index: 10, kind: input, shape index: {}]   ;;  %s24751_s11 = inlined_call_operand.hbm [shape: f32[1,64], index: 11, kind: input, shape index: {}]   ;;  %s24752_s12 = inlined_call_operand.hbm [shape: f32[1,64], index: 12, kind: input, shape index: {}]   ;;  %s24753_s13 = inlined_call_operand.vmem [shape: f32[2,4,8], index: 13, kind: input, shape index: {}]   ;;  %s24754_s14 = inlined_call_operand.hbm [shape: f32[2,32,32], index: 14, kind: input, shape index: {}]   ;;  %s24755_s15 = inlined_call_operand.hbm [shape: f32[1,32], index: 15, kind: input, shape index: {}]   ;;  %s24756_s16 = inlined_call_operand.hbm [shape: f32[1,32], index: 16, kind: input, shape index: {}]   ;;  %s24757_s17 = inlined_call_operand.hbm [shape: f32[1,4,4], index: 17, kind: input, shape index: {}]   ;;  %s24758_s18 = inlined_call_operand.vmem [shape: f32[1,16,4], index: 18, kind: input, shape index: {}]   ;;  %s24759_s19 = inlined_call_operand.hbm [shape: f32[1,4], index: 19, kind: input, shape index: {}]   ;;  %s24760_s20 = inlined_call_operand.vmem [shape: f32[2,2,4], index: 20, kind: input, shape index: {}]   ;;  %s24761_s21 = inlined_call_operand.vmem [shape: f32[2,4,4], index: 21, kind: input, shape index: {}]   ;;  %s24762_s22 = inlined_call_operand.vmem [shape: f32[1,4], index: 22, kind: input, shape index: {}]   ;;  %s24763_s23 = inlined_call_operand.hbm [shape: f32[2,4], index: 23, kind: output, shape index: {}]  }
   0x1   :  { %24826 = sst [smem:[#allocation68_spill]] %s24740_s0 }
   0x2   :  { %24827 = sst [smem:[#allocation69_spill]] %s24741_s1 }
   0x3   :  { %24828 = sst [smem:[#allocation70_spill]] %s24742_s2 }
   0x4   :  { %24829 = sst [smem:[#allocation71_spill]] %s24743_s3 }
   0x5   :  { %24830 = sst [smem:[#allocation72_spill]] %s24744_s4 }
   0x6   :  { %24831 = sst [smem:[#allocation73_spill]] %s24745_s5 }
   0x7   :  { %24832 = sst [smem:[#allocation74_spill]] %s24746_s6 }
   0x8   :  { %24833 = sst [smem:[#allocation75_spill]] %s24747_s7 }
   0x9   :  { %24834 = sst [smem:[#allocation76_spill]] %s24763_s23 }
   0xa   :  { %28 = vsyncpa [#allocation3], 0 }
   0xb   :  { %29 = vsyncpa [#allocation6], 0 }
   0xc   :  { %30 = vsyncpa [#allocation9], 0 }
   0xd   :  { %31 = vsyncpa [#allocation12], 0 }
   0xe   :  { %32 = vsyncpa [#allocation15], 0 }
   0xf   :  { %33 = vsyncpa [#allocation18], 0 }
  0x10   :  { %34 = vsyncpa [#allocation21], 0 }
  0x11   :  { %35 = vsyncpa [#allocation24], 0 }
  0x12   :  { %36 = vsyncpa [#allocation27], 0 }
  0x13   :  { %37 = vsyncpa [#allocation4], 0  ;;  %s21764_s4 = smov [#allocation5]   ;;  %s21765_s24 = smov [#allocation8]  }
  0x14   :  { %s57_s30 = sshll.u32 %s21764_s4, 4  ;;  %s80_s25 = sshll.u32 %s21765_s24, 4  ;;  %s58_s30 = int_to_ptr.vmem [resolvable:$true] %s57_s30  ;;  %s81_s25 = int_to_ptr.vmem [resolvable:$true] %s80_s25 }
  0x15   :  { %s21412_s5 = scalar_lea.vmem %s58_s30, 512  ;;  %p21417_p1 = scmp.lt.s32.totalorder %s58_s30, %s58_s30 }
  0x16   :  { %p21413_p0 = scmp.ne.s32.totalorder %s58_s30, %s21412_s5  ;;  %p21418_p2 = scmp.lt.s32.totalorder %s21412_s5, %s21412_s5 }
  0x18   :  { %p21419_p3 = por %p21418_p2, %p21417_p1 }
  0x1a   :  { %p21420_p4 = pnand %p21419_p3, %p21413_p0 }
  0x1c   :  { %21423 = shalt.err (!%p21420_p4)
}
  0x1d   :  { %s21766_s1 = smov 128   ;;  %s21767_s26 = smov 8  }
  0x1e   :  { %s24835_s27 = sld [smem:[#allocation70_spill]]  ;;  %s21432_s7 = scalar_lea.vmem %s81_s25, 16 }
  0x1f   :  { %p21433_p5 = scmp.ne.s32.totalorder %s81_s25, %s21432_s7  ;;  %s21436_s28 = scalar_lea.vmem %s81_s25, 32 }
  0x20   :  { %p21437_p6 = scmp.lt.s32.totalorder %s81_s25, %s81_s25  ;;  %p21438_p7 = scmp.lt.s32.totalorder %s21436_s28, %s21432_s7 }
  0x22   :  { %p21439_p8 = por %p21438_p7, %p21437_p6 }
  0x24   :  { %63 = dma.hbm_to_vmem [thread:$0]  %s24835_s27, 512, %s58_s30, [#allocation6], %s21766_s1, %s21766_s1, %s21767_s26  }
  0x25   :  { %p21440_p9 = pnand %p21439_p8, %p21433_p5 }
  0x27   :  { %21443 = shalt.err (!%p21440_p9)
}
  0x28   :  { %s24836_s0 = sld [smem:[#allocation72_spill]]  ;;  %s21768_s4 = smov [#allocation11]  }
  0x29   :  { %s101_s24 = sshll.u32 %s21768_s4, 4  ;;  %s21769_s5 = smov [#allocation14]   ;;  %s102_s24 = int_to_ptr.vmem [resolvable:$true] %s101_s24 }
  0x2a   :  { %s124_s23 = sshll.u32 %s21769_s5, 4  ;;  %s21452_s2 = scalar_lea.vmem %s102_s24, 1024  ;;  %s125_s23 = int_to_ptr.vmem [resolvable:$true] %s124_s23 }
  0x2b   :  { %p21453_p10 = scmp.ne.s32.totalorder %s102_s24, %s21452_s2  ;;  %p21457_p11 = scmp.lt.s32.totalorder %s102_s24, %s102_s24 }
  0x2c   :  { %p21458_p12 = scmp.lt.s32.totalorder %s21452_s2, %s21452_s2 }
  0x2e   :  { %83 = dma.hbm_to_vmem [thread:$0]  %s24836_s0, 16, %s81_s25, [#allocation9]  }
  0x2f   :  { %p21459_p13 = por %p21458_p12, %p21457_p11 }
  0x31   :  { %p21460_p0 = pnand %p21459_p13, %p21453_p10 }
  0x33   :  { %21463 = shalt.err (!%p21460_p0)
}
  0x34   :  { %s24837_s27 = sld [smem:[#allocation74_spill]]  ;;  %s21472_s25 = scalar_lea.vmem %s125_s23, 16 }
  0x35   :  { %p21473_p1 = scmp.ne.s32.totalorder %s125_s23, %s21472_s25  ;;  %s21476_s7 = scalar_lea.vmem %s125_s23, 32 }
  0x36   :  { %p21477_p2 = scmp.lt.s32.totalorder %s125_s23, %s125_s23  ;;  %p21478_p3 = scmp.lt.s32.totalorder %s21476_s7, %s21472_s25 }
  0x38   :  { %p21479_p4 = por %p21478_p3, %p21477_p2 }
  0x3a   :  { %107 = dma.hbm_to_vmem [thread:$0]  %s24837_s27, 1024, %s102_s24, [#allocation12], %s21766_s1, %s21766_s1, %s21767_s26  }
  0x3b   :  { %p21480_p5 = pnand %p21479_p4, %p21473_p1 }
  0x3d   :  { %21483 = shalt.err (!%p21480_p5)
}
  0x3e   :  { %127 = dma.hbm_to_vmem [thread:$0]  %s24748_s8, 16, %s125_s23, [#allocation15]  }
  0x3f   :  { %s21770_s3 = smov [#allocation17]   ;;  %s21771_s4 = smov [#allocation20]  }
  0x40   :  { %s148_s0 = sshll.u32 %s21770_s3, 4  ;;  %s169_s5 = sshll.u32 %s21771_s4, 4  ;;  %s149_s0 = int_to_ptr.vmem [resolvable:$true] %s148_s0  ;;  %s170_s5 = int_to_ptr.vmem [resolvable:$true] %s169_s5 }
  0x41   :  { %s21492_s2 = scalar_lea.vmem %s149_s0, 16  ;;  %s21496_s24 = scalar_lea.vmem %s149_s0, 32 }
  0x42   :  { %p21493_p6 = scmp.ne.s32.totalorder %s149_s0, %s21492_s2  ;;  %p21497_p7 = scmp.lt.s32.totalorder %s149_s0, %s149_s0 }
  0x43   :  { %p21498_p8 = scmp.lt.s32.totalorder %s21496_s24, %s21492_s2 }
  0x45   :  { %p21499_p9 = por %p21498_p8, %p21497_p7 }
  0x47   :  { %p21500_p10 = pnand %p21499_p9, %p21493_p6 }
  0x49   :  { %21503 = shalt.err (!%p21500_p10)
}
  0x4a   :  { %151 = dma.hbm_to_vmem [thread:$0]  %s24751_s11, 16, %s149_s0, [#allocation18]  }
  0x4b   :  { %s21512_s27 = scalar_lea.vmem %s170_s5, 1024  ;;  %p21517_p12 = scmp.lt.s32.totalorder %s170_s5, %s170_s5 }
  0x4c   :  { %p21513_p11 = scmp.ne.s32.totalorder %s170_s5, %s21512_s27  ;;  %p21518_p13 = scmp.lt.s32.totalorder %s21512_s27, %s21512_s27 }
  0x4e   :  { %p21519_p0 = por %p21518_p13, %p21517_p12 }
  0x50   :  { %p21520_p1 = pnand %p21519_p0, %p21513_p11 }
  0x52   :  { %21523 = shalt.err (!%p21520_p1)
}
  0x53   :  { %175 = dma.hbm_to_vmem [thread:$0]  %s24754_s14, 1024, %s170_s5, [#allocation21], %s21766_s1, %s21766_s1, %s21767_s26  }
  0x54   :  { %s21772_s25 = smov [#allocation23]   ;;  %s21773_s28 = smov [#allocation2]  }
  0x55   :  { %s192_s7 = sshll.u32 %s21772_s25, 4  ;;  %s45_s29 = sshll.u32 %s21773_s28, 4  ;;  %s193_s7 = int_to_ptr.vmem [resolvable:$true] %s192_s7  ;;  %s46_s29 = int_to_ptr.vmem [resolvable:$true] %s45_s29 }
  0x56   :  { %s21532_s11 = scalar_lea.vmem %s193_s7, 16  ;;  %s21536_s3 = scalar_lea.vmem %s193_s7, 32 }
  0x57   :  { %p21533_p2 = scmp.ne.s32.totalorder %s193_s7, %s21532_s11  ;;  %p21537_p3 = scmp.lt.s32.totalorder %s193_s7, %s193_s7 }
  0x58   :  { %p21538_p4 = scmp.lt.s32.totalorder %s21536_s3, %s21532_s11 }
  0x5a   :  { %p21539_p5 = por %p21538_p4, %p21537_p3 }
  0x5c   :  { %p21540_p6 = pnand %p21539_p5, %p21533_p2 }
  0x5e   :  { %21543 = shalt.err (!%p21540_p6)
}
  0x5f   :  { %195 = dma.hbm_to_vmem [thread:$0]  %s24756_s16, 16, %s193_s7, [#allocation24]  }
  0x60   :  { %s21552_s2 = scalar_lea.vmem %s46_s29, 2048  ;;  %p21557_p8 = scmp.lt.s32.totalorder %s46_s29, %s46_s29 }
  0x61   :  { %p21553_p7 = scmp.ne.s32.totalorder %s46_s29, %s21552_s2  ;;  %p21558_p9 = scmp.lt.s32.totalorder %s21552_s2, %s21552_s2 }
  0x63   :  { %p21559_p10 = por %p21558_p9, %p21557_p8 }
  0x65   :  { %p21560_p11 = pnand %p21559_p10, %p21553_p7 }
  0x67   :  { %21563 = shalt.err (!%p21560_p11)
}
  0x68   :  { %s24838_s24 = sld [smem:[#allocation69_spill]]  ;;  %s21774_s30 = smov [#allocation7]  }
  0x69   :  { %s70_s6 = sshll.u32 %s21774_s30, 4  ;;  %s21775_s27 = smov [#allocation10]   ;;  %s71_s6 = int_to_ptr.vmem [resolvable:$true] %s70_s6 }
  0x6a   :  { %s89_s8 = sshll.u32 %s21775_s27, 4  ;;  %s21572_s16 = scalar_lea.vmem %s71_s6, 16  ;;  %s90_s8 = int_to_ptr.vmem [resolvable:$true] %s89_s8 }
  0x6b   :  { %p21573_p12 = scmp.ne.s32.totalorder %s71_s6, %s21572_s16  ;;  %s21576_s23 = scalar_lea.vmem %s71_s6, 32 }
  0x6c   :  { %p21577_p13 = scmp.lt.s32.totalorder %s71_s6, %s71_s6  ;;  %p21578_p0 = scmp.lt.s32.totalorder %s21576_s23, %s21572_s16 }
  0x6e   :  { %51 = dma.hbm_to_vmem [thread:$0]  %s24838_s24, 2048, %s46_s29, [#allocation3], %s21766_s1, %s21766_s1, %s21767_s26  }
  0x6f   :  { %p21579_p1 = por %p21578_p0, %p21577_p13 }
  0x71   :  { %p21580_p2 = pnand %p21579_p1, %p21573_p12 }
  0x73   :  { %21583 = shalt.err (!%p21580_p2)
}
  0x74   :  { %s24839_s28 = sld [smem:[#allocation71_spill]]  ;;  %s21592_s11 = scalar_lea.vmem %s90_s8, 1024 }
  0x75   :  { %p21593_p3 = scmp.ne.s32.totalorder %s90_s8, %s21592_s11  ;;  %p21597_p4 = scmp.lt.s32.totalorder %s90_s8, %s90_s8 }
  0x76   :  { %p21598_p5 = scmp.lt.s32.totalorder %s21592_s11, %s21592_s11 }
  0x78   :  { %p21599_p6 = por %p21598_p5, %p21597_p4 }
  0x7a   :  { %73 = dma.hbm_to_vmem [thread:$0]  %s24839_s28, 16, %s71_s6, [#allocation6]  }
  0x7b   :  { %p21600_p7 = pnand %p21599_p6, %p21593_p3 }
  0x7d   :  { %21603 = shalt.err (!%p21600_p7)
}
  0x7e   :  { %s24840_s0 = sld [smem:[#allocation73_spill]]  ;;  %s21776_s4 = smov [#allocation13]  }
  0x7f   :  { %s114_s2 = sshll.u32 %s21776_s4, 4  ;;  %s21777_s14 = smov [#allocation16]   ;;  %s115_s2 = int_to_ptr.vmem [resolvable:$true] %s114_s2 }
  0x80   :  { %s133_s5 = sshll.u32 %s21777_s14, 4  ;;  %s21612_s24 = scalar_lea.vmem %s115_s2, 16  ;;  %s134_s5 = int_to_ptr.vmem [resolvable:$true] %s133_s5 }
  0x81   :  { %p21613_p8 = scmp.ne.s32.totalorder %s115_s2, %s21612_s24  ;;  %s21616_s30 = scalar_lea.vmem %s115_s2, 32 }
  0x82   :  { %p21617_p9 = scmp.lt.s32.totalorder %s115_s2, %s115_s2  ;;  %p21618_p10 = scmp.lt.s32.totalorder %s21616_s30, %s21612_s24 }
  0x84   :  { %95 = dma.hbm_to_vmem [thread:$0]  %s24840_s0, 1024, %s90_s8, [#allocation9], %s21766_s1, %s21766_s1, %s21767_s26  }
  0x85   :  { %p21619_p11 = por %p21618_p10, %p21617_p9 }
  0x87   :  { %p21620_p12 = pnand %p21619_p11, %p21613_p8 }
  0x89   :  { %21623 = shalt.err (!%p21620_p12)
}
  0x8a   :  { %s24841_s16 = sld [smem:[#allocation75_spill]]  ;;  %s21632_s23 = scalar_lea.vmem %s134_s5, 512 }
  0x8b   :  { %p21633_p13 = scmp.ne.s32.totalorder %s134_s5, %s21632_s23  ;;  %p21637_p0 = scmp.lt.s32.totalorder %s134_s5, %s134_s5 }
  0x8c   :  { %p21638_p1 = scmp.lt.s32.totalorder %s21632_s23, %s21632_s23 }
  0x8e   :  { %p21639_p2 = por %p21638_p1, %p21637_p0 }
  0x90   :  { %117 = dma.hbm_to_vmem [thread:$0]  %s24841_s16, 16, %s115_s2, [#allocation12]  }
  0x91   :  { %p21640_p3 = pnand %p21639_p2, %p21633_p13 }
  0x93   :  { %21643 = shalt.err (!%p21640_p3)
}
  0x94   :  { %139 = dma.hbm_to_vmem [thread:$0]  %s24749_s9, 512, %s134_s5, [#allocation15], %s21766_s1, %s21766_s1, %s21767_s26  }
  0x95   :  { %s21778_s7 = smov [#allocation19]   ;;  %s21779_s11 = smov [#allocation22]  }
  0x96   :  { %s158_s28 = sshll.u32 %s21778_s7, 4  ;;  %s182_s29 = sshll.u32 %s21779_s11, 4  ;;  %s159_s28 = int_to_ptr.vmem [resolvable:$true] %s158_s28  ;;  %s183_s29 = int_to_ptr.vmem [resolvable:$true] %s182_s29 }
  0x97   :  { %s21652_s3 = scalar_lea.vmem %s159_s28, 16  ;;  %s21656_s0 = scalar_lea.vmem %s159_s28, 32 }
  0x98   :  { %p21653_p4 = scmp.ne.s32.totalorder %s159_s28, %s21652_s3  ;;  %p21657_p5 = scmp.lt.s32.totalorder %s159_s28, %s159_s28 }
  0x99   :  { %p21658_p6 = scmp.lt.s32.totalorder %s21656_s0, %s21652_s3 }
  0x9b   :  { %p21659_p7 = por %p21658_p6, %p21657_p5 }
  0x9d   :  { %p21660_p8 = pnand %p21659_p7, %p21653_p4 }
  0x9f   :  { %21663 = shalt.err (!%p21660_p8)
}
  0xa0   :  { %161 = dma.hbm_to_vmem [thread:$0]  %s24752_s12, 16, %s159_s28, [#allocation18]  }
  0xa1   :  { %s21672_s14 = scalar_lea.vmem %s183_s29, 16  ;;  %s21676_s9 = scalar_lea.vmem %s183_s29, 32 }
  0xa2   :  { %p21673_p9 = scmp.ne.s32.totalorder %s183_s29, %s21672_s14  ;;  %p21677_p10 = scmp.lt.s32.totalorder %s183_s29, %s183_s29 }
  0xa3   :  { %p21678_p11 = scmp.lt.s32.totalorder %s21676_s9, %s21672_s14 }
  0xa5   :  { %p21679_p12 = por %p21678_p11, %p21677_p10 }
  0xa7   :  { %p21680_p13 = pnand %p21679_p12, %p21673_p9 }
  0xa9   :  { %21683 = shalt.err (!%p21680_p13)
}
  0xaa   :  { %185 = dma.hbm_to_vmem [thread:$0]  %s24755_s15, 16, %s183_s29, [#allocation21]  }
  0xab   :  { %s21780_s5 = smov [#allocation25]   ;;  %s21781_s30 = smov [#allocation26]  }
  0xac   :  { %s202_s24 = sshll.u32 %s21780_s5, 4  ;;  %s214_s6 = sshll.u32 %s21781_s30, 4  ;;  %s203_s24 = int_to_ptr.vmem [resolvable:$true] %s202_s24  ;;  %s215_s6 = int_to_ptr.vmem [resolvable:$true] %s214_s6 }
  0xad   :  { %s21692_s27 = scalar_lea.vmem %s203_s24, 64  ;;  %p21697_p1 = scmp.lt.s32.totalorder %s203_s24, %s203_s24 }
  0xae   :  { %p21693_p0 = scmp.ne.s32.totalorder %s203_s24, %s21692_s27  ;;  %p21698_p2 = scmp.lt.s32.totalorder %s21692_s27, %s21692_s27 }
  0xb0   :  { %p21699_p3 = por %p21698_p2, %p21697_p1 }
  0xb2   :  { %p21700_p4 = pnand %p21699_p3, %p21693_p0 }
  0xb4   :  { %21703 = shalt.err (!%p21700_p4)
}
  0xb5   :  { %205 = dma.hbm_to_vmem [thread:$0]  %s24757_s17, 64, %s203_s24, [#allocation24]  }
  0xb6   :  { %s21712_s23 = scalar_lea.vmem %s215_s6, 16  ;;  %s21716_s15 = scalar_lea.vmem %s215_s6, 32 }
  0xb7   :  { %p21713_p5 = scmp.ne.s32.totalorder %s215_s6, %s21712_s23  ;;  %p21717_p6 = scmp.lt.s32.totalorder %s215_s6, %s215_s6 }
  0xb8   :  { %p21718_p7 = scmp.lt.s32.totalorder %s21716_s15, %s21712_s23 }
  0xba   :  { %p21719_p8 = por %p21718_p7, %p21717_p6 }
  0xbc   :  { %p21720_p9 = pnand %p21719_p8, %p21713_p5 }
  0xbe   :  { %21723 = shalt.err (!%p21720_p9)
}
  0xbf   :  { %217 = dma.hbm_to_vmem [thread:$0]  %s24759_s19, 16, %s215_s6, [#allocation27]  }
  0xc0   :  { %21744 = dma.done.wait [#allocation3], 2048  }
  0xc1   :  { %21745 = vsyncadd [#allocation3], 4294965248 }
  0xc2   :  { %21746 = dma.done.wait [#allocation6], 528  }
  0xc3   :  { %21747 = vsyncadd [#allocation6], 4294966768 }
  0xc4   :  { %21748 = dma.done.wait [#allocation9], 1040  }
  0xc5   :  { %21749 = vsyncadd [#allocation9], 4294966256 }
  0xc6   :  { %21750 = dma.done.wait [#allocation12], 1040  }
  0xc7   :  { %21751 = vsyncadd [#allocation12], 4294966256 }
  0xc8   :  { %21752 = dma.done.wait [#allocation15], 528  }
  0xc9   :  { %21753 = vsyncadd [#allocation15], 4294966768 }
  0xca   :  { %21754 = dma.done.wait [#allocation18], 32  }
  0xcb   :  { %21755 = vsyncadd [#allocation18], 4294967264 }
  0xcc   :  { %21756 = dma.done.wait [#allocation21], 1040  }
  0xcd   :  { %21757 = vsyncadd [#allocation21], 4294966256 }
  0xce   :  { %21758 = dma.done.wait [#allocation24], 80  }
  0xcf   :  { %21759 = vsyncadd [#allocation24], 4294967216 }
  0xd0   :  { %21760 = dma.done.wait [#allocation27], 16  }
  0xd1   :  { %21761 = vsyncadd [#allocation27], 4294967280  ;;  %s24842_s7 = sld [smem:[#allocation68_spill]]  ;;  %vm284_vm0 = vcmask 523264   ;;  %v280_v14 = vld [vmem:[#allocation2] sm:$0xff]  ;;  %v281_v19 = vld [vmem:[#allocation2 + $0x8] sm:$0xff] }
  0xd2   :  { %v286_v22 = vsel %vm284_vm0, %v280_v14, 0  ;;  %v289_v30 = vsel %vm284_vm0, %v281_v19, 0  ;;  %v282_v37 = vld [vmem:[#allocation2 + $0x10] sm:$0xff]  ;;  %v283_v42 = vld [vmem:[#allocation2 + $0x18] sm:$0xff]  ;;  %vm1649_vm1 = vcmask 64512   ;;  %vm5376_vm2 = vcmask 261120  }
  0xd3   :  { %v22041_v27 = vand.u32 4294901760, %v286_v22  ;;  %v22065_v36 = vand.u32 4294901760, %v289_v30  ;;  %v292_v50 = vsel %vm284_vm0, %v282_v37, 0  ;;  %v295_v53 = vsel %vm284_vm0, %v283_v42, 0  ;;  %s21782_s6 = smov 112   ;;  %s21785_s27 = smov 96  }
  0xd4   :  { %v22102_v52 = vand.u32 4294901760, %v292_v50  ;;  %v22112_v56 = vand.u32 4294901760, %v295_v53  ;;  %vm6565_vm3 = vcmask 130048   ;;  %vm21784_vm4 = vmmov 0   ;;  %s21786_s5 = smov [#allocation28]  }
  0xd5   :  { %v22062_v35 = vsub.f32 %v286_v22, %v22041_v27  ;;  %19411 = vmatprep.mubr.f32.mxu1 %v22041_v27  ;;  %v22082_v45 = vsub.f32 %v289_v30, %v22065_v36  ;;  %vm15516_vm5 = vcmask 257024   ;;  %vm15568_vm6 = vcmask 31744   ;;  %s18321_s24 = sshll.u32 %s21786_s5, 4  ;;  %s18322_s24 = int_to_ptr.vmem [resolvable:$true] %s18321_s24 }
  0xd6   :  { %v22129_v62 = vsub.f32 %v292_v50, %v22102_v52  ;;  %vm15572_vm7 = vcmask 1043456   ;;  %vm18313_vm8 = vcmask 25600   ;;  %s21724_s30 = scalar_lea.vmem %s18322_s24, 32  ;;  %p21729_p11 = scmp.lt.s32.totalorder %s18322_s24, %s18322_s24 }
  0xd7   :  { %v279_v0 = vld [vmem:[%s24842_s7 + $0x38] sm:$0xff]  ;;  %v278_v1 = vld [vmem:[%s24842_s7 + $0x30] sm:$0xff]  ;;  %v277_v2 = vld [vmem:[%s24842_s7 + $0x28] sm:$0xff]  ;;  %v372_v41 = vand.u32 4294901760, %v22062_v35  ;;  %v382_v51 = vand.u32 4294901760, %v22082_v45  ;;  %p21725_p10 = scmp.ne.s32.totalorder %s18322_s24, %s21724_s30  ;;  %p21730_p12 = scmp.lt.s32.totalorder %s21724_s30, %s21724_s30 }
  0xd8   :  { %v21982_v3 = vand.u32 4294901760, %v279_v0  ;;  %v21984_v4 = vand.u32 4294901760, %v278_v1  ;;  %v21986_v5 = vand.u32 4294901760, %v277_v2  ;;  %v276_v6 = vld [vmem:[%s24842_s7 + $0x20] sm:$0xff]  ;;  %v275_v7 = vld [vmem:[%s24842_s7 + $0x18] sm:$0xff]  ;;  %v274_v8 = vld [vmem:[%s24842_s7 + $0x10] sm:$0xff] }
  0xd9   :  { %v21997_v9 = vand.u32 4294901760, %v276_v6  ;;  %v21999_v10 = vand.u32 4294901760, %v275_v7  ;;  %v22001_v11 = vand.u32 4294901760, %v274_v8  ;;  %v273_v12 = vld [vmem:[%s24842_s7 + $0x8] sm:$0xff]  ;;  %v272_v13 = vld [vmem:[%s24842_s7] sm:$0xff]  ;;  %v373_v47 = vsub.f32 %v22062_v35, %v372_v41  ;;  %p21731_p13 = por %p21730_p12, %p21729_p11 }
  0xda   :  { %24843 = vst [vmem:[#allocation39_spill] sm:$0xff] %v21984_v4  ;;  %24844 = vst [vmem:[#allocation40_spill] sm:$0xff] %v21986_v5  ;;  %19373 = vmatprep.subr.mxu0 %v21982_v3  ;;  %v22011_v15 = vsub.f32 %v279_v0, %v21982_v3  ;;  %v22014_v16 = vsub.f32 %v278_v1, %v21984_v4  ;;  %v22016_v17 = vand.u32 4294901760, %v273_v12  ;;  %v22022_v20 = vand.u32 4294901760, %v272_v13 }
  0xdb   :  { %24845 = vst [vmem:[#allocation41_spill] sm:$0xff] %v21997_v9  ;;  %24846 = vst [vmem:[#allocation42_spill] sm:$0xff] %v21999_v10  ;;  %v22019_v18 = vsub.f32 %v277_v2, %v21986_v5  ;;  %19374 = vmatpush3.msra.mxu0 %v21982_v3  ;;  %v22025_v21 = vsub.f32 %v276_v6, %v21997_v9  ;;  %v22029_v23 = vsub.f32 %v275_v7, %v21999_v10  ;;  %p21732_p0 = pnand %p21731_p13, %p21725_p10 }
  0xdc   :  { %24847 = vst [vmem:[#allocation43_spill] sm:$0xff] %v22001_v11  ;;  %24848 = vst [vmem:[#allocation44_spill] sm:$0xff] %v22011_v15  ;;  %19375 = vmatprep.subr.mxu0 %v21984_v4  ;;  %v22033_v24 = vand.u32 4294901760, %v22011_v15  ;;  %v22036_v25 = vand.u32 4294901760, %v22014_v16  ;;  %v22052_v31 = vsub.f32 %v274_v8, %v22001_v11  ;;  %v22093_v48 = vsub.f32 %v273_v12, %v22016_v17 }
  0xdd   :  { %24849 = vst [vmem:[#allocation45_spill] sm:$0xff] %v22014_v16  ;;  %24850 = vst [vmem:[#allocation46_spill] sm:$0xff] %v22016_v17  ;;  %v22039_v26 = vand.u32 4294901760, %v22019_v18  ;;  %19376 = vmatpush3.msra.mxu0 %v21984_v4  ;;  %v22045_v28 = vand.u32 4294901760, %v22025_v21  ;;  %v22048_v29 = vand.u32 4294901760, %v22029_v23  ;;  %v22096_v49 = vsub.f32 %v272_v13, %v22022_v20 }
  0xde   :  { %24851 = vst [vmem:[#allocation47_spill] sm:$0xff] %v22019_v18  ;;  %24852 = vst [vmem:[#allocation48_spill] sm:$0xff] %v22022_v20  ;;  %19377 = vmatprep.subr.mxu0 %v21986_v5  ;;  %v430_v32 = vsub.f32 %v22011_v15, %v22033_v24  ;;  %v437_v33 = vsub.f32 %v22014_v16, %v22036_v25  ;;  %v22085_v46 = vand.u32 4294901760, %v22052_v31  ;;  %v22110_v55 = vand.u32 4294901760, %v22093_v48 }
  0xdf   :  { %24853 = vst [vmem:[#allocation49_spill] sm:$0xff] %v22025_v21  ;;  %24854 = vst [vmem:[#allocation50_spill] sm:$0xff] %v22029_v23  ;;  %v444_v34 = vsub.f32 %v22019_v18, %v22039_v26  ;;  %19378 = vmatpush3.msra.mxu0 %v21986_v5  ;;  %v451_v40 = vsub.f32 %v22025_v21, %v22045_v28  ;;  %v458_v44 = vsub.f32 %v22029_v23, %v22048_v29 }
  0xe0   :  { %24855 = vst [vmem:[#allocation51_spill] sm:$0xff] %v22033_v24  ;;  %24856 = vst [vmem:[#allocation52_spill] sm:$0xff] %v22036_v25  ;;  %19379 = vmatprep.subr.mxu0 %v21997_v9  ;;  %v22069_v38 = vand.u32 4294901760, %v430_v32  ;;  %v22071_v39 = vand.u32 4294901760, %v437_v33  ;;  %v383_v57 = vsub.f32 %v22082_v45, %v382_v51  ;;  %v465_v58 = vsub.f32 %v22052_v31, %v22085_v46  ;;  %v965_v32 = vld [vmem:[#allocation2 + $0x20] sm:$0xff]  ;;  %v966_v33 = vld [vmem:[#allocation2 + $0x28] sm:$0xff] }
  0xe1   :  { %24857 = vst [vmem:[#allocation53_spill] sm:$0xff] %v22039_v26  ;;  %24858 = vst [vmem:[#allocation54_spill] sm:$0xff] %v22045_v28  ;;  %19380 = vmatpush3.msra.mxu0 %v21997_v9  ;;  %v22077_v43 = vand.u32 4294901760, %v444_v34  ;;  %v22107_v54 = vand.u32 4294901760, %v451_v40  ;;  %v22122_v59 = vand.u32 4294901760, %v22096_v49  ;;  %v374_v60 = vand.u32 4294901760, %v373_v47 }
  0xe2   :  { %24859 = vst [vmem:[#allocation55_spill] sm:$0xff] %v22048_v29  ;;  %24860 = vst [vmem:[#allocation56_spill] sm:$0xff] %v22052_v31  ;;  %19381 = vmatprep.subr.mxu0 %v21999_v10  ;;  %19395 = vmatprep.subr.mxu1 %v22069_v38  ;;  %v22126_v61 = vand.u32 4294901760, %v458_v44  ;;  %v384_v63 = vand.u32 4294901760, %v383_v57  ;;  %v472_v0 = vsub.f32 %v22093_v48, %v22110_v55  ;;  %v22142_v2 = vand.u32 4294901760, %v465_v58  ;;  %v967_v44 = vld [vmem:[#allocation2 + $0x30] sm:$0xff] }
  0xe3   :  { %24861 = vst [vmem:[#allocation57_spill] sm:$0xff] %v22077_v43  ;;  %24862 = vst [vmem:[#allocation58_spill] sm:$0xff] %v22085_v46  ;;  %19382 = vmatpush3.msra.mxu0 %v21999_v10  ;;  %19396 = vmatpush3.msra.mxu1 %v22069_v38  ;;  %v22138_v1 = vsub.f32 %v295_v53, %v22112_v56  ;;  %v479_v6 = vsub.f32 %v22096_v49, %v22122_v59  ;;  %v392_v7 = vand.u32 4294901760, %v22129_v62  ;;  %v968_v47 = vld [vmem:[#allocation2 + $0x38] sm:$0xff] }
  0xe4   :  { %24863 = vst [vmem:[#allocation59_spill] sm:$0xff] %v22093_v48  ;;  %24864 = vst [vmem:[#allocation60_spill] sm:$0xff] %v22096_v49  ;;  %19383 = vmatprep.subr.mxu0 %v22001_v11  ;;  %19397 = vmatprep.subr.mxu1 %v22071_v39  ;;  %v22149_v8 = vand.u32 4294901760, %v472_v0  ;;  %v970_v34 = vsel %vm284_vm0, %v965_v32, 0 }
  0xe5   :  { %24865 = vst [vmem:[#allocation61_spill] sm:$0xff] %v22107_v54  ;;  %24866 = vst [vmem:[#allocation62_spill] sm:$0xff] %v22110_v55  ;;  %19384 = vmatpush3.msra.mxu0 %v22001_v11  ;;  %19398 = vmatpush3.msra.mxu1 %v22071_v39  ;;  %v402_v12 = vand.u32 4294901760, %v22138_v1  ;;  %v22156_v13 = vand.u32 4294901760, %v479_v6  ;;  %v393_v14 = vsub.f32 %v22129_v62, %v392_v7  ;;  %v22240_v37 = vand.u32 4294901760, %v970_v34 }
  0xe6   :  { %24867 = vst [vmem:[#allocation63_spill] sm:$0xff] %v22122_v59  ;;  %19385 = vmatprep.subr.mxu0 %v22016_v17  ;;  %19399 = vmatprep.subr.mxu1 %v22077_v43  ;;  %24868 = vst [vmem:[#allocation64_spill] sm:$0xff] %v22126_v61 }
  0xe7   :  { %19386 = vmatpush3.msra.mxu0 %v22016_v17  ;;  %19400 = vmatpush3.msra.mxu1 %v22077_v43  ;;  %24869 = vst [vmem:[#allocation65_spill] sm:$0xff] %v22142_v2  ;;  %24870 = vst [vmem:[#allocation66_spill] sm:$0xff] %v22149_v8  ;;  %v403_v19 = vsub.f32 %v22138_v1, %v402_v12  ;;  %v394_v22 = vand.u32 4294901760, %v393_v14  ;;  %v1648_v14 = vld [vmem:[#allocation5 + $0x8] sm:$0xff] }
  0xe8   :  { %19387 = vmatprep.subr.mxu0 %v22022_v20  ;;  %19401 = vmatprep.subr.mxu1 %v22107_v54  ;;  %24871 = vst [vmem:[#allocation67_spill] sm:$0xff] %v22156_v13 }
  0xe9   :  { %19388 = vmatpush3.msra.mxu0 %v22022_v20  ;;  %19402 = vmatpush3.msra.mxu1 %v22107_v54  ;;  %v404_v30 = vand.u32 4294901760, %v403_v19  ;;  %v22413_v19 = vand.u32 4294901760, %v1648_v14 }
  0xea   :  { %19389 = vmatprep.mubr.f32.mxu0 %v374_v60  ;;  %19403 = vmatprep.subr.mxu1 %v22126_v61 }
  0xeb   :  { %19417 = vmatprep.subr.mxu0 %v22011_v15  ;;  %19390 = vmatmul.mubr.f32.vlgmr.msra.gmra.mxu0 %v384_v63 }
  0xec   :  { %19404 = vmatpush3.msra.mxu1 %v22126_v61  ;;  %19418 = vmatpush3.msra.mxu0 %v22011_v15 }
  0xed   :  { %19405 = vmatprep.subr.mxu1 %v22142_v2  ;;  %19419 = vmatprep.subr.mxu0 %v22014_v16 }
  0xee   :  { %19406 = vmatpush3.msra.mxu1 %v22142_v2  ;;  %19420 = vmatpush3.msra.mxu0 %v22014_v16 }
  0xef   :  { %19407 = vmatprep.subr.mxu1 %v22149_v8  ;;  %19421 = vmatprep.subr.mxu0 %v22019_v18 }
  0xf0   :  { %19408 = vmatpush3.msra.mxu1 %v22149_v8  ;;  %19422 = vmatpush3.msra.mxu0 %v22019_v18 }
  0xf1   :  { %19409 = vmatprep.subr.mxu1 %v22156_v13  ;;  %19423 = vmatprep.subr.mxu0 %v22025_v21 }
  0xf2   :  { %19410 = vmatpush3.msra.mxu1 %v22156_v13  ;;  %19424 = vmatpush3.msra.mxu0 %v22025_v21 }
  0xf3   :  { %19412 = vmatmul.mubr.f32.vlgmr.msra.gmra.mxu1 %v22065_v36  ;;  %19425 = vmatprep.subr.mxu0 %v22029_v23 }
  0xf4   :  { %19439 = vmatprep.subr.mxu1 %v21982_v3  ;;  %19426 = vmatpush3.msra.mxu0 %v22029_v23 }
  0xf5   :  { %19440 = vmatpush3.msra.mxu1 %v21982_v3  ;;  %19427 = vmatprep.subr.mxu0 %v22052_v31 }
  0xf6   :  { %19441 = vmatprep.subr.mxu1 %v21984_v4  ;;  %19392 = vmatprep.mubr.f32.mxu0 %v394_v22  ;;  %v22416_v22 = vsub.f32 %v1648_v14, %v22413_v19 }
  0xf7   :  { %19428 = vmatpush3.msra.mxu0 %v22052_v31  ;;  %19442 = vmatpush3.msra.mxu1 %v21984_v4 }
  0xf8   :  { %19393 = vmatmul.mubr.f32.gmra.mxu0 %v404_v30  ;;  %19429 = vmatprep.subr.mxu0 %v22093_v48  ;;  %v22421_v30 = vand.u32 4294901760, %v22416_v22 }
  0xf9   :  { %19443 = vmatprep.subr.mxu1 %v21986_v5  ;;  %19430 = vmatpush3.msra.mxu0 %v22093_v48 }
  0xfa   :  { %19444 = vmatpush3.msra.mxu1 %v21986_v5  ;;  %19431 = vmatprep.subr.mxu0 %v22096_v49  ;;  %v1802_v32 = vsub.f32 %v22416_v22, %v22421_v30 }
  0xfb   :  { %19445 = vmatprep.subr.mxu1 %v21997_v9  ;;  %19432 = vmatpush3.msra.mxu0 %v22096_v49 }
  0xfc   :  { %19433 = vmatprep.mubr.f32.mxu0 %v22062_v35  ;;  %19446 = vmatpush3.msra.mxu1 %v21997_v9  ;;  %v973_v35 = vsel %vm284_vm0, %v966_v33, 0  ;;  %v1803_v33 = vand.u32 4294901760, %v1802_v32 }
  0xfd   :  { %19414 = vmatprep.mubr.f32.mxu1 %v22102_v52  ;;  %19434 = vmatmul.mubr.f32.vlgmr.msra.gmra.mxu0 %v22082_v45  ;;  %v22246_v40 = vand.u32 4294901760, %v973_v35 }
  0xfe   :  { %19447 = vmatprep.subr.mxu1 %v21999_v10  ;;  %19461 = vmatprep.subr.mxu0 %v22033_v24 }
  0xff   :  { %19415 = vmatmul.mubr.f32.gmra.mxu1 %v22112_v56  ;;  %19462 = vmatpush3.msra.mxu0 %v22033_v24  ;;  %v22260_v42 = vsub.f32 %v973_v35, %v22246_v40 }
 0x100   :  { %19448 = vmatpush3.msra.mxu1 %v21999_v10  ;;  %19463 = vmatprep.subr.mxu0 %v22036_v25 }
 0x101   :  { %19449 = vmatprep.subr.mxu1 %v22001_v11  ;;  %19436 = vmatprep.mubr.f32.mxu0 %v22129_v62  ;;  %v1066_v50 = vand.u32 4294901760, %v22260_v42 }
 0x102   :  { %19450 = vmatpush3.msra.mxu1 %v22001_v11  ;;  %19464 = vmatpush3.msra.mxu0 %v22036_v25 }
 0x103   :  { %19437 = vmatmul.mubr.f32.gmra.mxu0 %v22138_v1  ;;  %19451 = vmatprep.subr.mxu1 %v22016_v17 }
 0x104   :  { %19465 = vmatprep.subr.mxu0 %v22039_v26  ;;  %19452 = vmatpush3.msra.mxu1 %v22016_v17 }
 0x105   :  { %19466 = vmatpush3.msra.mxu0 %v22039_v26  ;;  %19453 = vmatprep.subr.mxu1 %v22022_v20 }
 0x106   :  { %19467 = vmatprep.subr.mxu0 %v22045_v28  ;;  %19454 = vmatpush3.msra.mxu1 %v22022_v20 }
 0x107   :  { %19455 = vmatprep.mubr.f32.mxu1 %v372_v41  ;;  %19468 = vmatpush3.msra.mxu0 %v22045_v28  ;;  %v22253_v41 = vsub.f32 %v970_v34, %v22240_v37 }
 0x108   :  { %19456 = vmatmul.mubr.f32.vlgmr.msra.gmra.mxu1 %v382_v51  ;;  %19469 = vmatprep.subr.mxu0 %v22048_v29  ;;  %v976_v51 = vsel %vm284_vm0, %v967_v44, 0 }
 0x109   :  { %19483 = vmatprep.subr.mxu1 %v21982_v3  ;;  %19470 = vmatpush3.msra.mxu0 %v22048_v29  ;;  %v1056_v45 = vand.u32 4294901760, %v22253_v41  ;;  %v22283_v57 = vand.u32 4294901760, %v976_v51 }
 0x10a   :  { %19484 = vmatpush3.msra.mxu1 %v21982_v3  ;;  %19471 = vmatprep.subr.mxu0 %v22085_v46 }
 0x10b   :  { %19485 = vmatprep.subr.mxu1 %v21984_v4  ;;  %19458 = vmatprep.mubr.f32.mxu1 %v392_v7  ;;  %v1057_v53 = vsub.f32 %v22253_v41, %v1056_v45 }
 0x10c   :  { %19472 = vmatpush3.msra.mxu0 %v22085_v46  ;;  %19486 = vmatpush3.msra.mxu1 %v21984_v4 }
 0x10d   :  { %19459 = vmatmul.mubr.f32.gmra.mxu1 %v402_v12  ;;  %19473 = vmatprep.subr.mxu0 %v22110_v55  ;;  %v1058_v60 = vand.u32 4294901760, %v1057_v53 }
 0x10e   :  { %19487 = vmatprep.subr.mxu1 %v21986_v5  ;;  %19474 = vmatpush3.msra.mxu0 %v22110_v55 }
 0x10f   :  { %19488 = vmatpush3.msra.mxu1 %v21986_v5  ;;  %19475 = vmatprep.subr.mxu0 %v22122_v59 }
 0x110   :  { %19489 = vmatprep.subr.mxu1 %v21997_v9  ;;  %19476 = vmatpush3.msra.mxu0 %v22122_v59 }
 0x111   :  { %19477 = vmatprep.mubr.f32.mxu0 %v22041_v27  ;;  %19490 = vmatpush3.msra.mxu1 %v21997_v9 }
 0x112   :  { %19478 = vmatmul.mubr.f32.vlgmr.msra.gmra.mxu0 %v22065_v36  ;;  %19491 = vmatprep.subr.mxu1 %v21999_v10 }
 0x113   :  { %19505 = vmatprep.subr.mxu0 %v21982_v3  ;;  %19492 = vmatpush3.msra.mxu1 %v21999_v10 }
 0x114   :  { %19506 = vmatpush3.msra.mxu0 %v21982_v3  ;;  %19493 = vmatprep.subr.mxu1 %v22001_v11 }
 0x115   :  { %19507 = vmatprep.subr.mxu0 %v21984_v4  ;;  %19480 = vmatprep.mubr.f32.mxu0 %v22102_v52 }
 0x116   :  { %19494 = vmatpush3.msra.mxu1 %v22001_v11  ;;  %19508 = vmatpush3.msra.mxu0 %v21984_v4 }
 0x117   :  { %19481 = vmatmul.mubr.f32.gmra.mxu0 %v22112_v56  ;;  %19495 = vmatprep.subr.mxu1 %v22016_v17 }
 0x118   :  { %19509 = vmatprep.subr.mxu0 %v21986_v5  ;;  %19496 = vmatpush3.msra.mxu1 %v22016_v17 }
 0x119   :  { %19510 = vmatpush3.msra.mxu0 %v21986_v5  ;;  %19497 = vmatprep.subr.mxu1 %v22022_v20 }
 0x11a   :  { %19511 = vmatprep.subr.mxu0 %v21997_v9  ;;  %19498 = vmatpush3.msra.mxu1 %v22022_v20 }
 0x11b   :  { %19499 = vmatprep.mubr.f32.mxu1 %v22041_v27  ;;  %19512 = vmatpush3.msra.mxu0 %v21997_v9  ;;  %v979_v27 = vsel %vm284_vm0, %v968_v47, 0 }
 0x11c   :  { %19500 = vmatmul.mubr.f32.vlgmr.msra.gmra.mxu1 %v22065_v36  ;;  %19513 = vmatprep.subr.mxu0 %v21999_v10  ;;  %v1067_v36 = vsub.f32 %v22260_v42, %v1066_v50  ;;  %v22292_v58 = vand.u32 4294901760, %v979_v27 }
 0x11d   :  { %19527 = vmatprep.subr.mxu1 %v22069_v38  ;;  %19514 = vmatpush3.msra.mxu0 %v21999_v10 }
 0x11e   :  { %19528 = vmatpush3.msra.mxu1 %v22069_v38  ;;  %19515 = vmatprep.subr.mxu0 %v22001_v11  ;;  %v1068_v62 = vand.u32 4294901760, %v1067_v36 }
 0x11f   :  { %19529 = vmatprep.subr.mxu1 %v22071_v39  ;;  %19502 = vmatprep.mubr.f32.mxu1 %v22102_v52  ;;  %v22299_v52 = vsub.f32 %v976_v51, %v22283_v57 }
 0x120   :  { %19516 = vmatpush3.msra.mxu0 %v22001_v11  ;;  %19530 = vmatpush3.msra.mxu1 %v22071_v39 }
 0x121   :  { %19503 = vmatmul.mubr.f32.gmra.mxu1 %v22112_v56  ;;  %19517 = vmatprep.subr.mxu0 %v22016_v17  ;;  %v22306_v56 = vsub.f32 %v979_v27, %v22292_v58  ;;  %v1076_v63 = vand.u32 4294901760, %v22299_v52 }
 0x122   :  { %19531 = vmatprep.subr.mxu1 %v22077_v43  ;;  %19518 = vmatpush3.msra.mxu0 %v22016_v17 }
 0x123   :  { %19532 = vmatpush3.msra.mxu1 %v22077_v43  ;;  %19519 = vmatprep.subr.mxu0 %v22022_v20  ;;  %v1086_v0 = vand.u32 4294901760, %v22306_v56  ;;  %v1077_v1 = vsub.f32 %v22299_v52, %v1076_v63 }
 0x124   :  { %19533 = vmatprep.subr.mxu1 %v22107_v54  ;;  %19520 = vmatpush3.msra.mxu0 %v22022_v20 }
 0x125   :  { %19534 = vmatpush3.msra.mxu1 %v22107_v54  ;;  %19521 = vmatprep.mubr.f32.mxu0 %v1058_v60  ;;  %v1087_v6 = vsub.f32 %v22306_v56, %v1086_v0  ;;  %v1078_v7 = vand.u32 4294901760, %v1077_v1 }
 0x126   :  { %19535 = vmatprep.subr.mxu1 %v22126_v61  ;;  %19549 = vmatprep.subr.mxu0 %v22011_v15 }
 0x127   :  { %19522 = vmatmul.mubr.f32.vlgmr.msra.gmra.mxu0 %v1068_v62  ;;  %19536 = vmatpush3.msra.mxu1 %v22126_v61  ;;  %v1088_v12 = vand.u32 4294901760, %v1087_v6 }
 0x128   :  { %19550 = vmatpush3.msra.mxu0 %v22011_v15  ;;  %19537 = vmatprep.subr.mxu1 %v22142_v2 }
 0x129   :  { %19551 = vmatprep.subr.mxu0 %v22014_v16  ;;  %19538 = vmatpush3.msra.mxu1 %v22142_v2 }
 0x12a   :  { %19552 = vmatpush3.msra.mxu0 %v22014_v16  ;;  %19539 = vmatprep.subr.mxu1 %v22149_v8 }
 0x12b   :  { %19553 = vmatprep.subr.mxu0 %v22019_v18  ;;  %19540 = vmatpush3.msra.mxu1 %v22149_v8 }
 0x12c   :  { %19554 = vmatpush3.msra.mxu0 %v22019_v18  ;;  %19541 = vmatprep.subr.mxu1 %v22156_v13 }
 0x12d   :  { %19555 = vmatprep.subr.mxu0 %v22025_v21  ;;  %19542 = vmatpush3.msra.mxu1 %v22156_v13 }
 0x12e   :  { %19543 = vmatprep.mubr.f32.mxu1 %v22240_v37  ;;  %19556 = vmatpush3.msra.mxu0 %v22025_v21 }
 0x12f   :  { %19544 = vmatmul.mubr.f32.vlgmr.msra.gmra.mxu1 %v22246_v40  ;;  %19557 = vmatprep.subr.mxu0 %v22029_v23 }
 0x130   :  { %19571 = vmatprep.subr.mxu1 %v21982_v3  ;;  %19558 = vmatpush3.msra.mxu0 %v22029_v23 }
 0x131   :  { %19572 = vmatpush3.msra.mxu1 %v21982_v3  ;;  %19559 = vmatprep.subr.mxu0 %v22052_v31 }
 0x132   :  { %19573 = vmatprep.subr.mxu1 %v21984_v4  ;;  %19524 = vmatprep.mubr.f32.mxu0 %v1078_v7 }
 0x133   :  { %19560 = vmatpush3.msra.mxu0 %v22052_v31  ;;  %19574 = vmatpush3.msra.mxu1 %v21984_v4 }
 0x134   :  { %19525 = vmatmul.mubr.f32.gmra.mxu0 %v1088_v12  ;;  %19561 = vmatprep.subr.mxu0 %v22093_v48 }
 0x135   :  { %19575 = vmatprep.subr.mxu1 %v21986_v5  ;;  %19562 = vmatpush3.msra.mxu0 %v22093_v48 }
 0x136   :  { %19576 = vmatpush3.msra.mxu1 %v21986_v5  ;;  %19563 = vmatprep.subr.mxu0 %v22096_v49 }
 0x137   :  { %19577 = vmatprep.subr.mxu1 %v21997_v9  ;;  %19564 = vmatpush3.msra.mxu0 %v22096_v49 }
 0x138   :  { %19565 = vmatprep.mubr.f32.mxu0 %v22253_v41  ;;  %19578 = vmatpush3.msra.mxu1 %v21997_v9 }
 0x139   :  { %19546 = vmatprep.mubr.f32.mxu1 %v22283_v57  ;;  %19566 = vmatmul.mubr.f32.vlgmr.msra.gmra.mxu0 %v22260_v42 }
 0x13a   :  { %19579 = vmatprep.subr.mxu1 %v21999_v10  ;;  %19593 = vmatprep.subr.mxu0 %v22033_v24 }
 0x13b   :  { %19547 = vmatmul.mubr.f32.gmra.mxu1 %v22292_v58  ;;  %19594 = vmatpush3.msra.mxu0 %v22033_v24 }
 0x13c   :  { %19580 = vmatpush3.msra.mxu1 %v21999_v10  ;;  %19595 = vmatprep.subr.mxu0 %v22036_v25 }
 0x13d   :  { %19581 = vmatprep.subr.mxu1 %v22001_v11  ;;  %19568 = vmatprep.mubr.f32.mxu0 %v22299_v52 }
 0x13e   :  { %19582 = vmatpush3.msra.mxu1 %v22001_v11  ;;  %19596 = vmatpush3.msra.mxu0 %v22036_v25 }
 0x13f   :  { %19569 = vmatmul.mubr.f32.gmra.mxu0 %v22306_v56  ;;  %19583 = vmatprep.subr.mxu1 %v22016_v17 }
 0x140   :  { %19597 = vmatprep.subr.mxu0 %v22039_v26  ;;  %19584 = vmatpush3.msra.mxu1 %v22016_v17 }
 0x141   :  { %19598 = vmatpush3.msra.mxu0 %v22039_v26  ;;  %19585 = vmatprep.subr.mxu1 %v22022_v20 }
 0x142   :  { %19599 = vmatprep.subr.mxu0 %v22045_v28  ;;  %19586 = vmatpush3.msra.mxu1 %v22022_v20 }
 0x143   :  { %19587 = vmatprep.mubr.f32.mxu1 %v1056_v45  ;;  %19600 = vmatpush3.msra.mxu0 %v22045_v28 }
 0x144   :  { %19588 = vmatmul.mubr.f32.vlgmr.msra.gmra.mxu1 %v1066_v50  ;;  %19601 = vmatprep.subr.mxu0 %v22048_v29 }
 0x145   :  { %19615 = vmatprep.subr.mxu1 %v21982_v3  ;;  %19602 = vmatpush3.msra.mxu0 %v22048_v29 }
 0x146   :  { %19616 = vmatpush3.msra.mxu1 %v21982_v3  ;;  %19603 = vmatprep.subr.mxu0 %v22085_v46 }
 0x147   :  { %19617 = vmatprep.subr.mxu1 %v21984_v4  ;;  %19590 = vmatprep.mubr.f32.mxu1 %v1076_v63 }
 0x148   :  { %19604 = vmatpush3.msra.mxu0 %v22085_v46  ;;  %19618 = vmatpush3.msra.mxu1 %v21984_v4 }
 0x149   :  { %19591 = vmatmul.mubr.f32.gmra.mxu1 %v1086_v0  ;;  %19605 = vmatprep.subr.mxu0 %v22110_v55 }
 0x14a   :  { %19619 = vmatprep.subr.mxu1 %v21986_v5  ;;  %19606 = vmatpush3.msra.mxu0 %v22110_v55 }
 0x14b   :  { %19620 = vmatpush3.msra.mxu1 %v21986_v5  ;;  %19607 = vmatprep.subr.mxu0 %v22122_v59 }
 0x14c   :  { %19621 = vmatprep.subr.mxu1 %v21997_v9  ;;  %19608 = vmatpush3.msra.mxu0 %v22122_v59 }
 0x14d   :  { %19609 = vmatprep.mubr.f32.mxu0 %v22240_v37  ;;  %19622 = vmatpush3.msra.mxu1 %v21997_v9 }
 0x14e   :  { %19610 = vmatmul.mubr.f32.vlgmr.msra.gmra.mxu0 %v22246_v40  ;;  %19623 = vmatprep.subr.mxu1 %v21999_v10 }
 0x14f   :  { %19624 = vmatpush3.msra.mxu1 %v21999_v10  ;;  %19612 = vmatprep.mubr.f32.mxu0 %v22283_v57 }
 0x150   :  { %19625 = vmatprep.subr.mxu1 %v22001_v11  ;;  %19631 = vmatprep.mubr.f32.mxu1 %v22240_v37 }
 0x151   :  { %19626 = vmatpush3.msra.mxu1 %v22001_v11  ;;  %19637 = vmatprep.subr.mxu0 %v22413_v19 }
 0x152   :  { %19613 = vmatmul.mubr.f32.gmra.mxu0 %v22292_v58  ;;  %19627 = vmatprep.subr.mxu1 %v22016_v17 }
 0x153   :  { %19628 = vmatpush3.msra.mxu1 %v22016_v17  ;;  %19638 = vmatpush3.msra.mxu0 %v22413_v19 }
 0x154   :  { %19629 = vmatprep.subr.mxu1 %v22022_v20  ;;  %19653 = vmatprep.subr.mxu0 %v22416_v22 }
 0x155   :  { %19630 = vmatpush3.msra.mxu1 %v22022_v20  ;;  %v963_v20 = vld [vmem:[#allocation5] sm:$0xff] }
 0x156   :  { %19632 = vmatmul.mubr.f32.vlgmr.msra.gmra.mxu1 %v22246_v40  ;;  %19645 = vmatprep.subr.mxu1 %v1803_v33  ;;  %v22475_v2 = vand.u32 4294901760, %v963_v20 }
 0x157   :  { %19634 = vmatprep.mubr.f32.mxu1 %v22283_v57  ;;  %19646 = vmatpush3.msra.mxu1 %v1803_v33 }
 0x158   :  { %19661 = vmatprep.subr.mxu1 %v22413_v19 }
 0x15a   :  { %19635 = vmatmul.mubr.f32.gmra.mxu1 %v22292_v58 }
 0x1ab   :  { %v22427_v34 = vpop.f32.mrf.mxu0 }
 0x1ad   :  { %v22429_v35 = vpop.f32.mrf.mxu0 }
 0x1b3   :  { %v22435_v41 = vpop.f32.mrf.mxu1 }
 0x1b5   :  { %v22439_v44 = vpop.f32.mrf.mxu1 }
 0x1b8   :  { %v22431_v37 = vpop.f32.mrf.mxu0 }
 0x1ba   :  { %v22433_v40 = vpop.f32.mrf.mxu0 }
 0x1bd   :  { %v22437_v42 = vpop.f32.mrf.mxu0 }
 0x1bf   :  { %v22441_v45 = vpop.f32.mrf.mxu1  ;;  %v22443_v47 = vpop.f32.mrf.mxu0 }
 0x1c1   :  { %v22445_v50 = vpop.f32.mrf.mxu1 }
 0x1c3   :  { %v22447_v51 = vpop.f32.mrf.mxu0 }
 0x1c5   :  { %v22451_v27 = vpop.f32.mrf.mxu0 }
 0x1c8   :  { %v22449_v53 = vpop.f32.mrf.mxu1 }
 0x1ca   :  { %v22453_v57 = vpop.f32.mrf.mxu1 }
 0x1cd   :  { %v22457_v58 = vpop.f32.mrf.mxu1 }
 0x1cf   :  { %v22461_v52 = vpop.f32.mrf.mxu1 }
 0x1d2   :  { %v22455_v36 = vpop.f32.mrf.mxu0 }
 0x1d4   :  { %v22459_v60 = vpop.f32.mrf.mxu0 }
 0x1d7   :  { %v22463_v62 = vpop.f32.mrf.mxu0 }
 0x1d9   :  { %v22467_v63 = vpop.f32.mrf.mxu0 }
 0x1dc   :  { %v22465_v56 = vpop.f32.mrf.mxu1 }
 0x1de   :  { %v22469_v0 = vpop.f32.mrf.mxu1 }
 0x1e1   :  { %v22471_v6 = vpop.f32.mrf.mxu1 }
 0x1e3   :  { %v22473_v14 = vpop.f32.mrf.mxu1 }
 0x1e7   :  { %v19523_v1 = vpop.f32.mrf.mxu0 }
 0x1e9   :  { %v1060_v7 = vpop.f32.mrf.mxu0 }
 0x1ef   :  { %v19545_v32 = vpop.f32.mrf.mxu1 }
 0x1f0   :  { %v1208_v31 = vadd.f32 %v19545_v32, %v19523_v1 }
 0x1f1   :  { %v1201_v59 = vpop.f32.mrf.mxu1 }
 0x1f2   :  { %v1202_v18 = vadd.f32 %v1201_v59, %v1060_v7 }
 0x1f4   :  { %v19526_v12 = vpop.f32.mrf.mxu0 }
 0x1f6   :  { %v1080_v33 = vpop.f32.mrf.mxu0 }
 0x1f9   :  { %v19567_v55 = vpop.f32.mrf.mxu0 }
 0x1fa   :  { %v1315_v16 = vadd.f32 %v19567_v55, %v1208_v31 }
 0x1fb   :  { %v19548_v46 = vpop.f32.mrf.mxu1  ;;  %v1307_v29 = vpop.f32.mrf.mxu0 }
 0x1fc   :  { %v1220_v15 = vadd.f32 %v19548_v46, %v19526_v12  ;;  %v1308_v17 = vadd.f32 %v1307_v29, %v1202_v18  ;;  %v22478_v46 = vsub.f32 %v963_v20, %v22475_v2 }
 0x1fd   :  { %v1213_v28 = vpop.f32.mrf.mxu1 }
 0x1fe   :  { %v1214_v13 = vadd.f32 %v1213_v28, %v1080_v33 }
 0x1ff   :  { %v19570_v26 = vpop.f32.mrf.mxu0 }
 0x200   :  { %v1329_v9 = vadd.f32 %v19570_v26, %v1220_v15  ;;  %v530_v26 = vadd.f32 %v22445_v50, %v22433_v40 }
 0x201   :  { %v1321_v24 = vpop.f32.mrf.mxu0 }
 0x202   :  { %v1322_v54 = vadd.f32 %v1321_v24, %v1214_v13 }
 0x204   :  { %v19589_v25 = vpop.f32.mrf.mxu1 }
 0x205   :  { %v1418_v11 = vadd.f32 %v19589_v25, %v1315_v16 }
 0x206   :  { %v1409_v49 = vpop.f32.mrf.mxu1 }
 0x207   :  { %v1410_v5 = vadd.f32 %v1409_v49, %v1308_v17  ;;  %v524_v17 = vadd.f32 %v22435_v41, %v22427_v34  ;;  %v536_v34 = vadd.f32 %v22441_v45, %v22431_v37 }
 0x209   :  { %v19592_v23 = vpop.f32.mrf.mxu1  ;;  %v645_v12 = vadd.f32 %v22447_v51, %v536_v34 }
 0x20a   :  { %v1434_v43 = vadd.f32 %v19592_v23, %v1329_v9  ;;  %v22494_v23 = vand.u32 4294901760, %v22478_v46 }
 0x20b   :  { %v1425_v8 = vpop.f32.mrf.mxu1 }
 0x20c   :  { %v1426_v18 = vadd.f32 %v1425_v8, %v1322_v54  ;;  %v2389_v50 = vsub.f32 %v22478_v46, %v22494_v23 }
 0x20e   :  { %v19611_v48 = vpop.f32.mrf.mxu0 }
 0x20f   :  { %v1535_v61 = vadd.f32 %v19611_v48, %v1418_v11  ;;  %v518_v11 = vadd.f32 %v22439_v44, %v22429_v35  ;;  %v638_v44 = vadd.f32 %v22451_v27, %v530_v26 }
 0x210   :  { %v1528_v21 = vpop.f32.mrf.mxu0 }
 0x211   :  { %v1529_v1 = vadd.f32 %v1528_v21, %v1410_v5  ;;  %v624_v24 = vadd.f32 %v22443_v47, %v518_v11  ;;  %v742_v27 = vadd.f32 %v22461_v52, %v638_v44 }
 0x212   :  { %v19614_v10 = vpop.f32.mrf.mxu0 }
 0x213   :  { %v1547_v16 = vadd.f32 %v19614_v10, %v1434_v43  ;;  %v726_v8 = vadd.f32 %v22453_v57, %v624_v24 }
 0x214   :  { %v1540_v59 = vpop.f32.mrf.mxu0 }
 0x215   :  { %v1541_v9 = vadd.f32 %v1540_v59, %v1426_v18  ;;  %v750_v18 = vadd.f32 %v22457_v58, %v645_v12  ;;  %v24877_v12 = vld [vmem:[#allocation41_spill] sm:$0xff] }
 0x216   :  { %v19633_v4 = vpop.f32.mrf.mxu1 }
 0x217   :  { %v1632_v32 = vadd.f32 %v19633_v4, %v1535_v61  ;;  %v631_v61 = vadd.f32 %v22437_v42, %v524_v17  ;;  %v845_v42 = vadd.f32 %v22459_v60, %v726_v8  ;;  %v2826_v8 = vld [vmem:[#allocation2 + $0x48] sm:$0xff] }
 0x218   :  { %v1625_v31 = vpop.f32.mrf.mxu1 }
 0x219   :  { %v1654_v25 = vsel %vm1649_vm1, %v1632_v32, 0  ;;  %v1626_v28 = vadd.f32 %v1625_v31, %v1529_v1  ;;  %v734_v37 = vadd.f32 %v22449_v53, %v631_v61  ;;  %v942_v60 = vadd.f32 %v22469_v0, %v845_v42  ;;  %v2828_v42 = vld [vmem:[#allocation2 + $0x58] sm:$0xff] }
 0x21a   :  { %v22481_v29 = vand.u32 4294901760, %v1654_v25  ;;  %v19636_v15 = vpop.f32.mrf.mxu1  ;;  %v857_v32 = vadd.f32 %v22467_v63, %v742_v27  ;;  %v2839_v27 = vsel %vm284_vm0, %v2828_v42, 0 }
 0x21b   :  { %v1651_v4 = vsel %vm1649_vm1, %v1626_v28, 0  ;;  %v1644_v5 = vadd.f32 %v19636_v15, %v1547_v16  ;;  %v851_v33 = vadd.f32 %v22455_v36, %v734_v37  ;;  %v2390_v16 = vand.u32 4294901760, %v2389_v50  ;;  %v24875_v37 = vld [vmem:[#allocation64_spill] sm:$0xff] }
 0x21c   :  { %v22489_v20 = vsub.f32 %v1654_v25, %v22481_v29  ;;  %v22491_v10 = vand.u32 4294901760, %v1651_v4  ;;  %v1637_v21 = vpop.f32.mrf.mxu1  ;;  %v2238_v25 = vsel %vm1649_vm1, %v942_v60, 0  ;;  %v954_v51 = vadd.f32 %v22473_v14, %v857_v32  ;;  %v24879_v32 = vld [vmem:[#allocation42_spill] sm:$0xff] }
 0x21d   :  { %v1660_v43 = vsel %vm1649_vm1, %v1644_v5, 0  ;;  %v1638_v48 = vadd.f32 %v1637_v21, %v1541_v9  ;;  %v948_v52 = vadd.f32 %v22465_v56, %v851_v33  ;;  %v863_v36 = vadd.f32 %v22463_v62, %v750_v18  ;;  %v24878_v33 = vld [vmem:[#allocation65_spill] sm:$0xff] }
 0x21e   :  { %v1740_v49 = vand.u32 4294901760, %v22489_v20  ;;  %v1729_v54 = vsub.f32 %v1651_v4, %v22491_v10  ;;  %v22502_v55 = vand.u32 4294901760, %v1660_v43  ;;  %19647 = vmatprep.mubr.f32.mxu1 %v22491_v10  ;;  %v22543_v56 = vand.u32 4294901760, %v2238_v25 }
 0x21f   :  { %v1657_v13 = vsel %vm1649_vm1, %v1638_v48, 0  ;;  %19648 = vmatmul.mubr.f32.vlgmr.msra.gmra.mxu1 %v22481_v29  ;;  %v2241_v58 = vsel %vm1649_vm1, %v948_v52, 0  ;;  %v960_v15 = vadd.f32 %v22471_v6, %v863_v36  ;;  %v2244_v14 = vsel %vm1649_vm1, %v954_v51, 0  ;;  %v24881_v52 = vld [vmem:[#allocation43_spill] sm:$0xff] }
 0x220   :  { %v22512_v35 = vsub.f32 %v1660_v43, %v22502_v55  ;;  %v22514_v40 = vand.u32 4294901760, %v1657_v13  ;;  %v1730_v41 = vand.u32 4294901760, %v1729_v54  ;;  %19662 = vmatpush3.msra.mxu1 %v22413_v19  ;;  %v1741_v47 = vsub.f32 %v22489_v20, %v1740_v49 }
 0x221   :  { %19677 = vmatprep.subr.mxu1 %v22413_v19  ;;  %v2247_v62 = vsel %vm1649_vm1, %v960_v15, 0  ;;  %v22552_v11 = vand.u32 4294901760, %v2244_v14  ;;  %v24886_v15 = vld [vmem:[#allocation45_spill] sm:$0xff] }
 0x222   :  { %v1749_v45 = vsub.f32 %v1657_v13, %v22514_v40  ;;  %19650 = vmatprep.mubr.f32.mxu1 %v22514_v40  ;;  %v1731_v57 = vsub.f32 %v1729_v54, %v1730_v41  ;;  %v1760_v7 = vand.u32 4294901760, %v22512_v35  ;;  %v1742_v59 = vand.u32 4294901760, %v1741_v47  ;;  %v24874_v47 = vld [vmem:[#allocation39_spill] sm:$0xff] }
 0x223   :  { %19651 = vmatmul.mubr.f32.gmra.mxu1 %v22502_v55  ;;  %v22558_v9 = vand.u32 4294901760, %v2247_v62  ;;  %v2336_v4 = vsub.f32 %v2244_v14, %v22552_v11 }
 0x224   :  { %19663 = vmatprep.mubr.f32.mxu1 %v1730_v41  ;;  %v1732_v1 = vand.u32 4294901760, %v1731_v57  ;;  %v1750_v53 = vand.u32 4294901760, %v1749_v45  ;;  %v1761_v31 = vsub.f32 %v22512_v35, %v1760_v7  ;;  %v24873_v41 = vld [vmem:[#allocation61_spill] sm:$0xff]  ;;  %v24876_v57 = vld [vmem:[#allocation40_spill] sm:$0xff] }
 0x225   :  { %v2337_v21 = vand.u32 4294901760, %v2336_v4 }
 0x226   :  { %19639 = vmatprep.mubr.f32.mxu0 %v1732_v1  ;;  %v1751_v0 = vsub.f32 %v1749_v45, %v1750_v53  ;;  %v1762_v28 = vand.u32 4294901760, %v1761_v31 }
 0x227   :  { %19640 = vmatmul.mubr.f32.vlgmr.msra.gmra.mxu0 %v1742_v59  ;;  %19664 = vmatmul.mubr.f32.vlgmr.msra.gmra.mxu1 %v1740_v49  ;;  %v2338_v43 = vsub.f32 %v2336_v4, %v2337_v21  ;;  %v24880_v59 = vld [vmem:[#allocation66_spill] sm:$0xff] }
 0x228   :  { %19666 = vmatprep.mubr.f32.mxu1 %v1750_v53  ;;  %v1752_v63 = vand.u32 4294901760, %v1751_v0  ;;  %19654 = vmatpush3.msra.mxu0 %v22416_v22  ;;  %v22548_v22 = vand.u32 4294901760, %v2241_v58  ;;  %v22633_v53 = vand.u32 4294901760, %v2839_v27  ;;  %v24882_v0 = vld [vmem:[#allocation67_spill] sm:$0xff] }
 0x229   :  { %19678 = vmatpush3.msra.mxu1 %v22413_v19  ;;  %19669 = vmatprep.subr.mxu0 %v22421_v30  ;;  %v2316_v19 = vsub.f32 %v2238_v25, %v22543_v56  ;;  %v2339_v49 = vand.u32 4294901760, %v2338_v43  ;;  %v24883_v25 = vld [vmem:[#allocation46_spill] sm:$0xff]  ;;  %v24900_v43 = vld [vmem:[#allocation63_spill] sm:$0xff] }
 0x22a   :  { %19642 = vmatprep.mubr.f32.mxu0 %v1752_v63  ;;  %19693 = vmatprep.subr.mxu1 %v2390_v16  ;;  %v2326_v6 = vsub.f32 %v2241_v58, %v22548_v22  ;;  %v24884_v63 = vld [vmem:[#allocation48_spill] sm:$0xff] }
 0x22b   :  { %19643 = vmatmul.mubr.f32.gmra.mxu0 %v1762_v28  ;;  %19667 = vmatmul.mubr.f32.gmra.mxu1 %v1760_v7  ;;  %v2317_v5 = vand.u32 4294901760, %v2316_v19  ;;  %v24885_v58 = vld [vmem:[#allocation44_spill] sm:$0xff] }
 0x22c   :  { %19655 = vmatprep.mubr.f32.mxu0 %v1729_v54  ;;  %19679 = vmatprep.mubr.f32.mxu1 %v22491_v10  ;;  %v2327_v17 = vand.u32 4294901760, %v2326_v6  ;;  %v2825_v54 = vld [vmem:[#allocation2 + $0x40] sm:$0xff] }
 0x22e   :  { %v2328_v24 = vsub.f32 %v2326_v6, %v2327_v17 }
 0x22f   :  { %19656 = vmatmul.mubr.f32.vlgmr.msra.gmra.mxu0 %v22489_v20  ;;  %19680 = vmatmul.mubr.f32.vlgmr.msra.gmra.mxu1 %v22481_v29  ;;  %v2346_v20 = vsub.f32 %v2247_v62, %v22558_v9  ;;  %v24888_v62 = vld [vmem:[#allocation49_spill] sm:$0xff] }
 0x230   :  { %19658 = vmatprep.mubr.f32.mxu0 %v1749_v45  ;;  %19682 = vmatprep.mubr.f32.mxu1 %v22514_v40 }
 0x231   :  { %19670 = vmatpush3.msra.mxu0 %v22421_v30  ;;  %19694 = vmatpush3.msra.mxu1 %v2390_v16  ;;  %v2318_v30 = vsub.f32 %v2316_v19, %v2317_v5  ;;  %v22649_v16 = vsub.f32 %v2839_v27, %v22633_v53 }
 0x232   :  { %19685 = vmatprep.subr.mxu0 %v22475_v2  ;;  %19709 = vmatprep.subr.mxu1 %v22475_v2 }
 0x233   :  { %19659 = vmatmul.mubr.f32.gmra.mxu0 %v22512_v35  ;;  %19683 = vmatmul.mubr.f32.gmra.mxu1 %v22502_v55  ;;  %v2319_v26 = vand.u32 4294901760, %v2318_v30  ;;  %v24872_v35 = vld [vmem:[#allocation57_spill] sm:$0xff]  ;;  %v2946_v28 = vand.u32 4294901760, %v22649_v16 }
 0x234   :  { %19671 = vmatprep.mubr.f32.mxu0 %v22491_v10  ;;  %19695 = vmatprep.mubr.f32.mxu1 %v22543_v56  ;;  %v2347_v10 = vand.u32 4294901760, %v2346_v20  ;;  %v24895_v30 = vld [vmem:[#allocation53_spill] sm:$0xff] }
 0x235   :  { %v2947_v14 = vsub.f32 %v22649_v16, %v2946_v28 }
 0x236   :  { %v2348_v48 = vsub.f32 %v2346_v20, %v2347_v10 }
 0x237   :  { %19672 = vmatmul.mubr.f32.vlgmr.msra.gmra.mxu0 %v22481_v29  ;;  %19696 = vmatmul.mubr.f32.vlgmr.msra.gmra.mxu1 %v22548_v22  ;;  %v2329_v29 = vand.u32 4294901760, %v2328_v24  ;;  %v24897_v24 = vld [vmem:[#allocation55_spill] sm:$0xff] }
 0x238   :  { %19674 = vmatprep.mubr.f32.mxu0 %v22514_v40  ;;  %19698 = vmatprep.mubr.f32.mxu1 %v22552_v11  ;;  %v2349_v61 = vand.u32 4294901760, %v2348_v48  ;;  %v2827_v40 = vld [vmem:[#allocation2 + $0x50] sm:$0xff] }
 0x239   :  { %19686 = vmatpush3.msra.mxu0 %v22475_v2  ;;  %19710 = vmatpush3.msra.mxu1 %v22475_v2  ;;  %v2836_v50 = vsel %vm284_vm0, %v2827_v40, 0 }
 0x23a   :  { %19701 = vmatprep.subr.mxu0 %v22478_v46  ;;  %19725 = vmatprep.subr.mxu1 %v22475_v2  ;;  %v22627_v60 = vand.u32 4294901760, %v2836_v50 }
 0x23b   :  { %19675 = vmatmul.mubr.f32.gmra.mxu0 %v22502_v55  ;;  %19699 = vmatmul.mubr.f32.gmra.mxu1 %v22558_v9  ;;  %v2830_v55 = vsel %vm284_vm0, %v2825_v54, 0 }
 0x23c   :  { %19687 = vmatprep.mubr.f32.mxu0 %v2319_v26  ;;  %19711 = vmatprep.mubr.f32.mxu1 %v2317_v5  ;;  %v22585_v13 = vand.u32 4294901760, %v2830_v55  ;;  %v22643_v18 = vsub.f32 %v2836_v50, %v22627_v60  ;;  %v24892_v5 = vld [vmem:[#allocation60_spill] sm:$0xff]  ;;  %v24899_v26 = vld [vmem:[#allocation62_spill] sm:$0xff] }
 0x23e   :  { %v2936_v36 = vand.u32 4294901760, %v22643_v18 }
 0x23f   :  { %19688 = vmatmul.mubr.f32.vlgmr.msra.gmra.mxu0 %v2329_v29  ;;  %19712 = vmatmul.mubr.f32.vlgmr.msra.gmra.mxu1 %v2327_v17  ;;  %v24893_v17 = vld [vmem:[#allocation51_spill] sm:$0xff]  ;;  %v3508_v29 = vld [vmem:[#allocation5 + $0x10] sm:$0xff] }
 0x240   :  { %19690 = vmatprep.mubr.f32.mxu0 %v2339_v49  ;;  %19714 = vmatprep.mubr.f32.mxu1 %v2337_v21  ;;  %v24896_v21 = vld [vmem:[#allocation54_spill] sm:$0xff]  ;;  %v22743_v48 = vand.u32 4294901760, %v3508_v29 }
 0x241   :  { %19702 = vmatpush3.msra.mxu0 %v22478_v46  ;;  %19726 = vmatpush3.msra.mxu1 %v22475_v2  ;;  %v2833_v2 = vsel %vm284_vm0, %v2826_v8, 0  ;;  %v22595_v46 = vsub.f32 %v2830_v55, %v22585_v13 }
 0x242   :  { %19717 = vmatprep.subr.mxu0 %v22494_v23  ;;  %19755 = vmatprep.subr.mxu1 %v22069_v38  ;;  %v22598_v34 = vand.u32 4294901760, %v2833_v2  ;;  %v22746_v49 = vsub.f32 %v3508_v29, %v22743_v48 }
 0x243   :  { %19691 = vmatmul.mubr.f32.gmra.mxu0 %v2349_v61  ;;  %19715 = vmatmul.mubr.f32.gmra.mxu1 %v2347_v10  ;;  %v24898_v10 = vld [vmem:[#allocation58_spill] sm:$0xff] }
 0x244   :  { %19703 = vmatprep.mubr.f32.mxu0 %v2316_v19  ;;  %19727 = vmatprep.mubr.f32.mxu1 %v22543_v56  ;;  %v22609_v44 = vsub.f32 %v2833_v2, %v22598_v34  ;;  %v22751_v54 = vand.u32 4294901760, %v22746_v49 }
 0x246   :  { %v2926_v7 = vand.u32 4294901760, %v22609_v44  ;;  %v3661_v61 = vsub.f32 %v22746_v49, %v22751_v54 }
 0x247   :  { %19704 = vmatmul.mubr.f32.vlgmr.msra.gmra.mxu0 %v2326_v6  ;;  %19728 = vmatmul.mubr.f32.vlgmr.msra.gmra.mxu1 %v22548_v22  ;;  %v24889_v6 = vld [vmem:[#allocation50_spill] sm:$0xff] }
 0x248   :  { %19706 = vmatprep.mubr.f32.mxu0 %v2336_v4  ;;  %19730 = vmatprep.mubr.f32.mxu1 %v22552_v11  ;;  %v2927_v31 = vsub.f32 %v22609_v44, %v2926_v7  ;;  %v24891_v4 = vld [vmem:[#allocation59_spill] sm:$0xff]  ;;  %v3662_v55 = vand.u32 4294901760, %v3661_v61 }
 0x249   :  { %19718 = vmatpush3.msra.mxu0 %v22494_v23  ;;  %19756 = vmatpush3.msra.mxu1 %v22069_v38  ;;  %v2916_v23 = vand.u32 4294901760, %v22595_v46 }
 0x24a   :  { %19733 = vmatprep.subr.mxu0 %v21982_v3  ;;  %19757 = vmatprep.subr.mxu1 %v22071_v39  ;;  %v2928_v51 = vand.u32 4294901760, %v2927_v31 }
 0x24b   :  { %19707 = vmatmul.mubr.f32.gmra.mxu0 %v2346_v20  ;;  %19731 = vmatmul.mubr.f32.gmra.mxu1 %v22558_v9  ;;  %v2917_v45 = vsub.f32 %v22595_v46, %v2916_v23  ;;  %v24894_v20 = vld [vmem:[#allocation52_spill] sm:$0xff] }
 0x24c   :  { %19719 = vmatprep.mubr.f32.mxu0 %v22543_v56  ;;  %19758 = vmatpush3.msra.mxu1 %v22071_v39  ;;  %v2937_v56 = vsub.f32 %v22643_v18, %v2936_v36 }
 0x24d   :  { %19759 = vmatprep.subr.mxu1 %v24872_v35  ;;  %19771 = vmatprep.mubr.f32.mxu1 %v22585_v13  ;;  %v2918_v1 = vand.u32 4294901760, %v2917_v45 }
 0x24e   :  { %19760 = vmatpush3.msra.mxu1 %v24872_v35  ;;  %v2938_v19 = vand.u32 4294901760, %v2937_v56 }
 0x24f   :  { %19720 = vmatmul.mubr.f32.vlgmr.msra.gmra.mxu0 %v22548_v22  ;;  %19761 = vmatprep.subr.mxu1 %v24873_v41  ;;  %v24887_v22 = vld [vmem:[#allocation47_spill] sm:$0xff] }
 0x250   :  { %19734 = vmatpush3.msra.mxu0 %v21982_v3  ;;  %19722 = vmatprep.mubr.f32.mxu0 %v22552_v11  ;;  %v2948_v11 = vand.u32 4294901760, %v2947_v14 }
 0x251   :  { %19735 = vmatprep.subr.mxu0 %v24874_v47  ;;  %19762 = vmatpush3.msra.mxu1 %v24873_v41 }
 0x252   :  { %19736 = vmatpush3.msra.mxu0 %v24874_v47  ;;  %19763 = vmatprep.subr.mxu1 %v24875_v37 }
 0x253   :  { %19737 = vmatprep.subr.mxu0 %v24876_v57  ;;  %19723 = vmatmul.mubr.f32.gmra.mxu0 %v22558_v9  ;;  %v24890_v9 = vld [vmem:[#allocation56_spill] sm:$0xff] }
 0x254   :  { %19738 = vmatpush3.msra.mxu0 %v24876_v57  ;;  %19764 = vmatpush3.msra.mxu1 %v24875_v37 }
 0x255   :  { %19739 = vmatprep.subr.mxu0 %v24877_v12  ;;  %19765 = vmatprep.subr.mxu1 %v24878_v33 }
 0x256   :  { %19740 = vmatpush3.msra.mxu0 %v24877_v12  ;;  %19766 = vmatpush3.msra.mxu1 %v24878_v33 }
 0x257   :  { %19741 = vmatprep.subr.mxu0 %v24879_v32  ;;  %19767 = vmatprep.subr.mxu1 %v24880_v59 }
 0x258   :  { %19742 = vmatpush3.msra.mxu0 %v24879_v32  ;;  %19768 = vmatpush3.msra.mxu1 %v24880_v59 }
 0x259   :  { %19743 = vmatprep.subr.mxu0 %v24881_v52  ;;  %19769 = vmatprep.subr.mxu1 %v24882_v0 }
 0x25a   :  { %19744 = vmatpush3.msra.mxu0 %v24881_v52  ;;  %19749 = vmatprep.mubr.f32.mxu0 %v2918_v1 }
 0x25b   :  { %19745 = vmatprep.subr.mxu0 %v24883_v25  ;;  %19770 = vmatpush3.msra.mxu1 %v24882_v0 }
 0x25c   :  { %19746 = vmatpush3.msra.mxu0 %v24883_v25  ;;  %19772 = vmatmul.mubr.f32.vlgmr.msra.gmra.mxu1 %v22598_v34 }
 0x25d   :  { %19747 = vmatprep.subr.mxu0 %v24884_v63  ;;  %19799 = vmatprep.subr.mxu1 %v21982_v3 }
 0x25e   :  { %19748 = vmatpush3.msra.mxu0 %v24884_v63  ;;  %19800 = vmatpush3.msra.mxu1 %v21982_v3 }
 0x25f   :  { %19750 = vmatmul.mubr.f32.vlgmr.msra.gmra.mxu0 %v2928_v51  ;;  %19777 = vmatprep.subr.mxu0 %v24885_v58 }
 0x260   :  { %19778 = vmatpush3.msra.mxu0 %v24885_v58  ;;  %19801 = vmatprep.subr.mxu1 %v24874_v47 }
 0x261   :  { %19779 = vmatprep.subr.mxu0 %v24886_v15  ;;  %19802 = vmatpush3.msra.mxu1 %v24874_v47 }
 0x262   :  { %19780 = vmatpush3.msra.mxu0 %v24886_v15  ;;  %19803 = vmatprep.subr.mxu1 %v24876_v57 }
 0x263   :  { %19781 = vmatprep.subr.mxu0 %v24887_v22  ;;  %19804 = vmatpush3.msra.mxu1 %v24876_v57 }
 0x264   :  { %19782 = vmatpush3.msra.mxu0 %v24887_v22  ;;  %19805 = vmatprep.subr.mxu1 %v24877_v12 }
 0x265   :  { %19783 = vmatprep.subr.mxu0 %v24888_v62  ;;  %19806 = vmatpush3.msra.mxu1 %v24877_v12 }
 0x266   :  { %19784 = vmatpush3.msra.mxu0 %v24888_v62  ;;  %19807 = vmatprep.subr.mxu1 %v24879_v32 }
 0x267   :  { %19785 = vmatprep.subr.mxu0 %v24889_v6  ;;  %19808 = vmatpush3.msra.mxu1 %v24879_v32 }
 0x268   :  { %19786 = vmatpush3.msra.mxu0 %v24889_v6  ;;  %19752 = vmatprep.mubr.f32.mxu0 %v2938_v19 }
 0x269   :  { %19774 = vmatprep.mubr.f32.mxu1 %v22627_v60  ;;  %19787 = vmatprep.subr.mxu0 %v24890_v9 }
 0x26a   :  { %19809 = vmatprep.subr.mxu1 %v24881_v52  ;;  %19753 = vmatmul.mubr.f32.gmra.mxu0 %v2948_v11 }
 0x26b   :  { %19775 = vmatmul.mubr.f32.gmra.mxu1 %v22633_v53  ;;  %19788 = vmatpush3.msra.mxu0 %v24890_v9 }
 0x26c   :  { %19810 = vmatpush3.msra.mxu1 %v24881_v52  ;;  %19789 = vmatprep.subr.mxu0 %v24891_v4 }
 0x26d   :  { %19811 = vmatprep.subr.mxu1 %v24883_v25  ;;  %19790 = vmatpush3.msra.mxu0 %v24891_v4 }
 0x26e   :  { %19812 = vmatpush3.msra.mxu1 %v24883_v25  ;;  %19791 = vmatprep.subr.mxu0 %v24892_v5 }
 0x26f   :  { %19813 = vmatprep.subr.mxu1 %v24884_v63  ;;  %19792 = vmatpush3.msra.mxu0 %v24892_v5 }
 0x270   :  { %19793 = vmatprep.mubr.f32.mxu0 %v22595_v46  ;;  %19814 = vmatpush3.msra.mxu1 %v24884_v63 }
 0x271   :  { %19794 = vmatmul.mubr.f32.vlgmr.msra.gmra.mxu0 %v22609_v44  ;;  %19815 = vmatprep.mubr.f32.mxu1 %v2916_v23 }
 0x272   :  { %19821 = vmatprep.subr.mxu0 %v24893_v17  ;;  %19843 = vmatprep.subr.mxu1 %v21982_v3 }
 0x273   :  { %19816 = vmatmul.mubr.f32.vlgmr.msra.gmra.mxu1 %v2926_v7  ;;  %19822 = vmatpush3.msra.mxu0 %v24893_v17 }
 0x274   :  { %19844 = vmatpush3.msra.mxu1 %v21982_v3  ;;  %19823 = vmatprep.subr.mxu0 %v24894_v20 }
 0x275   :  { %19845 = vmatprep.subr.mxu1 %v24874_v47  ;;  %19796 = vmatprep.mubr.f32.mxu0 %v22643_v18 }
 0x276   :  { %19824 = vmatpush3.msra.mxu0 %v24894_v20  ;;  %19846 = vmatpush3.msra.mxu1 %v24874_v47 }
 0x277   :  { %19797 = vmatmul.mubr.f32.gmra.mxu0 %v22649_v16  ;;  %19825 = vmatprep.subr.mxu0 %v24895_v30 }
 0x278   :  { %19847 = vmatprep.subr.mxu1 %v24876_v57  ;;  %19818 = vmatprep.mubr.f32.mxu1 %v2936_v36 }
 0x279   :  { %19826 = vmatpush3.msra.mxu0 %v24895_v30  ;;  %19848 = vmatpush3.msra.mxu1 %v24876_v57 }
 0x27a   :  { %19819 = vmatmul.mubr.f32.gmra.mxu1 %v2946_v28  ;;  %19827 = vmatprep.subr.mxu0 %v24896_v21 }
 0x27b   :  { %19849 = vmatprep.subr.mxu1 %v24877_v12  ;;  %19828 = vmatpush3.msra.mxu0 %v24896_v21 }
 0x27c   :  { %19850 = vmatpush3.msra.mxu1 %v24877_v12  ;;  %19829 = vmatprep.subr.mxu0 %v24897_v24 }
 0x27d   :  { %19851 = vmatprep.subr.mxu1 %v24879_v32  ;;  %19830 = vmatpush3.msra.mxu0 %v24897_v24 }
 0x27e   :  { %19852 = vmatpush3.msra.mxu1 %v24879_v32  ;;  %19831 = vmatprep.subr.mxu0 %v24898_v10 }
 0x27f   :  { %19853 = vmatprep.subr.mxu1 %v24881_v52  ;;  %19832 = vmatpush3.msra.mxu0 %v24898_v10 }
 0x280   :  { %19854 = vmatpush3.msra.mxu1 %v24881_v52  ;;  %19833 = vmatprep.subr.mxu0 %v24899_v26 }
 0x281   :  { %19855 = vmatprep.subr.mxu1 %v24883_v25  ;;  %19834 = vmatpush3.msra.mxu0 %v24899_v26 }
 0x282   :  { %19856 = vmatpush3.msra.mxu1 %v24883_v25  ;;  %19835 = vmatprep.subr.mxu0 %v24900_v43 }
 0x283   :  { %19857 = vmatprep.subr.mxu1 %v24884_v63  ;;  %19836 = vmatpush3.msra.mxu0 %v24900_v43 }
 0x284   :  { %19837 = vmatprep.mubr.f32.mxu0 %v22585_v13  ;;  %19858 = vmatpush3.msra.mxu1 %v24884_v63 }
 0x285   :  { %19859 = vmatprep.mubr.f32.mxu1 %v22585_v13  ;;  %19838 = vmatmul.mubr.f32.vlgmr.msra.gmra.mxu0 %v22598_v34 }
 0x286   :  { %19860 = vmatmul.mubr.f32.vlgmr.msra.gmra.mxu1 %v22598_v34  ;;  %19840 = vmatprep.mubr.f32.mxu0 %v22627_v60 }
 0x287   :  { %19862 = vmatprep.mubr.f32.mxu1 %v22627_v60  ;;  %19865 = vmatprep.subr.mxu0 %v22743_v48 }
 0x288   :  { %19866 = vmatpush3.msra.mxu0 %v22743_v48  ;;  %19873 = vmatprep.subr.mxu1 %v3662_v55 }
 0x289   :  { %19841 = vmatmul.mubr.f32.gmra.mxu0 %v22633_v53  ;;  %19881 = vmatprep.subr.mxu0 %v22746_v49 }
 0x28a   :  { %19863 = vmatmul.mubr.f32.gmra.mxu1 %v22633_v53 }
 0x28b   :  { %19874 = vmatpush3.msra.mxu1 %v3662_v55 }
 0x28c   :  { %19889 = vmatprep.subr.mxu1 %v22743_v48 }
 0x2df   :  { %v19649_v8 = vpop.f32.mrf.mxu1 }
 0x2e1   :  { %v22757_v13 = vpop.f32.mrf.mxu1 }
 0x2e2   :  { %24901 = vst [vmem:[#allocation57_spill] sm:$0xff] %v22757_v13 }
 0x2e3   :  { %v19652_v2 = vpop.f32.mrf.mxu1 }
 0x2e5   :  { %v22759_v46 = vpop.f32.mrf.mxu1 }
 0x2e6   :  { %24902 = vst [vmem:[#allocation61_spill] sm:$0xff] %v22759_v46 }
 0x2e7   :  { %v19641_v34 = vpop.f32.mrf.mxu0  ;;  %v19665_v23 = vpop.f32.mrf.mxu1 }
 0x2e8   :  { %v1847_v40 = vadd.f32 %v19649_v8, %v19641_v34 }
 0x2e9   :  { %v22761_v44 = vpop.f32.mrf.mxu0  ;;  %v22763_v42 = vpop.f32.mrf.mxu1 }
 0x2ea   :  { %24903 = vst [vmem:[#allocation39_spill] sm:$0xff] %v22761_v44  ;;  %24904 = vst [vmem:[#allocation64_spill] sm:$0xff] %v22763_v42 }
 0x2eb   :  { %v19644_v50 = vpop.f32.mrf.mxu0  ;;  %v19668_v45 = vpop.f32.mrf.mxu1 }
 0x2ec   :  { %v1859_v7 = vadd.f32 %v19652_v2, %v19644_v50 }
 0x2ed   :  { %v22765_v27 = vpop.f32.mrf.mxu0  ;;  %v22767_v60 = vpop.f32.mrf.mxu1 }
 0x2ee   :  { %24905 = vst [vmem:[#allocation40_spill] sm:$0xff] %v22765_v27  ;;  %24906 = vst [vmem:[#allocation41_spill] sm:$0xff] %v22767_v60 }
 0x2ef   :  { %v19657_v1 = vpop.f32.mrf.mxu0  ;;  %v19681_v53 = vpop.f32.mrf.mxu1 }
 0x2f0   :  { %v1940_v31 = vadd.f32 %v19657_v1, %v1847_v40 }
 0x2f1   :  { %v22769_v18 = vpop.f32.mrf.mxu0  ;;  %v22771_v16 = vpop.f32.mrf.mxu1 }
 0x2f2   :  { %24907 = vst [vmem:[#allocation65_spill] sm:$0xff] %v22769_v18  ;;  %24908 = vst [vmem:[#allocation42_spill] sm:$0xff] %v22771_v16  ;;  %v2036_v51 = vadd.f32 %v19665_v23, %v1940_v31 }
 0x2f3   :  { %v19660_v36 = vpop.f32.mrf.mxu0  ;;  %v19684_v28 = vpop.f32.mrf.mxu1 }
 0x2f4   :  { %v1954_v56 = vadd.f32 %v19660_v36, %v1859_v7 }
 0x2f5   :  { %v22773_v14 = vpop.f32.mrf.mxu0  ;;  %v22775_v19 = vpop.f32.mrf.mxu1 }
 0x2f6   :  { %24909 = vst [vmem:[#allocation66_spill] sm:$0xff] %v22773_v14  ;;  %24910 = vst [vmem:[#allocation43_spill] sm:$0xff] %v22775_v19  ;;  %v2052_v11 = vadd.f32 %v19668_v45, %v1954_v56 }
 0x2f7   :  { %v19673_v29 = vpop.f32.mrf.mxu0  ;;  %v19697_v61 = vpop.f32.mrf.mxu1 }
 0x2f8   :  { %v2132_v55 = vadd.f32 %v19673_v29, %v2036_v51 }
 0x2f9   :  { %v22777_v8 = vpop.f32.mrf.mxu0  ;;  %v22779_v2 = vpop.f32.mrf.mxu1 }
 0x2fa   :  { %24911 = vst [vmem:[#allocation67_spill] sm:$0xff] %v22777_v8  ;;  %24912 = vst [vmem:[#allocation46_spill] sm:$0xff] %v22779_v2  ;;  %v2222_v34 = vadd.f32 %v19681_v53, %v2132_v55 }
 0x2fb   :  { %v19676_v40 = vpop.f32.mrf.mxu0  ;;  %v19700_v50 = vpop.f32.mrf.mxu1 }
 0x2fc   :  { %v2144_v1 = vadd.f32 %v19676_v40, %v2052_v11 }
 0x2fd   :  { %v22781_v23 = vpop.f32.mrf.mxu0  ;;  %v22783_v31 = vpop.f32.mrf.mxu1 }
 0x2fe   :  { %24913 = vst [vmem:[#allocation48_spill] sm:$0xff] %v22781_v23  ;;  %24914 = vst [vmem:[#allocation44_spill] sm:$0xff] %v22783_v31  ;;  %v2234_v7 = vadd.f32 %v19684_v28, %v2144_v1 }
 0x2ff   :  { %v19689_v36 = vpop.f32.mrf.mxu0  ;;  %v19713_v16 = vpop.f32.mrf.mxu1 }
 0x300   :  { %v2332_v19 = vadd.f32 %v19689_v36, %v2222_v34 }
 0x301   :  { %v22785_v45 = vpop.f32.mrf.mxu0  ;;  %v22787_v56 = vpop.f32.mrf.mxu1 }
 0x302   :  { %24915 = vst [vmem:[#allocation45_spill] sm:$0xff] %v22785_v45  ;;  %24916 = vst [vmem:[#allocation47_spill] sm:$0xff] %v22787_v56  ;;  %v2434_v51 = vadd.f32 %v19697_v61, %v2332_v19 }
 0x303   :  { %v19692_v29 = vpop.f32.mrf.mxu0  ;;  %v19716_v2 = vpop.f32.mrf.mxu1 }
 0x304   :  { %v2352_v60 = vadd.f32 %v19692_v29, %v2234_v7 }
 0x305   :  { %v22789_v53 = vpop.f32.mrf.mxu0  ;;  %v22791_v23 = vpop.f32.mrf.mxu1 }
 0x306   :  { %24917 = vst [vmem:[#allocation49_spill] sm:$0xff] %v22789_v53  ;;  %v2446_v55 = vadd.f32 %v19700_v50, %v2352_v60  ;;  %24918 = vst [vmem:[#allocation50_spill] sm:$0xff] %v22791_v23 }
 0x307   :  { %v19705_v11 = vpop.f32.mrf.mxu0  ;;  %v19729_v36 = vpop.f32.mrf.mxu1 }
 0x308   :  { %v2527_v40 = vadd.f32 %v19705_v11, %v2434_v51 }
 0x309   :  { %v22793_v31 = vpop.f32.mrf.mxu0  ;;  %v22797_v7 = vpop.f32.mrf.mxu1 }
 0x30a   :  { %24919 = vst [vmem:[#allocation56_spill] sm:$0xff] %v22793_v31  ;;  %v2623_v28 = vadd.f32 %v19713_v16, %v2527_v40  ;;  %24921 = vst [vmem:[#allocation60_spill] sm:$0xff] %v22797_v7 }
 0x30b   :  { %v19708_v1 = vpop.f32.mrf.mxu0  ;;  %v19732_v11 = vpop.f32.mrf.mxu1 }
 0x30c   :  { %v2541_v34 = vadd.f32 %v19708_v1, %v2446_v55 }
 0x30d   :  { %v22795_v45 = vpop.f32.mrf.mxu0  ;;  %v22807_v40 = vpop.f32.mrf.mxu1 }
 0x30e   :  { %24920 = vst [vmem:[#allocation59_spill] sm:$0xff] %v22795_v45  ;;  %v2639_v56 = vadd.f32 %v19716_v2, %v2541_v34  ;;  %24926 = vst [vmem:[#allocation55_spill] sm:$0xff] %v22807_v40 }
 0x30f   :  { %v19721_v19 = vpop.f32.mrf.mxu0 }
 0x310   :  { %v2719_v61 = vadd.f32 %v19721_v19, %v2623_v28 }
 0x311   :  { %v22799_v29 = vpop.f32.mrf.mxu0 }
 0x312   :  { %24922 = vst [vmem:[#allocation51_spill] sm:$0xff] %v22799_v29  ;;  %v22801_v60 = vadd.f32 %v19729_v36, %v2719_v61 }
 0x313   :  { %v19724_v50 = vpop.f32.mrf.mxu0 }
 0x314   :  { %24923 = vst [vmem:[#allocation52_spill] sm:$0xff] %v22801_v60  ;;  %v2731_v51 = vadd.f32 %v19724_v50, %v2639_v56 }
 0x315   :  { %v22805_v16 = vpop.f32.mrf.mxu0 }
 0x316   :  { %v22803_v23 = vadd.f32 %v19732_v11, %v2731_v51  ;;  %24925 = vst [vmem:[#allocation54_spill] sm:$0xff] %v22805_v16 }
 0x318   :  { %24924 = vst [vmem:[#allocation53_spill] sm:$0xff] %v22803_v23 }
 0x31c   :  { %v19773_v1 = vpop.f32.mrf.mxu1 }
 0x31e   :  { %v3061_v28 = vpop.f32.mrf.mxu1 }
 0x31f   :  { %v19751_v55 = vpop.f32.mrf.mxu0 }
 0x320   :  { %v3068_v56 = vadd.f32 %v19773_v1, %v19751_v55 }
 0x321   :  { %v2920_v2 = vpop.f32.mrf.mxu0 }
 0x322   :  { %v3062_v51 = vadd.f32 %v3061_v28, %v2920_v2 }
 0x32a   :  { %v19754_v34 = vpop.f32.mrf.mxu0 }
 0x32b   :  { %v19776_v19 = vpop.f32.mrf.mxu1 }
 0x32c   :  { %v2940_v7 = vpop.f32.mrf.mxu0  ;;  %v3080_v16 = vadd.f32 %v19776_v19, %v19754_v34 }
 0x32d   :  { %v3073_v45 = vpop.f32.mrf.mxu1 }
 0x32e   :  { %v3074_v40 = vadd.f32 %v3073_v45, %v2940_v7 }
 0x331   :  { %v19795_v29 = vpop.f32.mrf.mxu0 }
 0x332   :  { %v3175_v11 = vadd.f32 %v19795_v29, %v3068_v56 }
 0x333   :  { %v19817_v36 = vpop.f32.mrf.mxu1  ;;  %v3167_v61 = vpop.f32.mrf.mxu0 }
 0x334   :  { %v3168_v8 = vadd.f32 %v3167_v61, %v3062_v51  ;;  %v3278_v14 = vadd.f32 %v19817_v36, %v3175_v11 }
 0x335   :  { %v3269_v31 = vpop.f32.mrf.mxu1 }
 0x336   :  { %v3270_v13 = vadd.f32 %v3269_v31, %v3168_v8 }
 0x337   :  { %v19798_v50 = vpop.f32.mrf.mxu0 }
 0x338   :  { %v3189_v46 = vadd.f32 %v19798_v50, %v3080_v16 }
 0x339   :  { %v3181_v42 = vpop.f32.mrf.mxu0 }
 0x33a   :  { %v19820_v53 = vpop.f32.mrf.mxu1  ;;  %v3182_v44 = vadd.f32 %v3181_v42, %v3074_v40 }
 0x33b   :  { %v3294_v26 = vadd.f32 %v19820_v53, %v3189_v46 }
 0x33c   :  { %v3285_v27 = vpop.f32.mrf.mxu1 }
 0x33d   :  { %v3286_v29 = vadd.f32 %v3285_v27, %v3182_v44 }
 0x345   :  { %v19839_v18 = vpop.f32.mrf.mxu0 }
 0x346   :  { %v3395_v23 = vadd.f32 %v19839_v18, %v3278_v14  ;;  %v19861_v60 = vpop.f32.mrf.mxu1 }
 0x347   :  { %v3388_v43 = vpop.f32.mrf.mxu0 }
 0x348   :  { %v3492_v10 = vadd.f32 %v19861_v60, %v3395_v23  ;;  %v3389_v55 = vadd.f32 %v3388_v43, %v3270_v13  ;;  %v3485_v1 = vpop.f32.mrf.mxu1 }
 0x349   :  { %v19842_v2 = vpop.f32.mrf.mxu0 }
 0x34a   :  { %v3513_v34 = vsel %vm1649_vm1, %v3492_v10, 0  ;;  %v3486_v28 = vadd.f32 %v3485_v1, %v3389_v55  ;;  %v3407_v19 = vadd.f32 %v19842_v2, %v3294_v26  ;;  %v19864_v45 = vpop.f32.mrf.mxu1 }
 0x34b   :  { %v22810_v7 = vand.u32 4294901760, %v3513_v34  ;;  %v3400_v16 = vpop.f32.mrf.mxu0 }
 0x34c   :  { %v3510_v8 = vsel %vm1649_vm1, %v3486_v28, 0  ;;  %v3504_v42 = vadd.f32 %v19864_v45, %v3407_v19  ;;  %v3401_v18 = vadd.f32 %v3400_v16, %v3286_v29  ;;  %v3497_v23 = vpop.f32.mrf.mxu1  ;;  %v4101_v29 = vld [vmem:[#allocation2 + $0x60] sm:$0xff]  ;;  %v4102_v19 = vld [vmem:[#allocation2 + $0x68] sm:$0xff] }
 0x34d   :  { %v3598_v14 = vsub.f32 %v3513_v34, %v22810_v7  ;;  %v3587_v46 = vand.u32 4294901760, %v3510_v8  ;;  %v4106_v28 = vsel %vm284_vm0, %v4101_v29, 0 }
 0x34e   :  { %v3519_v43 = vsel %vm1649_vm1, %v3504_v42, 0  ;;  %v3498_v13 = vadd.f32 %v3497_v23, %v3401_v18  ;;  %v22828_v45 = vand.u32 4294901760, %v4106_v28 }
 0x34f   :  { %v3599_v44 = vand.u32 4294901760, %v3598_v14  ;;  %v3588_v27 = vsub.f32 %v3510_v8, %v3587_v46  ;;  %v22815_v10 = vand.u32 4294901760, %v3519_v43  ;;  %19875 = vmatprep.mubr.f32.mxu1 %v3587_v46 }
 0x350   :  { %v3516_v26 = vsel %vm1649_vm1, %v3498_v13, 0  ;;  %19876 = vmatmul.mubr.f32.vlgmr.msra.gmra.mxu1 %v22810_v7 }
 0x351   :  { %v3618_v31 = vsub.f32 %v3519_v43, %v22815_v10  ;;  %v3607_v53 = vand.u32 4294901760, %v3516_v26  ;;  %v3589_v60 = vand.u32 4294901760, %v3588_v27  ;;  %19890 = vmatpush3.msra.mxu1 %v22743_v48  ;;  %v3600_v40 = vsub.f32 %v3598_v14, %v3599_v44 }
 0x352   :  { %19905 = vmatprep.subr.mxu1 %v22743_v48 }
 0x353   :  { %v3608_v36 = vsub.f32 %v3516_v26, %v3607_v53  ;;  %19878 = vmatprep.mubr.f32.mxu1 %v3607_v53  ;;  %v3590_v61 = vsub.f32 %v3588_v27, %v3589_v60  ;;  %v3619_v56 = vand.u32 4294901760, %v3618_v31  ;;  %v3601_v11 = vand.u32 4294901760, %v3600_v40 }
 0x354   :  { %19879 = vmatmul.mubr.f32.gmra.mxu1 %v22815_v10 }
 0x355   :  { %19891 = vmatprep.mubr.f32.mxu1 %v3589_v60  ;;  %v3591_v50 = vand.u32 4294901760, %v3590_v61  ;;  %v3609_v51 = vand.u32 4294901760, %v3608_v36  ;;  %v3620_v55 = vsub.f32 %v3618_v31, %v3619_v56 }
 0x357   :  { %19867 = vmatprep.mubr.f32.mxu0 %v3591_v50  ;;  %v3610_v1 = vsub.f32 %v3608_v36, %v3609_v51  ;;  %v3621_v34 = vand.u32 4294901760, %v3620_v55 }
 0x358   :  { %19868 = vmatmul.mubr.f32.vlgmr.msra.gmra.mxu0 %v3601_v11  ;;  %19892 = vmatmul.mubr.f32.vlgmr.msra.gmra.mxu1 %v3599_v44 }
 0x359   :  { %19894 = vmatprep.mubr.f32.mxu1 %v3609_v51  ;;  %v3611_v2 = vand.u32 4294901760, %v3610_v1  ;;  %19882 = vmatpush3.msra.mxu0 %v22746_v49  ;;  %v22837_v49 = vsub.f32 %v4106_v28, %v22828_v45 }
 0x35a   :  { %19906 = vmatpush3.msra.mxu1 %v22743_v48  ;;  %19897 = vmatprep.subr.mxu0 %v22751_v54  ;;  %v4109_v48 = vsel %vm284_vm0, %v4102_v19, 0  ;;  %v24930_v19 = vld [vmem:[#allocation52_spill] sm:$0xff] }
 0x35b   :  { %19870 = vmatprep.mubr.f32.mxu0 %v3611_v2  ;;  %19935 = vmatprep.subr.mxu1 %v22069_v38  ;;  %v22840_v16 = vand.u32 4294901760, %v4109_v48 }
 0x35c   :  { %19871 = vmatmul.mubr.f32.gmra.mxu0 %v3621_v34  ;;  %19895 = vmatmul.mubr.f32.gmra.mxu1 %v3619_v56 }
 0x35d   :  { %19883 = vmatprep.mubr.f32.mxu0 %v3588_v27  ;;  %19907 = vmatprep.mubr.f32.mxu1 %v3587_v46  ;;  %v22850_v8 = vsub.f32 %v4109_v48, %v22840_v16 }
 0x35f   :  { %v4202_v42 = vand.u32 4294901760, %v22850_v8 }
 0x360   :  { %19884 = vmatmul.mubr.f32.vlgmr.msra.gmra.mxu0 %v3598_v14  ;;  %19908 = vmatmul.mubr.f32.vlgmr.msra.gmra.mxu1 %v22810_v7 }
 0x361   :  { %19886 = vmatprep.mubr.f32.mxu0 %v3608_v36  ;;  %19910 = vmatprep.mubr.f32.mxu1 %v3607_v53 }
 0x362   :  { %19898 = vmatpush3.msra.mxu0 %v22751_v54  ;;  %19936 = vmatpush3.msra.mxu1 %v22069_v38  ;;  %v4192_v38 = vand.u32 4294901760, %v22837_v49  ;;  %v4103_v54 = vld [vmem:[#allocation2 + $0x70] sm:$0xff] }
 0x363   :  { %19913 = vmatprep.subr.mxu0 %v21982_v3  ;;  %19937 = vmatprep.subr.mxu1 %v22071_v39 }
 0x364   :  { %19887 = vmatmul.mubr.f32.gmra.mxu0 %v3618_v31  ;;  %19911 = vmatmul.mubr.f32.gmra.mxu1 %v22815_v10 }
 0x365   :  { %19899 = vmatprep.mubr.f32.mxu0 %v3587_v46  ;;  %19938 = vmatpush3.msra.mxu1 %v22071_v39  ;;  %v4104_v39 = vld [vmem:[#allocation2 + $0x78] sm:$0xff] }
 0x366   :  { %19939 = vmatprep.subr.mxu1 %v24872_v35  ;;  %19951 = vmatprep.mubr.f32.mxu1 %v22828_v45  ;;  %v4115_v18 = vsel %vm284_vm0, %v4104_v39, 0 }
 0x367   :  { %19940 = vmatpush3.msra.mxu1 %v24872_v35  ;;  %v4112_v35 = vsel %vm284_vm0, %v4103_v54, 0  ;;  %v22873_v46 = vand.u32 4294901760, %v4115_v18 }
 0x368   :  { %19900 = vmatmul.mubr.f32.vlgmr.msra.gmra.mxu0 %v22810_v7  ;;  %19941 = vmatprep.subr.mxu1 %v24873_v41  ;;  %v4193_v7 = vsub.f32 %v22837_v49, %v4192_v38 }
 0x369   :  { %19914 = vmatpush3.msra.mxu0 %v21982_v3  ;;  %19902 = vmatprep.mubr.f32.mxu0 %v3607_v53 }
 0x36a   :  { %19915 = vmatprep.subr.mxu0 %v24874_v47  ;;  %19942 = vmatpush3.msra.mxu1 %v24873_v41  ;;  %v22867_v41 = vand.u32 4294901760, %v4112_v35  ;;  %v4194_v14 = vand.u32 4294901760, %v4193_v7 }
 0x36b   :  { %19916 = vmatpush3.msra.mxu0 %v24874_v47  ;;  %19943 = vmatprep.subr.mxu1 %v24875_v37 }
 0x36c   :  { %19917 = vmatprep.subr.mxu0 %v24876_v57  ;;  %19903 = vmatmul.mubr.f32.gmra.mxu0 %v22815_v10  ;;  %v22883_v23 = vsub.f32 %v4112_v35, %v22867_v41 }
 0x36d   :  { %19918 = vmatpush3.msra.mxu0 %v24876_v57  ;;  %19944 = vmatpush3.msra.mxu1 %v24875_v37  ;;  %v4203_v37 = vsub.f32 %v22850_v8, %v4202_v42 }
 0x36e   :  { %19919 = vmatprep.subr.mxu0 %v24877_v12  ;;  %19945 = vmatprep.subr.mxu1 %v24878_v33 }
 0x36f   :  { %19920 = vmatpush3.msra.mxu0 %v24877_v12  ;;  %19946 = vmatpush3.msra.mxu1 %v24878_v33  ;;  %v22889_v33 = vsub.f32 %v4115_v18, %v22873_v46  ;;  %v4204_v43 = vand.u32 4294901760, %v4203_v37 }
 0x370   :  { %19921 = vmatprep.subr.mxu0 %v24879_v32  ;;  %19947 = vmatprep.subr.mxu1 %v24880_v59 }
 0x371   :  { %19922 = vmatpush3.msra.mxu0 %v24879_v32  ;;  %19948 = vmatpush3.msra.mxu1 %v24880_v59  ;;  %v4212_v59 = vand.u32 4294901760, %v22883_v23  ;;  %v4222_v13 = vand.u32 4294901760, %v22889_v33 }
 0x372   :  { %19923 = vmatprep.subr.mxu0 %v24881_v52  ;;  %19949 = vmatprep.subr.mxu1 %v24882_v0 }
 0x373   :  { %19924 = vmatpush3.msra.mxu0 %v24881_v52  ;;  %19929 = vmatprep.mubr.f32.mxu0 %v4194_v14  ;;  %v4223_v44 = vsub.f32 %v22889_v33, %v4222_v13 }
 0x374   :  { %19925 = vmatprep.subr.mxu0 %v24883_v25  ;;  %19950 = vmatpush3.msra.mxu1 %v24882_v0  ;;  %v4213_v0 = vsub.f32 %v22883_v23, %v4212_v59 }
 0x375   :  { %19926 = vmatpush3.msra.mxu0 %v24883_v25  ;;  %19952 = vmatmul.mubr.f32.vlgmr.msra.gmra.mxu1 %v22840_v16 }
 0x376   :  { %19927 = vmatprep.subr.mxu0 %v24884_v63  ;;  %19979 = vmatprep.subr.mxu1 %v21982_v3 }
 0x377   :  { %19928 = vmatpush3.msra.mxu0 %v24884_v63  ;;  %19980 = vmatpush3.msra.mxu1 %v21982_v3 }
 0x378   :  { %19930 = vmatmul.mubr.f32.vlgmr.msra.gmra.mxu0 %v4204_v43  ;;  %19957 = vmatprep.subr.mxu0 %v24885_v58 }
 0x379   :  { %19958 = vmatpush3.msra.mxu0 %v24885_v58  ;;  %19981 = vmatprep.subr.mxu1 %v24874_v47  ;;  %v4214_v58 = vand.u32 4294901760, %v4213_v0 }
 0x37a   :  { %19959 = vmatprep.subr.mxu0 %v24886_v15  ;;  %19982 = vmatpush3.msra.mxu1 %v24874_v47 }
 0x37b   :  { %19960 = vmatpush3.msra.mxu0 %v24886_v15  ;;  %19983 = vmatprep.subr.mxu1 %v24876_v57  ;;  %v4224_v15 = vand.u32 4294901760, %v4223_v44 }
 0x37c   :  { %19961 = vmatprep.subr.mxu0 %v24887_v22  ;;  %19984 = vmatpush3.msra.mxu1 %v24876_v57 }
 0x37d   :  { %19962 = vmatpush3.msra.mxu0 %v24887_v22  ;;  %19985 = vmatprep.subr.mxu1 %v24877_v12 }
 0x37e   :  { %19963 = vmatprep.subr.mxu0 %v24888_v62  ;;  %19986 = vmatpush3.msra.mxu1 %v24877_v12 }
 0x37f   :  { %19964 = vmatpush3.msra.mxu0 %v24888_v62  ;;  %19987 = vmatprep.subr.mxu1 %v24879_v32 }
 0x380   :  { %19965 = vmatprep.subr.mxu0 %v24889_v6  ;;  %19988 = vmatpush3.msra.mxu1 %v24879_v32 }
 0x381   :  { %19966 = vmatpush3.msra.mxu0 %v24889_v6  ;;  %19932 = vmatprep.mubr.f32.mxu0 %v4214_v58 }
 0x382   :  { %19954 = vmatprep.mubr.f32.mxu1 %v22867_v41  ;;  %19967 = vmatprep.subr.mxu0 %v24890_v9 }
 0x383   :  { %19989 = vmatprep.subr.mxu1 %v24881_v52  ;;  %19933 = vmatmul.mubr.f32.gmra.mxu0 %v4224_v15 }
 0x384   :  { %19955 = vmatmul.mubr.f32.gmra.mxu1 %v22873_v46  ;;  %19968 = vmatpush3.msra.mxu0 %v24890_v9 }
 0x385   :  { %19990 = vmatpush3.msra.mxu1 %v24881_v52  ;;  %19969 = vmatprep.subr.mxu0 %v24891_v4 }
 0x386   :  { %19991 = vmatprep.subr.mxu1 %v24883_v25  ;;  %19970 = vmatpush3.msra.mxu0 %v24891_v4 }
 0x387   :  { %19992 = vmatpush3.msra.mxu1 %v24883_v25  ;;  %19971 = vmatprep.subr.mxu0 %v24892_v5 }
 0x388   :  { %19993 = vmatprep.subr.mxu1 %v24884_v63  ;;  %19972 = vmatpush3.msra.mxu0 %v24892_v5 }
 0x389   :  { %19973 = vmatprep.mubr.f32.mxu0 %v22837_v49  ;;  %19994 = vmatpush3.msra.mxu1 %v24884_v63 }
 0x38a   :  { %19974 = vmatmul.mubr.f32.vlgmr.msra.gmra.mxu0 %v22850_v8  ;;  %19995 = vmatprep.mubr.f32.mxu1 %v4192_v38  ;;  %v24931_v38 = vld [vmem:[#allocation53_spill] sm:$0xff] }
 0x38b   :  { %20001 = vmatprep.subr.mxu0 %v24893_v17  ;;  %20023 = vmatprep.subr.mxu1 %v21982_v3 }
 0x38c   :  { %19996 = vmatmul.mubr.f32.vlgmr.msra.gmra.mxu1 %v4202_v42  ;;  %20002 = vmatpush3.msra.mxu0 %v24893_v17 }
 0x38d   :  { %20024 = vmatpush3.msra.mxu1 %v21982_v3  ;;  %20003 = vmatprep.subr.mxu0 %v24894_v20  ;;  %v24927_v3 = vld [vmem:[#allocation58_spill] sm:$0xff] }
 0x38e   :  { %20025 = vmatprep.subr.mxu1 %v24874_v47  ;;  %19976 = vmatprep.mubr.f32.mxu0 %v22883_v23 }
 0x38f   :  { %20004 = vmatpush3.msra.mxu0 %v24894_v20  ;;  %20026 = vmatpush3.msra.mxu1 %v24874_v47  ;;  %v24928_v47 = vld [vmem:[#allocation62_spill] sm:$0xff] }
 0x390   :  { %19977 = vmatmul.mubr.f32.gmra.mxu0 %v22889_v33  ;;  %20005 = vmatprep.subr.mxu0 %v24895_v30 }
 0x391   :  { %20027 = vmatprep.subr.mxu1 %v24876_v57  ;;  %19998 = vmatprep.mubr.f32.mxu1 %v4212_v59 }
 0x392   :  { %20006 = vmatpush3.msra.mxu0 %v24895_v30  ;;  %20028 = vmatpush3.msra.mxu1 %v24876_v57  ;;  %v24929_v57 = vld [vmem:[#allocation63_spill] sm:$0xff] }
 0x393   :  { %19999 = vmatmul.mubr.f32.gmra.mxu1 %v4222_v13  ;;  %20007 = vmatprep.subr.mxu0 %v24896_v21 }
 0x394   :  { %20029 = vmatprep.subr.mxu1 %v24877_v12  ;;  %20008 = vmatpush3.msra.mxu0 %v24896_v21 }
 0x395   :  { %20030 = vmatpush3.msra.mxu1 %v24877_v12  ;;  %20009 = vmatprep.subr.mxu0 %v24897_v24  ;;  %v4784_v12 = vld [vmem:[#allocation5 + $0x18] sm:$0xff] }
 0x396   :  { %20031 = vmatprep.subr.mxu1 %v24879_v32  ;;  %20010 = vmatpush3.msra.mxu0 %v24897_v24 }
 0x397   :  { %20032 = vmatpush3.msra.mxu1 %v24879_v32  ;;  %20011 = vmatprep.subr.mxu0 %v24927_v3  ;;  %v22983_v32 = vand.u32 4294901760, %v4784_v12 }
 0x398   :  { %20033 = vmatprep.subr.mxu1 %v24881_v52  ;;  %20012 = vmatpush3.msra.mxu0 %v24927_v3 }
 0x399   :  { %20034 = vmatpush3.msra.mxu1 %v24881_v52  ;;  %20013 = vmatprep.subr.mxu0 %v24928_v47  ;;  %v22986_v52 = vsub.f32 %v4784_v12, %v22983_v32 }
 0x39a   :  { %20035 = vmatprep.subr.mxu1 %v24883_v25  ;;  %20014 = vmatpush3.msra.mxu0 %v24928_v47 }
 0x39b   :  { %20036 = vmatpush3.msra.mxu1 %v24883_v25  ;;  %20015 = vmatprep.subr.mxu0 %v24929_v57  ;;  %v22991_v25 = vand.u32 4294901760, %v22986_v52 }
 0x39c   :  { %20037 = vmatprep.subr.mxu1 %v24884_v63  ;;  %20016 = vmatpush3.msra.mxu0 %v24929_v57 }
 0x39d   :  { %20017 = vmatprep.mubr.f32.mxu0 %v22828_v45  ;;  %20038 = vmatpush3.msra.mxu1 %v24884_v63  ;;  %v4937_v63 = vsub.f32 %v22986_v52, %v22991_v25 }
 0x39e   :  { %20039 = vmatprep.mubr.f32.mxu1 %v22828_v45  ;;  %20018 = vmatmul.mubr.f32.vlgmr.msra.gmra.mxu0 %v22840_v16 }
 0x39f   :  { %20040 = vmatmul.mubr.f32.vlgmr.msra.gmra.mxu1 %v22840_v16  ;;  %20020 = vmatprep.mubr.f32.mxu0 %v22867_v41  ;;  %v4938_v22 = vand.u32 4294901760, %v4937_v63 }
 0x3a0   :  { %20042 = vmatprep.mubr.f32.mxu1 %v22867_v41  ;;  %20045 = vmatprep.subr.mxu0 %v22983_v32 }
 0x3a1   :  { %20046 = vmatpush3.msra.mxu0 %v22983_v32  ;;  %20053 = vmatprep.subr.mxu1 %v4938_v22 }
 0x3a2   :  { %20021 = vmatmul.mubr.f32.gmra.mxu0 %v22873_v46  ;;  %20061 = vmatprep.subr.mxu0 %v22986_v52 }
 0x3a3   :  { %20043 = vmatmul.mubr.f32.gmra.mxu1 %v22873_v46 }
 0x3a4   :  { %20054 = vmatpush3.msra.mxu1 %v4938_v22 }
 0x3a5   :  { %20069 = vmatprep.subr.mxu1 %v22983_v32 }
 0x410   :  { %v19877_v62 = vpop.f32.mrf.mxu1 }
 0x412   :  { %v22997_v6 = vpop.f32.mrf.mxu1 }
 0x414   :  { %v19880_v9 = vpop.f32.mrf.mxu1 }
 0x416   :  { %v22999_v4 = vpop.f32.mrf.mxu1 }
 0x418   :  { %v19869_v5 = vpop.f32.mrf.mxu0  ;;  %v19893_v17 = vpop.f32.mrf.mxu1 }
 0x419   :  { %v3706_v20 = vadd.f32 %v19877_v62, %v19869_v5 }
 0x41a   :  { %v23001_v30 = vpop.f32.mrf.mxu0  ;;  %v23003_v21 = vpop.f32.mrf.mxu1 }
 0x41c   :  { %v19872_v24 = vpop.f32.mrf.mxu0  ;;  %v19896_v10 = vpop.f32.mrf.mxu1 }
 0x41d   :  { %v3718_v27 = vadd.f32 %v19880_v9, %v19872_v24 }
 0x41e   :  { %v23005_v26 = vpop.f32.mrf.mxu0  ;;  %v23007_v60 = vpop.f32.mrf.mxu1 }
 0x420   :  { %v19885_v31 = vpop.f32.mrf.mxu0  ;;  %v19909_v50 = vpop.f32.mrf.mxu1 }
 0x421   :  { %v3799_v53 = vadd.f32 %v19885_v31, %v3706_v20 }
 0x422   :  { %v23009_v40 = vpop.f32.mrf.mxu0  ;;  %v23013_v2 = vpop.f32.mrf.mxu1 }
 0x423   :  { %v3895_v36 = vadd.f32 %v19893_v17, %v3799_v53 }
 0x424   :  { %v19888_v61 = vpop.f32.mrf.mxu0  ;;  %v19912_v49 = vpop.f32.mrf.mxu1 }
 0x425   :  { %v3813_v56 = vadd.f32 %v19888_v61, %v3718_v27 }
 0x426   :  { %v23011_v51 = vpop.f32.mrf.mxu0  ;;  %v23025_v35 = vpop.f32.mrf.mxu1 }
 0x427   :  { %v3911_v11 = vadd.f32 %v19896_v10, %v3813_v56 }
 0x428   :  { %v19901_v55 = vpop.f32.mrf.mxu0 }
 0x429   :  { %v3991_v1 = vadd.f32 %v19901_v55, %v3895_v36 }
 0x42a   :  { %v23015_v29 = vpop.f32.mrf.mxu0 }
 0x42b   :  { %v4081_v34 = vadd.f32 %v19909_v50, %v3991_v1 }
 0x42c   :  { %v19904_v28 = vpop.f32.mrf.mxu0 }
 0x42d   :  { %v23018_v45 = vadd.f32 %v4081_v34, %v24930_v19  ;;  %v4003_v48 = vadd.f32 %v19904_v28, %v3911_v11 }
 0x42e   :  { %v23023_v8 = vpop.f32.mrf.mxu0 }
 0x42f   :  { %v4093_v16 = vadd.f32 %v19912_v49, %v4003_v48 }
 0x431   :  { %v23021_v54 = vadd.f32 %v4093_v16, %v24931_v38 }
 0x435   :  { %v19953_v7 = vpop.f32.mrf.mxu1 }
 0x437   :  { %v4337_v41 = vpop.f32.mrf.mxu1 }
 0x438   :  { %v19931_v39 = vpop.f32.mrf.mxu0 }
 0x439   :  { %v4344_v13 = vadd.f32 %v19953_v7, %v19931_v39 }
 0x43a   :  { %v4196_v42 = vpop.f32.mrf.mxu0 }
 0x43b   :  { %v4338_v44 = vadd.f32 %v4337_v41, %v4196_v42 }
 0x443   :  { %v19934_v18 = vpop.f32.mrf.mxu0 }
 0x444   :  { %v19956_v14 = vpop.f32.mrf.mxu1 }
 0x445   :  { %v4216_v46 = vpop.f32.mrf.mxu0  ;;  %v4356_v3 = vadd.f32 %v19956_v14, %v19934_v18 }
 0x446   :  { %v4349_v37 = vpop.f32.mrf.mxu1 }
 0x447   :  { %v4350_v12 = vadd.f32 %v4349_v37, %v4216_v46 }
 0x44a   :  { %v19975_v23 = vpop.f32.mrf.mxu0 }
 0x44b   :  { %v4451_v58 = vadd.f32 %v19975_v23, %v4344_v13 }
 0x44c   :  { %v19997_v33 = vpop.f32.mrf.mxu1  ;;  %v4443_v43 = vpop.f32.mrf.mxu0 }
 0x44d   :  { %v4444_v47 = vadd.f32 %v4443_v43, %v4338_v44  ;;  %v4554_v63 = vadd.f32 %v19997_v33, %v4451_v58 }
 0x44e   :  { %v4545_v59 = vpop.f32.mrf.mxu1 }
 0x44f   :  { %v4546_v5 = vadd.f32 %v4545_v59, %v4444_v47 }
 0x450   :  { %v19978_v0 = vpop.f32.mrf.mxu0 }
 0x451   :  { %v4465_v22 = vadd.f32 %v19978_v0, %v4356_v3 }
 0x452   :  { %v4457_v57 = vpop.f32.mrf.mxu0 }
 0x453   :  { %v20000_v15 = vpop.f32.mrf.mxu1  ;;  %v4458_v17 = vadd.f32 %v4457_v57, %v4350_v12 }
 0x454   :  { %v4570_v10 = vadd.f32 %v20000_v15, %v4465_v22  ;;  %v24934_v22 = vld [vmem:[#allocation65_spill] sm:$0xff] }
 0x455   :  { %v4561_v62 = vpop.f32.mrf.mxu1 }
 0x456   :  { %v4562_v56 = vadd.f32 %v4561_v62, %v4458_v17 }
 0x45e   :  { %v20019_v9 = vpop.f32.mrf.mxu0 }
 0x45f   :  { %v4671_v20 = vadd.f32 %v20019_v9, %v4554_v63  ;;  %v20041_v24 = vpop.f32.mrf.mxu1  ;;  %v24935_v9 = vld [vmem:[#allocation40_spill] sm:$0xff] }
 0x460   :  { %v4664_v27 = vpop.f32.mrf.mxu0 }
 0x461   :  { %v4768_v31 = vadd.f32 %v20041_v24, %v4671_v20  ;;  %v4665_v53 = vadd.f32 %v4664_v27, %v4546_v5  ;;  %v4761_v36 = vpop.f32.mrf.mxu1  ;;  %v24936_v5 = vld [vmem:[#allocation61_spill] sm:$0xff]  ;;  %v24937_v24 = vld [vmem:[#allocation66_spill] sm:$0xff] }
 0x462   :  { %v20022_v61 = vpop.f32.mrf.mxu0  ;;  %v1853_v17 = vadd.f32 %v24936_v5, %v24935_v9 }
 0x463   :  { %v4789_v50 = vsel %vm1649_vm1, %v4768_v31, 0  ;;  %v4762_v11 = vadd.f32 %v4761_v36, %v4665_v53  ;;  %v4683_v55 = vadd.f32 %v20022_v61, %v4570_v10  ;;  %v20044_v1 = vpop.f32.mrf.mxu1  ;;  %v24938_v10 = vld [vmem:[#allocation64_spill] sm:$0xff]  ;;  %v24939_v53 = vld [vmem:[#allocation67_spill] sm:$0xff] }
 0x464   :  { %v4873_v34 = vand.u32 4294901760, %v4789_v50  ;;  %v4676_v28 = vpop.f32.mrf.mxu0  ;;  %v1947_v27 = vadd.f32 %v24937_v24, %v1853_v17 }
 0x465   :  { %v4786_v19 = vsel %vm1649_vm1, %v4762_v11, 0  ;;  %v4780_v48 = vadd.f32 %v20044_v1, %v4683_v55  ;;  %v4677_v49 = vadd.f32 %v4676_v28, %v4562_v56  ;;  %v4773_v39 = vpop.f32.mrf.mxu1  ;;  %v24940_v56 = vld [vmem:[#allocation41_spill] sm:$0xff]  ;;  %v24941_v55 = vld [vmem:[#allocation48_spill] sm:$0xff] }
 0x466   :  { %v4874_v16 = vsub.f32 %v4789_v50, %v4873_v34  ;;  %v4863_v38 = vand.u32 4294901760, %v4786_v19  ;;  %v2044_v50 = vadd.f32 %v24940_v56, %v1947_v27 }
 0x467   :  { %v4795_v7 = vsel %vm1649_vm1, %v4780_v48, 0  ;;  %v4774_v42 = vadd.f32 %v4773_v39, %v4677_v49  ;;  %v24943_v49 = vld [vmem:[#allocation45_spill] sm:$0xff] }
 0x468   :  { %v4875_v18 = vand.u32 4294901760, %v4874_v16  ;;  %v4864_v41 = vsub.f32 %v4786_v19, %v4863_v38  ;;  %v4893_v14 = vand.u32 4294901760, %v4795_v7  ;;  %20055 = vmatprep.mubr.f32.mxu1 %v4863_v38  ;;  %v2138_v1 = vadd.f32 %v24941_v55, %v2044_v50 }
 0x469   :  { %v4792_v46 = vsel %vm1649_vm1, %v4774_v42, 0  ;;  %20056 = vmatmul.mubr.f32.vlgmr.msra.gmra.mxu1 %v4873_v34 }
 0x46a   :  { %v4894_v37 = vsub.f32 %v4795_v7, %v4893_v14  ;;  %v4883_v23 = vand.u32 4294901760, %v4792_v46  ;;  %v4865_v33 = vand.u32 4294901760, %v4864_v41  ;;  %20070 = vmatpush3.msra.mxu1 %v22983_v32  ;;  %v4876_v43 = vsub.f32 %v4874_v16, %v4875_v18  ;;  %v24944_v7 = vld [vmem:[#allocation43_spill] sm:$0xff] }
 0x46b   :  { %20085 = vmatprep.subr.mxu1 %v22983_v32  ;;  %v2228_v42 = vadd.f32 %v24944_v7, %v2138_v1  ;;  %v24953_v1 = vld [vmem:[#allocation60_spill] sm:$0xff] }
 0x46c   :  { %v4884_v59 = vsub.f32 %v4792_v46, %v4883_v23  ;;  %20058 = vmatprep.mubr.f32.mxu1 %v4883_v23  ;;  %v4866_v13 = vsub.f32 %v4864_v41, %v4865_v33  ;;  %v4895_v0 = vand.u32 4294901760, %v4894_v37  ;;  %v4877_v15 = vand.u32 4294901760, %v4876_v43  ;;  %v24945_v46 = vld [vmem:[#allocation49_spill] sm:$0xff] }
 0x46d   :  { %20059 = vmatmul.mubr.f32.gmra.mxu1 %v4893_v14 }
 0x46e   :  { %20071 = vmatprep.mubr.f32.mxu1 %v4865_v33  ;;  %v4867_v44 = vand.u32 4294901760, %v4866_v13  ;;  %v4885_v58 = vand.u32 4294901760, %v4884_v59  ;;  %v4896_v3 = vsub.f32 %v4894_v37, %v4895_v0  ;;  %v24947_v13 = vld [vmem:[#allocation56_spill] sm:$0xff] }
 0x470   :  { %20047 = vmatprep.mubr.f32.mxu0 %v4867_v44  ;;  %v4886_v47 = vsub.f32 %v4884_v59, %v4885_v58  ;;  %v4897_v12 = vand.u32 4294901760, %v4896_v3 }
 0x471   :  { %20048 = vmatmul.mubr.f32.vlgmr.msra.gmra.mxu0 %v4877_v15  ;;  %20072 = vmatmul.mubr.f32.vlgmr.msra.gmra.mxu1 %v4875_v18 }
 0x472   :  { %20074 = vmatprep.mubr.f32.mxu1 %v4885_v58  ;;  %v4887_v57 = vand.u32 4294901760, %v4886_v47  ;;  %20062 = vmatpush3.msra.mxu0 %v22986_v52  ;;  %v24933_v52 = vld [vmem:[#allocation57_spill] sm:$0xff]  ;;  %v3712_v58 = vadd.f32 %v22999_v4, %v23005_v26  ;;  %v24948_v47 = vld [vmem:[#allocation44_spill] sm:$0xff] }
 0x473   :  { %20086 = vmatpush3.msra.mxu1 %v22983_v32  ;;  %20077 = vmatprep.subr.mxu0 %v22991_v25  ;;  %v24932_v32 = vld [vmem:[#allocation39_spill] sm:$0xff] }
 0x474   :  { %20050 = vmatprep.mubr.f32.mxu0 %v4887_v57  ;;  %v1841_v63 = vadd.f32 %v24933_v52, %v24932_v32 }
 0x475   :  { %20051 = vmatmul.mubr.f32.gmra.mxu0 %v4897_v12  ;;  %20075 = vmatmul.mubr.f32.gmra.mxu1 %v4895_v0 }
 0x476   :  { %20063 = vmatprep.mubr.f32.mxu0 %v4864_v41  ;;  %20087 = vmatprep.mubr.f32.mxu1 %v4863_v38  ;;  %v1933_v62 = vadd.f32 %v24934_v22, %v1841_v63  ;;  %v3700_v41 = vadd.f32 %v22997_v6, %v23001_v30  ;;  %v3806_v6 = vadd.f32 %v23011_v51, %v3712_v58  ;;  %v24949_v63 = vld [vmem:[#allocation59_spill] sm:$0xff] }
 0x478   :  { %v2028_v31 = vadd.f32 %v24938_v10, %v1933_v62  ;;  %v3903_v10 = vadd.f32 %v23007_v60, %v3806_v6 }
 0x479   :  { %20064 = vmatmul.mubr.f32.vlgmr.msra.gmra.mxu0 %v4874_v16  ;;  %20088 = vmatmul.mubr.f32.vlgmr.msra.gmra.mxu1 %v4873_v34 }
 0x47a   :  { %20066 = vmatprep.mubr.f32.mxu0 %v4884_v59  ;;  %20090 = vmatprep.mubr.f32.mxu1 %v4883_v23  ;;  %v2126_v36 = vadd.f32 %v24939_v53, %v2028_v31  ;;  %v3792_v59 = vadd.f32 %v23009_v40, %v3700_v41  ;;  %v24950_v40 = vld [vmem:[#allocation47_spill] sm:$0xff]  ;;  %v3997_v50 = vadd.f32 %v23023_v8, %v3903_v10 }
 0x47b   :  { %20078 = vmatpush3.msra.mxu0 %v22991_v25 }
 0x47c   :  { %v3887_v30 = vadd.f32 %v23003_v21, %v3792_v59  ;;  %v24952_v21 = vld [vmem:[#allocation50_spill] sm:$0xff] }
 0x47d   :  { %20067 = vmatmul.mubr.f32.gmra.mxu0 %v4894_v37  ;;  %20091 = vmatmul.mubr.f32.gmra.mxu1 %v4893_v14  ;;  %v2342_v37 = vadd.f32 %v24945_v46, %v2228_v42 }
 0x47e   :  { %20079 = vmatprep.mubr.f32.mxu0 %v4863_v38  ;;  %v3985_v5 = vadd.f32 %v23015_v29, %v3887_v30 }
 0x47f   :  { %v2440_v57 = vadd.f32 %v24948_v47, %v2342_v37  ;;  %v24955_v37 = vld [vmem:[#allocation55_spill] sm:$0xff] }
 0x480   :  { %v4075_v56 = vadd.f32 %v23013_v2, %v3985_v5 }
 0x481   :  { %20080 = vmatmul.mubr.f32.vlgmr.msra.gmra.mxu0 %v4873_v34  ;;  %v24942_v34 = vld [vmem:[#allocation42_spill] sm:$0xff]  ;;  %v2534_v22 = vadd.f32 %v24949_v63, %v2440_v57 }
 0x482   :  { %20082 = vmatprep.mubr.f32.mxu0 %v4883_v23  ;;  %v2216_v28 = vadd.f32 %v24942_v34, %v2126_v36  ;;  %v24946_v23 = vld [vmem:[#allocation46_spill] sm:$0xff] }
 0x484   :  { %v2322_v16 = vadd.f32 %v24943_v49, %v2216_v28  ;;  %v24954_v49 = vld [vmem:[#allocation54_spill] sm:$0xff] }
 0x485   :  { %20083 = vmatmul.mubr.f32.gmra.mxu0 %v4893_v14 }
 0x486   :  { %v2428_v33 = vadd.f32 %v24946_v23, %v2322_v16 }
 0x488   :  { %v2520_v0 = vadd.f32 %v24947_v13, %v2428_v33 }
 0x48a   :  { %v2615_v62 = vadd.f32 %v24950_v40, %v2520_v0 }
 0x529   :  { %v20057_v20 = vpop.f32.mrf.mxu1 }
 0x52b   :  { %v4975_v25 = vpop.f32.mrf.mxu1 }
 0x52d   :  { %v20060_v61 = vpop.f32.mrf.mxu1 }
 0x52f   :  { %v4987_v11 = vpop.f32.mrf.mxu1 }
 0x531   :  { %v20049_v19 = vpop.f32.mrf.mxu0  ;;  %v20073_v48 = vpop.f32.mrf.mxu1 }
 0x532   :  { %v4982_v15 = vadd.f32 %v20057_v20, %v20049_v19  ;;  %v24951_v20 = vld [vmem:[#allocation51_spill] sm:$0xff] }
 0x533   :  { %v4869_v38 = vpop.f32.mrf.mxu0  ;;  %v5162_v39 = vpop.f32.mrf.mxu1  ;;  %v2713_v24 = vadd.f32 %v24951_v20, %v2615_v62 }
 0x534   :  { %v4976_v32 = vadd.f32 %v4975_v25, %v4869_v38  ;;  %v2631_v25 = vadd.f32 %v24952_v21, %v2534_v22 }
 0x535   :  { %v20052_v18 = vpop.f32.mrf.mxu0  ;;  %v20076_v14 = vpop.f32.mrf.mxu1  ;;  %v2803_v34 = vadd.f32 %v24953_v1, %v2713_v24 }
 0x536   :  { %v4994_v17 = vadd.f32 %v20060_v61, %v20052_v18  ;;  %v2725_v16 = vadd.f32 %v24954_v49, %v2631_v25  ;;  %v18338_v49 = vld [vmem:[#allocation7] ss:$0 sm:$0xff] }
 0x537   :  { %v4889_v43 = vpop.f32.mrf.mxu0  ;;  %v5178_v3 = vpop.f32.mrf.mxu1  ;;  %v4096_v42 = vadd.f32 %v4075_v56, %v2803_v34 }
 0x538   :  { %v4988_v53 = vadd.f32 %v4987_v11, %v4889_v43  ;;  %v4087_v11 = vadd.f32 %v23025_v35, %v3997_v50  ;;  %v2815_v23 = vadd.f32 %v24955_v37, %v2725_v16 }
 0x539   :  { %v20065_v44 = vpop.f32.mrf.mxu0  ;;  %v20089_v4 = vpop.f32.mrf.mxu1 }
 0x53a   :  { %v5075_v52 = vadd.f32 %v20065_v44, %v4982_v15  ;;  %v4098_v13 = vadd.f32 %v4087_v11, %v2815_v23 }
 0x53b   :  { %v5067_v12 = vpop.f32.mrf.mxu0  ;;  %v5350_v55 = vpop.f32.mrf.mxu1 }
 0x53c   :  { %v5068_v26 = vadd.f32 %v5067_v12, %v4976_v32  ;;  %v5171_v31 = vadd.f32 %v20073_v48, %v5075_v52 }
 0x53d   :  { %v20068_v9 = vpop.f32.mrf.mxu0  ;;  %v20092_v18 = vpop.f32.mrf.mxu1 }
 0x53e   :  { %v5089_v51 = vadd.f32 %v20068_v9, %v4994_v17  ;;  %v5163_v61 = vadd.f32 %v5162_v39, %v5068_v26 }
 0x53f   :  { %v5081_v27 = vpop.f32.mrf.mxu0  ;;  %v5362_v0 = vpop.f32.mrf.mxu1 }
 0x540   :  { %v5082_v28 = vadd.f32 %v5081_v27, %v4988_v53  ;;  %v5187_v48 = vadd.f32 %v20076_v14, %v5089_v51 }
 0x541   :  { %v20081_v36 = vpop.f32.mrf.mxu0 }
 0x542   :  { %v5267_v29 = vadd.f32 %v20081_v36, %v5171_v31  ;;  %v5179_v46 = vadd.f32 %v5178_v3, %v5082_v28 }
 0x543   :  { %v5260_v19 = vpop.f32.mrf.mxu0 }
 0x544   :  { %v5357_v60 = vadd.f32 %v20089_v4, %v5267_v29  ;;  %v5261_v38 = vadd.f32 %v5260_v19, %v5163_v61 }
 0x545   :  { %v20084_v7 = vpop.f32.mrf.mxu0 }
 0x546   :  { %v5351_v2 = vadd.f32 %v5350_v55, %v5261_v38  ;;  %v5279_v41 = vadd.f32 %v20084_v7, %v5187_v48  ;;  %v5373_v8 = vadd.f32 %v5357_v60, %v23018_v45  ;;  %v18339_v7 = vld [vmem:[#allocation8] ss:$0 sm:$0xff] }
 0x547   :  { %v5272_v39 = vpop.f32.mrf.mxu0 }
 0x548   :  { %v5372_v33 = vadd.f32 %v5351_v2, %v4096_v42  ;;  %v5369_v43 = vadd.f32 %v20092_v18, %v5279_v41  ;;  %v5273_v59 = vadd.f32 %v5272_v39, %v5179_v46  ;;  %v5392_v44 = vmul.f32 %v5373_v8, %v5373_v8 }
 0x549   :  { %v5378_v47 = vsel %vm5376_vm2, %v5373_v8, 0.0 }
 0x54a   :  { %v5391_v14 = vmul.f32 %v5372_v33, %v5372_v33  ;;  %v5377_v58 = vsel %vm5376_vm2, %v5372_v33, 0.0  ;;  %v5375_v35 = vadd.f32 %v5369_v43, %v23021_v54  ;;  %v5363_v15 = vadd.f32 %v5362_v0, %v5273_v59 }
 0x54b   :  { %v5379_v57 = vadd.f32 %v5378_v47, %v5377_v58  ;;  %v5396_v12 = vsel %vm5376_vm2, %v5392_v44, 0.0  ;;  %v5487_v47 = vld [vmem:[#allocation10] sm:$0xff] }
 0x54c   :  { %v5395_v45 = vsel %vm5376_vm2, %v5391_v14, 0.0  ;;  %v5374_v3 = vadd.f32 %v5363_v15, %v4098_v13  ;;  %v5394_v6 = vmul.f32 %v5375_v35, %v5375_v35  ;;  %v5382_v22 = vsel %vm5376_vm2, %v5375_v35, 0.0 }
 0x54d   :  { %v5397_v52 = vadd.f32 %v5396_v12, %v5395_v45  ;;  %v5490_v45 = vsel %vm5376_vm2, %v5487_v47, 0 }
 0x54e   :  { %v5380_v30 = vsel %vm5376_vm2, %v5374_v3, 0.0  ;;  %v5393_v32 = vmul.f32 %v5374_v3, %v5374_v3  ;;  %v5400_v9 = vsel %vm5376_vm2, %v5394_v6, 0.0 }
 0x54f   :  { %v5381_v63 = vadd.f32 %v5380_v30, %v5379_v57 }
 0x550   :  { %v5398_v40 = vsel %vm5376_vm2, %v5393_v32, 0.0 }
 0x551   :  { %v5383_v54 = vadd.f32 %v5382_v22, %v5381_v63  ;;  %v5399_v62 = vadd.f32 %v5398_v40, %v5397_v52  ;;  %v5488_v40 = vld [vmem:[#allocation10 + $0x8] sm:$0xff] }
 0x553   :  { %v5384_v5 = vrot.slane %v5383_v54, 4  ;;  %v5401_v17 = vadd.f32 %v5400_v9, %v5399_v62 }
 0x555   :  { %v5385_v4 = vadd.f32 %v5384_v5, %v5383_v54  ;;  %v5402_v26 = vrot.slane %v5401_v17, 4  ;;  %v5493_v54 = vsel %vm5376_vm2, %v5488_v40, 0 }
 0x556   :  { %v23099_v62 = vand.u32 4294901760, %v5493_v54 }
 0x557   :  { %v5386_v20 = vrot.slane %v5385_v4, 2  ;;  %v5403_v24 = vadd.f32 %v5402_v26, %v5401_v17 }
 0x558   :  { %v23102_v9 = vsub.f32 %v5493_v54, %v23099_v62 }
 0x559   :  { %v5387_v27 = vadd.f32 %v5386_v20, %v5385_v4  ;;  %v5404_v10 = vrot.slane %v5403_v24, 2 }
 0x55b   :  { %v5388_v51 = vrot.slane %v5387_v27, 1  ;;  %v5405_v31 = vadd.f32 %v5404_v10, %v5403_v24  ;;  %v5576_v24 = vand.u32 4294901760, %v23102_v9 }
 0x55d   :  { %v5389_v21 = vadd.f32 %v5388_v51, %v5387_v27  ;;  %v5406_v25 = vrot.slane %v5405_v31, 1 }
 0x55f   :  { %v5390_v53 = vmul.f32 0.03125, %v5389_v21  ;;  %v5407_v36 = vadd.f32 %v5406_v25, %v5405_v31 }
 0x561   :  { %v5408_v56 = vmul.f32 0.03125, %v5407_v36  ;;  %v5409_v50 = vmul.f32 %v5390_v53, %v5390_v53  ;;  %v5414_v55 = vsub.f32 %v5375_v35, %v5390_v53  ;;  %v5412_v29 = vsub.f32 %v5373_v8, %v5390_v53 }
 0x562   :  { %v5411_v34 = vsub.f32 %v5372_v33, %v5390_v53  ;;  %v5413_v28 = vsub.f32 %v5374_v3, %v5390_v53  ;;  %v23084_v3 = vand.u32 4294901760, %v5490_v45 }
 0x563   :  { %v5410_v61 = vsub.f32 %v5408_v56, %v5409_v50  ;;  %v5577_v50 = vsub.f32 %v23102_v9, %v5576_v24 }
 0x564   :  { %v23087_v57 = vsub.f32 %v5490_v45, %v23084_v3  ;;  %20112 = vmatprep.mubr.f32.mxu1 %v23084_v3 }
 0x565   :  { %v5415_v1 = vadd.f32 1e-05, %v5410_v61 }
 0x566   :  { %v5566_v12 = vand.u32 4294901760, %v23087_v57 }
 0x567   :  { %21364 = vrsqrt.f32 %v5415_v1 }
 0x568   :  { %v5567_v6 = vsub.f32 %v23087_v57, %v5566_v12 }
 0x56a   :  { %v5568_v52 = vand.u32 4294901760, %v5567_v6 }
 0x56c   :  { %20101 = vmatprep.mubr.f32.mxu0 %v5568_v52 }
 0x574   :  { %v21365_v19 = vpop.eup %21364 }
 0x575   :  { %v5417_v16 = vmul.f32 %v21365_v19, %v5411_v34  ;;  %v5419_v60 = vmul.f32 %v21365_v19, %v5413_v28  ;;  %v5420_v38 = vmul.f32 %v21365_v19, %v5414_v55  ;;  %v5418_v48 = vmul.f32 %v21365_v19, %v5412_v29 }
 0x577   :  { %v5428_v42 = vmul.f32 %v18338_v49, %v5417_v16  ;;  %v5430_v11 = vmul.f32 %v18338_v49, %v5419_v60  ;;  %v5431_v18 = vmul.f32 %v18338_v49, %v5420_v38  ;;  %v5429_v2 = vmul.f32 %v18338_v49, %v5418_v48 }
 0x578   :  { %v5578_v49 = vand.u32 4294901760, %v5577_v50 }
 0x579   :  { %v5439_v41 = vadd.f32 %v18339_v7, %v5428_v42  ;;  %v5441_v46 = vadd.f32 %v18339_v7, %v5430_v11  ;;  %v5442_v39 = vadd.f32 %v18339_v7, %v5431_v18  ;;  %v5440_v8 = vadd.f32 %v18339_v7, %v5429_v2  ;;  %v6026_v11 = vld [vmem:[#allocation10 + $0x10] sm:$0xff]  ;;  %v6027_v18 = vld [vmem:[#allocation10 + $0x18] sm:$0xff] }
 0x57b   :  { %v18340_v37 = vmul.f32 -1.442695, %v5439_v41  ;;  %v18342_v23 = vmul.f32 -1.442695, %v5441_v46  ;;  %v18343_v43 = vmul.f32 -1.442695, %v5442_v39 }
 0x57c   :  { %v18341_v33 = vmul.f32 -1.442695, %v5440_v8 }
 0x57d   :  { %21366 = vpow2.f32 %v18340_v37 }
 0x57e   :  { %21368 = vpow2.f32 %v18342_v23 }
 0x57f   :  { %21370 = vpow2.f32 %v18343_v43 }
 0x580   :  { %21372 = vpow2.f32 %v18341_v33 }
 0x58a   :  { %v21367_v59 = vpop.eup %21366 }
 0x58b   :  { %v21369_v13 = vpop.eup %21368  ;;  %v5455_v15 = vadd.f32 1.0, %v21367_v59 }
 0x58c   :  { %v21371_v0 = vpop.eup %21370  ;;  %v5457_v35 = vadd.f32 1.0, %v21369_v13 }
 0x58d   :  { %v21373_v14 = vpop.eup %21372  ;;  %v5458_v44 = vadd.f32 1.0, %v21371_v0 }
 0x58e   :  { %v5456_v58 = vadd.f32 1.0, %v21373_v14 }
 0x58f   :  { %21374 = vrcp.f32 %v5458_v44  ;;  %v6564_v44 = vld [vmem:[#allocation11 + $0x18] sm:$0xff] }
 0x590   :  { %21376 = vrcp.f32 %v5456_v58  ;;  %v23295_v58 = vand.u32 4294901760, %v6564_v44 }
 0x591   :  { %21378 = vrcp.f32 %v5457_v35  ;;  %v6563_v35 = vld [vmem:[#allocation11 + $0x10] sm:$0xff] }
 0x592   :  { %21380 = vrcp.f32 %v5455_v15  ;;  %v23298_v15 = vsub.f32 %v6564_v44, %v23295_v58  ;;  %v23300_v47 = vand.u32 4294901760, %v6563_v35 }
 0x594   :  { %v23305_v45 = vand.u32 4294901760, %v23298_v15 }
 0x59c   :  { %v21375_v30 = vpop.eup %21374 }
 0x59d   :  { %v21377_v32 = vpop.eup %21376  ;;  %5477 = vrot.lane.b32.xlu0 %v21375_v30, %s21782_s6 }
 0x59e   :  { %5473 = vrot.lane.b32.xlu1 %v21377_v32, %s21782_s6  ;;  %v21379_v63 = vpop.eup %21378 }
 0x59f   :  { %v21381_v22 = vpop.eup %21380 }
 0x5a1   :  { %5475 = vrot.lane.b32.xlu0 %v21379_v63, %s21782_s6 }
 0x5a2   :  { %5471 = vrot.lane.b32.xlu1 %v21381_v22, %s21782_s6 }
 0x60f   :  { %v5478_v5 = vpop.permute.xlu0 %5477 }
 0x610   :  { %v5486_v17 = vmul.f32 %v5478_v5, %v5442_v39  ;;  %v5474_v4 = vpop.permute.xlu1 %5473 }
 0x611   :  { %v5484_v26 = vmul.f32 %v5474_v4, %v5440_v8 }
 0x612   :  { %v23104_v20 = vand.u32 4294901760, %v5486_v17 }
 0x613   :  { %v23107_v27 = vand.u32 4294901760, %v5484_v26  ;;  %v5476_v10 = vpop.permute.xlu0 %5475 }
 0x614   :  { %v23110_v51 = vsub.f32 %v5486_v17, %v23104_v20  ;;  %v5485_v31 = vmul.f32 %v5476_v10, %v5441_v46  ;;  %v5472_v21 = vpop.permute.xlu1 %5471  ;;  %20093 = vmatprep.subr.mxu0 %v23104_v20  ;;  %v6032_v46 = vsel %vm5376_vm2, %v6027_v18, 0 }
 0x615   :  { %v23114_v25 = vsub.f32 %v5484_v26, %v23107_v27  ;;  %v5483_v53 = vmul.f32 %v5472_v21, %v5439_v41  ;;  %20094 = vmatpush3.msra.mxu0 %v23104_v20  ;;  %v6029_v41 = vsel %vm5376_vm2, %v6026_v11, 0  ;;  %v23189_v8 = vand.u32 4294901760, %v6032_v46 }
 0x616   :  { %v23118_v36 = vand.u32 4294901760, %v23110_v51  ;;  %v23120_v56 = vand.u32 4294901760, %v5485_v31  ;;  %v23185_v39 = vand.u32 4294901760, %v6029_v41 }
 0x617   :  { %v23125_v55 = vand.u32 4294901760, %v5483_v53  ;;  %v23128_v29 = vand.u32 4294901760, %v23114_v25  ;;  %v23203_v23 = vsub.f32 %v6032_v46, %v23189_v8 }
 0x618   :  { %v23131_v61 = vsub.f32 %v5485_v31, %v23120_v56  ;;  %20095 = vmatprep.subr.mxu0 %v23120_v56  ;;  %v5612_v1 = vsub.f32 %v23110_v51, %v23118_v36  ;;  %v23198_v37 = vsub.f32 %v6029_v41, %v23185_v39  ;;  %v6024_v41 = vld [vmem:[#allocation11 + $0x8] sm:$0xff] }
 0x619   :  { %v23137_v34 = vsub.f32 %v5483_v53, %v23125_v55  ;;  %20096 = vmatpush3.msra.mxu0 %v23120_v56  ;;  %v5626_v38 = vsub.f32 %v23114_v25, %v23128_v29  ;;  %v6115_v33 = vand.u32 4294901760, %v23203_v23 }
 0x61a   :  { %v23141_v28 = vand.u32 4294901760, %v23131_v61  ;;  %20097 = vmatprep.subr.mxu0 %v23107_v27  ;;  %v23144_v19 = vand.u32 4294901760, %v5612_v1  ;;  %v6105_v43 = vand.u32 4294901760, %v23198_v37 }
 0x61b   :  { %v23147_v16 = vand.u32 4294901760, %v23137_v34  ;;  %20098 = vmatpush3.msra.mxu0 %v23107_v27  ;;  %v23167_v42 = vand.u32 4294901760, %v5626_v38  ;;  %v6116_v13 = vsub.f32 %v23203_v23, %v6115_v33 }
 0x61c   :  { %20099 = vmatprep.subr.mxu0 %v23125_v55  ;;  %20104 = vmatprep.subr.mxu1 %v23144_v19  ;;  %v5619_v60 = vsub.f32 %v23131_v61, %v23141_v28  ;;  %v6106_v59 = vsub.f32 %v23198_v37, %v6105_v43 }
 0x61d   :  { %20100 = vmatpush3.msra.mxu0 %v23125_v55  ;;  %20105 = vmatpush3.msra.mxu1 %v23144_v19  ;;  %v5633_v7 = vsub.f32 %v23137_v34, %v23147_v16  ;;  %v6117_v14 = vand.u32 4294901760, %v6116_v13 }
 0x61e   :  { %20115 = vmatprep.subr.mxu0 %v23110_v51  ;;  %20102 = vmatmul.mubr.f32.vlgmr.msra.gmra.mxu0 %v5578_v49  ;;  %v23159_v48 = vand.u32 4294901760, %v5619_v60  ;;  %v6107_v0 = vand.u32 4294901760, %v6106_v59 }
 0x61f   :  { %20116 = vmatpush3.msra.mxu0 %v23110_v51  ;;  %20123 = vmatprep.mubr.f32.mxu0 %v23087_v57  ;;  %v23173_v2 = vand.u32 4294901760, %v5633_v7  ;;  %v6691_v57 = vsub.f32 %v23298_v15, %v23305_v45 }
 0x620   :  { %20106 = vmatprep.subr.mxu1 %v23159_v48  ;;  %20117 = vmatprep.subr.mxu0 %v23131_v61 }
 0x621   :  { %20107 = vmatpush3.msra.mxu1 %v23159_v48  ;;  %20118 = vmatpush3.msra.mxu0 %v23131_v61  ;;  %v6692_v6 = vand.u32 4294901760, %v6691_v57 }
 0x622   :  { %20108 = vmatprep.subr.mxu1 %v23167_v42  ;;  %20119 = vmatprep.subr.mxu0 %v23114_v25 }
 0x623   :  { %20109 = vmatpush3.msra.mxu1 %v23167_v42  ;;  %20120 = vmatpush3.msra.mxu0 %v23114_v25 }
 0x624   :  { %20110 = vmatprep.subr.mxu1 %v23173_v2  ;;  %20121 = vmatprep.subr.mxu0 %v23137_v34 }
 0x625   :  { %20111 = vmatpush3.msra.mxu1 %v23173_v2  ;;  %20122 = vmatpush3.msra.mxu0 %v23137_v34 }
 0x626   :  { %20113 = vmatmul.mubr.f32.vlgmr.msra.gmra.mxu1 %v23099_v62  ;;  %20126 = vmatprep.subr.mxu1 %v23104_v20 }
 0x627   :  { %20137 = vmatprep.subr.mxu0 %v23118_v36  ;;  %20124 = vmatmul.mubr.f32.vlgmr.msra.gmra.mxu0 %v23102_v9 }
 0x628   :  { %20127 = vmatpush3.msra.mxu1 %v23104_v20  ;;  %20138 = vmatpush3.msra.mxu0 %v23118_v36 }
 0x629   :  { %20128 = vmatprep.subr.mxu1 %v23120_v56  ;;  %20139 = vmatprep.subr.mxu0 %v23141_v28 }
 0x62a   :  { %20129 = vmatpush3.msra.mxu1 %v23120_v56  ;;  %20140 = vmatpush3.msra.mxu0 %v23141_v28 }
 0x62b   :  { %20130 = vmatprep.subr.mxu1 %v23107_v27  ;;  %20141 = vmatprep.subr.mxu0 %v23128_v29 }
 0x62c   :  { %20131 = vmatpush3.msra.mxu1 %v23107_v27  ;;  %20142 = vmatpush3.msra.mxu0 %v23128_v29 }
 0x62d   :  { %20132 = vmatprep.subr.mxu1 %v23125_v55  ;;  %20143 = vmatprep.subr.mxu0 %v23147_v16 }
 0x62e   :  { %20133 = vmatpush3.msra.mxu1 %v23125_v55  ;;  %20134 = vmatprep.mubr.f32.mxu1 %v5566_v12 }
 0x62f   :  { %20144 = vmatpush3.msra.mxu0 %v23147_v16  ;;  %20135 = vmatmul.mubr.f32.vlgmr.msra.gmra.mxu1 %v5576_v24 }
 0x630   :  { %20145 = vmatprep.mubr.f32.mxu0 %v23084_v3  ;;  %20148 = vmatprep.subr.mxu1 %v23104_v20 }
 0x631   :  { %20159 = vmatprep.subr.mxu0 %v23104_v20  ;;  %20146 = vmatmul.mubr.f32.vlgmr.msra.gmra.mxu0 %v23099_v62 }
 0x632   :  { %20149 = vmatpush3.msra.mxu1 %v23104_v20  ;;  %20160 = vmatpush3.msra.mxu0 %v23104_v20 }
 0x633   :  { %20150 = vmatprep.subr.mxu1 %v23120_v56  ;;  %20161 = vmatprep.subr.mxu0 %v23120_v56 }
 0x634   :  { %20151 = vmatpush3.msra.mxu1 %v23120_v56  ;;  %20162 = vmatpush3.msra.mxu0 %v23120_v56 }
 0x635   :  { %20152 = vmatprep.subr.mxu1 %v23107_v27  ;;  %20163 = vmatprep.subr.mxu0 %v23107_v27 }
 0x636   :  { %20153 = vmatpush3.msra.mxu1 %v23107_v27  ;;  %20164 = vmatpush3.msra.mxu0 %v23107_v27 }
 0x637   :  { %20154 = vmatprep.subr.mxu1 %v23125_v55  ;;  %20165 = vmatprep.subr.mxu0 %v23125_v55 }
 0x638   :  { %20155 = vmatpush3.msra.mxu1 %v23125_v55  ;;  %20156 = vmatprep.mubr.f32.mxu1 %v23084_v3  ;;  %v23308_v3 = vsub.f32 %v6563_v35, %v23300_v47 }
 0x639   :  { %20166 = vmatpush3.msra.mxu0 %v23125_v55  ;;  %20157 = vmatmul.mubr.f32.vlgmr.msra.gmra.mxu1 %v23099_v62 }
 0x63a   :  { %20167 = vmatprep.mubr.f32.mxu0 %v6107_v0  ;;  %20170 = vmatprep.subr.mxu1 %v23144_v19  ;;  %v23315_v12 = vand.u32 4294901760, %v23308_v3 }
 0x63b   :  { %20181 = vmatprep.subr.mxu0 %v23110_v51  ;;  %20168 = vmatmul.mubr.f32.vlgmr.msra.gmra.mxu0 %v6117_v14 }
 0x63c   :  { %20171 = vmatpush3.msra.mxu1 %v23144_v19  ;;  %20182 = vmatpush3.msra.mxu0 %v23110_v51  ;;  %v6698_v30 = vsub.f32 %v23308_v3, %v23315_v12 }
 0x63d   :  { %20172 = vmatprep.subr.mxu1 %v23159_v48  ;;  %20183 = vmatprep.subr.mxu0 %v23131_v61 }
 0x63e   :  { %20173 = vmatpush3.msra.mxu1 %v23159_v48  ;;  %20184 = vmatpush3.msra.mxu0 %v23131_v61  ;;  %v6699_v32 = vand.u32 4294901760, %v6698_v30 }
 0x63f   :  { %20174 = vmatprep.subr.mxu1 %v23167_v42  ;;  %20185 = vmatprep.subr.mxu0 %v23114_v25 }
 0x640   :  { %20175 = vmatpush3.msra.mxu1 %v23167_v42  ;;  %20186 = vmatpush3.msra.mxu0 %v23114_v25 }
 0x641   :  { %20176 = vmatprep.subr.mxu1 %v23173_v2  ;;  %20187 = vmatprep.subr.mxu0 %v23137_v34 }
 0x642   :  { %20177 = vmatpush3.msra.mxu1 %v23173_v2  ;;  %20178 = vmatprep.mubr.f32.mxu1 %v23185_v39 }
 0x643   :  { %20188 = vmatpush3.msra.mxu0 %v23137_v34  ;;  %20179 = vmatmul.mubr.f32.vlgmr.msra.gmra.mxu1 %v23189_v8 }
 0x644   :  { %20189 = vmatprep.mubr.f32.mxu0 %v23198_v37  ;;  %20192 = vmatprep.subr.mxu1 %v23104_v20 }
 0x645   :  { %20203 = vmatprep.subr.mxu0 %v23118_v36  ;;  %20190 = vmatmul.mubr.f32.vlgmr.msra.gmra.mxu0 %v23203_v23  ;;  %v23321_v23 = vand.u32 4294901760, %v6024_v41 }
 0x646   :  { %20193 = vmatpush3.msra.mxu1 %v23104_v20  ;;  %20204 = vmatpush3.msra.mxu0 %v23118_v36 }
 0x647   :  { %20194 = vmatprep.subr.mxu1 %v23120_v56  ;;  %20205 = vmatprep.subr.mxu0 %v23141_v28  ;;  %v23326_v30 = vsub.f32 %v6024_v41, %v23321_v23 }
 0x648   :  { %20195 = vmatpush3.msra.mxu1 %v23120_v56  ;;  %20206 = vmatpush3.msra.mxu0 %v23141_v28 }
 0x649   :  { %20196 = vmatprep.subr.mxu1 %v23107_v27  ;;  %20207 = vmatprep.subr.mxu0 %v23128_v29 }
 0x64a   :  { %20197 = vmatpush3.msra.mxu1 %v23107_v27  ;;  %20208 = vmatpush3.msra.mxu0 %v23128_v29 }
 0x64b   :  { %20198 = vmatprep.subr.mxu1 %v23125_v55  ;;  %20209 = vmatprep.subr.mxu0 %v23147_v16 }
 0x64c   :  { %20199 = vmatpush3.msra.mxu1 %v23125_v55  ;;  %20200 = vmatprep.mubr.f32.mxu1 %v6105_v43  ;;  %v6023_v43 = vld [vmem:[#allocation11] sm:$0xff] }
 0x64d   :  { %20210 = vmatpush3.msra.mxu0 %v23147_v16  ;;  %20201 = vmatmul.mubr.f32.vlgmr.msra.gmra.mxu1 %v6115_v33  ;;  %v23323_v44 = vand.u32 4294901760, %v6023_v43 }
 0x64e   :  { %20214 = vmatprep.subr.mxu1 %v23104_v20  ;;  %20211 = vmatprep.mubr.f32.mxu0 %v23185_v39 }
 0x64f   :  { %20215 = vmatpush3.msra.mxu1 %v23104_v20  ;;  %20212 = vmatmul.mubr.f32.vlgmr.msra.gmra.mxu0 %v23189_v8 }
 0x650   :  { %20216 = vmatprep.subr.mxu1 %v23120_v56  ;;  %20222 = vmatprep.mubr.f32.mxu1 %v23185_v39 }
 0x651   :  { %20217 = vmatpush3.msra.mxu1 %v23120_v56  ;;  %20225 = vmatprep.subr.mxu0 %v23295_v58 }
 0x652   :  { %20218 = vmatprep.subr.mxu1 %v23107_v27  ;;  %20226 = vmatpush3.msra.mxu0 %v23295_v58 }
 0x653   :  { %20219 = vmatpush3.msra.mxu1 %v23107_v27  ;;  %20227 = vmatprep.subr.mxu0 %v23300_v47 }
 0x654   :  { %20220 = vmatprep.subr.mxu1 %v23125_v55  ;;  %20228 = vmatpush3.msra.mxu0 %v23300_v47 }
 0x655   :  { %20221 = vmatpush3.msra.mxu1 %v23125_v55  ;;  %20239 = vmatprep.subr.mxu0 %v23298_v15 }
 0x656   :  { %20223 = vmatmul.mubr.f32.vlgmr.msra.gmra.mxu1 %v23189_v8  ;;  %20232 = vmatprep.subr.mxu1 %v6692_v6 }
 0x657   :  { %20233 = vmatpush3.msra.mxu1 %v6692_v6 }
 0x658   :  { %20234 = vmatprep.subr.mxu1 %v6699_v32 }
 0x659   :  { %20235 = vmatpush3.msra.mxu1 %v6699_v32 }
 0x65a   :  { %20246 = vmatprep.subr.mxu1 %v23295_v58 }
 0x6de   :  { %v20103_v52 = vpop.f32.mrf.mxu0 }
 0x6e0   :  { %v5570_v63 = vpop.f32.mrf.mxu0 }
 0x6e6   :  { %v20114_v22 = vpop.f32.mrf.mxu1 }
 0x6e7   :  { %v20125_v40 = vpop.f32.mrf.mxu0  ;;  %v5678_v33 = vadd.f32 %v20114_v22, %v20103_v52  ;;  %v23332_v22 = vsub.f32 %v6023_v43, %v23323_v44 }
 0x6e8   :  { %v5671_v54 = vpop.f32.mrf.mxu1 }
 0x6e9   :  { %v5757_v62 = vpop.f32.mrf.mxu0  ;;  %v5672_v46 = vadd.f32 %v5671_v54, %v5570_v63  ;;  %v5765_v32 = vadd.f32 %v20125_v40, %v5678_v33 }
 0x6eb   :  { %v5758_v13 = vadd.f32 %v5757_v62, %v5672_v46 }
 0x6ef   :  { %v20136_v9 = vpop.f32.mrf.mxu1 }
 0x6f1   :  { %v20147_v5 = vpop.f32.mrf.mxu0  ;;  %v5841_v17 = vpop.f32.mrf.mxu1 }
 0x6f2   :  { %v5842_v35 = vadd.f32 %v5841_v17, %v5758_v13  ;;  %v7584_v13 = vld [vmem:[#allocation10 + $0x28] sm:$0xff] }
 0x6f3   :  { %v5932_v4 = vpop.f32.mrf.mxu0 }
 0x6f4   :  { %v5933_v62 = vadd.f32 %v5932_v4, %v5842_v35 }
 0x6f9   :  { %v20158_v26 = vpop.f32.mrf.mxu1 }
 0x6fb   :  { %v20169_v24 = vpop.f32.mrf.mxu0  ;;  %v6013_v10 = vpop.f32.mrf.mxu1 }
 0x6fd   :  { %v6109_v31 = vpop.f32.mrf.mxu0 }
 0x703   :  { %v20180_v21 = vpop.f32.mrf.mxu1 }
 0x704   :  { %v6217_v1 = vadd.f32 %v20180_v21, %v20169_v24  ;;  %v23336_v21 = vand.u32 4294901760, %v23326_v30 }
 0x705   :  { %v6210_v53 = vpop.f32.mrf.mxu1  ;;  %v20191_v50 = vpop.f32.mrf.mxu0 }
 0x706   :  { %v6211_v49 = vadd.f32 %v6210_v53, %v6109_v31  ;;  %v6304_v7 = vadd.f32 %v20191_v50, %v6217_v1  ;;  %v5850_v31 = vadd.f32 %v20136_v9, %v5765_v32  ;;  %v6014_v50 = vadd.f32 %v6013_v10, %v5933_v62  ;;  %v8120_v62 = vld [vmem:[#allocation11 + $0x20] sm:$0xff] }
 0x707   :  { %v6296_v38 = vpop.f32.mrf.mxu0  ;;  %v23340_v9 = vand.u32 4294901760, %v23332_v22  ;;  %v7199_v4 = vsub.f32 %v23326_v30, %v23336_v21 }
 0x708   :  { %v6297_v39 = vadd.f32 %v6296_v38, %v6211_v49  ;;  %v5939_v1 = vadd.f32 %v20147_v5, %v5850_v31 }
 0x709   :  { %v7200_v41 = vand.u32 4294901760, %v7199_v4 }
 0x70a   :  { %v6020_v38 = vadd.f32 %v20158_v26, %v5939_v1 }
 0x70c   :  { %v7078_v26 = vsel %vm6565_vm3, %v6020_v38, 0 }
 0x70d   :  { %v20202_v60 = vpop.f32.mrf.mxu1  ;;  %v23358_v43 = vand.u32 4294901760, %v7078_v26 }
 0x70e   :  { %v6389_v8 = vadd.f32 %v20202_v60, %v6304_v7 }
 0x70f   :  { %v6380_v11 = vpop.f32.mrf.mxu1  ;;  %v20213_v18 = vpop.f32.mrf.mxu0 }
 0x710   :  { %v6381_v37 = vadd.f32 %v6380_v11, %v6297_v39  ;;  %v6478_v0 = vadd.f32 %v20213_v18, %v6389_v8  ;;  %v7075_v11 = vsel %vm6565_vm3, %v6014_v50, 0  ;;  %v7206_v18 = vsub.f32 %v23332_v22, %v23340_v9 }
 0x711   :  { %v6471_v59 = vpop.f32.mrf.mxu0  ;;  %v23353_v46 = vand.u32 4294901760, %v7075_v11 }
 0x712   :  { %v6472_v57 = vadd.f32 %v6471_v59, %v6381_v37  ;;  %v7207_v37 = vand.u32 4294901760, %v7206_v18  ;;  %v7583_v59 = vld [vmem:[#allocation10 + $0x20] sm:$0xff] }
 0x713   :  { %v7148_v33 = vsub.f32 %v7075_v11, %v23353_v46 }
 0x716   :  { %v20224_v14 = vpop.f32.mrf.mxu1 }
 0x717   :  { %v6559_v6 = vadd.f32 %v20224_v14, %v6478_v0  ;;  %v7589_v14 = vsel %vm5376_vm2, %v7584_v13, 0 }
 0x718   :  { %v6552_v63 = vpop.f32.mrf.mxu1 }
 0x719   :  { %v6570_v54 = vsel %vm6565_vm3, %v6559_v6, 0  ;;  %v6553_v24 = vadd.f32 %v6552_v63, %v6472_v57 }
 0x71a   :  { %v23329_v52 = vand.u32 4294901760, %v6570_v54 }
 0x71b   :  { %v6567_v17 = vsel %vm6565_vm3, %v6553_v24, 0 }
 0x71c   :  { %v6650_v53 = vsub.f32 %v6570_v54, %v23329_v52  ;;  %v6639_v40 = vand.u32 4294901760, %v6567_v17 }
 0x71e   :  { %v6640_v49 = vsub.f32 %v6567_v17, %v6639_v40  ;;  %20236 = vmatprep.mubr.f32.mxu1 %v6639_v40  ;;  %v6651_v60 = vand.u32 4294901760, %v6650_v53 }
 0x71f   :  { %20237 = vmatmul.mubr.f32.vlgmr.msra.gmra.mxu1 %v23329_v52 }
 0x720   :  { %20247 = vmatpush3.msra.mxu1 %v23295_v58  ;;  %v6641_v7 = vand.u32 4294901760, %v6640_v49  ;;  %v6652_v5 = vsub.f32 %v6650_v53, %v6651_v60 }
 0x721   :  { %20248 = vmatprep.subr.mxu1 %v23300_v47 }
 0x722   :  { %20249 = vmatpush3.msra.mxu1 %v23300_v47  ;;  %20250 = vmatprep.mubr.f32.mxu1 %v6641_v7  ;;  %v6642_v10 = vsub.f32 %v6640_v49, %v6641_v7  ;;  %v6653_v8 = vand.u32 4294901760, %v6652_v5 }
 0x723   :  { %20260 = vmatprep.subr.mxu1 %v23295_v58  ;;  %20251 = vmatmul.mubr.f32.vlgmr.msra.gmra.mxu1 %v6651_v60 }
 0x724   :  { %20261 = vmatpush3.msra.mxu1 %v23295_v58  ;;  %20264 = vmatprep.mubr.f32.mxu1 %v6639_v40  ;;  %v6643_v39 = vand.u32 4294901760, %v6642_v10  ;;  %v7158_v58 = vsub.f32 %v7078_v26, %v23358_v43 }
 0x725   :  { %20262 = vmatprep.subr.mxu1 %v23300_v47 }
 0x726   :  { %20263 = vmatpush3.msra.mxu1 %v23300_v47  ;;  %20229 = vmatprep.mubr.f32.mxu0 %v6643_v39  ;;  %v7149_v47 = vand.u32 4294901760, %v7148_v33 }
 0x727   :  { %20274 = vmatprep.subr.mxu1 %v7200_v41  ;;  %20230 = vmatmul.mubr.f32.vlgmr.msra.gmra.mxu0 %v6653_v8 }
 0x728   :  { %20240 = vmatpush3.msra.mxu0 %v23298_v15  ;;  %20265 = vmatmul.mubr.f32.vlgmr.msra.gmra.mxu1 %v23329_v52  ;;  %v7159_v15 = vand.u32 4294901760, %v7158_v58 }
 0x729   :  { %20275 = vmatpush3.msra.mxu1 %v7200_v41  ;;  %20241 = vmatprep.subr.mxu0 %v23308_v3 }
 0x72a   :  { %20243 = vmatprep.mubr.f32.mxu0 %v6640_v49  ;;  %20276 = vmatprep.subr.mxu1 %v7207_v37 }
 0x72b   :  { %20278 = vmatprep.mubr.f32.mxu1 %v23353_v46  ;;  %20242 = vmatpush3.msra.mxu0 %v23308_v3  ;;  %v7150_v3 = vsub.f32 %v7148_v33, %v7149_v47 }
 0x72c   :  { %20277 = vmatpush3.msra.mxu1 %v7207_v37  ;;  %20253 = vmatprep.subr.mxu0 %v23305_v45 }
 0x72d   :  { %20288 = vmatprep.subr.mxu1 %v23321_v23  ;;  %20244 = vmatmul.mubr.f32.vlgmr.msra.gmra.mxu0 %v6650_v53  ;;  %v7151_v0 = vand.u32 4294901760, %v7150_v3 }
 0x72e   :  { %20254 = vmatpush3.msra.mxu0 %v23305_v45  ;;  %20279 = vmatmul.mubr.f32.vlgmr.msra.gmra.mxu1 %v23358_v43  ;;  %v7160_v45 = vsub.f32 %v7158_v58, %v7159_v15 }
 0x72f   :  { %20289 = vmatpush3.msra.mxu1 %v23321_v23  ;;  %20255 = vmatprep.subr.mxu0 %v23315_v12 }
 0x730   :  { %20257 = vmatprep.mubr.f32.mxu0 %v6639_v40  ;;  %20290 = vmatprep.subr.mxu1 %v23323_v44  ;;  %v7161_v35 = vand.u32 4294901760, %v7160_v45 }
 0x731   :  { %20292 = vmatprep.mubr.f32.mxu1 %v7149_v47  ;;  %20256 = vmatpush3.msra.mxu0 %v23315_v12  ;;  %v7586_v12 = vsel %vm5376_vm2, %v7583_v59, 0 }
 0x732   :  { %20291 = vmatpush3.msra.mxu1 %v23323_v44  ;;  %20267 = vmatprep.subr.mxu0 %v23321_v23  ;;  %v23389_v57 = vand.u32 4294901760, %v7586_v12 }
 0x733   :  { %20302 = vmatprep.subr.mxu1 %v23321_v23  ;;  %20258 = vmatmul.mubr.f32.vlgmr.msra.gmra.mxu0 %v23329_v52  ;;  %v8121_v52 = vld [vmem:[#allocation11 + $0x28] sm:$0xff] }
 0x734   :  { %20268 = vmatpush3.msra.mxu0 %v23321_v23  ;;  %20293 = vmatmul.mubr.f32.vlgmr.msra.gmra.mxu1 %v7159_v15 }
 0x735   :  { %20303 = vmatpush3.msra.mxu1 %v23321_v23  ;;  %20269 = vmatprep.subr.mxu0 %v23323_v44  ;;  %v23392_v23 = vand.u32 4294901760, %v7589_v14 }
 0x736   :  { %20271 = vmatprep.mubr.f32.mxu0 %v7151_v0  ;;  %20304 = vmatprep.subr.mxu1 %v23323_v44 }
 0x737   :  { %20306 = vmatprep.mubr.f32.mxu1 %v23353_v46  ;;  %20270 = vmatpush3.msra.mxu0 %v23323_v44  ;;  %v7671_v6 = vsub.f32 %v7589_v14, %v23392_v23 }
 0x738   :  { %20305 = vmatpush3.msra.mxu1 %v23323_v44  ;;  %20281 = vmatprep.subr.mxu0 %v23326_v30  ;;  %v7661_v44 = vsub.f32 %v7586_v12, %v23389_v57 }
 0x739   :  { %20320 = vmatprep.subr.mxu1 %v23144_v19  ;;  %20272 = vmatmul.mubr.f32.vlgmr.msra.gmra.mxu0 %v7161_v35  ;;  %v7672_v32 = vand.u32 4294901760, %v7671_v6 }
 0x73a   :  { %20282 = vmatpush3.msra.mxu0 %v23326_v30  ;;  %20307 = vmatmul.mubr.f32.vlgmr.msra.gmra.mxu1 %v23358_v43  ;;  %v7662_v30 = vand.u32 4294901760, %v7661_v44 }
 0x73b   :  { %20321 = vmatpush3.msra.mxu1 %v23144_v19  ;;  %20283 = vmatprep.subr.mxu0 %v23332_v22  ;;  %v7673_v54 = vsub.f32 %v7671_v6, %v7672_v32 }
 0x73c   :  { %20285 = vmatprep.mubr.f32.mxu0 %v7148_v33  ;;  %20322 = vmatprep.subr.mxu1 %v23159_v48  ;;  %v7663_v63 = vsub.f32 %v7661_v44, %v7662_v30 }
 0x73d   :  { %20284 = vmatpush3.msra.mxu0 %v23332_v22  ;;  %20323 = vmatpush3.msra.mxu1 %v23159_v48  ;;  %v7674_v31 = vand.u32 4294901760, %v7673_v54  ;;  %v23459_v22 = vand.u32 4294901760, %v8121_v52 }
 0x73e   :  { %20295 = vmatprep.subr.mxu0 %v23336_v21  ;;  %20324 = vmatprep.subr.mxu1 %v23167_v42  ;;  %v7664_v24 = vand.u32 4294901760, %v7663_v63 }
 0x73f   :  { %20286 = vmatmul.mubr.f32.vlgmr.msra.gmra.mxu0 %v7158_v58  ;;  %20325 = vmatpush3.msra.mxu1 %v23167_v42  ;;  %v23462_v17 = vsub.f32 %v8121_v52, %v23459_v22 }
 0x740   :  { %20296 = vmatpush3.msra.mxu0 %v23336_v21  ;;  %20299 = vmatprep.mubr.f32.mxu0 %v23353_v46  ;;  %v23464_v21 = vand.u32 4294901760, %v8120_v62 }
 0x741   :  { %20297 = vmatprep.subr.mxu0 %v23340_v9  ;;  %20326 = vmatprep.subr.mxu1 %v23173_v2  ;;  %v23469_v53 = vand.u32 4294901760, %v23462_v17 }
 0x742   :  { %20298 = vmatpush3.msra.mxu0 %v23340_v9  ;;  %20327 = vmatpush3.msra.mxu1 %v23173_v2  ;;  %v23472_v40 = vsub.f32 %v8120_v62, %v23464_v21 }
 0x743   :  { %20309 = vmatprep.subr.mxu0 %v23104_v20  ;;  %20328 = vmatprep.mubr.f32.mxu1 %v23389_v57  ;;  %v8247_v50 = vsub.f32 %v23462_v17, %v23469_v53 }
 0x744   :  { %20342 = vmatprep.subr.mxu1 %v23104_v20  ;;  %20300 = vmatmul.mubr.f32.vlgmr.msra.gmra.mxu0 %v23358_v43  ;;  %v23479_v1 = vand.u32 4294901760, %v23472_v40 }
 0x745   :  { %20310 = vmatpush3.msra.mxu0 %v23104_v20  ;;  %20329 = vmatmul.mubr.f32.vlgmr.msra.gmra.mxu1 %v23392_v23  ;;  %v8248_v49 = vand.u32 4294901760, %v8247_v50 }
 0x746   :  { %20343 = vmatpush3.msra.mxu1 %v23104_v20  ;;  %20311 = vmatprep.subr.mxu0 %v23120_v56  ;;  %v8254_v60 = vsub.f32 %v23472_v40, %v23479_v1 }
 0x747   :  { %20344 = vmatprep.subr.mxu1 %v23120_v56  ;;  %20312 = vmatpush3.msra.mxu0 %v23120_v56 }
 0x748   :  { %20345 = vmatpush3.msra.mxu1 %v23120_v56  ;;  %20313 = vmatprep.subr.mxu0 %v23107_v27  ;;  %v8255_v9 = vand.u32 4294901760, %v8254_v60 }
 0x749   :  { %20346 = vmatprep.subr.mxu1 %v23107_v27  ;;  %20314 = vmatpush3.msra.mxu0 %v23107_v27 }
 0x74a   :  { %20347 = vmatpush3.msra.mxu1 %v23107_v27  ;;  %20315 = vmatprep.subr.mxu0 %v23125_v55 }
 0x74b   :  { %20348 = vmatprep.subr.mxu1 %v23125_v55  ;;  %20316 = vmatpush3.msra.mxu0 %v23125_v55 }
 0x74c   :  { %20317 = vmatprep.mubr.f32.mxu0 %v7664_v24  ;;  %20349 = vmatpush3.msra.mxu1 %v23125_v55 }
 0x74d   :  { %20318 = vmatmul.mubr.f32.vlgmr.msra.gmra.mxu0 %v7674_v31  ;;  %20331 = vmatprep.subr.mxu0 %v23110_v51 }
 0x74e   :  { %20350 = vmatprep.mubr.f32.mxu1 %v7662_v30  ;;  %20364 = vmatprep.subr.mxu1 %v23104_v20 }
 0x74f   :  { %20332 = vmatpush3.msra.mxu0 %v23110_v51  ;;  %20351 = vmatmul.mubr.f32.vlgmr.msra.gmra.mxu1 %v7672_v32 }
 0x750   :  { %20365 = vmatpush3.msra.mxu1 %v23104_v20  ;;  %20333 = vmatprep.subr.mxu0 %v23131_v61 }
 0x751   :  { %20366 = vmatprep.subr.mxu1 %v23120_v56  ;;  %20334 = vmatpush3.msra.mxu0 %v23131_v61 }
 0x752   :  { %20367 = vmatpush3.msra.mxu1 %v23120_v56  ;;  %20335 = vmatprep.subr.mxu0 %v23114_v25 }
 0x753   :  { %20368 = vmatprep.subr.mxu1 %v23107_v27  ;;  %20336 = vmatpush3.msra.mxu0 %v23114_v25 }
 0x754   :  { %20369 = vmatpush3.msra.mxu1 %v23107_v27  ;;  %20337 = vmatprep.subr.mxu0 %v23137_v34 }
 0x755   :  { %20370 = vmatprep.subr.mxu1 %v23125_v55  ;;  %20338 = vmatpush3.msra.mxu0 %v23137_v34 }
 0x756   :  { %20339 = vmatprep.mubr.f32.mxu0 %v7661_v44  ;;  %20371 = vmatpush3.msra.mxu1 %v23125_v55 }
 0x757   :  { %20340 = vmatmul.mubr.f32.vlgmr.msra.gmra.mxu0 %v7671_v6  ;;  %20353 = vmatprep.subr.mxu0 %v23118_v36 }
 0x758   :  { %20354 = vmatpush3.msra.mxu0 %v23118_v36  ;;  %20361 = vmatprep.mubr.f32.mxu0 %v23389_v57 }
 0x759   :  { %20355 = vmatprep.subr.mxu0 %v23141_v28  ;;  %20372 = vmatprep.mubr.f32.mxu1 %v23389_v57 }
 0x75a   :  { %20356 = vmatpush3.msra.mxu0 %v23141_v28  ;;  %20373 = vmatmul.mubr.f32.vlgmr.msra.gmra.mxu1 %v23392_v23 }
 0x75b   :  { %20357 = vmatprep.subr.mxu0 %v23128_v29  ;;  %20382 = vmatprep.subr.mxu1 %v8248_v49 }
 0x75c   :  { %20358 = vmatpush3.msra.mxu0 %v23128_v29  ;;  %20383 = vmatpush3.msra.mxu1 %v8248_v49 }
 0x75d   :  { %20359 = vmatprep.subr.mxu0 %v23147_v16  ;;  %20384 = vmatprep.subr.mxu1 %v8255_v9 }
 0x75e   :  { %20360 = vmatpush3.msra.mxu0 %v23147_v16  ;;  %20385 = vmatpush3.msra.mxu1 %v8255_v9 }
 0x75f   :  { %20362 = vmatmul.mubr.f32.vlgmr.msra.gmra.mxu0 %v23392_v23  ;;  %20375 = vmatprep.subr.mxu0 %v23459_v22 }
 0x760   :  { %20376 = vmatpush3.msra.mxu0 %v23459_v22  ;;  %20396 = vmatprep.subr.mxu1 %v23459_v22 }
 0x761   :  { %20377 = vmatprep.subr.mxu0 %v23464_v21 }
 0x762   :  { %20378 = vmatpush3.msra.mxu0 %v23464_v21 }
 0x763   :  { %20389 = vmatprep.subr.mxu0 %v23462_v17 }
 0x7df   :  { %v20238_v4 = vpop.f32.mrf.mxu1 }
 0x7e1   :  { %v23485_v38 = vpop.f32.mrf.mxu1 }
 0x7e3   :  { %v20252_v7 = vpop.f32.mrf.mxu1 }
 0x7e5   :  { %v23489_v18 = vpop.f32.mrf.mxu1 }
 0x7e7   :  { %v20231_v11 = vpop.f32.mrf.mxu0 }
 0x7e8   :  { %v6743_v5 = vadd.f32 %v20238_v4, %v20231_v11  ;;  %v20266_v26 = vpop.f32.mrf.mxu1 }
 0x7e9   :  { %v23487_v10 = vpop.f32.mrf.mxu0 }
 0x7ea   :  { %v23493_v37 = vpop.f32.mrf.mxu1 }
 0x7ed   :  { %v20245_v41 = vpop.f32.mrf.mxu0 }
 0x7ee   :  { %v6826_v46 = vadd.f32 %v20245_v41, %v6743_v5  ;;  %v20280_v47 = vpop.f32.mrf.mxu1 }
 0x7ef   :  { %v23491_v39 = vpop.f32.mrf.mxu0 }
 0x7f0   :  { %v6909_v8 = vadd.f32 %v20252_v7, %v6826_v46  ;;  %v23497_v59 = vpop.f32.mrf.mxu1 }
 0x7f3   :  { %v20259_v43 = vpop.f32.mrf.mxu0 }
 0x7f4   :  { %v6992_v33 = vadd.f32 %v20259_v43, %v6909_v8  ;;  %v20294_v12 = vpop.f32.mrf.mxu1 }
 0x7f5   :  { %v23495_v58 = vpop.f32.mrf.mxu0 }
 0x7f6   :  { %v7071_v15 = vadd.f32 %v20266_v26, %v6992_v33  ;;  %v23503_v23 = vpop.f32.mrf.mxu1 }
 0x7f9   :  { %v20273_v3 = vpop.f32.mrf.mxu0 }
 0x7fa   :  { %v7164_v45 = vadd.f32 %v20273_v3, %v7071_v15  ;;  %v20308_v32 = vpop.f32.mrf.mxu1 }
 0x7fb   :  { %v23499_v13 = vpop.f32.mrf.mxu0 }
 0x7fc   :  { %v7251_v0 = vadd.f32 %v20280_v47, %v7164_v45  ;;  %v23509_v24 = vpop.f32.mrf.mxu1 }
 0x7ff   :  { %v20287_v14 = vpop.f32.mrf.mxu0 }
 0x800   :  { %v7334_v35 = vadd.f32 %v20287_v14, %v7251_v0 }
 0x801   :  { %v23501_v57 = vpop.f32.mrf.mxu0 }
 0x802   :  { %v7417_v44 = vadd.f32 %v20294_v12, %v7334_v35 }
 0x804   :  { %v20301_v6 = vpop.f32.mrf.mxu0 }
 0x805   :  { %v7500_v30 = vadd.f32 %v20301_v6, %v7417_v44  ;;  %v20330_v52 = vpop.f32.mrf.mxu1 }
 0x806   :  { %v23507_v54 = vpop.f32.mrf.mxu0 }
 0x807   :  { %v23505_v63 = vadd.f32 %v20308_v32, %v7500_v30  ;;  %v7767_v50 = vpop.f32.mrf.mxu1 }
 0x80d   :  { %v20319_v31 = vpop.f32.mrf.mxu0 }
 0x80e   :  { %v7774_v60 = vadd.f32 %v20330_v52, %v20319_v31  ;;  %v8633_v52 = vld [vmem:[#allocation10 + $0x30] sm:$0xff] }
 0x80f   :  { %v7666_v62 = vpop.f32.mrf.mxu0  ;;  %v20352_v9 = vpop.f32.mrf.mxu1 }
 0x810   :  { %v7768_v7 = vadd.f32 %v7767_v50, %v7666_v62  ;;  %v8634_v50 = vld [vmem:[#allocation10 + $0x38] sm:$0xff] }
 0x811   :  { %v7937_v41 = vpop.f32.mrf.mxu1 }
 0x817   :  { %v20341_v49 = vpop.f32.mrf.mxu0 }
 0x818   :  { %v7861_v11 = vadd.f32 %v20341_v49, %v7774_v60  ;;  %v8636_v60 = vsel %vm5376_vm2, %v8633_v52, 0 }
 0x819   :  { %v7853_v4 = vpop.f32.mrf.mxu0 }
 0x81a   :  { %v7854_v5 = vadd.f32 %v7853_v4, %v7768_v7  ;;  %v7946_v26 = vadd.f32 %v20352_v9, %v7861_v11  ;;  %v20374_v8 = vpop.f32.mrf.mxu1  ;;  %v8639_v4 = vsel %vm5376_vm2, %v8634_v50, 0  ;;  %v23522_v11 = vand.u32 4294901760, %v8636_v60 }
 0x81c   :  { %v7938_v43 = vadd.f32 %v7937_v41, %v7854_v5  ;;  %v8109_v45 = vpop.f32.mrf.mxu1  ;;  %v23525_v5 = vand.u32 4294901760, %v8639_v4 }
 0x81f   :  { %v20363_v46 = vpop.f32.mrf.mxu0 }
 0x820   :  { %v8035_v33 = vadd.f32 %v20363_v46, %v7946_v26 }
 0x821   :  { %v8028_v47 = vpop.f32.mrf.mxu0 }
 0x822   :  { %v8116_v15 = vadd.f32 %v20374_v8, %v8035_v33  ;;  %v8029_v3 = vadd.f32 %v8028_v47, %v7938_v43 }
 0x824   :  { %v8126_v0 = vsel %vm6565_vm3, %v8116_v15, 0  ;;  %v8110_v12 = vadd.f32 %v8109_v45, %v8029_v3 }
 0x825   :  { %v8205_v14 = vand.u32 4294901760, %v8126_v0 }
 0x826   :  { %v8123_v35 = vsel %vm6565_vm3, %v8110_v12, 0 }
 0x827   :  { %v8206_v44 = vsub.f32 %v8126_v0, %v8205_v14  ;;  %v8195_v6 = vand.u32 4294901760, %v8123_v35 }
 0x829   :  { %v8207_v30 = vand.u32 4294901760, %v8206_v44  ;;  %v8196_v32 = vsub.f32 %v8123_v35, %v8195_v6  ;;  %20386 = vmatprep.mubr.f32.mxu1 %v8195_v6 }
 0x82a   :  { %20387 = vmatmul.mubr.f32.vlgmr.msra.gmra.mxu1 %v8205_v14 }
 0x82b   :  { %20397 = vmatpush3.msra.mxu1 %v23459_v22  ;;  %v8197_v31 = vand.u32 4294901760, %v8196_v32  ;;  %v8208_v62 = vsub.f32 %v8206_v44, %v8207_v30 }
 0x82c   :  { %20398 = vmatprep.subr.mxu1 %v23464_v21 }
 0x82d   :  { %20399 = vmatpush3.msra.mxu1 %v23464_v21  ;;  %20400 = vmatprep.mubr.f32.mxu1 %v8197_v31  ;;  %v8198_v49 = vsub.f32 %v8196_v32, %v8197_v31  ;;  %v8209_v7 = vand.u32 4294901760, %v8208_v62 }
 0x82e   :  { %20410 = vmatprep.subr.mxu1 %v23459_v22  ;;  %20401 = vmatmul.mubr.f32.vlgmr.msra.gmra.mxu1 %v8207_v30 }
 0x82f   :  { %20411 = vmatpush3.msra.mxu1 %v23459_v22  ;;  %20414 = vmatprep.mubr.f32.mxu1 %v8195_v6  ;;  %v8199_v9 = vand.u32 4294901760, %v8198_v49  ;;  %v8711_v22 = vsub.f32 %v8636_v60, %v23522_v11 }
 0x830   :  { %20412 = vmatprep.subr.mxu1 %v23464_v21 }
 0x831   :  { %20413 = vmatpush3.msra.mxu1 %v23464_v21  ;;  %20379 = vmatprep.mubr.f32.mxu0 %v8199_v9  ;;  %v8721_v21 = vsub.f32 %v8639_v4, %v23525_v5 }
 0x832   :  { %20428 = vmatprep.subr.mxu1 %v23144_v19  ;;  %20380 = vmatmul.mubr.f32.vlgmr.msra.gmra.mxu0 %v8209_v7 }
 0x833   :  { %20390 = vmatpush3.msra.mxu0 %v23462_v17  ;;  %20415 = vmatmul.mubr.f32.vlgmr.msra.gmra.mxu1 %v8205_v14  ;;  %v8722_v17 = vand.u32 4294901760, %v8721_v21 }
 0x834   :  { %20429 = vmatpush3.msra.mxu1 %v23144_v19  ;;  %20391 = vmatprep.subr.mxu0 %v23472_v40  ;;  %v8712_v19 = vand.u32 4294901760, %v8711_v22 }
 0x835   :  { %20393 = vmatprep.mubr.f32.mxu0 %v8196_v32  ;;  %20430 = vmatprep.subr.mxu1 %v23159_v48 }
 0x836   :  { %20392 = vmatpush3.msra.mxu0 %v23472_v40  ;;  %20431 = vmatpush3.msra.mxu1 %v23159_v48  ;;  %v8713_v48 = vsub.f32 %v8711_v22, %v8712_v19 }
 0x837   :  { %20403 = vmatprep.subr.mxu0 %v23469_v53  ;;  %20432 = vmatprep.subr.mxu1 %v23167_v42 }
 0x838   :  { %20394 = vmatmul.mubr.f32.vlgmr.msra.gmra.mxu0 %v8206_v44  ;;  %20433 = vmatpush3.msra.mxu1 %v23167_v42  ;;  %v8723_v42 = vsub.f32 %v8721_v21, %v8722_v17 }
 0x839   :  { %20404 = vmatpush3.msra.mxu0 %v23469_v53  ;;  %20407 = vmatprep.mubr.f32.mxu0 %v8195_v6 }
 0x83a   :  { %20405 = vmatprep.subr.mxu0 %v23479_v1  ;;  %20434 = vmatprep.subr.mxu1 %v23173_v2  ;;  %v8724_v53 = vand.u32 4294901760, %v8723_v42 }
 0x83b   :  { %20406 = vmatpush3.msra.mxu0 %v23479_v1  ;;  %20435 = vmatpush3.msra.mxu1 %v23173_v2  ;;  %v8714_v2 = vand.u32 4294901760, %v8713_v48 }
 0x83c   :  { %20417 = vmatprep.subr.mxu0 %v23104_v20  ;;  %20436 = vmatprep.mubr.f32.mxu1 %v23522_v11 }
 0x83d   :  { %20450 = vmatprep.subr.mxu1 %v23104_v20  ;;  %20408 = vmatmul.mubr.f32.vlgmr.msra.gmra.mxu0 %v8205_v14 }
 0x83e   :  { %20418 = vmatpush3.msra.mxu0 %v23104_v20  ;;  %20437 = vmatmul.mubr.f32.vlgmr.msra.gmra.mxu1 %v23525_v5 }
 0x83f   :  { %20451 = vmatpush3.msra.mxu1 %v23104_v20  ;;  %20419 = vmatprep.subr.mxu0 %v23120_v56 }
 0x840   :  { %20452 = vmatprep.subr.mxu1 %v23120_v56  ;;  %20420 = vmatpush3.msra.mxu0 %v23120_v56 }
 0x841   :  { %20453 = vmatpush3.msra.mxu1 %v23120_v56  ;;  %20421 = vmatprep.subr.mxu0 %v23107_v27 }
 0x842   :  { %20454 = vmatprep.subr.mxu1 %v23107_v27  ;;  %20422 = vmatpush3.msra.mxu0 %v23107_v27 }
 0x843   :  { %20455 = vmatpush3.msra.mxu1 %v23107_v27  ;;  %20423 = vmatprep.subr.mxu0 %v23125_v55 }
 0x844   :  { %20456 = vmatprep.subr.mxu1 %v23125_v55  ;;  %20424 = vmatpush3.msra.mxu0 %v23125_v55 }
 0x845   :  { %20425 = vmatprep.mubr.f32.mxu0 %v8714_v2  ;;  %20457 = vmatpush3.msra.mxu1 %v23125_v55 }
 0x846   :  { %20426 = vmatmul.mubr.f32.vlgmr.msra.gmra.mxu0 %v8724_v53  ;;  %20439 = vmatprep.subr.mxu0 %v23110_v51 }
 0x847   :  { %20458 = vmatprep.mubr.f32.mxu1 %v8712_v19  ;;  %20472 = vmatprep.subr.mxu1 %v23104_v20 }
 0x848   :  { %20440 = vmatpush3.msra.mxu0 %v23110_v51  ;;  %20459 = vmatmul.mubr.f32.vlgmr.msra.gmra.mxu1 %v8722_v17  ;;  %v9170_v51 = vld [vmem:[#allocation11 + $0x30] sm:$0xff] }
 0x849   :  { %20473 = vmatpush3.msra.mxu1 %v23104_v20  ;;  %20441 = vmatprep.subr.mxu0 %v23131_v61  ;;  %v9171_v20 = vld [vmem:[#allocation11 + $0x38] sm:$0xff] }
 0x84a   :  { %20474 = vmatprep.subr.mxu1 %v23120_v56  ;;  %20442 = vmatpush3.msra.mxu0 %v23131_v61 }
 0x84b   :  { %20475 = vmatpush3.msra.mxu1 %v23120_v56  ;;  %20443 = vmatprep.subr.mxu0 %v23114_v25 }
 0x84c   :  { %20476 = vmatprep.subr.mxu1 %v23107_v27  ;;  %20444 = vmatpush3.msra.mxu0 %v23114_v25 }
 0x84d   :  { %20477 = vmatpush3.msra.mxu1 %v23107_v27  ;;  %20445 = vmatprep.subr.mxu0 %v23137_v34  ;;  %v23589_v27 = vand.u32 4294901760, %v9171_v20 }
 0x84e   :  { %20478 = vmatprep.subr.mxu1 %v23125_v55  ;;  %20446 = vmatpush3.msra.mxu0 %v23137_v34 }
 0x84f   :  { %20447 = vmatprep.mubr.f32.mxu0 %v8711_v22  ;;  %20479 = vmatpush3.msra.mxu1 %v23125_v55  ;;  %v23592_v25 = vsub.f32 %v9171_v20, %v23589_v27 }
 0x850   :  { %20448 = vmatmul.mubr.f32.vlgmr.msra.gmra.mxu0 %v8721_v21  ;;  %20461 = vmatprep.subr.mxu0 %v23118_v36 }
 0x851   :  { %20462 = vmatpush3.msra.mxu0 %v23118_v36  ;;  %20469 = vmatprep.mubr.f32.mxu0 %v23522_v11  ;;  %v23594_v36 = vand.u32 4294901760, %v9170_v51  ;;  %v23599_v56 = vand.u32 4294901760, %v23592_v25 }
 0x852   :  { %20463 = vmatprep.subr.mxu0 %v23141_v28  ;;  %20480 = vmatprep.mubr.f32.mxu1 %v23522_v11 }
 0x853   :  { %20464 = vmatpush3.msra.mxu0 %v23141_v28  ;;  %20481 = vmatmul.mubr.f32.vlgmr.msra.gmra.mxu1 %v23525_v5  ;;  %v23602_v55 = vsub.f32 %v9170_v51, %v23594_v36 }
 0x854   :  { %20465 = vmatprep.subr.mxu0 %v23128_v29 }
 0x855   :  { %20466 = vmatpush3.msra.mxu0 %v23128_v29  ;;  %v9297_v29 = vsub.f32 %v23592_v25, %v23599_v56  ;;  %v23609_v61 = vand.u32 4294901760, %v23602_v55 }
 0x856   :  { %20467 = vmatprep.subr.mxu0 %v23147_v16 }
 0x857   :  { %20468 = vmatpush3.msra.mxu0 %v23147_v16  ;;  %v9298_v34 = vand.u32 4294901760, %v9297_v29  ;;  %v9304_v28 = vsub.f32 %v23602_v55, %v23609_v61 }
 0x858   :  { %20470 = vmatmul.mubr.f32.vlgmr.msra.gmra.mxu0 %v23525_v5  ;;  %20483 = vmatprep.subr.mxu0 %v23589_v27 }
 0x859   :  { %20484 = vmatpush3.msra.mxu0 %v23589_v27  ;;  %20490 = vmatprep.subr.mxu1 %v9298_v34  ;;  %v9305_v16 = vand.u32 4294901760, %v9304_v28 }
 0x85a   :  { %20485 = vmatprep.subr.mxu0 %v23594_v36  ;;  %20491 = vmatpush3.msra.mxu1 %v9298_v34 }
 0x85b   :  { %20486 = vmatpush3.msra.mxu0 %v23594_v36  ;;  %20492 = vmatprep.subr.mxu1 %v9305_v16 }
 0x85c   :  { %20497 = vmatprep.subr.mxu0 %v23592_v25  ;;  %20493 = vmatpush3.msra.mxu1 %v9305_v16 }
 0x85d   :  { %20504 = vmatprep.subr.mxu1 %v23589_v27 }
 0x8ea   :  { %v20388_v40 = vpop.f32.mrf.mxu1 }
 0x8ec   :  { %v23615_v41 = vpop.f32.mrf.mxu1 }
 0x8ee   :  { %v20402_v8 = vpop.f32.mrf.mxu1 }
 0x8f0   :  { %v23621_v15 = vpop.f32.mrf.mxu1 }
 0x8f2   :  { %v20381_v1 = vpop.f32.mrf.mxu0 }
 0x8f3   :  { %v8299_v26 = vadd.f32 %v20388_v40, %v20381_v1  ;;  %v20416_v12 = vpop.f32.mrf.mxu1 }
 0x8f4   :  { %v23617_v46 = vpop.f32.mrf.mxu0 }
 0x8f5   :  { %v23628_v6 = vpop.f32.mrf.mxu1 }
 0x8f8   :  { %v20395_v43 = vpop.f32.mrf.mxu0 }
 0x8f9   :  { %v8382_v33 = vadd.f32 %v20395_v43, %v8299_v26 }
 0x8fa   :  { %v23619_v47 = vpop.f32.mrf.mxu0 }
 0x8fb   :  { %v8465_v3 = vadd.f32 %v20402_v8, %v8382_v33 }
 0x8fd   :  { %v20409_v45 = vpop.f32.mrf.mxu0 }
 0x8fe   :  { %v8548_v0 = vadd.f32 %v20409_v45, %v8465_v3  ;;  %v20438_v32 = vpop.f32.mrf.mxu1 }
 0x8ff   :  { %v23626_v44 = vpop.f32.mrf.mxu0 }
 0x900   :  { %v8627_v14 = vadd.f32 %v20416_v12, %v8548_v0  ;;  %v8817_v52 = vpop.f32.mrf.mxu1 }
 0x902   :  { %v23624_v35 = vadd.f32 %v8627_v14, %v23505_v63 }
 0x906   :  { %v20427_v30 = vpop.f32.mrf.mxu0 }
 0x907   :  { %v8824_v50 = vadd.f32 %v20438_v32, %v20427_v30 }
 0x908   :  { %v8716_v31 = vpop.f32.mrf.mxu0  ;;  %v20460_v49 = vpop.f32.mrf.mxu1 }
 0x909   :  { %v8818_v9 = vadd.f32 %v8817_v52, %v8716_v31 }
 0x90a   :  { %v8987_v11 = vpop.f32.mrf.mxu1 }
 0x910   :  { %v20449_v62 = vpop.f32.mrf.mxu0 }
 0x911   :  { %v8911_v4 = vadd.f32 %v20449_v62, %v8824_v50 }
 0x912   :  { %v8903_v60 = vpop.f32.mrf.mxu0 }
 0x913   :  { %v8904_v7 = vadd.f32 %v8903_v60, %v8818_v9  ;;  %v8996_v5 = vadd.f32 %v20460_v49, %v8911_v4  ;;  %v20482_v63 = vpop.f32.mrf.mxu1 }
 0x915   :  { %v8988_v21 = vadd.f32 %v8987_v11, %v8904_v7  ;;  %v9159_v2 = vpop.f32.mrf.mxu1 }
 0x918   :  { %v20471_v22 = vpop.f32.mrf.mxu0 }
 0x919   :  { %v9085_v19 = vadd.f32 %v20471_v22, %v8996_v5 }
 0x91a   :  { %v9078_v17 = vpop.f32.mrf.mxu0 }
 0x91b   :  { %v9166_v48 = vadd.f32 %v20482_v63, %v9085_v19  ;;  %v9079_v42 = vadd.f32 %v9078_v17, %v8988_v21 }
 0x91d   :  { %v9176_v53 = vsel %vm6565_vm3, %v9166_v48, 0  ;;  %v9160_v20 = vadd.f32 %v9159_v2, %v9079_v42 }
 0x91e   :  { %v9255_v51 = vand.u32 4294901760, %v9176_v53 }
 0x91f   :  { %v9173_v29 = vsel %vm6565_vm3, %v9160_v20, 0 }
 0x920   :  { %v9256_v34 = vsub.f32 %v9176_v53, %v9255_v51  ;;  %v9245_v28 = vand.u32 4294901760, %v9173_v29 }
 0x922   :  { %v9257_v16 = vand.u32 4294901760, %v9256_v34  ;;  %v9246_v40 = vsub.f32 %v9173_v29, %v9245_v28  ;;  %20494 = vmatprep.mubr.f32.mxu1 %v9245_v28 }
 0x923   :  { %20495 = vmatmul.mubr.f32.vlgmr.msra.gmra.mxu1 %v9255_v51 }
 0x924   :  { %20505 = vmatpush3.msra.mxu1 %v23589_v27  ;;  %v9247_v1 = vand.u32 4294901760, %v9246_v40  ;;  %v9258_v26 = vsub.f32 %v9256_v34, %v9257_v16 }
 0x925   :  { %20506 = vmatprep.subr.mxu1 %v23594_v36 }
 0x926   :  { %20507 = vmatpush3.msra.mxu1 %v23594_v36  ;;  %20508 = vmatprep.mubr.f32.mxu1 %v9247_v1  ;;  %v9248_v8 = vsub.f32 %v9246_v40, %v9247_v1  ;;  %v9259_v33 = vand.u32 4294901760, %v9258_v26 }
 0x927   :  { %20509 = vmatmul.mubr.f32.vlgmr.msra.gmra.mxu1 %v9257_v16  ;;  %20518 = vmatprep.subr.mxu1 %v23589_v27 }
 0x928   :  { %20519 = vmatpush3.msra.mxu1 %v23589_v27  ;;  %20522 = vmatprep.mubr.f32.mxu1 %v9245_v28  ;;  %v9249_v43 = vand.u32 4294901760, %v9248_v8  ;;  %v6737_v27 = vadd.f32 %v23485_v38, %v23487_v10 }
 0x929   :  { %20520 = vmatprep.subr.mxu1 %v23594_v36 }
 0x92a   :  { %20487 = vmatprep.mubr.f32.mxu0 %v9249_v43  ;;  %20521 = vmatpush3.msra.mxu1 %v23594_v36 }
 0x92b   :  { %20488 = vmatmul.mubr.f32.vlgmr.msra.gmra.mxu0 %v9259_v33  ;;  %20523 = vmatmul.mubr.f32.vlgmr.msra.gmra.mxu1 %v9255_v51 }
 0x92c   :  { %20498 = vmatpush3.msra.mxu0 %v23592_v25  ;;  %20501 = vmatprep.mubr.f32.mxu0 %v9246_v40  ;;  %v6819_v25 = vadd.f32 %v23491_v39, %v6737_v27 }
 0x92d   :  { %20499 = vmatprep.subr.mxu0 %v23602_v55 }
 0x92e   :  { %20500 = vmatpush3.msra.mxu0 %v23602_v55  ;;  %v6901_v36 = vadd.f32 %v23489_v18, %v6819_v25 }
 0x92f   :  { %20502 = vmatmul.mubr.f32.vlgmr.msra.gmra.mxu0 %v9256_v34  ;;  %20511 = vmatprep.subr.mxu0 %v23599_v56 }
 0x930   :  { %20512 = vmatpush3.msra.mxu0 %v23599_v56  ;;  %20515 = vmatprep.mubr.f32.mxu0 %v9245_v28  ;;  %v6986_v55 = vadd.f32 %v23495_v58, %v6901_v36 }
 0x931   :  { %20513 = vmatprep.subr.mxu0 %v23609_v61 }
 0x932   :  { %20514 = vmatpush3.msra.mxu0 %v23609_v61  ;;  %v7065_v3 = vadd.f32 %v23493_v37, %v6986_v55  ;;  %v8293_v61 = vadd.f32 %v23615_v41, %v23617_v46 }
 0x933   :  { %20516 = vmatmul.mubr.f32.vlgmr.msra.gmra.mxu0 %v9255_v51 }
 0x934   :  { %v7154_v45 = vadd.f32 %v23499_v13, %v7065_v3  ;;  %v8375_v14 = vadd.f32 %v23619_v47, %v8293_v61  ;;  %v18345_v61 = vld [vmem:[#allocation14] ss:$0 sm:$0xff] }
 0x936   :  { %v7245_v0 = vadd.f32 %v23497_v59, %v7154_v45  ;;  %v8457_v18 = vadd.f32 %v23621_v15, %v8375_v14  ;;  %v18344_v45 = vld [vmem:[#allocation13] ss:$0 sm:$0xff] }
 0x938   :  { %v7327_v38 = vadd.f32 %v23501_v57, %v7245_v0  ;;  %v8542_v59 = vadd.f32 %v23626_v44, %v8457_v18 }
 0x93a   :  { %v7409_v37 = vadd.f32 %v23503_v23, %v7327_v38  ;;  %v8621_v49 = vadd.f32 %v23628_v6, %v8542_v59 }
 0x93c   :  { %v7494_v46 = vadd.f32 %v23507_v54, %v7409_v37 }
 0x93e   :  { %v7573_v23 = vadd.f32 %v23509_v24, %v7494_v46 }
 0x940   :  { %v8630_v44 = vadd.f32 %v8621_v49, %v7573_v23 }
 0x9e3   :  { %v20496_v56 = vpop.f32.mrf.mxu1 }
 0x9e5   :  { %v9342_v12 = vpop.f32.mrf.mxu1 }
 0x9e7   :  { %v20510_v10 = vpop.f32.mrf.mxu1 }
 0x9e9   :  { %v9506_v13 = vpop.f32.mrf.mxu1 }
 0x9eb   :  { %v20489_v39 = vpop.f32.mrf.mxu0  ;;  %v20524_v57 = vpop.f32.mrf.mxu1 }
 0x9ec   :  { %v9349_v30 = vadd.f32 %v20496_v56, %v20489_v39 }
 0x9ed   :  { %v9251_v58 = vpop.f32.mrf.mxu0  ;;  %v9670_v11 = vpop.f32.mrf.mxu1 }
 0x9ee   :  { %v9343_v31 = vadd.f32 %v9342_v12, %v9251_v58 }
 0x9ef   :  { %v20503_v32 = vpop.f32.mrf.mxu0 }
 0x9f0   :  { %v9432_v52 = vadd.f32 %v20503_v32, %v9349_v30  ;;  %v21783_v32 = vmov 0.0  }
 0x9f1   :  { %v9424_v41 = vpop.f32.mrf.mxu0  ;;  %20525 = vmatprep.subr.mxu0 %v21783_v32  ;;  %20532 = vmatprep.subr.mxu1 %v21783_v32 }
 0x9f2   :  { %v9425_v47 = vadd.f32 %v9424_v41, %v9343_v31  ;;  %v9515_v62 = vadd.f32 %v20510_v10, %v9432_v52  ;;  %20529 = vmatprep.mubr.msk.f32.mxu0 %vm21784_vm4, %v21783_v32  ;;  %20536 = vmatprep.mubr.msk.f32.mxu1 %vm21784_vm4, %v21783_v32  ;;  %v9752_v52 = vld [vmem:[#allocation16] sm:$0xff] }
 0x9f3   :  { %v20517_v50 = vpop.f32.mrf.mxu0  ;;  %v9754_v41 = vsel %vm6565_vm3, %v9752_v52, 0 }
 0x9f4   :  { %v9598_v15 = vadd.f32 %v20517_v50, %v9515_v62  ;;  %v9507_v60 = vadd.f32 %v9506_v13, %v9425_v47  ;;  %v23678_v46 = vand.u32 4294901760, %v9754_v41 }
 0x9f5   :  { %v9591_v9 = vpop.f32.mrf.mxu0 }
 0x9f6   :  { %v9677_v4 = vadd.f32 %v20524_v57, %v9598_v15  ;;  %v9592_v7 = vadd.f32 %v9591_v9, %v9507_v60  ;;  %v9824_v47 = vsub.f32 %v9754_v41, %v23678_v46  ;;  %v10220_v57 = vld [vmem:[#allocation16 + $0x8] sm:$0xff] }
 0x9f7   :  { %v10222_v23 = vsel %vm6565_vm3, %v10220_v57, 0 }
 0x9f8   :  { %v9681_v5 = vadd.f32 %v9677_v4, %v23624_v35  ;;  %v9671_v22 = vadd.f32 %v9670_v11, %v9592_v7  ;;  %v9825_v62 = vand.u32 4294901760, %v9824_v47 }
 0x9fa   :  { %v9693_v63 = vmul.f32 %v9681_v5, %v9681_v5  ;;  %v9680_v54 = vadd.f32 %v9671_v22, %v8630_v44  ;;  %v9683_v21 = vsel %vm284_vm0, %v9681_v5, 0.0  ;;  %v9826_v60 = vsub.f32 %v9824_v47, %v9825_v62 }
 0x9fc   :  { %v9682_v19 = vsel %vm284_vm0, %v9680_v54, 0.0  ;;  %v9692_v17 = vmul.f32 %v9680_v54, %v9680_v54  ;;  %v9695_v48 = vsel %vm284_vm0, %v9693_v63, 0.0  ;;  %v9827_v44 = vand.u32 4294901760, %v9826_v60 }
 0x9fd   :  { %v9684_v6 = vadd.f32 %v9683_v21, %v9682_v19 }
 0x9fe   :  { %v9694_v42 = vsel %vm284_vm0, %v9692_v17, 0.0 }
 0x9ff   :  { %v9685_v24 = vrot.slane %v9684_v6, 4  ;;  %v9696_v2 = vadd.f32 %v9695_v48, %v9694_v42 }
 0xa01   :  { %v9686_v53 = vadd.f32 %v9685_v24, %v9684_v6  ;;  %v9697_v20 = vrot.slane %v9696_v2, 4 }
 0xa03   :  { %v9687_v51 = vrot.slane %v9686_v53, 2  ;;  %v9698_v29 = vadd.f32 %v9697_v20, %v9696_v2 }
 0xa05   :  { %v9688_v35 = vadd.f32 %v9687_v51, %v9686_v53  ;;  %v9699_v34 = vrot.slane %v9698_v29, 2  ;;  %v18351_v53 = vld [vmem:[%s24750_s10 + $0x38] sm:$0xff]  ;;  %v18350_v51 = vld [vmem:[%s24750_s10 + $0x30] sm:$0xff] }
 0xa06   :  { %v23795_v20 = vand.u32 4294901760, %v18351_v53 }
 0xa07   :  { %v9689_v28 = vrot.slane %v9688_v35, 1  ;;  %v9700_v16 = vadd.f32 %v9699_v34, %v9698_v29  ;;  %v18349_v34 = vld [vmem:[%s24750_s10 + $0x28] sm:$0xff] }
 0xa08   :  { %v23801_v29 = vsub.f32 %v18351_v53, %v23795_v20  ;;  %v10218_v53 = vld [vmem:[%s24750_s10 + $0x18] sm:$0xff] }
 0xa09   :  { %v9690_v40 = vadd.f32 %v9689_v28, %v9688_v35  ;;  %v9701_v1 = vrot.slane %v9700_v16, 1  ;;  %v23803_v35 = vand.u32 4294901760, %v18350_v51 }
 0xa0a   :  { %v10797_v28 = vand.u32 4294901760, %v23801_v29 }
 0xa0b   :  { %v9691_v26 = vmul.f32 0.0625, %v9690_v40  ;;  %v9702_v8 = vadd.f32 %v9701_v1, %v9700_v16  ;;  %v23812_v16 = vsub.f32 %v18350_v51, %v23803_v35  ;;  %v23814_v40 = vand.u32 4294901760, %v18349_v34  ;;  %v18348_v1 = vld [vmem:[%s24750_s10 + $0x20] sm:$0xff] }
 0xa0d   :  { %v9703_v43 = vmul.f32 0.0625, %v9702_v8  ;;  %v9704_v33 = vmul.f32 %v9691_v26, %v9691_v26  ;;  %v9706_v36 = vsub.f32 %v9680_v54, %v9691_v26  ;;  %v9707_v55 = vsub.f32 %v9681_v5, %v9691_v26 }
 0xa0e   :  { %v23689_v5 = vand.u32 4294901760, %v10222_v23  ;;  %v10798_v26 = vsub.f32 %v23801_v29, %v10797_v28  ;;  %v10804_v8 = vand.u32 4294901760, %v23812_v16 }
 0xa0f   :  { %v9705_v27 = vsub.f32 %v9703_v43, %v9704_v33  ;;  %v23826_v43 = vsub.f32 %v18349_v34, %v23814_v40  ;;  %v23828_v33 = vand.u32 4294901760, %v18348_v1  ;;  %v10217_v34 = vld [vmem:[%s24750_s10 + $0x10] sm:$0xff] }
 0xa10   :  { %v23705_v21 = vsub.f32 %v10222_v23, %v23689_v5 }
 0xa11   :  { %v9708_v25 = vadd.f32 1e-05, %v9705_v27  ;;  %v10799_v27 = vand.u32 4294901760, %v10798_v26 }
 0xa12   :  { %v10293_v48 = vand.u32 4294901760, %v23705_v21 }
 0xa13   :  { %21382 = vrsqrt.f32 %v9708_v25  ;;  %v10805_v25 = vsub.f32 %v23812_v16, %v10804_v8 }
 0xa14   :  { %v10294_v24 = vsub.f32 %v23705_v21, %v10293_v48 }
 0xa16   :  { %v10295_v2 = vand.u32 4294901760, %v10294_v24 }
 0xa20   :  { %v21383_v3 = vpop.eup %21382 }
 0xa21   :  { %v9710_v56 = vmul.f32 %v21383_v3, %v9706_v36  ;;  %v9711_v0 = vmul.f32 %v21383_v3, %v9707_v55  ;;  %v10811_v36 = vand.u32 4294901760, %v23826_v43  ;;  %v23837_v55 = vsub.f32 %v18348_v1, %v23828_v33 }
 0xa22   :  { %v10806_v3 = vand.u32 4294901760, %v10805_v25  ;;  %v10216_v25 = vld [vmem:[%s24750_s10 + $0x8] sm:$0xff] }
 0xa23   :  { %v9719_v12 = vmul.f32 %v18344_v45, %v9710_v56  ;;  %v9720_v14 = vmul.f32 %v18344_v45, %v9711_v0  ;;  %v10812_v45 = vsub.f32 %v23826_v43, %v10811_v36  ;;  %v10818_v56 = vand.u32 4294901760, %v23837_v55 }
 0xa25   :  { %v9728_v38 = vadd.f32 %v18345_v61, %v9719_v12  ;;  %v9729_v10 = vadd.f32 %v18345_v61, %v9720_v14  ;;  %v10813_v0 = vand.u32 4294901760, %v10812_v45  ;;  %v10819_v61 = vsub.f32 %v23837_v55, %v10818_v56 }
 0xa26   :  { %v23872_v45 = vand.u32 4294901760, %v10217_v34 }
 0xa27   :  { %v18346_v39 = vmul.f32 -1.442695, %v9728_v38  ;;  %v18347_v18 = vmul.f32 -1.442695, %v9729_v10  ;;  %v10820_v12 = vand.u32 4294901760, %v10819_v61 }
 0xa29   :  { %21384 = vpow2.f32 %v18346_v39 }
 0xa2a   :  { %21386 = vpow2.f32 %v18347_v18 }
 0xa36   :  { %v21385_v58 = vpop.eup %21384 }
 0xa37   :  { %v21387_v37 = vpop.eup %21386  ;;  %v9736_v30 = vadd.f32 1.0, %v21385_v58 }
 0xa38   :  { %v9737_v13 = vadd.f32 1.0, %v21387_v37 }
 0xa39   :  { %21388 = vrcp.f32 %v9736_v30 }
 0xa3a   :  { %21390 = vrcp.f32 %v9737_v13 }
 0xa46   :  { %v21389_v59 = vpop.eup %21388 }
 0xa47   :  { %v21391_v31 = vpop.eup %21390  ;;  %9744 = vrot.lane.b32.xlu1 %v21389_v59, %s21785_s27 }
 0xa48   :  { %9746 = vrot.lane.b32.xlu0 %v21391_v31, %s21785_s27 }
 0xab9   :  { %v9745_v50 = vpop.permute.xlu1 %9744 }
 0xaba   :  { %v9747_v49 = vpop.permute.xlu0 %9746  ;;  %v9750_v15 = vmul.f32 %v9745_v50, %v9728_v38 }
 0xabb   :  { %v9751_v9 = vmul.f32 %v9747_v49, %v9729_v10 }
 0xabc   :  { %v23682_v4 = vand.u32 4294901760, %v9750_v15 }
 0xabd   :  { %v23684_v7 = vand.u32 4294901760, %v9751_v9 }
 0xabe   :  { %v23687_v11 = vsub.f32 %v9750_v15, %v23682_v4 }
 0xabf   :  { %v23692_v22 = vsub.f32 %v9751_v9, %v23684_v7  ;;  %20526 = vmatpush3.msra.mxu0 %v23684_v7 }
 0xac0   :  { %20527 = vmatprep.subr.mxu0 %v21783_v32  ;;  %v23697_v63 = vand.u32 4294901760, %v23687_v11 }
 0xac1   :  { %20528 = vmatpush3.msra.mxu0 %v23682_v4  ;;  %v23701_v54 = vand.u32 4294901760, %v23692_v22 }
 0xac2   :  { %20539 = vmatprep.subr.mxu0 %v21783_v32  ;;  %20530 = vmatmul.mubr.f32.vlgmr.msra.gmra.mxu0 %v9827_v44  ;;  %v9872_v17 = vsub.f32 %v23687_v11, %v23697_v63 }
 0xac3   :  { %20540 = vmatpush3.msra.mxu0 %v23692_v22  ;;  %20543 = vmatprep.mubr.msk.f32.mxu0 %vm21784_vm4, %v21783_v32  ;;  %v9865_v19 = vsub.f32 %v23692_v22, %v23701_v54 }
 0xac4   :  { %20541 = vmatprep.subr.mxu0 %v21783_v32  ;;  %v23722_v42 = vand.u32 4294901760, %v9872_v17 }
 0xac5   :  { %20542 = vmatpush3.msra.mxu0 %v23687_v11  ;;  %v23716_v6 = vand.u32 4294901760, %v9865_v19 }
 0xac6   :  { %20553 = vmatprep.subr.mxu0 %v21783_v32  ;;  %20544 = vmatmul.mubr.f32.vlgmr.msra.gmra.mxu0 %v9824_v47 }
 0xac7   :  { %20533 = vmatpush3.msra.mxu1 %v23716_v6  ;;  %20554 = vmatpush3.msra.mxu0 %v23701_v54 }
 0xac8   :  { %20534 = vmatprep.subr.mxu1 %v21783_v32  ;;  %20555 = vmatprep.subr.mxu0 %v21783_v32 }
 0xac9   :  { %20535 = vmatpush3.msra.mxu1 %v23722_v42  ;;  %20556 = vmatpush3.msra.mxu0 %v23697_v63 }
 0xaca   :  { %20537 = vmatmul.mubr.f32.vlgmr.msra.gmra.mxu1 %v23678_v46  ;;  %20546 = vmatprep.subr.mxu1 %v21783_v32 }
 0xacb   :  { %20557 = vmatprep.mubr.msk.f32.mxu0 %vm21784_vm4, %v21783_v32  ;;  %20567 = vmatprep.subr.mxu0 %v21783_v32 }
 0xacc   :  { %20547 = vmatpush3.msra.mxu1 %v23684_v7  ;;  %20558 = vmatmul.mubr.f32.vlgmr.msra.gmra.mxu0 %v23678_v46 }
 0xacd   :  { %20568 = vmatpush3.msra.mxu0 %v23684_v7  ;;  %20548 = vmatprep.subr.mxu1 %v21783_v32 }
 0xace   :  { %20569 = vmatprep.subr.mxu0 %v21783_v32  ;;  %20549 = vmatpush3.msra.mxu1 %v23682_v4 }
 0xacf   :  { %20550 = vmatprep.mubr.msk.f32.mxu1 %vm21784_vm4, %v21783_v32  ;;  %20570 = vmatpush3.msra.mxu0 %v23682_v4 }
 0xad0   :  { %20551 = vmatmul.mubr.f32.vlgmr.msra.gmra.mxu1 %v9825_v62  ;;  %20560 = vmatprep.subr.mxu1 %v21783_v32 }
 0xad1   :  { %20571 = vmatprep.mubr.msk.f32.mxu0 %vm21784_vm4, %v21783_v32  ;;  %20581 = vmatprep.subr.mxu0 %v21783_v32 }
 0xad2   :  { %20561 = vmatpush3.msra.mxu1 %v23684_v7  ;;  %20572 = vmatmul.mubr.f32.vlgmr.msra.gmra.mxu0 %v10295_v2 }
 0xad3   :  { %20582 = vmatpush3.msra.mxu0 %v23692_v22  ;;  %20562 = vmatprep.subr.mxu1 %v21783_v32 }
 0xad4   :  { %20583 = vmatprep.subr.mxu0 %v21783_v32  ;;  %20563 = vmatpush3.msra.mxu1 %v23682_v4 }
 0xad5   :  { %20564 = vmatprep.mubr.msk.f32.mxu1 %vm21784_vm4, %v21783_v32  ;;  %20584 = vmatpush3.msra.mxu0 %v23687_v11 }
 0xad6   :  { %20565 = vmatmul.mubr.f32.vlgmr.msra.gmra.mxu1 %v23678_v46  ;;  %20574 = vmatprep.subr.mxu1 %v21783_v32 }
 0xad7   :  { %20585 = vmatprep.mubr.msk.f32.mxu0 %vm21784_vm4, %v21783_v32  ;;  %20595 = vmatprep.subr.mxu0 %v21783_v32 }
 0xad8   :  { %20575 = vmatpush3.msra.mxu1 %v23716_v6  ;;  %20586 = vmatmul.mubr.f32.vlgmr.msra.gmra.mxu0 %v23705_v21 }
 0xad9   :  { %20596 = vmatpush3.msra.mxu0 %v23701_v54  ;;  %20576 = vmatprep.subr.mxu1 %v21783_v32 }
 0xada   :  { %20597 = vmatprep.subr.mxu0 %v21783_v32  ;;  %20577 = vmatpush3.msra.mxu1 %v23722_v42 }
 0xadb   :  { %20578 = vmatprep.mubr.msk.f32.mxu1 %vm21784_vm4, %v21783_v32  ;;  %20598 = vmatpush3.msra.mxu0 %v23697_v63 }
 0xadc   :  { %20579 = vmatmul.mubr.f32.vlgmr.msra.gmra.mxu1 %v23689_v5  ;;  %20588 = vmatprep.subr.mxu1 %v21783_v32 }
 0xadd   :  { %20589 = vmatpush3.msra.mxu1 %v23684_v7  ;;  %20592 = vmatprep.mubr.msk.f32.mxu1 %vm21784_vm4, %v21783_v32 }
 0xade   :  { %20590 = vmatprep.subr.mxu1 %v21783_v32  ;;  %20599 = vmatprep.mubr.msk.f32.mxu0 %vm21784_vm4, %v21783_v32 }
 0xadf   :  { %20591 = vmatpush3.msra.mxu1 %v23682_v4  ;;  %20600 = vmatmul.mubr.f32.vlgmr.msra.gmra.mxu0 %v23689_v5 }
 0xae0   :  { %20593 = vmatmul.mubr.f32.vlgmr.msra.gmra.mxu1 %v10293_v48  ;;  %20602 = vmatprep.subr.mxu1 %v21783_v32 }
 0xae1   :  { %20603 = vmatpush3.msra.mxu1 %v23684_v7  ;;  %20606 = vmatprep.mubr.msk.f32.mxu1 %vm21784_vm4, %v21783_v32 }
 0xae2   :  { %20604 = vmatprep.subr.mxu1 %v21783_v32  ;;  %20609 = vmatprep.subr.mxu0 %v21783_v32 }
 0xae3   :  { %20605 = vmatpush3.msra.mxu1 %v23682_v4  ;;  %20617 = vmatprep.mubr.msk.f32.mxu0 %vm21784_vm4, %v21783_v32 }
 0xae4   :  { %20607 = vmatmul.mubr.f32.vlgmr.msra.gmra.mxu1 %v23689_v5  ;;  %20620 = vmatprep.subr.mxu1 %v21783_v32 }
 0xae5   :  { %20628 = vmatprep.mubr.msk.f32.mxu1 %vm21784_vm4, %v21783_v32  ;;  %20610 = vmatpush3.msra.mxu0 %v23795_v20 }
 0xae6   :  { %20611 = vmatprep.subr.mxu0 %v21783_v32  ;;  %20621 = vmatpush3.msra.mxu1 %v10799_v27  ;;  %v23863_v27 = vand.u32 4294901760, %v10218_v53 }
 0xae7   :  { %20612 = vmatpush3.msra.mxu0 %v23803_v35  ;;  %20622 = vmatprep.subr.mxu1 %v21783_v32 }
 0xae8   :  { %20613 = vmatprep.subr.mxu0 %v21783_v32  ;;  %20623 = vmatpush3.msra.mxu1 %v10806_v3 }
 0xae9   :  { %20614 = vmatpush3.msra.mxu0 %v23814_v40  ;;  %20624 = vmatprep.subr.mxu1 %v21783_v32 }
 0xaea   :  { %20615 = vmatprep.subr.mxu0 %v21783_v32  ;;  %20625 = vmatpush3.msra.mxu1 %v10813_v0  ;;  %v10215_v0 = vld [vmem:[%s24750_s10] sm:$0xff] }
 0xaeb   :  { %20616 = vmatpush3.msra.mxu0 %v23828_v33  ;;  %20626 = vmatprep.subr.mxu1 %v21783_v32 }
 0xaec   :  { %20631 = vmatprep.subr.mxu0 %v21783_v32  ;;  %20627 = vmatpush3.msra.mxu1 %v10820_v12 }
 0xaed   :  { %20642 = vmatprep.subr.mxu1 %v21783_v32 }
 0xb82   :  { %v9829_v14 = vpop.f32.mrf.mxu0 }
 0xb84   :  { %v20531_v38 = vpop.f32.mrf.mxu0 }
 0xb85   :  { %v23882_v38 = vand.u32 4294901760, %v10216_v25 }
 0xb86   :  { %v9986_v10 = vpop.f32.mrf.mxu0 }
 0xb88   :  { %v20545_v39 = vpop.f32.mrf.mxu0 }
 0xb89   :  { %v23887_v39 = vsub.f32 %v10217_v34, %v23872_v45 }
 0xb8a   :  { %v9910_v18 = vpop.f32.mrf.mxu1 }
 0xb8b   :  { %v9911_v48 = vadd.f32 %v9910_v18, %v9829_v14  ;;  %v23880_v14 = vsub.f32 %v10218_v53, %v23863_v27  ;;  %v23889_v18 = vand.u32 4294901760, %v10215_v0  ;;  %v18352_v53 = vld [vmem:[%s24750_s10 + $0x40] sm:$0xff] }
 0xb8c   :  { %v20538_v58 = vpop.f32.mrf.mxu1  ;;  %v10138_v37 = vpop.f32.mrf.mxu0 }
 0xb8d   :  { %v9987_v1 = vadd.f32 %v9986_v10, %v9911_v48 }
 0xb8e   :  { %v20559_v30 = vpop.f32.mrf.mxu0 }
 0xb8f   :  { %v11285_v30 = vand.u32 4294901760, %v23880_v14 }
 0xb90   :  { %v10061_v13 = vpop.f32.mrf.mxu1 }
 0xb91   :  { %v10062_v61 = vadd.f32 %v10061_v13, %v9987_v1  ;;  %v23895_v13 = vsub.f32 %v10216_v25, %v23882_v38 }
 0xb92   :  { %v20552_v59 = vpop.f32.mrf.mxu1  ;;  %v10297_v31 = vpop.f32.mrf.mxu0 }
 0xb93   :  { %v10139_v58 = vadd.f32 %v10138_v37, %v10062_v61  ;;  %v11292_v59 = vand.u32 4294901760, %v23887_v39 }
 0xb94   :  { %v20573_v52 = vpop.f32.mrf.mxu0 }
 0xb95   :  { %v11299_v52 = vand.u32 4294901760, %v23895_v13 }
 0xb96   :  { %v10211_v41 = vpop.f32.mrf.mxu1 }
 0xb97   :  { %v10212_v37 = vadd.f32 %v10211_v41, %v10139_v58 }
 0xb98   :  { %v20566_v46 = vpop.f32.mrf.mxu1  ;;  %v10454_v47 = vpop.f32.mrf.mxu0 }
 0xb99   :  { %v11177_v46 = vsel %vm5376_vm2, %v10212_v37, 0 }
 0xb9a   :  { %v20587_v62 = vpop.f32.mrf.mxu0 }
 0xb9c   :  { %v10378_v57 = vpop.f32.mrf.mxu1 }
 0xb9d   :  { %v10379_v50 = vadd.f32 %v10378_v57, %v10297_v31  ;;  %v23902_v31 = vsub.f32 %v10215_v0, %v23889_v18 }
 0xb9e   :  { %v20580_v49 = vpop.f32.mrf.mxu1 }
 0xb9f   :  { %v10455_v15 = vadd.f32 %v10454_v47, %v10379_v50  ;;  %v10606_v60 = vpop.f32.mrf.mxu0  ;;  %v11306_v41 = vand.u32 4294901760, %v23902_v31  ;;  %v11300_v47 = vsub.f32 %v23895_v13, %v11299_v52  ;;  %v23936_v50 = vand.u32 4294901760, %v11177_v46 }
 0xba0   :  { %v10529_v9 = vpop.f32.mrf.mxu1 }
 0xba1   :  { %v10530_v23 = vadd.f32 %v10529_v9, %v10455_v15  ;;  %v20601_v44 = vpop.f32.mrf.mxu0  ;;  %v11307_v57 = vsub.f32 %v23902_v31, %v11306_v41  ;;  %v11249_v15 = vsub.f32 %v11177_v46, %v23936_v50 }
 0xba2   :  { %v20594_v5 = vpop.f32.mrf.mxu1 }
 0xba3   :  { %v10607_v21 = vadd.f32 %v10606_v60, %v10530_v23  ;;  %v11308_v49 = vand.u32 4294901760, %v11307_v57  ;;  %v18355_v23 = vld [vmem:[%s24750_s10 + $0x58] sm:$0xff]  ;;  %v18354_v5 = vld [vmem:[%s24750_s10 + $0x50] sm:$0xff] }
 0xba4   :  { %v10679_v19 = vpop.f32.mrf.mxu1  ;;  %v24062_v44 = vand.u32 4294901760, %v18355_v23 }
 0xba5   :  { %v10680_v17 = vadd.f32 %v10679_v19, %v10607_v21  ;;  %v24070_v19 = vand.u32 4294901760, %v18354_v5 }
 0xba6   :  { %v20608_v24 = vpop.f32.mrf.mxu1  ;;  %v24068_v21 = vsub.f32 %v18355_v23, %v24062_v44 }
 0xba7   :  { %v10689_v2 = vsel %vm5376_vm2, %v10680_v17, 0  ;;  %v18353_v17 = vld [vmem:[%s24750_s10 + $0x48] sm:$0xff]  ;;  %v24079_v24 = vsub.f32 %v18354_v5, %v24070_v19 }
 0xba8   :  { %v23856_v51 = vand.u32 4294901760, %v10689_v2  ;;  %v12242_v48 = vand.u32 4294901760, %v24068_v21 }
 0xba9   :  { %v12249_v34 = vand.u32 4294901760, %v24079_v24 }
 0xbaa   :  { %v10761_v26 = vsub.f32 %v10689_v2, %v23856_v51  ;;  %20629 = vmatmul.mubr.f32.vlgmr.msra.gmra.mxu1 %v23856_v51  ;;  %v24081_v2 = vand.u32 4294901760, %v18353_v17 }
 0xbab   :  { %20643 = vmatpush3.msra.mxu1 %v23795_v20  ;;  %20650 = vmatprep.mubr.msk.f32.mxu1 %vm21784_vm4, %v21783_v32  ;;  %v12250_v25 = vsub.f32 %v24079_v24, %v12249_v34 }
 0xbac   :  { %v10762_v3 = vand.u32 4294901760, %v10761_v26  ;;  %20644 = vmatprep.subr.mxu1 %v21783_v32  ;;  %v24093_v1 = vsub.f32 %v18353_v17, %v24081_v2 }
 0xbad   :  { %20645 = vmatpush3.msra.mxu1 %v23803_v35  ;;  %v12251_v0 = vand.u32 4294901760, %v12250_v25 }
 0xbae   :  { %v10763_v12 = vsub.f32 %v10761_v26, %v10762_v3  ;;  %20646 = vmatprep.subr.mxu1 %v21783_v32 }
 0xbaf   :  { %20647 = vmatpush3.msra.mxu1 %v23814_v40 }
 0xbb0   :  { %v10764_v10 = vand.u32 4294901760, %v10763_v12  ;;  %20648 = vmatprep.subr.mxu1 %v21783_v32 }
 0xbb1   :  { %20649 = vmatpush3.msra.mxu1 %v23828_v33 }
 0xbb2   :  { %20651 = vmatmul.mubr.f32.vlgmr.msra.gmra.mxu1 %v10762_v3  ;;  %20664 = vmatprep.subr.mxu1 %v21783_v32  ;;  %v12256_v3 = vand.u32 4294901760, %v24093_v1 }
 0xbb3   :  { %20618 = vmatmul.mubr.f32.vlgmr.msra.gmra.mxu0 %v10764_v10  ;;  %20665 = vmatpush3.msra.mxu1 %v23795_v20  ;;  %v11286_v20 = vsub.f32 %v23880_v14, %v11285_v30 }
 0xbb4   :  { %20632 = vmatpush3.msra.mxu0 %v23801_v29  ;;  %20666 = vmatprep.subr.mxu1 %v21783_v32  ;;  %v11250_v29 = vand.u32 4294901760, %v11249_v15  ;;  %v12257_v61 = vsub.f32 %v24093_v1, %v12256_v3 }
 0xbb5   :  { %20633 = vmatprep.subr.mxu0 %v21783_v32  ;;  %20667 = vmatpush3.msra.mxu1 %v23803_v35  ;;  %v11293_v35 = vsub.f32 %v23887_v39, %v11292_v59 }
 0xbb6   :  { %20634 = vmatpush3.msra.mxu0 %v23812_v16  ;;  %20668 = vmatprep.subr.mxu1 %v21783_v32 }
 0xbb7   :  { %20635 = vmatprep.subr.mxu0 %v21783_v32  ;;  %20669 = vmatpush3.msra.mxu1 %v23814_v40  ;;  %v11287_v40 = vand.u32 4294901760, %v11286_v20  ;;  %v11294_v62 = vand.u32 4294901760, %v11293_v35 }
 0xbb8   :  { %20636 = vmatpush3.msra.mxu0 %v23826_v43  ;;  %20670 = vmatprep.subr.mxu1 %v21783_v32 }
 0xbb9   :  { %20637 = vmatprep.subr.mxu0 %v21783_v32  ;;  %20639 = vmatprep.mubr.msk.f32.mxu0 %vm21784_vm4, %v21783_v32 }
 0xbba   :  { %20638 = vmatpush3.msra.mxu0 %v23837_v55  ;;  %20671 = vmatpush3.msra.mxu1 %v23828_v33  ;;  %v11301_v33 = vand.u32 4294901760, %v11300_v47 }
 0xbbb   :  { %20672 = vmatprep.mubr.msk.f32.mxu1 %vm21784_vm4, %v21783_v32  ;;  %20640 = vmatmul.mubr.f32.vlgmr.msra.gmra.mxu0 %v10761_v26  ;;  %v24095_v26 = vand.u32 4294901760, %v18352_v53 }
 0xbbc   :  { %20653 = vmatprep.subr.mxu0 %v21783_v32  ;;  %20673 = vmatmul.mubr.f32.vlgmr.msra.gmra.mxu1 %v23856_v51 }
 0xbbd   :  { %20686 = vmatprep.subr.mxu1 %v21783_v32  ;;  %20654 = vmatpush3.msra.mxu0 %v10797_v28  ;;  %v11251_v28 = vsub.f32 %v11249_v15, %v11250_v29 }
 0xbbe   :  { %20687 = vmatpush3.msra.mxu1 %v11287_v40  ;;  %20655 = vmatprep.subr.mxu0 %v21783_v32 }
 0xbbf   :  { %20688 = vmatprep.subr.mxu1 %v21783_v32  ;;  %20656 = vmatpush3.msra.mxu0 %v10804_v8  ;;  %v11252_v16 = vand.u32 4294901760, %v11251_v28  ;;  %v11665_v8 = vld [vmem:[#allocation16 + $0x10] sm:$0xff] }
 0xbc0   :  { %20689 = vmatpush3.msra.mxu1 %v11294_v62  ;;  %20657 = vmatprep.subr.mxu0 %v21783_v32  ;;  %v11667_v43 = vsel %vm6565_vm3, %v11665_v8, 0 }
 0xbc1   :  { %20690 = vmatprep.subr.mxu1 %v21783_v32  ;;  %20658 = vmatpush3.msra.mxu0 %v10811_v36  ;;  %v11736_v36 = vand.u32 4294901760, %v11667_v43 }
 0xbc2   :  { %20691 = vmatpush3.msra.mxu1 %v11301_v33  ;;  %20659 = vmatprep.subr.mxu0 %v21783_v32 }
 0xbc3   :  { %20692 = vmatprep.subr.mxu1 %v21783_v32  ;;  %20660 = vmatpush3.msra.mxu0 %v10818_v56  ;;  %v11737_v55 = vsub.f32 %v11667_v43, %v11736_v36 }
 0xbc4   :  { %20661 = vmatprep.mubr.msk.f32.mxu0 %vm21784_vm4, %v21783_v32  ;;  %20693 = vmatpush3.msra.mxu1 %v11308_v49 }
 0xbc5   :  { %20694 = vmatprep.mubr.msk.f32.mxu1 %vm21784_vm4, %v21783_v32  ;;  %20662 = vmatmul.mubr.f32.vlgmr.msra.gmra.mxu0 %v23856_v51  ;;  %v11738_v56 = vand.u32 4294901760, %v11737_v55  ;;  %v12243_v51 = vsub.f32 %v24068_v21, %v12242_v48 }
 0xbc6   :  { %20675 = vmatprep.subr.mxu0 %v21783_v32  ;;  %20695 = vmatmul.mubr.f32.vlgmr.msra.gmra.mxu1 %v23936_v50 }
 0xbc7   :  { %20708 = vmatprep.subr.mxu1 %v21783_v32  ;;  %20676 = vmatpush3.msra.mxu0 %v23863_v27  ;;  %v11739_v60 = vsub.f32 %v11737_v55, %v11738_v56 }
 0xbc8   :  { %20709 = vmatpush3.msra.mxu1 %v23863_v27  ;;  %20677 = vmatprep.subr.mxu0 %v21783_v32 }
 0xbc9   :  { %20710 = vmatprep.subr.mxu1 %v21783_v32  ;;  %20678 = vmatpush3.msra.mxu0 %v23872_v45  ;;  %v11740_v9 = vand.u32 4294901760, %v11739_v60 }
 0xbca   :  { %20711 = vmatpush3.msra.mxu1 %v23872_v45  ;;  %20679 = vmatprep.subr.mxu0 %v21783_v32 }
 0xbcb   :  { %20712 = vmatprep.subr.mxu1 %v21783_v32  ;;  %20680 = vmatpush3.msra.mxu0 %v23882_v38 }
 0xbcc   :  { %20713 = vmatpush3.msra.mxu1 %v23882_v38  ;;  %20681 = vmatprep.subr.mxu0 %v21783_v32 }
 0xbcd   :  { %20714 = vmatprep.subr.mxu1 %v21783_v32  ;;  %20682 = vmatpush3.msra.mxu0 %v23889_v18 }
 0xbce   :  { %20683 = vmatprep.mubr.msk.f32.mxu0 %vm21784_vm4, %v21783_v32  ;;  %20715 = vmatpush3.msra.mxu1 %v23889_v18 }
 0xbcf   :  { %20716 = vmatprep.mubr.msk.f32.mxu1 %vm21784_vm4, %v21783_v32  ;;  %20684 = vmatmul.mubr.f32.vlgmr.msra.gmra.mxu0 %v11252_v16 }
 0xbd0   :  { %20697 = vmatprep.subr.mxu0 %v21783_v32  ;;  %20717 = vmatmul.mubr.f32.vlgmr.msra.gmra.mxu1 %v11250_v29 }
 0xbd1   :  { %20730 = vmatprep.subr.mxu1 %v21783_v32  ;;  %20698 = vmatpush3.msra.mxu0 %v23880_v14  ;;  %v12258_v14 = vand.u32 4294901760, %v12257_v61 }
 0xbd2   :  { %20731 = vmatpush3.msra.mxu1 %v23863_v27  ;;  %20699 = vmatprep.subr.mxu0 %v21783_v32  ;;  %v12244_v27 = vand.u32 4294901760, %v12243_v51 }
 0xbd3   :  { %20732 = vmatprep.subr.mxu1 %v21783_v32  ;;  %20700 = vmatpush3.msra.mxu0 %v23887_v39 }
 0xbd4   :  { %20733 = vmatpush3.msra.mxu1 %v23872_v45  ;;  %20701 = vmatprep.subr.mxu0 %v21783_v32  ;;  %v24104_v45 = vsub.f32 %v18352_v53, %v24095_v26 }
 0xbd5   :  { %20734 = vmatprep.subr.mxu1 %v21783_v32  ;;  %20702 = vmatpush3.msra.mxu0 %v23895_v13 }
 0xbd6   :  { %20735 = vmatpush3.msra.mxu1 %v23882_v38  ;;  %20703 = vmatprep.subr.mxu0 %v21783_v32  ;;  %v12263_v12 = vand.u32 4294901760, %v24104_v45 }
 0xbd7   :  { %20736 = vmatprep.subr.mxu1 %v21783_v32  ;;  %20704 = vmatpush3.msra.mxu0 %v23902_v31 }
 0xbd8   :  { %20705 = vmatprep.mubr.msk.f32.mxu0 %vm21784_vm4, %v21783_v32  ;;  %20737 = vmatpush3.msra.mxu1 %v23889_v18  ;;  %v12264_v38 = vsub.f32 %v24104_v45, %v12263_v12 }
 0xbd9   :  { %20738 = vmatprep.mubr.msk.f32.mxu1 %vm21784_vm4, %v21783_v32  ;;  %20706 = vmatmul.mubr.f32.vlgmr.msra.gmra.mxu0 %v11249_v15 }
 0xbda   :  { %20719 = vmatprep.subr.mxu0 %v21783_v32  ;;  %20739 = vmatmul.mubr.f32.vlgmr.msra.gmra.mxu1 %v23936_v50  ;;  %v12265_v10 = vand.u32 4294901760, %v12264_v38 }
 0xbdb   :  { %20748 = vmatprep.subr.mxu1 %v21783_v32  ;;  %20720 = vmatpush3.msra.mxu0 %v11285_v30 }
 0xbdc   :  { %20749 = vmatpush3.msra.mxu1 %v23716_v6  ;;  %20721 = vmatprep.subr.mxu0 %v21783_v32 }
 0xbdd   :  { %20750 = vmatprep.subr.mxu1 %v21783_v32  ;;  %20722 = vmatpush3.msra.mxu0 %v11292_v59 }
 0xbde   :  { %20751 = vmatpush3.msra.mxu1 %v23722_v42  ;;  %20723 = vmatprep.subr.mxu0 %v21783_v32 }
 0xbdf   :  { %20752 = vmatprep.mubr.msk.f32.mxu1 %vm21784_vm4, %v21783_v32  ;;  %20762 = vmatprep.subr.mxu1 %v21783_v32 }
 0xbe0   :  { %20724 = vmatpush3.msra.mxu0 %v11299_v52  ;;  %20753 = vmatmul.mubr.f32.vlgmr.msra.gmra.mxu1 %v11736_v36 }
 0xbe1   :  { %20763 = vmatpush3.msra.mxu1 %v23684_v7  ;;  %20725 = vmatprep.subr.mxu0 %v21783_v32 }
 0xbe2   :  { %20764 = vmatprep.subr.mxu1 %v21783_v32  ;;  %20726 = vmatpush3.msra.mxu0 %v11306_v41 }
 0xbe3   :  { %20727 = vmatprep.mubr.msk.f32.mxu0 %vm21784_vm4, %v21783_v32  ;;  %20765 = vmatpush3.msra.mxu1 %v23682_v4 }
 0xbe4   :  { %20728 = vmatmul.mubr.f32.vlgmr.msra.gmra.mxu0 %v23936_v50  ;;  %20741 = vmatprep.subr.mxu0 %v21783_v32 }
 0xbe5   :  { %20766 = vmatprep.mubr.msk.f32.mxu1 %vm21784_vm4, %v21783_v32  ;;  %20776 = vmatprep.subr.mxu1 %v21783_v32 }
 0xbe6   :  { %20742 = vmatpush3.msra.mxu0 %v23684_v7  ;;  %20767 = vmatmul.mubr.f32.vlgmr.msra.gmra.mxu1 %v11738_v56 }
 0xbe7   :  { %20777 = vmatpush3.msra.mxu1 %v23684_v7  ;;  %20743 = vmatprep.subr.mxu0 %v21783_v32 }
 0xbe8   :  { %20778 = vmatprep.subr.mxu1 %v21783_v32  ;;  %20744 = vmatpush3.msra.mxu0 %v23682_v4 }
 0xbe9   :  { %20745 = vmatprep.mubr.msk.f32.mxu0 %vm21784_vm4, %v21783_v32  ;;  %20779 = vmatpush3.msra.mxu1 %v23682_v4 }
 0xbea   :  { %20746 = vmatmul.mubr.f32.vlgmr.msra.gmra.mxu0 %v11740_v9  ;;  %20755 = vmatprep.subr.mxu0 %v21783_v32 }
 0xbeb   :  { %20756 = vmatpush3.msra.mxu0 %v23692_v22  ;;  %20759 = vmatprep.mubr.msk.f32.mxu0 %vm21784_vm4, %v21783_v32 }
 0xbec   :  { %20757 = vmatprep.subr.mxu0 %v21783_v32  ;;  %20780 = vmatprep.mubr.msk.f32.mxu1 %vm21784_vm4, %v21783_v32 }
 0xbed   :  { %20758 = vmatpush3.msra.mxu0 %v23687_v11  ;;  %20781 = vmatmul.mubr.f32.vlgmr.msra.gmra.mxu1 %v11736_v36 }
 0xbee   :  { %20760 = vmatmul.mubr.f32.vlgmr.msra.gmra.mxu0 %v11737_v55  ;;  %20769 = vmatprep.subr.mxu0 %v21783_v32 }
 0xbef   :  { %20770 = vmatpush3.msra.mxu0 %v23701_v54  ;;  %20773 = vmatprep.mubr.msk.f32.mxu0 %vm21784_vm4, %v21783_v32 }
 0xbf0   :  { %20771 = vmatprep.subr.mxu0 %v21783_v32  ;;  %20794 = vmatprep.subr.mxu1 %v21783_v32 }
 0xbf1   :  { %20772 = vmatpush3.msra.mxu0 %v23697_v63  ;;  %20802 = vmatprep.mubr.msk.f32.mxu1 %vm21784_vm4, %v21783_v32 }
 0xbf2   :  { %20774 = vmatmul.mubr.f32.vlgmr.msra.gmra.mxu0 %v11736_v36  ;;  %20783 = vmatprep.subr.mxu0 %v21783_v32 }
 0xbf3   :  { %20791 = vmatprep.mubr.msk.f32.mxu0 %vm21784_vm4, %v21783_v32  ;;  %20784 = vmatpush3.msra.mxu0 %v24062_v44 }
 0xbf4   :  { %20785 = vmatprep.subr.mxu0 %v21783_v32  ;;  %20795 = vmatpush3.msra.mxu1 %v12244_v27 }
 0xbf5   :  { %20786 = vmatpush3.msra.mxu0 %v24070_v19  ;;  %20796 = vmatprep.subr.mxu1 %v21783_v32 }
 0xbf6   :  { %20787 = vmatprep.subr.mxu0 %v21783_v32  ;;  %20797 = vmatpush3.msra.mxu1 %v12251_v0 }
 0xbf7   :  { %20788 = vmatpush3.msra.mxu0 %v24081_v2  ;;  %20798 = vmatprep.subr.mxu1 %v21783_v32 }
 0xbf8   :  { %20789 = vmatprep.subr.mxu0 %v21783_v32  ;;  %20799 = vmatpush3.msra.mxu1 %v12258_v14 }
 0xbf9   :  { %20790 = vmatpush3.msra.mxu0 %v24095_v26  ;;  %20800 = vmatprep.subr.mxu1 %v21783_v32 }
 0xbfa   :  { %20805 = vmatprep.subr.mxu0 %v21783_v32  ;;  %20801 = vmatpush3.msra.mxu1 %v12265_v10 }
 0xbfb   :  { %20816 = vmatprep.subr.mxu1 %v21783_v32 }
 0xc6a   :  { %v10857_v39 = vpop.f32.mrf.mxu1 }
 0xc6c   :  { %v20630_v18 = vpop.f32.mrf.mxu1 }
 0xc72   :  { %v11014_v58 = vpop.f32.mrf.mxu1 }
 0xc73   :  { %v10766_v30 = vpop.f32.mrf.mxu0 }
 0xc74   :  { %v10858_v13 = vadd.f32 %v10857_v39, %v10766_v30  ;;  %v20652_v59 = vpop.f32.mrf.mxu1 }
 0xc75   :  { %v20619_v31 = vpop.f32.mrf.mxu0 }
 0xc7b   :  { %v10937_v37 = vpop.f32.mrf.mxu0 }
 0xc7c   :  { %v10938_v20 = vadd.f32 %v10937_v37, %v10858_v13  ;;  %v11172_v52 = vpop.f32.mrf.mxu1 }
 0xc7d   :  { %v20641_v35 = vpop.f32.mrf.mxu0 }
 0xc7e   :  { %v20674_v41 = vpop.f32.mrf.mxu1  ;;  %v11015_v46 = vadd.f32 %v11014_v58, %v10938_v20 }
 0xc85   :  { %v11097_v40 = vpop.f32.mrf.mxu0 }
 0xc86   :  { %v11098_v47 = vadd.f32 %v11097_v40, %v11015_v46  ;;  %v11345_v62 = vpop.f32.mrf.mxu1 }
 0xc87   :  { %v20663_v57 = vpop.f32.mrf.mxu0 }
 0xc88   :  { %v20696_v50 = vpop.f32.mrf.mxu1  ;;  %v11173_v33 = vadd.f32 %v11172_v52, %v11098_v47 }
 0xc8f   :  { %v11254_v49 = vpop.f32.mrf.mxu0 }
 0xc90   :  { %v11255_v15 = vadd.f32 %v11254_v49, %v11173_v33  ;;  %v11502_v29 = vpop.f32.mrf.mxu1 }
 0xc91   :  { %v20685_v28 = vpop.f32.mrf.mxu0 }
 0xc92   :  { %v20718_v16 = vpop.f32.mrf.mxu1  ;;  %v11346_v8 = vadd.f32 %v11345_v62, %v11255_v15  ;;  %v12623_v62 = vld [vmem:[#allocation16 + $0x18] sm:$0xff] }
 0xc93   :  { %v12625_v57 = vsel %vm6565_vm3, %v12623_v62, 0 }
 0xc99   :  { %v11425_v43 = vpop.f32.mrf.mxu0 }
 0xc9a   :  { %v11426_v36 = vadd.f32 %v11425_v43, %v11346_v8  ;;  %v11660_v55 = vpop.f32.mrf.mxu1 }
 0xc9b   :  { %v20707_v56 = vpop.f32.mrf.mxu0 }
 0xc9c   :  { %v20740_v60 = vpop.f32.mrf.mxu1  ;;  %v11503_v9 = vadd.f32 %v11502_v29, %v11426_v36 }
 0xca0   :  { %v11823_v23 = vpop.f32.mrf.mxu1 }
 0xca2   :  { %v20754_v5 = vpop.f32.mrf.mxu1 }
 0xca4   :  { %v11585_v17 = vpop.f32.mrf.mxu0 }
 0xca5   :  { %v11586_v53 = vadd.f32 %v11585_v17, %v11503_v9 }
 0xca6   :  { %v20729_v51 = vpop.f32.mrf.mxu0  ;;  %v11974_v27 = vpop.f32.mrf.mxu1 }
 0xca7   :  { %v24119_v25 = vadd.f32 %v11660_v55, %v11586_v53 }
 0xca8   :  { %v20768_v0 = vpop.f32.mrf.mxu1 }
 0xcaa   :  { %v11742_v61 = vpop.f32.mrf.mxu0 }
 0xcab   :  { %v11824_v38 = vadd.f32 %v11823_v23, %v11742_v61 }
 0xcac   :  { %v20747_v14 = vpop.f32.mrf.mxu0 }
 0xcad   :  { %v12124_v10 = vpop.f32.mrf.mxu1 }
 0xcae   :  { %v11899_v39 = vpop.f32.mrf.mxu0 }
 0xcaf   :  { %v11900_v18 = vadd.f32 %v11899_v39, %v11824_v38  ;;  %v20782_v58 = vpop.f32.mrf.mxu1 }
 0xcb0   :  { %v20761_v30 = vpop.f32.mrf.mxu0 }
 0xcb1   :  { %v11975_v13 = vadd.f32 %v11974_v27, %v11900_v18 }
 0xcb2   :  { %v12051_v59 = vpop.f32.mrf.mxu0 }
 0xcb3   :  { %v12052_v31 = vadd.f32 %v12051_v59, %v11975_v13 }
 0xcb4   :  { %v20775_v37 = vpop.f32.mrf.mxu0 }
 0xcb5   :  { %v12125_v20 = vadd.f32 %v12124_v10, %v12052_v31 }
 0xcb7   :  { %v12134_v52 = vsel %vm5376_vm2, %v12125_v20, 0 }
 0xcb8   :  { %v12205_v35 = vand.u32 4294901760, %v12134_v52 }
 0xcba   :  { %v12206_v41 = vsub.f32 %v12134_v52, %v12205_v35  ;;  %20803 = vmatmul.mubr.f32.vlgmr.msra.gmra.mxu1 %v12205_v35 }
 0xcbb   :  { %20817 = vmatpush3.msra.mxu1 %v24062_v44  ;;  %20824 = vmatprep.mubr.msk.f32.mxu1 %vm21784_vm4, %v21783_v32 }
 0xcbc   :  { %v12207_v46 = vand.u32 4294901760, %v12206_v41  ;;  %20818 = vmatprep.subr.mxu1 %v21783_v32 }
 0xcbd   :  { %20819 = vmatpush3.msra.mxu1 %v24070_v19 }
 0xcbe   :  { %v12208_v40 = vsub.f32 %v12206_v41, %v12207_v46  ;;  %20820 = vmatprep.subr.mxu1 %v21783_v32 }
 0xcbf   :  { %20821 = vmatpush3.msra.mxu1 %v24081_v2 }
 0xcc0   :  { %v12209_v47 = vand.u32 4294901760, %v12208_v40  ;;  %20822 = vmatprep.subr.mxu1 %v21783_v32 }
 0xcc1   :  { %20823 = vmatpush3.msra.mxu1 %v24095_v26 }
 0xcc2   :  { %20825 = vmatmul.mubr.f32.vlgmr.msra.gmra.mxu1 %v12207_v46  ;;  %20838 = vmatprep.subr.mxu1 %v21783_v32 }
 0xcc3   :  { %20792 = vmatmul.mubr.f32.vlgmr.msra.gmra.mxu0 %v12209_v47  ;;  %20839 = vmatpush3.msra.mxu1 %v24062_v44  ;;  %v12694_v44 = vand.u32 4294901760, %v12625_v57 }
 0xcc4   :  { %20806 = vmatpush3.msra.mxu0 %v24068_v21  ;;  %20840 = vmatprep.subr.mxu1 %v21783_v32 }
 0xcc5   :  { %20807 = vmatprep.subr.mxu0 %v21783_v32  ;;  %20841 = vmatpush3.msra.mxu1 %v24070_v19  ;;  %v12695_v19 = vsub.f32 %v12625_v57, %v12694_v44 }
 0xcc6   :  { %20808 = vmatpush3.msra.mxu0 %v24079_v24  ;;  %20842 = vmatprep.subr.mxu1 %v21783_v32 }
 0xcc7   :  { %20809 = vmatprep.subr.mxu0 %v21783_v32  ;;  %20843 = vmatpush3.msra.mxu1 %v24081_v2  ;;  %v12696_v2 = vand.u32 4294901760, %v12695_v19 }
 0xcc8   :  { %20810 = vmatpush3.msra.mxu0 %v24093_v1  ;;  %20844 = vmatprep.subr.mxu1 %v21783_v32 }
 0xcc9   :  { %20811 = vmatprep.subr.mxu0 %v21783_v32  ;;  %20813 = vmatprep.mubr.msk.f32.mxu0 %vm21784_vm4, %v21783_v32 }
 0xcca   :  { %20812 = vmatpush3.msra.mxu0 %v24104_v45  ;;  %20845 = vmatpush3.msra.mxu1 %v24095_v26 }
 0xccb   :  { %20846 = vmatprep.mubr.msk.f32.mxu1 %vm21784_vm4, %v21783_v32  ;;  %20814 = vmatmul.mubr.f32.vlgmr.msra.gmra.mxu0 %v12206_v41 }
 0xccc   :  { %20827 = vmatprep.subr.mxu0 %v21783_v32  ;;  %20847 = vmatmul.mubr.f32.vlgmr.msra.gmra.mxu1 %v12205_v35 }
 0xccd   :  { %20856 = vmatprep.subr.mxu1 %v21783_v32  ;;  %20828 = vmatpush3.msra.mxu0 %v12242_v48 }
 0xcce   :  { %20857 = vmatpush3.msra.mxu1 %v23716_v6  ;;  %20829 = vmatprep.subr.mxu0 %v21783_v32  ;;  %v12697_v6 = vsub.f32 %v12695_v19, %v12696_v2 }
 0xccf   :  { %20858 = vmatprep.subr.mxu1 %v21783_v32  ;;  %20830 = vmatpush3.msra.mxu0 %v12249_v34  ;;  %v18356_v34 = vld [vmem:[%s24750_s10 + $0x60] sm:$0xff] }
 0xcd0   :  { %20859 = vmatpush3.msra.mxu1 %v23722_v42  ;;  %20831 = vmatprep.subr.mxu0 %v21783_v32  ;;  %v12698_v42 = vand.u32 4294901760, %v12697_v6  ;;  %v24243_v45 = vand.u32 4294901760, %v18356_v34 }
 0xcd1   :  { %20860 = vmatprep.mubr.msk.f32.mxu1 %vm21784_vm4, %v21783_v32  ;;  %20870 = vmatprep.subr.mxu1 %v21783_v32 }
 0xcd2   :  { %20832 = vmatpush3.msra.mxu0 %v12256_v3  ;;  %20861 = vmatmul.mubr.f32.vlgmr.msra.gmra.mxu1 %v12694_v44  ;;  %v24252_v49 = vsub.f32 %v18356_v34, %v24243_v45 }
 0xcd3   :  { %20871 = vmatpush3.msra.mxu1 %v23684_v7  ;;  %20833 = vmatprep.subr.mxu0 %v21783_v32 }
 0xcd4   :  { %20872 = vmatprep.subr.mxu1 %v21783_v32  ;;  %20834 = vmatpush3.msra.mxu0 %v12263_v12  ;;  %v13221_v28 = vand.u32 4294901760, %v24252_v49 }
 0xcd5   :  { %20835 = vmatprep.mubr.msk.f32.mxu0 %vm21784_vm4, %v21783_v32  ;;  %20873 = vmatpush3.msra.mxu1 %v23682_v4 }
 0xcd6   :  { %20836 = vmatmul.mubr.f32.vlgmr.msra.gmra.mxu0 %v12205_v35  ;;  %20849 = vmatprep.subr.mxu0 %v21783_v32  ;;  %v13222_v8 = vsub.f32 %v24252_v49, %v13221_v28 }
 0xcd7   :  { %20874 = vmatprep.mubr.msk.f32.mxu1 %vm21784_vm4, %v21783_v32  ;;  %20884 = vmatprep.subr.mxu1 %v21783_v32 }
 0xcd8   :  { %20850 = vmatpush3.msra.mxu0 %v23684_v7  ;;  %20875 = vmatmul.mubr.f32.vlgmr.msra.gmra.mxu1 %v12696_v2  ;;  %v13223_v43 = vand.u32 4294901760, %v13222_v8 }
 0xcd9   :  { %20885 = vmatpush3.msra.mxu1 %v23684_v7  ;;  %20851 = vmatprep.subr.mxu0 %v21783_v32 }
 0xcda   :  { %20886 = vmatprep.subr.mxu1 %v21783_v32  ;;  %20852 = vmatpush3.msra.mxu0 %v23682_v4 }
 0xcdb   :  { %20853 = vmatprep.mubr.msk.f32.mxu0 %vm21784_vm4, %v21783_v32  ;;  %20887 = vmatpush3.msra.mxu1 %v23682_v4  ;;  %v18359_v4 = vld [vmem:[%s24750_s10 + $0x78] sm:$0xff] }
 0xcdc   :  { %20854 = vmatmul.mubr.f32.vlgmr.msra.gmra.mxu0 %v12698_v42  ;;  %20863 = vmatprep.subr.mxu0 %v21783_v32  ;;  %v24210_v7 = vand.u32 4294901760, %v18359_v4 }
 0xcdd   :  { %20864 = vmatpush3.msra.mxu0 %v23692_v22  ;;  %20867 = vmatprep.mubr.msk.f32.mxu0 %vm21784_vm4, %v21783_v32 }
 0xcde   :  { %20865 = vmatprep.subr.mxu0 %v21783_v32  ;;  %20888 = vmatprep.mubr.msk.f32.mxu1 %vm21784_vm4, %v21783_v32  ;;  %v24216_v22 = vsub.f32 %v18359_v4, %v24210_v7 }
 0xcdf   :  { %20866 = vmatpush3.msra.mxu0 %v23687_v11  ;;  %20889 = vmatmul.mubr.f32.vlgmr.msra.gmra.mxu1 %v12694_v44  ;;  %v18358_v11 = vld [vmem:[%s24750_s10 + $0x70] sm:$0xff] }
 0xce0   :  { %20868 = vmatmul.mubr.f32.vlgmr.msra.gmra.mxu0 %v12695_v19  ;;  %20877 = vmatprep.subr.mxu0 %v21783_v32  ;;  %v13200_v21 = vand.u32 4294901760, %v24216_v22 }
 0xce1   :  { %20878 = vmatpush3.msra.mxu0 %v23701_v54  ;;  %20881 = vmatprep.mubr.msk.f32.mxu0 %vm21784_vm4, %v21783_v32  ;;  %v18357_v54 = vld [vmem:[%s24750_s10 + $0x68] sm:$0xff] }
 0xce2   :  { %20879 = vmatprep.subr.mxu0 %v21783_v32  ;;  %20902 = vmatprep.subr.mxu1 %v21783_v32  ;;  %v24229_v24 = vand.u32 4294901760, %v18357_v54  ;;  %v13201_v1 = vsub.f32 %v24216_v22, %v13200_v21 }
 0xce3   :  { %20880 = vmatpush3.msra.mxu0 %v23697_v63  ;;  %20910 = vmatprep.mubr.msk.f32.mxu1 %vm21784_vm4, %v21783_v32  ;;  %v24218_v63 = vand.u32 4294901760, %v18358_v11 }
 0xce4   :  { %20882 = vmatmul.mubr.f32.vlgmr.msra.gmra.mxu0 %v12694_v44  ;;  %20891 = vmatprep.subr.mxu0 %v21783_v32  ;;  %v24241_v3 = vsub.f32 %v18357_v54, %v24229_v24  ;;  %v13202_v12 = vand.u32 4294901760, %v13201_v1 }
 0xce5   :  { %20899 = vmatprep.mubr.msk.f32.mxu0 %vm21784_vm4, %v21783_v32  ;;  %20892 = vmatpush3.msra.mxu0 %v24210_v7  ;;  %v24227_v48 = vsub.f32 %v18358_v11, %v24218_v63 }
 0xce6   :  { %20893 = vmatprep.subr.mxu0 %v21783_v32  ;;  %v13214_v33 = vand.u32 4294901760, %v24241_v3  ;;  %20903 = vmatpush3.msra.mxu1 %v13202_v12 }
 0xce7   :  { %20894 = vmatpush3.msra.mxu0 %v24218_v63  ;;  %v13207_v26 = vand.u32 4294901760, %v24227_v48  ;;  %20904 = vmatprep.subr.mxu1 %v21783_v32 }
 0xce8   :  { %20895 = vmatprep.subr.mxu0 %v21783_v32  ;;  %v13215_v29 = vsub.f32 %v24241_v3, %v13214_v33 }
 0xce9   :  { %20896 = vmatpush3.msra.mxu0 %v24229_v24  ;;  %v13208_v50 = vsub.f32 %v24227_v48, %v13207_v26 }
 0xcea   :  { %20897 = vmatprep.subr.mxu0 %v21783_v32  ;;  %v13216_v16 = vand.u32 4294901760, %v13215_v29 }
 0xceb   :  { %20898 = vmatpush3.msra.mxu0 %v24243_v45  ;;  %v13209_v15 = vand.u32 4294901760, %v13208_v50 }
 0xcec   :  { %20913 = vmatprep.subr.mxu0 %v21783_v32 }
 0xced   :  { %20905 = vmatpush3.msra.mxu1 %v13209_v15 }
 0xcee   :  { %20906 = vmatprep.subr.mxu1 %v21783_v32 }
 0xcef   :  { %20907 = vmatpush3.msra.mxu1 %v13216_v16 }
 0xcf0   :  { %20908 = vmatprep.subr.mxu1 %v21783_v32 }
 0xcf1   :  { %20909 = vmatpush3.msra.mxu1 %v13223_v43 }
 0xcf2   :  { %20924 = vmatprep.subr.mxu1 %v21783_v32 }
 0xd7a   :  { %v12302_v36 = vpop.f32.mrf.mxu1 }
 0xd7c   :  { %v20804_v55 = vpop.f32.mrf.mxu1 }
 0xd82   :  { %v12459_v56 = vpop.f32.mrf.mxu1 }
 0xd83   :  { %v12211_v60 = vpop.f32.mrf.mxu0 }
 0xd84   :  { %v12303_v9 = vadd.f32 %v12302_v36, %v12211_v60  ;;  %v20826_v23 = vpop.f32.mrf.mxu1 }
 0xd85   :  { %v20793_v5 = vpop.f32.mrf.mxu0 }
 0xd8b   :  { %v12382_v17 = vpop.f32.mrf.mxu0 }
 0xd8c   :  { %v12383_v53 = vadd.f32 %v12382_v17, %v12303_v9  ;;  %v12617_v51 = vpop.f32.mrf.mxu1 }
 0xd8d   :  { %v20815_v27 = vpop.f32.mrf.mxu0 }
 0xd8e   :  { %v20848_v0 = vpop.f32.mrf.mxu1  ;;  %v12460_v61 = vadd.f32 %v12459_v56, %v12383_v53 }
 0xd92   :  { %v12781_v14 = vpop.f32.mrf.mxu1 }
 0xd94   :  { %v20862_v38 = vpop.f32.mrf.mxu1 }
 0xd96   :  { %v12542_v10 = vpop.f32.mrf.mxu0 }
 0xd97   :  { %v12543_v39 = vadd.f32 %v12542_v10, %v12460_v61 }
 0xd98   :  { %v20837_v18 = vpop.f32.mrf.mxu0  ;;  %v12932_v58 = vpop.f32.mrf.mxu1 }
 0xd99   :  { %v12618_v30 = vadd.f32 %v12617_v51, %v12543_v39 }
 0xd9a   :  { %v20876_v13 = vpop.f32.mrf.mxu1 }
 0xd9b   :  { %v24268_v59 = vadd.f32 %v12618_v30, %v24119_v25  ;;  %v18361_v13 = vld [vmem:[#allocation19] ss:$0 sm:$0xff] }
 0xd9c   :  { %v12700_v31 = vpop.f32.mrf.mxu0 }
 0xd9d   :  { %v12782_v20 = vadd.f32 %v12781_v14, %v12700_v31 }
 0xd9e   :  { %v20855_v37 = vpop.f32.mrf.mxu0 }
 0xd9f   :  { %v13082_v52 = vpop.f32.mrf.mxu1 }
 0xda0   :  { %v12857_v35 = vpop.f32.mrf.mxu0 }
 0xda1   :  { %v12858_v41 = vadd.f32 %v12857_v35, %v12782_v20  ;;  %v20890_v46 = vpop.f32.mrf.mxu1 }
 0xda2   :  { %v20869_v40 = vpop.f32.mrf.mxu0 }
 0xda3   :  { %v12933_v47 = vadd.f32 %v12932_v58, %v12858_v41  ;;  %v18360_v58 = vld [vmem:[#allocation17] ss:$0 sm:$0xff]  ;;  %v13630_v41 = vld [vmem:[%s24753_s13] sm:$0xf] }
 0xda4   :  { %v13009_v62 = vpop.f32.mrf.mxu0  ;;  %v13632_v46 = vsel %vm1649_vm1, %v13630_v41, 0 }
 0xda5   :  { %v13010_v57 = vadd.f32 %v13009_v62, %v12933_v47  ;;  %v13700_v40 = vand.u32 4294901760, %v13632_v46  ;;  %v18363_v62 = vld [vmem:[%s24753_s13 + $0x4] sm:$0xf] }
 0xda6   :  { %v20883_v44 = vpop.f32.mrf.mxu0 }
 0xda7   :  { %v13083_v19 = vadd.f32 %v13082_v52, %v13010_v57  ;;  %v13701_v47 = vsub.f32 %v13632_v46, %v13700_v40  ;;  %v14087_v44 = vsel %vm1649_vm1, %v18363_v62, 0 }
 0xda9   :  { %v13092_v2 = vsel %vm5376_vm2, %v13083_v19, 0  ;;  %v13702_v57 = vand.u32 4294901760, %v13701_v47 }
 0xdaa   :  { %v13163_v6 = vand.u32 4294901760, %v13092_v2 }
 0xdab   :  { %v13703_v19 = vsub.f32 %v13701_v47, %v13702_v57 }
 0xdac   :  { %v13164_v42 = vsub.f32 %v13092_v2, %v13163_v6  ;;  %20911 = vmatmul.mubr.f32.vlgmr.msra.gmra.mxu1 %v13163_v6  ;;  %v14155_v2 = vand.u32 4294901760, %v14087_v44 }
 0xdad   :  { %20925 = vmatpush3.msra.mxu1 %v24210_v7  ;;  %20932 = vmatprep.mubr.msk.f32.mxu1 %vm21784_vm4, %v21783_v32 }
 0xdae   :  { %v13165_v25 = vand.u32 4294901760, %v13164_v42  ;;  %20926 = vmatprep.subr.mxu1 %v21783_v32 }
 0xdaf   :  { %20927 = vmatpush3.msra.mxu1 %v24218_v63 }
 0xdb0   :  { %v13166_v4 = vsub.f32 %v13164_v42, %v13165_v25  ;;  %20928 = vmatprep.subr.mxu1 %v21783_v32 }
 0xdb1   :  { %20929 = vmatpush3.msra.mxu1 %v24229_v24 }
 0xdb2   :  { %v13167_v11 = vand.u32 4294901760, %v13166_v4  ;;  %20930 = vmatprep.subr.mxu1 %v21783_v32 }
 0xdb3   :  { %20931 = vmatpush3.msra.mxu1 %v24243_v45 }
 0xdb4   :  { %20933 = vmatmul.mubr.f32.vlgmr.msra.gmra.mxu1 %v13165_v25  ;;  %20946 = vmatprep.subr.mxu1 %v21783_v32  ;;  %v13704_v25 = vand.u32 4294901760, %v13703_v19 }
 0xdb5   :  { %20900 = vmatmul.mubr.f32.vlgmr.msra.gmra.mxu0 %v13167_v11  ;;  %20947 = vmatpush3.msra.mxu1 %v24210_v7  ;;  %v14156_v11 = vsub.f32 %v14087_v44, %v14155_v2 }
 0xdb6   :  { %20914 = vmatpush3.msra.mxu0 %v24216_v22  ;;  %20948 = vmatprep.subr.mxu1 %v21783_v32 }
 0xdb7   :  { %20915 = vmatprep.subr.mxu0 %v21783_v32  ;;  %20949 = vmatpush3.msra.mxu1 %v24218_v63 }
 0xdb8   :  { %20916 = vmatpush3.msra.mxu0 %v24227_v48  ;;  %20950 = vmatprep.subr.mxu1 %v21783_v32 }
 0xdb9   :  { %20917 = vmatprep.subr.mxu0 %v21783_v32  ;;  %20951 = vmatpush3.msra.mxu1 %v24229_v24 }
 0xdba   :  { %20918 = vmatpush3.msra.mxu0 %v24241_v3  ;;  %20952 = vmatprep.subr.mxu1 %v21783_v32 }
 0xdbb   :  { %20919 = vmatprep.subr.mxu0 %v21783_v32  ;;  %20921 = vmatprep.mubr.msk.f32.mxu0 %vm21784_vm4, %v21783_v32 }
 0xdbc   :  { %20920 = vmatpush3.msra.mxu0 %v24252_v49  ;;  %20953 = vmatpush3.msra.mxu1 %v24243_v45 }
 0xdbd   :  { %20954 = vmatprep.mubr.msk.f32.mxu1 %vm21784_vm4, %v21783_v32  ;;  %20922 = vmatmul.mubr.f32.vlgmr.msra.gmra.mxu0 %v13164_v42 }
 0xdbe   :  { %20935 = vmatprep.subr.mxu0 %v21783_v32  ;;  %20955 = vmatmul.mubr.f32.vlgmr.msra.gmra.mxu1 %v13163_v6 }
 0xdbf   :  { %20936 = vmatpush3.msra.mxu0 %v13200_v21  ;;  %20943 = vmatprep.mubr.msk.f32.mxu0 %vm21784_vm4, %v21783_v32 }
 0xdc0   :  { %20937 = vmatprep.subr.mxu0 %v21783_v32  ;;  %20962 = vmatprep.subr.mxu1 %v21783_v32 }
 0xdc1   :  { %20938 = vmatpush3.msra.mxu0 %v13207_v26  ;;  %20964 = vmatprep.mubr.msk.f32.mxu1 %vm21784_vm4, %v21783_v32 }
 0xdc2   :  { %20939 = vmatprep.subr.mxu0 %v21783_v32 }
 0xdc3   :  { %20940 = vmatpush3.msra.mxu0 %v13214_v33 }
 0xdc4   :  { %20941 = vmatprep.subr.mxu0 %v21783_v32 }
 0xdc5   :  { %20942 = vmatpush3.msra.mxu0 %v13221_v28 }
 0xdc6   :  { %20944 = vmatmul.mubr.f32.vlgmr.msra.gmra.mxu0 %v13163_v6  ;;  %20957 = vmatprep.subr.mxu0 %v21783_v32 }
 0xdc7   :  { %20959 = vmatprep.mubr.msk.f32.mxu0 %vm21784_vm4, %v21783_v32 }
 0xe6c   :  { %v13260_v7 = vpop.f32.mrf.mxu1 }
 0xe6e   :  { %v20912_v22 = vpop.f32.mrf.mxu1 }
 0xe74   :  { %v13417_v63 = vpop.f32.mrf.mxu1 }
 0xe75   :  { %v13169_v54 = vpop.f32.mrf.mxu0 }
 0xe76   :  { %v20934_v21 = vpop.f32.mrf.mxu1  ;;  %v13261_v1 = vadd.f32 %v13260_v7, %v13169_v54 }
 0xe77   :  { %v20901_v48 = vpop.f32.mrf.mxu0 }
 0xe7d   :  { %v13340_v24 = vpop.f32.mrf.mxu0 }
 0xe7e   :  { %v13575_v34 = vpop.f32.mrf.mxu1  ;;  %v13341_v45 = vadd.f32 %v13340_v24, %v13261_v1 }
 0xe7f   :  { %v20923_v26 = vpop.f32.mrf.mxu0 }
 0xe80   :  { %v20956_v3 = vpop.f32.mrf.mxu1  ;;  %v13418_v12 = vadd.f32 %v13417_v63, %v13341_v45  ;;  %v14157_v63 = vand.u32 4294901760, %v14156_v11  ;;  %v14538_v26 = vld [vmem:[#allocation20 + $0x30] sm:$0xff] }
 0xe81   :  { %v24372_v45 = vand.u32 4294901760, %v14538_v26 }
 0xe82   :  { %v14158_v48 = vsub.f32 %v14156_v11, %v14157_v63 }
 0xe84   :  { %v14159_v24 = vand.u32 4294901760, %v14158_v48  ;;  %v14081_v48 = vld [vmem:[#allocation20 + $0x8] sm:$0xff] }
 0xe86   :  { %v13500_v50 = vpop.f32.mrf.mxu0 }
 0xe87   :  { %v13501_v33 = vadd.f32 %v13500_v50, %v13418_v12  ;;  %v14537_v12 = vld [vmem:[#allocation20 + $0x28] sm:$0xff] }
 0xe88   :  { %v20945_v49 = vpop.f32.mrf.mxu0 }
 0xe89   :  { %v13576_v15 = vadd.f32 %v13575_v34, %v13501_v33  ;;  %v14539_v34 = vld [vmem:[#allocation20 + $0x38] sm:$0xff]  ;;  %v24378_v33 = vsub.f32 %v14538_v26, %v24372_v45  ;;  %v24380_v49 = vand.u32 4294901760, %v14537_v12  ;;  %v14080_v26 = vld [vmem:[#allocation20] sm:$0xff] }
 0xe8a   :  { %v24367_v1 = vand.u32 4294901760, %v14539_v34 }
 0xe8b   :  { %v13579_v29 = vadd.f32 %v13576_v15, %v24268_v59  ;;  %v14536_v15 = vld [vmem:[#allocation20 + $0x20] sm:$0xff] }
 0xe8c   :  { %v24370_v3 = vsub.f32 %v14539_v34, %v24367_v1 }
 0xe8d   :  { %v13580_v28 = vsel %vm284_vm0, %v13579_v29, 0.0  ;;  %v13588_v16 = vmul.f32 %v13579_v29, %v13579_v29 }
 0xe8e   :  { %v13581_v8 = vrot.slane %v13580_v28, 4  ;;  %v14649_v50 = vand.u32 4294901760, %v24370_v3 }
 0xe8f   :  { %v13589_v43 = vsel %vm284_vm0, %v13588_v16, 0.0  ;;  %v24389_v16 = vsub.f32 %v14537_v12, %v24380_v49 }
 0xe90   :  { %v13582_v36 = vadd.f32 %v13581_v8, %v13580_v28  ;;  %v13590_v55 = vrot.slane %v13589_v43, 4  ;;  %v14656_v28 = vand.u32 4294901760, %v24378_v33  ;;  %v24391_v8 = vand.u32 4294901760, %v14536_v15 }
 0xe92   :  { %v13583_v56 = vrot.slane %v13582_v36, 2  ;;  %v13591_v60 = vadd.f32 %v13590_v55, %v13589_v43  ;;  %v14663_v55 = vand.u32 4294901760, %v24389_v16 }
 0xe94   :  { %v13584_v9 = vadd.f32 %v13583_v56, %v13582_v36  ;;  %v13592_v23 = vrot.slane %v13591_v60, 2  ;;  %v14657_v36 = vsub.f32 %v24378_v33, %v14656_v28  ;;  %v24400_v56 = vsub.f32 %v14536_v15, %v24391_v8 }
 0xe96   :  { %v13585_v5 = vrot.slane %v13584_v9, 1  ;;  %v13593_v17 = vadd.f32 %v13592_v23, %v13591_v60  ;;  %v14658_v60 = vand.u32 4294901760, %v14657_v36  ;;  %v14670_v23 = vand.u32 4294901760, %v24400_v56 }
 0xe98   :  { %v13586_v53 = vadd.f32 %v13585_v5, %v13584_v9  ;;  %v13594_v51 = vrot.slane %v13593_v17, 1  ;;  %v14664_v9 = vsub.f32 %v24389_v16, %v14663_v55 }
 0xe9a   :  { %v13587_v27 = vmul.f32 0.125, %v13586_v53  ;;  %v13595_v0 = vadd.f32 %v13594_v51, %v13593_v17  ;;  %v14665_v5 = vand.u32 4294901760, %v14664_v9  ;;  %v14671_v17 = vsub.f32 %v24400_v56, %v14670_v23 }
 0xe9b   :  { %v24440_v9 = vand.u32 4294901760, %v14080_v26 }
 0xe9c   :  { %v13596_v61 = vmul.f32 0.125, %v13595_v0  ;;  %v13597_v14 = vmul.f32 %v13587_v27, %v13587_v27  ;;  %v13599_v39 = vsub.f32 %v13579_v29, %v13587_v27  ;;  %v14650_v29 = vsub.f32 %v24370_v3, %v14649_v50 }
 0xe9d   :  { %v14672_v53 = vand.u32 4294901760, %v14671_v17 }
 0xe9e   :  { %v13598_v38 = vsub.f32 %v13596_v61, %v13597_v14  ;;  %v14651_v43 = vand.u32 4294901760, %v14650_v29 }
 0xea0   :  { %v13600_v10 = vadd.f32 1e-05, %v13598_v38 }
 0xea2   :  { %21392 = vrsqrt.f32 %v13600_v10 }
 0xeaf   :  { %v21393_v18 = vpop.eup %21392 }
 0xeb0   :  { %v13602_v30 = vmul.f32 %v21393_v18, %v13599_v39 }
 0xeb2   :  { %v13610_v59 = vmul.f32 %v18360_v58, %v13602_v30 }
 0xeb4   :  { %v13618_v31 = vadd.f32 %v18361_v13, %v13610_v59 }
 0xeb6   :  { %v18362_v37 = vmul.f32 -1.442695, %v13618_v31 }
 0xeb8   :  { %21394 = vpow2.f32 %v18362_v37 }
 0xec5   :  { %v21395_v20 = vpop.eup %21394 }
 0xec6   :  { %v13622_v52 = vadd.f32 1.0, %v21395_v20 }
 0xec8   :  { %21396 = vrcp.f32 %v13622_v52 }
 0xed5   :  { %v21397_v35 = vpop.eup %21396 }
 0xed6   :  { %13626 = vrot.lane.b32.xlu0 %v21397_v35, %s21785_s27 }
 0xf48   :  { %v13627_v6 = vpop.permute.xlu0 %13626 }
 0xf49   :  { %v13629_v42 = vmul.f32 %v13627_v6, %v13618_v31 }
 0xf4b   :  { %v13665_v4 = vand.u32 4294901760, %v13629_v42 }
 0xf4d   :  { %v13742_v7 = vsub.f32 %v13629_v42, %v13665_v4  ;;  %20958 = vmatpush3.msra.mxu0 %v13665_v4 }
 0xf4e   :  { %20960 = vmatmul.mubr.f32.vlgmr.msra.gmra.mxu0 %v13704_v25  ;;  %20967 = vmatprep.subr.mxu0 %v21783_v32 }
 0xf4f   :  { %20968 = vmatpush3.msra.mxu0 %v13742_v7  ;;  %20969 = vmatprep.mubr.msk.f32.mxu0 %vm21784_vm4, %v21783_v32  ;;  %v13743_v22 = vand.u32 4294901760, %v13742_v7 }
 0xf50   :  { %20977 = vmatprep.subr.mxu0 %v21783_v32 }
 0xf51   :  { %v13744_v54 = vsub.f32 %v13742_v7, %v13743_v22 }
 0xf52   :  { %20970 = vmatmul.mubr.f32.vlgmr.msra.gmra.mxu0 %v13701_v47 }
 0xf53   :  { %20978 = vmatpush3.msra.mxu0 %v13743_v22  ;;  %v13745_v21 = vand.u32 4294901760, %v13744_v54  ;;  %20979 = vmatprep.mubr.msk.f32.mxu0 %vm21784_vm4, %v21783_v32 }
 0xf54   :  { %20987 = vmatprep.subr.mxu0 %v21783_v32 }
 0xf55   :  { %20963 = vmatpush3.msra.mxu1 %v13745_v21 }
 0xf56   :  { %20965 = vmatmul.mubr.f32.vlgmr.msra.gmra.mxu1 %v13700_v40  ;;  %20972 = vmatprep.subr.mxu1 %v21783_v32 }
 0xf57   :  { %20980 = vmatmul.mubr.f32.vlgmr.msra.gmra.mxu0 %v13700_v40  ;;  %20973 = vmatpush3.msra.mxu1 %v13665_v4 }
 0xf58   :  { %20988 = vmatpush3.msra.mxu0 %v13665_v4  ;;  %20974 = vmatprep.mubr.msk.f32.mxu1 %vm21784_vm4, %v21783_v32 }
 0xf59   :  { %20982 = vmatprep.subr.mxu1 %v21783_v32  ;;  %20989 = vmatprep.mubr.msk.f32.mxu0 %vm21784_vm4, %v21783_v32 }
 0xf5a   :  { %20997 = vmatprep.subr.mxu0 %v21783_v32  ;;  %20975 = vmatmul.mubr.f32.vlgmr.msra.gmra.mxu1 %v13702_v57 }
 0xf5b   :  { %20983 = vmatpush3.msra.mxu1 %v13665_v4  ;;  %20990 = vmatmul.mubr.f32.vlgmr.msra.gmra.mxu0 %v14159_v24 }
 0xf5c   :  { %20998 = vmatpush3.msra.mxu0 %v13742_v7  ;;  %20984 = vmatprep.mubr.msk.f32.mxu1 %vm21784_vm4, %v21783_v32 }
 0xf5d   :  { %20992 = vmatprep.subr.mxu1 %v21783_v32  ;;  %20999 = vmatprep.mubr.msk.f32.mxu0 %vm21784_vm4, %v21783_v32 }
 0xf5e   :  { %21007 = vmatprep.subr.mxu0 %v21783_v32  ;;  %20985 = vmatmul.mubr.f32.vlgmr.msra.gmra.mxu1 %v13700_v40 }
 0xf5f   :  { %20993 = vmatpush3.msra.mxu1 %v13745_v21  ;;  %21000 = vmatmul.mubr.f32.vlgmr.msra.gmra.mxu0 %v14156_v11  ;;  %v14083_v11 = vld [vmem:[#allocation20 + $0x18] sm:$0xff] }
 0xf60   :  { %21008 = vmatpush3.msra.mxu0 %v13743_v22  ;;  %20994 = vmatprep.mubr.msk.f32.mxu1 %vm21784_vm4, %v21783_v32  ;;  %v14082_v22 = vld [vmem:[#allocation20 + $0x10] sm:$0xff]  ;;  %v24420_v21 = vand.u32 4294901760, %v14083_v11 }
 0xf61   :  { %21002 = vmatprep.subr.mxu1 %v21783_v32  ;;  %21009 = vmatprep.mubr.msk.f32.mxu0 %vm21784_vm4, %v21783_v32  ;;  %v24426_v34 = vand.u32 4294901760, %v14082_v22 }
 0xf62   :  { %20995 = vmatmul.mubr.f32.vlgmr.msra.gmra.mxu1 %v14155_v2  ;;  %21017 = vmatprep.subr.mxu0 %v21783_v32  ;;  %v24431_v29 = vsub.f32 %v14083_v11, %v24420_v21 }
 0xf63   :  { %21003 = vmatpush3.msra.mxu1 %v13665_v4  ;;  %21004 = vmatprep.mubr.msk.f32.mxu1 %vm21784_vm4, %v21783_v32 }
 0xf64   :  { %21012 = vmatprep.subr.mxu1 %v21783_v32  ;;  %21010 = vmatmul.mubr.f32.vlgmr.msra.gmra.mxu0 %v14155_v2  ;;  %v15137_v17 = vand.u32 4294901760, %v24431_v29 }
 0xf65   :  { %21025 = vmatprep.mubr.msk.f32.mxu0 %vm21784_vm4, %v21783_v32  ;;  %21018 = vmatpush3.msra.mxu0 %v24367_v1 }
 0xf66   :  { %21005 = vmatmul.mubr.f32.vlgmr.msra.gmra.mxu1 %v14157_v63  ;;  %21019 = vmatprep.subr.mxu0 %v21783_v32 }
 0xf67   :  { %21013 = vmatpush3.msra.mxu1 %v13665_v4  ;;  %21014 = vmatprep.mubr.msk.f32.mxu1 %vm21784_vm4, %v21783_v32 }
 0xf68   :  { %21028 = vmatprep.subr.mxu1 %v21783_v32  ;;  %21020 = vmatpush3.msra.mxu0 %v24372_v45 }
 0xf69   :  { %21021 = vmatprep.subr.mxu0 %v21783_v32 }
 0xf6a   :  { %21015 = vmatmul.mubr.f32.vlgmr.msra.gmra.mxu1 %v14155_v2  ;;  %21022 = vmatpush3.msra.mxu0 %v24380_v49 }
 0xf6b   :  { %21036 = vmatprep.mubr.msk.f32.mxu1 %vm21784_vm4, %v21783_v32  ;;  %21023 = vmatprep.subr.mxu0 %v21783_v32 }
 0xf6c   :  { %21024 = vmatpush3.msra.mxu0 %v24391_v8  ;;  %21029 = vmatpush3.msra.mxu1 %v14651_v43  ;;  %v24433_v43 = vand.u32 4294901760, %v14081_v48 }
 0xf6d   :  { %21039 = vmatprep.subr.mxu0 %v21783_v32  ;;  %21030 = vmatprep.subr.mxu1 %v21783_v32 }
 0xf6e   :  { %21031 = vmatpush3.msra.mxu1 %v14658_v60  ;;  %v24438_v60 = vsub.f32 %v14082_v22, %v24426_v34 }
 0xf6f   :  { %21032 = vmatprep.subr.mxu1 %v21783_v32 }
 0xf70   :  { %21033 = vmatpush3.msra.mxu1 %v14665_v5 }
 0xf71   :  { %21034 = vmatprep.subr.mxu1 %v21783_v32 }
 0xf72   :  { %21035 = vmatpush3.msra.mxu1 %v14672_v53  ;;  %v24446_v53 = vsub.f32 %v14081_v48, %v24433_v43 }
 0xf73   :  { %21050 = vmatprep.subr.mxu1 %v21783_v32 }
0x100e   :  { %v13706_v51 = vpop.f32.mrf.mxu0 }
0x1010   :  { %v20961_v27 = vpop.f32.mrf.mxu0 }
0x1011   :  { %v24453_v27 = vsub.f32 %v14080_v26, %v24440_v9 }
0x1012   :  { %v13856_v0 = vpop.f32.mrf.mxu0 }
0x1014   :  { %v20971_v61 = vpop.f32.mrf.mxu0 }
0x1015   :  { %v15151_v61 = vand.u32 4294901760, %v24446_v53 }
0x1016   :  { %v13782_v14 = vpop.f32.mrf.mxu1 }
0x1017   :  { %v14004_v38 = vpop.f32.mrf.mxu0  ;;  %v13783_v42 = vadd.f32 %v13782_v14, %v13706_v51  ;;  %v15144_v51 = vand.u32 4294901760, %v24438_v60  ;;  %v15158_v14 = vand.u32 4294901760, %v24453_v27 }
0x1018   :  { %v20966_v10 = vpop.f32.mrf.mxu1 }
0x1019   :  { %v20981_v39 = vpop.f32.mrf.mxu0  ;;  %v13857_v63 = vadd.f32 %v13856_v0, %v13783_v42  ;;  %v15152_v10 = vsub.f32 %v24446_v53, %v15151_v61 }
0x101a   :  { %v13930_v18 = vpop.f32.mrf.mxu1 }
0x101b   :  { %v14161_v58 = vpop.f32.mrf.mxu0  ;;  %v13931_v12 = vadd.f32 %v13930_v18, %v13857_v63  ;;  %v15159_v18 = vsub.f32 %v24453_v27, %v15158_v14 }
0x101c   :  { %v20976_v30 = vpop.f32.mrf.mxu1 }
0x101d   :  { %v20991_v13 = vpop.f32.mrf.mxu0  ;;  %v14005_v5 = vadd.f32 %v14004_v38, %v13931_v12  ;;  %v15160_v30 = vand.u32 4294901760, %v15159_v18 }
0x101e   :  { %v14076_v59 = vpop.f32.mrf.mxu1 }
0x101f   :  { %v14311_v31 = vpop.f32.mrf.mxu0  ;;  %v14077_v0 = vadd.f32 %v14076_v59, %v14005_v5 }
0x1020   :  { %v20986_v37 = vpop.f32.mrf.mxu1 }
0x1021   :  { %v21001_v20 = vpop.f32.mrf.mxu0  ;;  %v15029_v38 = vsel %vm5376_vm2, %v14077_v0, 0 }
0x1022   :  { %v14237_v52 = vpop.f32.mrf.mxu1 }
0x1023   :  { %v14238_v35 = vadd.f32 %v14237_v52, %v14161_v58  ;;  %v24487_v58 = vand.u32 4294901760, %v15029_v38 }
0x1024   :  { %v20996_v41 = vpop.f32.mrf.mxu1  ;;  %v14459_v46 = vpop.f32.mrf.mxu0 }
0x1025   :  { %v14312_v40 = vadd.f32 %v14311_v31, %v14238_v35  ;;  %v15101_v13 = vsub.f32 %v15029_v38, %v24487_v58 }
0x1026   :  { %v14385_v47 = vpop.f32.mrf.mxu1  ;;  %v21011_v62 = vpop.f32.mrf.mxu0 }
0x1027   :  { %v14386_v57 = vadd.f32 %v14385_v47, %v14312_v40 }
0x1028   :  { %v21006_v44 = vpop.f32.mrf.mxu1 }
0x1029   :  { %v14460_v19 = vadd.f32 %v14459_v46, %v14386_v57 }
0x102a   :  { %v14531_v2 = vpop.f32.mrf.mxu1 }
0x102b   :  { %v14532_v6 = vadd.f32 %v14531_v2, %v14460_v19 }
0x102c   :  { %v21016_v25 = vpop.f32.mrf.mxu1 }
0x102d   :  { %v14541_v4 = vsel %vm5376_vm2, %v14532_v6, 0 }
0x102e   :  { %v24416_v7 = vand.u32 4294901760, %v14541_v4 }
0x1030   :  { %v14613_v54 = vsub.f32 %v14541_v4, %v24416_v7  ;;  %21037 = vmatmul.mubr.f32.vlgmr.msra.gmra.mxu1 %v24416_v7 }
0x1031   :  { %21051 = vmatpush3.msra.mxu1 %v24367_v1  ;;  %21058 = vmatprep.mubr.msk.f32.mxu1 %vm21784_vm4, %v21783_v32 }
0x1032   :  { %v14614_v24 = vand.u32 4294901760, %v14613_v54  ;;  %21052 = vmatprep.subr.mxu1 %v21783_v32 }
0x1033   :  { %21053 = vmatpush3.msra.mxu1 %v24372_v45 }
0x1034   :  { %v14615_v15 = vsub.f32 %v14613_v54, %v14614_v24  ;;  %21054 = vmatprep.subr.mxu1 %v21783_v32 }
0x1035   :  { %21055 = vmatpush3.msra.mxu1 %v24380_v49 }
0x1036   :  { %v14616_v36 = vand.u32 4294901760, %v14615_v15  ;;  %21056 = vmatprep.subr.mxu1 %v21783_v32 }
0x1037   :  { %21057 = vmatpush3.msra.mxu1 %v24391_v8 }
0x1038   :  { %21059 = vmatmul.mubr.f32.vlgmr.msra.gmra.mxu1 %v14614_v24  ;;  %21072 = vmatprep.subr.mxu1 %v21783_v32 }
0x1039   :  { %21026 = vmatmul.mubr.f32.vlgmr.msra.gmra.mxu0 %v14616_v36  ;;  %21073 = vmatpush3.msra.mxu1 %v24367_v1  ;;  %v15138_v1 = vsub.f32 %v24431_v29, %v15137_v17 }
0x103a   :  { %21040 = vmatpush3.msra.mxu0 %v24370_v3  ;;  %21074 = vmatprep.subr.mxu1 %v21783_v32  ;;  %v15102_v3 = vand.u32 4294901760, %v15101_v13 }
0x103b   :  { %21041 = vmatprep.subr.mxu0 %v21783_v32  ;;  %21075 = vmatpush3.msra.mxu1 %v24372_v45  ;;  %v15145_v45 = vsub.f32 %v24438_v60, %v15144_v51 }
0x103c   :  { %21042 = vmatpush3.msra.mxu0 %v24378_v33  ;;  %21076 = vmatprep.subr.mxu1 %v21783_v32 }
0x103d   :  { %21043 = vmatprep.subr.mxu0 %v21783_v32  ;;  %21077 = vmatpush3.msra.mxu1 %v24380_v49  ;;  %v15139_v49 = vand.u32 4294901760, %v15138_v1  ;;  %v15146_v39 = vand.u32 4294901760, %v15145_v45 }
0x103e   :  { %21044 = vmatpush3.msra.mxu0 %v24389_v16  ;;  %21078 = vmatprep.subr.mxu1 %v21783_v32 }
0x103f   :  { %21045 = vmatprep.subr.mxu0 %v21783_v32  ;;  %21047 = vmatprep.mubr.msk.f32.mxu0 %vm21784_vm4, %v21783_v32 }
0x1040   :  { %21046 = vmatpush3.msra.mxu0 %v24400_v56  ;;  %21079 = vmatpush3.msra.mxu1 %v24391_v8  ;;  %v15153_v8 = vand.u32 4294901760, %v15152_v10 }
0x1041   :  { %21080 = vmatprep.mubr.msk.f32.mxu1 %vm21784_vm4, %v21783_v32  ;;  %21048 = vmatmul.mubr.f32.vlgmr.msra.gmra.mxu0 %v14613_v54 }
0x1042   :  { %21061 = vmatprep.subr.mxu0 %v21783_v32  ;;  %21081 = vmatmul.mubr.f32.vlgmr.msra.gmra.mxu1 %v24416_v7 }
0x1043   :  { %21094 = vmatprep.subr.mxu1 %v21783_v32  ;;  %21062 = vmatpush3.msra.mxu0 %v14649_v50  ;;  %v15103_v50 = vsub.f32 %v15101_v13, %v15102_v3 }
0x1044   :  { %21095 = vmatpush3.msra.mxu1 %v15139_v49  ;;  %21063 = vmatprep.subr.mxu0 %v21783_v32 }
0x1045   :  { %21096 = vmatprep.subr.mxu1 %v21783_v32  ;;  %21064 = vmatpush3.msra.mxu0 %v14656_v28  ;;  %v15104_v33 = vand.u32 4294901760, %v15103_v50 }
0x1046   :  { %21097 = vmatpush3.msra.mxu1 %v15146_v39  ;;  %21065 = vmatprep.subr.mxu0 %v21783_v32 }
0x1047   :  { %21098 = vmatprep.subr.mxu1 %v21783_v32  ;;  %21066 = vmatpush3.msra.mxu0 %v14663_v55 }
0x1048   :  { %21099 = vmatpush3.msra.mxu1 %v15153_v8  ;;  %21067 = vmatprep.subr.mxu0 %v21783_v32  ;;  %v18364_v8 = vld [vmem:[#allocation22] ss:$0 sm:$0xff] }
0x1049   :  { %21100 = vmatprep.subr.mxu1 %v21783_v32  ;;  %21068 = vmatpush3.msra.mxu0 %v14670_v23 }
0x104a   :  { %21069 = vmatprep.mubr.msk.f32.mxu0 %vm21784_vm4, %v21783_v32  ;;  %21101 = vmatpush3.msra.mxu1 %v15160_v30 }
0x104b   :  { %21102 = vmatprep.mubr.msk.f32.mxu1 %vm21784_vm4, %v21783_v32  ;;  %21070 = vmatmul.mubr.f32.vlgmr.msra.gmra.mxu0 %v24416_v7 }
0x104c   :  { %21083 = vmatprep.subr.mxu0 %v21783_v32  ;;  %21103 = vmatmul.mubr.f32.vlgmr.msra.gmra.mxu1 %v24487_v58 }
0x104d   :  { %21116 = vmatprep.subr.mxu1 %v21783_v32  ;;  %21084 = vmatpush3.msra.mxu0 %v24420_v21 }
0x104e   :  { %21117 = vmatpush3.msra.mxu1 %v24420_v21  ;;  %21085 = vmatprep.subr.mxu0 %v21783_v32 }
0x104f   :  { %21118 = vmatprep.subr.mxu1 %v21783_v32  ;;  %21086 = vmatpush3.msra.mxu0 %v24426_v34 }
0x1050   :  { %21119 = vmatpush3.msra.mxu1 %v24426_v34  ;;  %21087 = vmatprep.subr.mxu0 %v21783_v32 }
0x1051   :  { %21120 = vmatprep.subr.mxu1 %v21783_v32  ;;  %21088 = vmatpush3.msra.mxu0 %v24433_v43 }
0x1052   :  { %21121 = vmatpush3.msra.mxu1 %v24433_v43  ;;  %21089 = vmatprep.subr.mxu0 %v21783_v32 }
0x1053   :  { %21122 = vmatprep.subr.mxu1 %v21783_v32  ;;  %21090 = vmatpush3.msra.mxu0 %v24440_v9 }
0x1054   :  { %21091 = vmatprep.mubr.msk.f32.mxu0 %vm21784_vm4, %v21783_v32  ;;  %21123 = vmatpush3.msra.mxu1 %v24440_v9 }
0x1055   :  { %21124 = vmatprep.mubr.msk.f32.mxu1 %vm21784_vm4, %v21783_v32  ;;  %21092 = vmatmul.mubr.f32.vlgmr.msra.gmra.mxu0 %v15104_v33 }
0x1056   :  { %21105 = vmatprep.subr.mxu0 %v21783_v32  ;;  %21125 = vmatmul.mubr.f32.vlgmr.msra.gmra.mxu1 %v15102_v3 }
0x1057   :  { %21138 = vmatprep.subr.mxu1 %v21783_v32  ;;  %21106 = vmatpush3.msra.mxu0 %v24431_v29 }
0x1058   :  { %21139 = vmatpush3.msra.mxu1 %v24420_v21  ;;  %21107 = vmatprep.subr.mxu0 %v21783_v32 }
0x1059   :  { %21140 = vmatprep.subr.mxu1 %v21783_v32  ;;  %21108 = vmatpush3.msra.mxu0 %v24438_v60 }
0x105a   :  { %21141 = vmatpush3.msra.mxu1 %v24426_v34  ;;  %21109 = vmatprep.subr.mxu0 %v21783_v32 }
0x105b   :  { %21142 = vmatprep.subr.mxu1 %v21783_v32  ;;  %21110 = vmatpush3.msra.mxu0 %v24446_v53 }
0x105c   :  { %21143 = vmatpush3.msra.mxu1 %v24433_v43  ;;  %21111 = vmatprep.subr.mxu0 %v21783_v32 }
0x105d   :  { %21144 = vmatprep.subr.mxu1 %v21783_v32  ;;  %21112 = vmatpush3.msra.mxu0 %v24453_v27 }
0x105e   :  { %21113 = vmatprep.mubr.msk.f32.mxu0 %vm21784_vm4, %v21783_v32  ;;  %21145 = vmatpush3.msra.mxu1 %v24440_v9 }
0x105f   :  { %21146 = vmatprep.mubr.msk.f32.mxu1 %vm21784_vm4, %v21783_v32  ;;  %21114 = vmatmul.mubr.f32.vlgmr.msra.gmra.mxu0 %v15101_v13  ;;  %v18365_v13 = vld [vmem:[#allocation23] ss:$0 sm:$0xff] }
0x1060   :  { %21127 = vmatprep.subr.mxu0 %v21783_v32  ;;  %21147 = vmatmul.mubr.f32.vlgmr.msra.gmra.mxu1 %v24487_v58 }
0x1061   :  { %21128 = vmatpush3.msra.mxu0 %v15137_v17  ;;  %21135 = vmatprep.mubr.msk.f32.mxu0 %vm21784_vm4, %v21783_v32 }
0x1062   :  { %21129 = vmatprep.subr.mxu0 %v21783_v32  ;;  %21154 = vmatprep.subr.mxu1 %v21783_v32 }
0x1063   :  { %21130 = vmatpush3.msra.mxu0 %v15144_v51  ;;  %21156 = vmatprep.mubr.msk.f32.mxu1 %vm21784_vm4, %v21783_v32 }
0x1064   :  { %21131 = vmatprep.subr.mxu0 %v21783_v32 }
0x1065   :  { %21132 = vmatpush3.msra.mxu0 %v15151_v61 }
0x1066   :  { %21133 = vmatprep.subr.mxu0 %v21783_v32 }
0x1067   :  { %21134 = vmatpush3.msra.mxu0 %v15158_v14 }
0x1068   :  { %21136 = vmatmul.mubr.f32.vlgmr.msra.gmra.mxu0 %v24487_v58  ;;  %21149 = vmatprep.subr.mxu0 %v21783_v32 }
0x1069   :  { %21151 = vmatprep.mubr.msk.f32.mxu0 %vm21784_vm4, %v21783_v32 }
0x10f0   :  { %v14709_v28 = vpop.f32.mrf.mxu1 }
0x10f2   :  { %v21038_v16 = vpop.f32.mrf.mxu1 }
0x10f8   :  { %v14866_v55 = vpop.f32.mrf.mxu1 }
0x10f9   :  { %v14618_v56 = vpop.f32.mrf.mxu0 }
0x10fa   :  { %v21060_v23 = vpop.f32.mrf.mxu1  ;;  %v14710_v47 = vadd.f32 %v14709_v28, %v14618_v56  ;;  %v15567_v56 = vld [vmem:[#allocation25] sm:$0xf] }
0x10fb   :  { %v21027_v59 = vpop.f32.mrf.mxu0  ;;  %v15570_v23 = vsel %vm15568_vm6, %v15567_v56, 0 }
0x10fc   :  { %v15642_v59 = vand.u32 4294901760, %v15570_v23 }
0x1101   :  { %v14789_v31 = vpop.f32.mrf.mxu0 }
0x1102   :  { %v15024_v37 = vpop.f32.mrf.mxu1  ;;  %v14790_v62 = vadd.f32 %v14789_v31, %v14710_v47  ;;  %v15643_v31 = vsub.f32 %v15570_v23, %v15642_v59 }
0x1103   :  { %v21049_v20 = vpop.f32.mrf.mxu0 }
0x1104   :  { %v21082_v52 = vpop.f32.mrf.mxu1  ;;  %v14867_v57 = vadd.f32 %v14866_v55, %v14790_v62 }
0x110b   :  { %v14949_v35 = vpop.f32.mrf.mxu0 }
0x110c   :  { %v15197_v41 = vpop.f32.mrf.mxu1  ;;  %v14950_v2 = vadd.f32 %v14949_v35, %v14867_v57 }
0x110d   :  { %v21071_v46 = vpop.f32.mrf.mxu0 }
0x110e   :  { %v21104_v40 = vpop.f32.mrf.mxu1  ;;  %v15025_v25 = vadd.f32 %v15024_v37, %v14950_v2  ;;  %v15644_v37 = vand.u32 4294901760, %v15643_v31 }
0x1110   :  { %v15645_v20 = vsub.f32 %v15643_v31, %v15644_v37 }
0x1112   :  { %v15646_v46 = vand.u32 4294901760, %v15645_v20 }
0x1115   :  { %v15106_v44 = vpop.f32.mrf.mxu0 }
0x1116   :  { %v15354_v19 = vpop.f32.mrf.mxu1  ;;  %v15107_v4 = vadd.f32 %v15106_v44, %v15025_v25 }
0x1117   :  { %v21093_v6 = vpop.f32.mrf.mxu0 }
0x1118   :  { %v21126_v42 = vpop.f32.mrf.mxu1  ;;  %v15198_v22 = vadd.f32 %v15197_v41, %v15107_v4  ;;  %v16022_v6 = vld [vmem:[%s24758_s18] sm:$0xff] }
0x1119   :  { %v16066_v25 = vand.u32 4294901760, %v16022_v6 }
0x111f   :  { %v15277_v11 = vpop.f32.mrf.mxu0 }
0x1120   :  { %v15512_v7 = vpop.f32.mrf.mxu1  ;;  %v15278_v21 = vadd.f32 %v15277_v11, %v15198_v22  ;;  %v16148_v11 = vsub.f32 %v16022_v6, %v16066_v25  ;;  %v16947_v6 = vld [vmem:[%s24761_s21] sm:$0xf] }
0x1121   :  { %v21115_v63 = vpop.f32.mrf.mxu0 }
0x1122   :  { %v21148_v54 = vpop.f32.mrf.mxu1  ;;  %v15355_v48 = vadd.f32 %v15354_v19, %v15278_v21  ;;  %v16023_v19 = vld [vmem:[%s24758_s18 + $0x8] sm:$0xff]  ;;  %v16149_v22 = vand.u32 4294901760, %v16148_v11 }
0x1123   :  { %v16063_v2 = vand.u32 4294901760, %v16023_v19 }
0x1124   :  { %v16150_v54 = vsub.f32 %v16148_v11, %v16149_v22 }
0x1125   :  { %v16141_v42 = vsub.f32 %v16023_v19, %v16063_v2 }
0x1126   :  { %v16151_v21 = vand.u32 4294901760, %v16150_v54 }
0x1127   :  { %v16142_v4 = vand.u32 4294901760, %v16141_v42 }
0x1128   :  { %v15437_v24 = vpop.f32.mrf.mxu0 }
0x1129   :  { %v15438_v34 = vadd.f32 %v15437_v24, %v15355_v48 }
0x112a   :  { %v21137_v26 = vpop.f32.mrf.mxu0 }
0x112b   :  { %v15513_v12 = vadd.f32 %v15512_v7, %v15438_v34  ;;  %v16143_v7 = vsub.f32 %v16141_v42, %v16142_v4 }
0x112d   :  { %v15517_v15 = vsel %vm15516_vm5, %v15513_v12, 0.0  ;;  %v15525_v29 = vmul.f32 %v15513_v12, %v15513_v12  ;;  %v16144_v63 = vand.u32 4294901760, %v16143_v7 }
0x112e   :  { %v15518_v43 = vrot.slane %v15517_v15, 4 }
0x112f   :  { %v15526_v36 = vsel %vm15516_vm5, %v15525_v29, 0.0 }
0x1130   :  { %v15519_v60 = vadd.f32 %v15518_v43, %v15517_v15  ;;  %v15527_v9 = vrot.slane %v15526_v36, 4 }
0x1132   :  { %v15520_v5 = vrot.slane %v15519_v60, 2  ;;  %v15528_v17 = vadd.f32 %v15527_v9, %v15526_v36 }
0x1134   :  { %v15521_v53 = vadd.f32 %v15520_v5, %v15519_v60  ;;  %v15529_v51 = vrot.slane %v15528_v17, 2 }
0x1136   :  { %v15522_v27 = vrot.slane %v15521_v53, 1  ;;  %v15530_v0 = vadd.f32 %v15529_v51, %v15528_v17 }
0x1138   :  { %v15523_v1 = vadd.f32 %v15522_v27, %v15521_v53  ;;  %v15531_v61 = vrot.slane %v15530_v0, 1 }
0x113a   :  { %v15524_v45 = vmul.f32 0.25, %v15523_v1  ;;  %v15532_v14 = vadd.f32 %v15531_v61, %v15530_v0 }
0x113c   :  { %v15533_v38 = vmul.f32 0.25, %v15532_v14  ;;  %v15534_v49 = vmul.f32 %v15524_v45, %v15524_v45  ;;  %v15536_v18 = vsub.f32 %v15513_v12, %v15524_v45 }
0x113e   :  { %v15535_v10 = vsub.f32 %v15533_v38, %v15534_v49 }
0x1140   :  { %v15537_v39 = vadd.f32 1e-05, %v15535_v10  ;;  %v16494_v10 = vld [vmem:[%s24760_s20] sm:$0x3] }
0x1142   :  { %21398 = vrsqrt.f32 %v15537_v39 }
0x114f   :  { %v21399_v58 = vpop.eup %21398 }
0x1150   :  { %v15539_v30 = vmul.f32 %v21399_v58, %v15536_v18  ;;  %v16496_v58 = vsel %vm15568_vm6, %v16494_v10, 0 }
0x1152   :  { %v15547_v3 = vmul.f32 %v18364_v8, %v15539_v30  ;;  %v16567_v30 = vand.u32 4294901760, %v16496_v58 }
0x1154   :  { %v15555_v50 = vadd.f32 %v18365_v13, %v15547_v3  ;;  %v18367_v3 = vld [vmem:[#allocation26] ss:$0 sm:$0xff] }
0x1156   :  { %v18366_v33 = vmul.f32 -1.442695, %v15555_v50 }
0x1158   :  { %21400 = vpow2.f32 %v18366_v33 }
0x1165   :  { %v21401_v28 = vpop.eup %21400 }
0x1166   :  { %v15559_v16 = vadd.f32 1.0, %v21401_v28 }
0x1168   :  { %21402 = vrcp.f32 %v15559_v16  ;;  %v16568_v16 = vsub.f32 %v16496_v58, %v16567_v30 }
0x1175   :  { %v21403_v55 = vpop.eup %21402 }
0x1176   :  { %15563 = vrot.lane.b32.xlu1 %v21403_v55, %s21782_s6 }
0x11e8   :  { %v15564_v52 = vpop.permute.xlu1 %15563 }
0x11e9   :  { %v15566_v35 = vmul.f32 %v15564_v52, %v15555_v50 }
0x11eb   :  { %v15574_v41 = vsel %vm15572_vm7, %v15566_v35, 0 }
0x11ec   :  { %v15607_v40 = vand.u32 4294901760, %v15574_v41 }
0x11ee   :  { %v15684_v47 = vsub.f32 %v15574_v41, %v15607_v40  ;;  %21150 = vmatpush3.msra.mxu0 %v15607_v40 }
0x11ef   :  { %21152 = vmatmul.mubr.f32.vlgmr.msra.gmra.mxu0 %v15646_v46  ;;  %21159 = vmatprep.subr.mxu0 %v21783_v32 }
0x11f0   :  { %21160 = vmatpush3.msra.mxu0 %v15684_v47  ;;  %21161 = vmatprep.mubr.msk.f32.mxu0 %vm21784_vm4, %v21783_v32  ;;  %v15685_v62 = vand.u32 4294901760, %v15684_v47 }
0x11f1   :  { %21169 = vmatprep.subr.mxu0 %v21783_v32 }
0x11f2   :  { %v15686_v57 = vsub.f32 %v15684_v47, %v15685_v62 }
0x11f3   :  { %21162 = vmatmul.mubr.f32.vlgmr.msra.gmra.mxu0 %v15643_v31 }
0x11f4   :  { %21170 = vmatpush3.msra.mxu0 %v15685_v62  ;;  %v15687_v44 = vand.u32 4294901760, %v15686_v57  ;;  %21171 = vmatprep.mubr.msk.f32.mxu0 %vm21784_vm4, %v21783_v32 }
0x11f5   :  { %21179 = vmatprep.subr.mxu0 %v21783_v32 }
0x11f6   :  { %21155 = vmatpush3.msra.mxu1 %v15687_v44 }
0x11f7   :  { %21157 = vmatmul.mubr.f32.vlgmr.msra.gmra.mxu1 %v15642_v59  ;;  %21164 = vmatprep.subr.mxu1 %v21783_v32 }
0x11f8   :  { %21165 = vmatpush3.msra.mxu1 %v15607_v40  ;;  %21166 = vmatprep.mubr.msk.f32.mxu1 %vm21784_vm4, %v21783_v32 }
0x11f9   :  { %21174 = vmatprep.subr.mxu1 %v21783_v32  ;;  %21172 = vmatmul.mubr.f32.vlgmr.msra.gmra.mxu0 %v15642_v59 }
0x11fa   :  { %21183 = vmatprep.mubr.msk.f32.mxu0 %vm21784_vm4, %v21783_v32  ;;  %21180 = vmatpush3.msra.mxu0 %v16063_v2 }
0x11fb   :  { %21167 = vmatmul.mubr.f32.vlgmr.msra.gmra.mxu1 %v15644_v37  ;;  %21181 = vmatprep.subr.mxu0 %v21783_v32  ;;  %v16569_v37 = vand.u32 4294901760, %v16568_v16 }
0x11fc   :  { %21175 = vmatpush3.msra.mxu1 %v15607_v40  ;;  %21176 = vmatprep.mubr.msk.f32.mxu1 %vm21784_vm4, %v21783_v32 }
0x11fd   :  { %21186 = vmatprep.subr.mxu1 %v21783_v32  ;;  %21182 = vmatpush3.msra.mxu0 %v16066_v25  ;;  %v16570_v46 = vsub.f32 %v16568_v16, %v16569_v37 }
0x11fe   :  { %21193 = vmatprep.subr.mxu0 %v21783_v32 }
0x11ff   :  { %21177 = vmatmul.mubr.f32.vlgmr.msra.gmra.mxu1 %v15642_v59  ;;  %v16571_v57 = vand.u32 4294901760, %v16570_v46 }
0x1200   :  { %21190 = vmatprep.mubr.msk.f32.mxu1 %vm21784_vm4, %v21783_v32  ;;  %21187 = vmatpush3.msra.mxu1 %v16144_v63 }
0x1201   :  { %21188 = vmatprep.subr.mxu1 %v21783_v32 }
0x1202   :  { %21189 = vmatpush3.msra.mxu1 %v16151_v21 }
0x1203   :  { %21200 = vmatprep.subr.mxu1 %v21783_v32 }
0x12af   :  { %v15648_v48 = vpop.f32.mrf.mxu0 }
0x12b1   :  { %v21153_v24 = vpop.f32.mrf.mxu0 }
0x12b3   :  { %v15798_v34 = vpop.f32.mrf.mxu0 }
0x12b5   :  { %v21163_v26 = vpop.f32.mrf.mxu0 }
0x12b7   :  { %v15724_v12 = vpop.f32.mrf.mxu1 }
0x12b8   :  { %v15725_v15 = vadd.f32 %v15724_v12, %v15648_v48 }
0x12b9   :  { %v21158_v29 = vpop.f32.mrf.mxu1  ;;  %v15946_v43 = vpop.f32.mrf.mxu0 }
0x12ba   :  { %v15799_v36 = vadd.f32 %v15798_v34, %v15725_v15 }
0x12bb   :  { %v15872_v60 = vpop.f32.mrf.mxu1  ;;  %v21173_v9 = vpop.f32.mrf.mxu0 }
0x12bc   :  { %v15873_v5 = vadd.f32 %v15872_v60, %v15799_v36 }
0x12bd   :  { %v21168_v17 = vpop.f32.mrf.mxu1 }
0x12be   :  { %v15947_v53 = vadd.f32 %v15946_v43, %v15873_v5 }
0x12bf   :  { %v16018_v51 = vpop.f32.mrf.mxu1 }
0x12c0   :  { %v16019_v27 = vadd.f32 %v16018_v51, %v15947_v53  ;;  %v18369_v51 = vld [vmem:[%s24760_s20 + $0x2] sm:$0x3] }
0x12c1   :  { %v21178_v0 = vpop.f32.mrf.mxu1 }
0x12c2   :  { %v16032_v1 = vsel %vm6565_vm3, %v16019_v27, 0 }
0x12c3   :  { %v16101_v61 = vand.u32 4294901760, %v16032_v1 }
0x12c5   :  { %v16102_v45 = vsub.f32 %v16032_v1, %v16101_v61  ;;  %21191 = vmatmul.mubr.f32.vlgmr.msra.gmra.mxu1 %v16101_v61 }
0x12c6   :  { %21201 = vmatpush3.msra.mxu1 %v16063_v2  ;;  %21204 = vmatprep.mubr.msk.f32.mxu1 %vm21784_vm4, %v21783_v32 }
0x12c7   :  { %v16103_v14 = vand.u32 4294901760, %v16102_v45  ;;  %21202 = vmatprep.subr.mxu1 %v21783_v32 }
0x12c8   :  { %21203 = vmatpush3.msra.mxu1 %v16066_v25 }
0x12c9   :  { %v16104_v38 = vsub.f32 %v16102_v45, %v16103_v14  ;;  %21205 = vmatmul.mubr.f32.vlgmr.msra.gmra.mxu1 %v16103_v14  ;;  %21214 = vmatprep.subr.mxu1 %v21783_v32 }
0x12ca   :  { %21215 = vmatpush3.msra.mxu1 %v16063_v2  ;;  %21218 = vmatprep.mubr.msk.f32.mxu1 %vm21784_vm4, %v21783_v32 }
0x12cb   :  { %v16105_v49 = vand.u32 4294901760, %v16104_v38  ;;  %21216 = vmatprep.subr.mxu1 %v21783_v32 }
0x12cc   :  { %21217 = vmatpush3.msra.mxu1 %v16066_v25 }
0x12cd   :  { %21184 = vmatmul.mubr.f32.vlgmr.msra.gmra.mxu0 %v16105_v49  ;;  %21219 = vmatmul.mubr.f32.vlgmr.msra.gmra.mxu1 %v16101_v61 }
0x12ce   :  { %21194 = vmatpush3.msra.mxu0 %v16141_v42  ;;  %21197 = vmatprep.mubr.msk.f32.mxu0 %vm21784_vm4, %v21783_v32 }
0x12cf   :  { %21195 = vmatprep.subr.mxu0 %v21783_v32  ;;  %21226 = vmatprep.subr.mxu1 %v21783_v32 }
0x12d0   :  { %21196 = vmatpush3.msra.mxu0 %v16148_v11  ;;  %21228 = vmatprep.mubr.msk.f32.mxu1 %vm21784_vm4, %v21783_v32 }
0x12d1   :  { %21198 = vmatmul.mubr.f32.vlgmr.msra.gmra.mxu0 %v16102_v45  ;;  %21207 = vmatprep.subr.mxu0 %v21783_v32 }
0x12d2   :  { %21208 = vmatpush3.msra.mxu0 %v16142_v4  ;;  %21211 = vmatprep.mubr.msk.f32.mxu0 %vm21784_vm4, %v21783_v32  ;;  %v16952_v4 = vsel %vm15572_vm7, %v16947_v6, 0 }
0x12d3   :  { %21209 = vmatprep.subr.mxu0 %v21783_v32  ;;  %v16985_v11 = vand.u32 4294901760, %v16952_v4 }
0x12d4   :  { %21210 = vmatpush3.msra.mxu0 %v16149_v22 }
0x12d5   :  { %21212 = vmatmul.mubr.f32.vlgmr.msra.gmra.mxu0 %v16101_v61  ;;  %21221 = vmatprep.subr.mxu0 %v21783_v32  ;;  %v17062_v7 = vsub.f32 %v16952_v4, %v16985_v11  ;;  %v17410_v61 = vsel %vm15568_vm6, %v18369_v51, 0 }
0x12d6   :  { %21223 = vmatprep.mubr.msk.f32.mxu0 %vm21784_vm4, %v21783_v32  ;;  %v17478_v38 = vand.u32 4294901760, %v17410_v61 }
0x12d7   :  { %v17063_v22 = vand.u32 4294901760, %v17062_v7 }
0x12d9   :  { %v17064_v63 = vsub.f32 %v17062_v7, %v17063_v22 }
0x12db   :  { %v17065_v54 = vand.u32 4294901760, %v17064_v63 }
0x1385   :  { %v16188_v39 = vpop.f32.mrf.mxu1 }
0x1387   :  { %v21192_v18 = vpop.f32.mrf.mxu1 }
0x1389   :  { %v16339_v8 = vpop.f32.mrf.mxu1 }
0x138b   :  { %v21206_v13 = vpop.f32.mrf.mxu1 }
0x138c   :  { %v18370_v13 = vld [vmem:[%s24761_s21 + $0x4] sm:$0xf] }
0x138d   :  { %v16107_v50 = vpop.f32.mrf.mxu0  ;;  %v16489_v33 = vpop.f32.mrf.mxu1 }
0x138e   :  { %v16108_v28 = vadd.f32 %v18367_v3, %v16107_v50  ;;  %v17864_v3 = vsel %vm15572_vm7, %v18370_v13, 0 }
0x138f   :  { %v21185_v55 = vpop.f32.mrf.mxu0  ;;  %v21220_v56 = vpop.f32.mrf.mxu1  ;;  %v17897_v50 = vand.u32 4294901760, %v17864_v3 }
0x1390   :  { %v16189_v23 = vadd.f32 %v16188_v39, %v16108_v28  ;;  %v17479_v39 = vsub.f32 %v17410_v61, %v17478_v38 }
0x1391   :  { %v16264_v59 = vpop.f32.mrf.mxu0 }
0x1392   :  { %v16265_v31 = vadd.f32 %v16264_v59, %v16189_v23  ;;  %v17480_v58 = vand.u32 4294901760, %v17479_v39 }
0x1393   :  { %v21199_v20 = vpop.f32.mrf.mxu0 }
0x1394   :  { %v16340_v52 = vadd.f32 %v16339_v8, %v16265_v31  ;;  %v17481_v8 = vsub.f32 %v17479_v39, %v17480_v58 }
0x1395   :  { %v16416_v35 = vpop.f32.mrf.mxu0 }
0x1396   :  { %v16417_v41 = vadd.f32 %v16416_v35, %v16340_v52 }
0x1397   :  { %v21213_v40 = vpop.f32.mrf.mxu0 }
0x1398   :  { %v16490_v47 = vadd.f32 %v16489_v33, %v16417_v41  ;;  %v17974_v33 = vsub.f32 %v17864_v3, %v17897_v50 }
0x139a   :  { %v16499_v62 = vsel %vm15572_vm7, %v16490_v47, 0  ;;  %v17975_v28 = vand.u32 4294901760, %v17974_v33 }
0x139b   :  { %v24630_v44 = vand.u32 4294901760, %v16499_v62 }
0x139d   :  { %v24633_v19 = vsub.f32 %v16499_v62, %v24630_v44  ;;  %21222 = vmatpush3.msra.mxu0 %v24630_v44 }
0x139e   :  { %21224 = vmatmul.mubr.f32.vlgmr.msra.gmra.mxu0 %v16571_v57  ;;  %21231 = vmatprep.subr.mxu0 %v21783_v32 }
0x139f   :  { %21232 = vmatpush3.msra.mxu0 %v24633_v19  ;;  %21233 = vmatprep.mubr.msk.f32.mxu0 %vm21784_vm4, %v21783_v32  ;;  %v24641_v2 = vand.u32 4294901760, %v24633_v19 }
0x13a0   :  { %21241 = vmatprep.subr.mxu0 %v21783_v32 }
0x13a1   :  { %v16611_v42 = vsub.f32 %v24633_v19, %v24641_v2 }
0x13a2   :  { %21234 = vmatmul.mubr.f32.vlgmr.msra.gmra.mxu0 %v16568_v16  ;;  %v17976_v16 = vsub.f32 %v17974_v33, %v17975_v28 }
0x13a3   :  { %21242 = vmatpush3.msra.mxu0 %v24641_v2  ;;  %v24650_v25 = vand.u32 4294901760, %v16611_v42  ;;  %21243 = vmatprep.mubr.msk.f32.mxu0 %vm21784_vm4, %v21783_v32 }
0x13a4   :  { %21251 = vmatprep.subr.mxu0 %v21783_v32  ;;  %v17977_v55 = vand.u32 4294901760, %v17976_v16 }
0x13a5   :  { %21227 = vmatpush3.msra.mxu1 %v24650_v25 }
0x13a6   :  { %21229 = vmatmul.mubr.f32.vlgmr.msra.gmra.mxu1 %v16567_v30  ;;  %21236 = vmatprep.subr.mxu1 %v21783_v32 }
0x13a7   :  { %21237 = vmatpush3.msra.mxu1 %v24630_v44  ;;  %21238 = vmatprep.mubr.msk.f32.mxu1 %vm21784_vm4, %v21783_v32 }
0x13a8   :  { %21246 = vmatprep.subr.mxu1 %v21783_v32  ;;  %21244 = vmatmul.mubr.f32.vlgmr.msra.gmra.mxu0 %v16567_v30 }
0x13a9   :  { %21252 = vmatpush3.msra.mxu0 %v16985_v11  ;;  %21253 = vmatprep.mubr.msk.f32.mxu0 %vm21784_vm4, %v21783_v32 }
0x13aa   :  { %21239 = vmatmul.mubr.f32.vlgmr.msra.gmra.mxu1 %v16569_v37  ;;  %21261 = vmatprep.subr.mxu0 %v21783_v32 }
0x13ab   :  { %21247 = vmatpush3.msra.mxu1 %v24630_v44  ;;  %21248 = vmatprep.mubr.msk.f32.mxu1 %vm21784_vm4, %v21783_v32 }
0x13ac   :  { %21256 = vmatprep.subr.mxu1 %v21783_v32 }
0x13ae   :  { %21249 = vmatmul.mubr.f32.vlgmr.msra.gmra.mxu1 %v16567_v30  ;;  %v17482_v30 = vand.u32 4294901760, %v17481_v8 }
0x13af   :  { %21258 = vmatprep.mubr.msk.f32.mxu1 %vm21784_vm4, %v21783_v32  ;;  %21257 = vmatpush3.msra.mxu1 %v17065_v54 }
0x13b0   :  { %21266 = vmatprep.subr.mxu1 %v21783_v32 }
0x145e   :  { %v16573_v21 = vpop.f32.mrf.mxu0 }
0x1460   :  { %v21225_v48 = vpop.f32.mrf.mxu0 }
0x1462   :  { %v16723_v24 = vpop.f32.mrf.mxu0 }
0x1464   :  { %v21235_v34 = vpop.f32.mrf.mxu0 }
0x1466   :  { %v16649_v26 = vpop.f32.mrf.mxu1 }
0x1467   :  { %v16650_v12 = vadd.f32 %v16649_v26, %v16573_v21 }
0x1468   :  { %v21230_v15 = vpop.f32.mrf.mxu1  ;;  %v16871_v29 = vpop.f32.mrf.mxu0 }
0x1469   :  { %v16724_v43 = vadd.f32 %v16723_v24, %v16650_v12 }
0x146a   :  { %v16797_v36 = vpop.f32.mrf.mxu1  ;;  %v21245_v60 = vpop.f32.mrf.mxu0 }
0x146b   :  { %v16798_v9 = vadd.f32 %v16797_v36, %v16724_v43 }
0x146c   :  { %v21240_v5 = vpop.f32.mrf.mxu1 }
0x146d   :  { %v16872_v17 = vadd.f32 %v16871_v29, %v16798_v9 }
0x146e   :  { %v16943_v53 = vpop.f32.mrf.mxu1 }
0x146f   :  { %v16944_v27 = vadd.f32 %v16943_v53, %v16872_v17 }
0x1470   :  { %v21250_v0 = vpop.f32.mrf.mxu1 }
0x1471   :  { %v16949_v1 = vsel %vm15568_vm6, %v16944_v27, 0 }
0x1472   :  { %v17020_v45 = vand.u32 4294901760, %v16949_v1 }
0x1474   :  { %v17021_v14 = vsub.f32 %v16949_v1, %v17020_v45  ;;  %21259 = vmatmul.mubr.f32.vlgmr.msra.gmra.mxu1 %v17020_v45 }
0x1475   :  { %21267 = vmatpush3.msra.mxu1 %v16985_v11  ;;  %21268 = vmatprep.mubr.msk.f32.mxu1 %vm21784_vm4, %v21783_v32 }
0x1476   :  { %v17022_v49 = vand.u32 4294901760, %v17021_v14  ;;  %21276 = vmatprep.subr.mxu1 %v21783_v32 }
0x1478   :  { %v17023_v10 = vsub.f32 %v17021_v14, %v17022_v49  ;;  %21269 = vmatmul.mubr.f32.vlgmr.msra.gmra.mxu1 %v17022_v49 }
0x1479   :  { %21277 = vmatpush3.msra.mxu1 %v16985_v11  ;;  %21278 = vmatprep.mubr.msk.f32.mxu1 %vm21784_vm4, %v21783_v32 }
0x147a   :  { %v17024_v18 = vand.u32 4294901760, %v17023_v10  ;;  %21286 = vmatprep.subr.mxu1 %v21783_v32 }
0x147c   :  { %21254 = vmatmul.mubr.f32.vlgmr.msra.gmra.mxu0 %v17024_v18  ;;  %21279 = vmatmul.mubr.f32.vlgmr.msra.gmra.mxu1 %v17020_v45 }
0x147d   :  { %21287 = vmatpush3.msra.mxu1 %v24650_v25  ;;  %21262 = vmatpush3.msra.mxu0 %v17062_v7 }
0x147e   :  { %21263 = vmatprep.mubr.msk.f32.mxu0 %vm21784_vm4, %v21783_v32  ;;  %21288 = vmatprep.mubr.msk.f32.mxu1 %vm21784_vm4, %v21783_v32 }
0x147f   :  { %21296 = vmatprep.subr.mxu1 %v21783_v32  ;;  %21271 = vmatprep.subr.mxu0 %v21783_v32 }
0x1480   :  { %21264 = vmatmul.mubr.f32.vlgmr.msra.gmra.mxu0 %v17021_v14  ;;  %21289 = vmatmul.mubr.f32.vlgmr.msra.gmra.mxu1 %v17478_v38 }
0x1481   :  { %21297 = vmatpush3.msra.mxu1 %v24630_v44  ;;  %21272 = vmatpush3.msra.mxu0 %v17063_v22 }
0x1482   :  { %21273 = vmatprep.mubr.msk.f32.mxu0 %vm21784_vm4, %v21783_v32  ;;  %21281 = vmatprep.subr.mxu0 %v21783_v32 }
0x1483   :  { %21298 = vmatprep.mubr.msk.f32.mxu1 %vm21784_vm4, %v21783_v32  ;;  %21306 = vmatprep.subr.mxu1 %v21783_v32 }
0x1484   :  { %21274 = vmatmul.mubr.f32.vlgmr.msra.gmra.mxu0 %v17020_v45  ;;  %21299 = vmatmul.mubr.f32.vlgmr.msra.gmra.mxu1 %v17480_v58  ;;  %v18368_v58 = vld [vmem:[%s24762_s22] ss:$0 sm:$0xff] }
0x1485   :  { %21282 = vmatpush3.msra.mxu0 %v24630_v44  ;;  %21307 = vmatpush3.msra.mxu1 %v24630_v44 }
0x1486   :  { %21283 = vmatprep.mubr.msk.f32.mxu0 %vm21784_vm4, %v21783_v32  ;;  %21291 = vmatprep.subr.mxu0 %v21783_v32 }
0x1487   :  { %21308 = vmatprep.mubr.msk.f32.mxu1 %vm21784_vm4, %v21783_v32  ;;  %21316 = vmatprep.subr.mxu1 %v21783_v32 }
0x1488   :  { %21284 = vmatmul.mubr.f32.vlgmr.msra.gmra.mxu0 %v17482_v30  ;;  %21309 = vmatmul.mubr.f32.vlgmr.msra.gmra.mxu1 %v17478_v38 }
0x1489   :  { %21292 = vmatpush3.msra.mxu0 %v24633_v19  ;;  %21293 = vmatprep.mubr.msk.f32.mxu0 %vm21784_vm4, %v21783_v32 }
0x148a   :  { %21301 = vmatprep.subr.mxu0 %v21783_v32  ;;  %21318 = vmatprep.mubr.msk.f32.mxu1 %vm21784_vm4, %v21783_v32 }
0x148b   :  { %21317 = vmatpush3.msra.mxu1 %v17977_v55 }
0x148c   :  { %21294 = vmatmul.mubr.f32.vlgmr.msra.gmra.mxu0 %v17479_v39  ;;  %21326 = vmatprep.subr.mxu1 %v21783_v32 }
0x148d   :  { %21302 = vmatpush3.msra.mxu0 %v24641_v2  ;;  %21303 = vmatprep.mubr.msk.f32.mxu0 %vm21784_vm4, %v21783_v32 }
0x148e   :  { %21311 = vmatprep.subr.mxu0 %v21783_v32 }
0x1490   :  { %21304 = vmatmul.mubr.f32.vlgmr.msra.gmra.mxu0 %v17478_v38 }
0x1491   :  { %21312 = vmatpush3.msra.mxu0 %v17897_v50  ;;  %21313 = vmatprep.mubr.msk.f32.mxu0 %vm21784_vm4, %v21783_v32 }
0x1492   :  { %21321 = vmatprep.subr.mxu0 %v21783_v32 }
0x1534   :  { %v17102_v56 = vpop.f32.mrf.mxu1 }
0x1536   :  { %v21260_v23 = vpop.f32.mrf.mxu1 }
0x1538   :  { %v17250_v59 = vpop.f32.mrf.mxu1 }
0x153a   :  { %v21270_v31 = vpop.f32.mrf.mxu1 }
0x153c   :  { %v17026_v37 = vpop.f32.mrf.mxu0  ;;  %v17396_v20 = vpop.f32.mrf.mxu1 }
0x153d   :  { %v17103_v52 = vadd.f32 %v17102_v56, %v17026_v37 }
0x153e   :  { %v21255_v35 = vpop.f32.mrf.mxu0  ;;  %v21280_v41 = vpop.f32.mrf.mxu1 }
0x1540   :  { %v17176_v46 = vpop.f32.mrf.mxu0  ;;  %v17560_v40 = vpop.f32.mrf.mxu1 }
0x1541   :  { %v17177_v47 = vadd.f32 %v17176_v46, %v17103_v52 }
0x1542   :  { %v21265_v62 = vpop.f32.mrf.mxu0  ;;  %v21290_v57 = vpop.f32.mrf.mxu1 }
0x1543   :  { %v17251_v44 = vadd.f32 %v17250_v59, %v17177_v47 }
0x1544   :  { %v17324_v19 = vpop.f32.mrf.mxu0  ;;  %v17708_v2 = vpop.f32.mrf.mxu1 }
0x1545   :  { %v17325_v6 = vadd.f32 %v17324_v19, %v17251_v44 }
0x1546   :  { %v21275_v42 = vpop.f32.mrf.mxu0  ;;  %v21300_v25 = vpop.f32.mrf.mxu1 }
0x1547   :  { %v17397_v4 = vadd.f32 %v17396_v20, %v17325_v6 }
0x1548   :  { %v17484_v11 = vpop.f32.mrf.mxu0  ;;  %v17854_v7 = vpop.f32.mrf.mxu1 }
0x1549   :  { %v17561_v54 = vadd.f32 %v17560_v40, %v17484_v11  ;;  %v17406_v13 = vadd.f32 %v18368_v58, %v17397_v4 }
0x154a   :  { %v21285_v22 = vpop.f32.mrf.mxu0  ;;  %v21310_v63 = vpop.f32.mrf.mxu1 }
0x154c   :  { %v17634_v21 = vpop.f32.mrf.mxu0 }
0x154d   :  { %v17635_v48 = vadd.f32 %v17634_v21, %v17561_v54 }
0x154e   :  { %v21295_v24 = vpop.f32.mrf.mxu0 }
0x154f   :  { %v17709_v34 = vadd.f32 %v17708_v2, %v17635_v48 }
0x1550   :  { %v17782_v26 = vpop.f32.mrf.mxu0 }
0x1551   :  { %v17783_v12 = vadd.f32 %v17782_v26, %v17709_v34 }
0x1552   :  { %v21305_v15 = vpop.f32.mrf.mxu0 }
0x1553   :  { %v17855_v29 = vadd.f32 %v17854_v7, %v17783_v12 }
0x1555   :  { %v17861_v43 = vsel %vm15568_vm6, %v17855_v29, 0 }
0x1556   :  { %v17932_v36 = vand.u32 4294901760, %v17861_v43 }
0x1558   :  { %v17933_v60 = vsub.f32 %v17861_v43, %v17932_v36  ;;  %21319 = vmatmul.mubr.f32.vlgmr.msra.gmra.mxu1 %v17932_v36 }
0x1559   :  { %21327 = vmatpush3.msra.mxu1 %v17897_v50  ;;  %21328 = vmatprep.mubr.msk.f32.mxu1 %vm21784_vm4, %v21783_v32 }
0x155a   :  { %v17934_v9 = vand.u32 4294901760, %v17933_v60  ;;  %21336 = vmatprep.subr.mxu1 %v21783_v32 }
0x155c   :  { %v17935_v5 = vsub.f32 %v17933_v60, %v17934_v9  ;;  %21329 = vmatmul.mubr.f32.vlgmr.msra.gmra.mxu1 %v17934_v9 }
0x155d   :  { %21337 = vmatpush3.msra.mxu1 %v17897_v50  ;;  %21338 = vmatprep.mubr.msk.f32.mxu1 %vm21784_vm4, %v21783_v32 }
0x155e   :  { %v17936_v17 = vand.u32 4294901760, %v17935_v5 }
0x1560   :  { %21314 = vmatmul.mubr.f32.vlgmr.msra.gmra.mxu0 %v17936_v17  ;;  %21339 = vmatmul.mubr.f32.vlgmr.msra.gmra.mxu1 %v17932_v36 }
0x1561   :  { %21322 = vmatpush3.msra.mxu0 %v17974_v33  ;;  %21323 = vmatprep.mubr.msk.f32.mxu0 %vm21784_vm4, %v21783_v32 }
0x1562   :  { %21331 = vmatprep.subr.mxu0 %v21783_v32 }
0x1564   :  { %21324 = vmatmul.mubr.f32.vlgmr.msra.gmra.mxu0 %v17933_v60 }
0x1565   :  { %21332 = vmatpush3.msra.mxu0 %v17975_v28  ;;  %21333 = vmatprep.mubr.msk.f32.mxu0 %vm21784_vm4, %v21783_v32 }
0x1568   :  { %21334 = vmatmul.mubr.f32.vlgmr.msra.gmra.mxu0 %v17932_v36 }
0x1618   :  { %v18014_v53 = vpop.f32.mrf.mxu1 }
0x161a   :  { %v21320_v51 = vpop.f32.mrf.mxu1 }
0x161c   :  { %v18162_v27 = vpop.f32.mrf.mxu1 }
0x161e   :  { %v21330_v0 = vpop.f32.mrf.mxu1 }
0x1620   :  { %v17938_v1 = vpop.f32.mrf.mxu0  ;;  %v18308_v61 = vpop.f32.mrf.mxu1 }
0x1621   :  { %v18015_v38 = vadd.f32 %v18014_v53, %v17938_v1 }
0x1622   :  { %v21315_v45 = vpop.f32.mrf.mxu0  ;;  %v21340_v14 = vpop.f32.mrf.mxu1 }
0x1624   :  { %v18088_v49 = vpop.f32.mrf.mxu0 }
0x1625   :  { %v18089_v10 = vadd.f32 %v18088_v49, %v18015_v38 }
0x1626   :  { %v21325_v39 = vpop.f32.mrf.mxu0 }
0x1627   :  { %v18163_v18 = vadd.f32 %v18162_v27, %v18089_v10 }
0x1628   :  { %v18236_v8 = vpop.f32.mrf.mxu0 }
0x1629   :  { %v18237_v32 = vadd.f32 %v18236_v8, %v18163_v18 }
0x162a   :  { %v21335_v30 = vpop.f32.mrf.mxu0 }
0x162b   :  { %v18309_v3 = vadd.f32 %v18308_v61, %v18237_v32 }
0x162d   :  { %v18312_v50 = vadd.f32 %v18309_v3, %v17406_v13 }
0x162f   :  { %18314 = vst.msk [vmem:[#allocation28] sm:$0x3] %vm18313_vm8, %v18312_v50 }
0x1630   :  { %21735 = shalt.err (!%p21732_p0)
}
0x1631   :  { %s24956_s16 = sld [smem:[#allocation76_spill]] }
0x1637   :  { %18324 = dma.vmem_to_hbm [thread:$0]  %s18322_s24, 32, %s24956_s16, [#allocation4]  }
0x1638   :  { %21762 = dma.done.wait [#allocation4], 32  }
0x1639   :  { %21763 = vsyncadd [#allocation4], 4294967264 }
0x163a   :  { %18328 = vsyncpa [#allocation3], 1 }
0x163b   :  { %18329 = vsyncpa [#allocation6], 1 }
0x163c   :  { %18330 = vsyncpa [#allocation9], 1 }
0x163d   :  { %18331 = vsyncpa [#allocation12], 1 }
0x163e   :  { %18332 = vsyncpa [#allocation15], 1 }
0x163f   :  { %18333 = vsyncpa [#allocation18], 1 }
0x1640   :  { %18334 = vsyncpa [#allocation21], 1 }
0x1641   :  { %18335 = vsyncpa [#allocation24], 1 }
0x1642   :  { %18336 = vsyncpa [#allocation27], 1 }
0x1643   :  { %18337 = vsyncpa [#allocation4], 1 }

</bundles_post_ra>
